<compile_context>
chip_gen: v7x
topology: tpu7x:2x2x1
jax: 0.10.0
libtpu: 0.0.40
codegen_flags: <defaults>
</compile_context>

<pallas_src>
import jax
import jax.numpy as jnp
from jax.experimental import pallas as pl
from jax.experimental.pallas import tpu as pltpu


# ---------------------------------------------------------------------------
# Fused kernel.  Grid = (batch tiles [parallel], point chunks [arbitrary]).
# ---------------------------------------------------------------------------
def _stn3d_kernel(x_ref,             # (bt, Nc, 8)    bf16 (xyz + zero channels)
                  w1_ref, b1_ref,    # (8, 64)   bf16, (1, 64)   f32
                  w2_ref, b2_ref,    # (64, 128) bf16, (1, 128)  f32
                  w3_ref, b3_ref,    # (128,1024)bf16, (1, 1024) f32
                  wf1_ref, bf1_ref,  # (1024,512)bf16, (1, 512)  f32
                  wf2_ref, bf2_ref,  # (512, 256)bf16, (1, 256)  f32
                  wf3_ref, bf3_ref,  # (256, 128)f32,  (1, 128)  f32 (identity folded)
                  out_ref,           # (bt, 128) f32  (lane-dense; cols 0..8 valid)
                  acc_ref):          # (bt, 1024) f32 scratch: running max of raw conv3
    j = pl.program_id(1)
    n_chunks = pl.num_programs(1)
    bt, nc, _ = x_ref.shape

    # Reset the running-max accumulator at the start of each batch tile.
    @pl.when(j == 0)
    def _():
        acc_ref[...] = jnp.full(acc_ref.shape, -jnp.inf, jnp.float32)

    rows = x_ref[...].reshape(bt * nc, 8)          # layout-preserving leading-dim merge

    # conv1 (3->64, K zero-padded to 8) + folded bn1 + relu   (MXU, f32 accumulation)
    h = jnp.dot(rows, w1_ref[...], preferred_element_type=jnp.float32) + b1_ref[...]
    h = jnp.maximum(h, 0.0).astype(jnp.bfloat16)

    # conv2 (64->128) + folded bn2 + relu                     (MXU, f32 accumulation)
    h = jnp.dot(h, w2_ref[...], preferred_element_type=jnp.float32) + b2_ref[...]
    h = jnp.maximum(h, 0.0).astype(jnp.bfloat16)

    # conv3 (128->1024), RAW: bias + relu are deferred past the max-pool
    # (exact: bias constant over points, relu monotone => relu(max(z)+b)=max(relu(z+b))).
    z = jnp.dot(h, w3_ref[...], preferred_element_type=jnp.float32)   # (bt*nc, 1024)

    # running per-point-cloud max over this chunk of points
    acc_ref[...] = jnp.maximum(acc_ref[...],
                               jnp.max(z.reshape(bt, nc, 1024), axis=1))

    # FC head as an epilogue on the pooled features, once per batch tile.
    @pl.when(j == n_chunks - 1)
    def _():
        g = jnp.maximum(acc_ref[...] + b3_ref[...], 0.0)              # bn3 bias + relu
        f = jnp.dot(g.astype(jnp.bfloat16), wf1_ref[...],
                    preferred_element_type=jnp.float32) + bf1_ref[...]
        f = jnp.maximum(f, 0.0)
        f = jnp.dot(f.astype(jnp.bfloat16), wf2_ref[...],
                    preferred_element_type=jnp.float32) + bf2_ref[...]
        f = jnp.maximum(f, 0.0)
        out_ref[...] = jnp.dot(f, wf3_ref[...],
                               preferred_element_type=jnp.float32) + bf3_ref[...]


# ---------------------------------------------------------------------------
# Tiling plan / helpers
# ---------------------------------------------------------------------------
def _round_up(v, m):
    return ((v + m - 1) // m) * m


def _const_spec(arr):
    """Grid-invariant full-array BlockSpec (fetched once, VMEM-resident)."""
    zeros = (0,) * arr.ndim
    return pl.BlockSpec(arr.shape, lambda *_: zeros)


def _vmem_capacity_bytes():
    try:
        info = pltpu.get_tpu_info()
        cap = getattr(info, "vmem_capacity_bytes", None)
        if cap:
            return int(cap)
    except Exception:
        pass
    return 64 * 1024 * 1024        # conservative default (v7x per-core VMEM)


def _plan(B, N):
    """Generation-aware tile plan -> (bt, nc, B_pad, N_pad, vmem_limit)."""
    phys = _vmem_capacity_bytes()
    vmem_limit = (phys * 3) // 4                         # 48 MiB v7x, 96 MiB v5e/v6e
    act_budget = max(8 * 1024 * 1024, vmem_limit - 8 * 1024 * 1024)
    bytes_per_point = 8 * 1024      # conv3 f32 chunk + conv1/2 acts + padded x (w/ slack)
    pts_per_step = max(1024, act_budget // bytes_per_point)

    B8 = _round_up(B, 8)
    if B8 >= 16:
        bt = max(8, (B8 // 2) // 8 * 8)   # keep >= 2 parallel grid steps (v7x: 2 TCs)
    else:
        bt = B8
    bt = min(bt, 64)

    nc = max(128, (pts_per_step // bt) // 128 * 128)     # chunk of points, mult of 128
    nc = min(nc, _round_up(N, 128))
    B_pad = _round_up(B, bt)
    N_pad = _round_up(N, nc)
    return bt, nc, B_pad, N_pad, int(vmem_limit)


# ---------------------------------------------------------------------------
# Forward wrapper
# ---------------------------------------------------------------------------
@jax.jit
def stn3d_forward(x_ncw, params):
    """x_ncw: (B, 3, N) float32 (PyTorch NCW layout).  Returns (B, 3, 3)."""
    B, C, N = x_ncw.shape
    assert C == 3
    (w1, b1, w2, b2, w3, b3, wf1, bf1, wf2, bf2, wf3, bf3) = params

    bt, nc, B_pad, N_pad, vmem_limit = _plan(B, N)

    # --- parameter prep (tiny host-side XLA ops) ----------------------------
    w1p = jnp.pad(w1, ((0, 5), (0, 0))).astype(jnp.bfloat16)       # (8, 64), K padded
    w2c = w2.astype(jnp.bfloat16)
    w3c = w3.astype(jnp.bfloat16)
    wf1c = wf1.astype(jnp.bfloat16)
    wf2c = wf2.astype(jnp.bfloat16)
    iden = jnp.array([1, 0, 0, 0, 1, 0, 0, 0, 1], jnp.float32)[None, :]
    wf3p = jnp.pad(wf3, ((0, 0), (0, 128 - 9)))                    # (256, 128) lane-dense
    bf3p = jnp.pad(bf3 + iden, ((0, 0), (0, 128 - 9)))             # identity folded in

    # --- input prep: NCW -> lane-dense (B_pad, N_pad, 8) bf16 ----------------
    x = jnp.transpose(x_ncw, (0, 2, 1))                            # (B, N, 3)
    x = jnp.pad(x, ((0, 0), (0, 0), (0, 5)))                       # channels 3..7 = 0
    if B_pad != B:
        x = jnp.pad(x, ((0, B_pad - B), (0, 0), (0, 0)))           # junk rows, sliced off
    if N_pad != N:
        # edge-replicate the last point so padded points never change the max-pool
        x = jnp.pad(x, ((0, 0), (0, N_pad - N), (0, 0)), mode="edge")
    x = x.astype(jnp.bfloat16)

    out = pl.pallas_call(
        _stn3d_kernel,
        out_shape=jax.ShapeDtypeStruct((B_pad, 128), jnp.float32),
        grid_spec=pltpu.PrefetchScalarGridSpec(
            num_scalar_prefetch=0,
            grid=(B_pad // bt, N_pad // nc),
            in_specs=[
                pl.BlockSpec((bt, nc, 8), lambda b, j: (b, j, 0)),
                _const_spec(w1p), _const_spec(b1),
                _const_spec(w2c), _const_spec(b2),
                _const_spec(w3c), _const_spec(b3),
                _const_spec(wf1c), _const_spec(bf1),
                _const_spec(wf2c), _const_spec(bf2),
                _const_spec(wf3p), _const_spec(bf3p),
            ],
            out_specs=pl.BlockSpec((bt, 128), lambda b, j: (b, 0)),
            scratch_shapes=[pltpu.VMEM((bt, 1024), jnp.float32)],
        ),
        compiler_params=pltpu.CompilerParams(
            dimension_semantics=("parallel", "arbitrary"),
            vmem_limit_bytes=vmem_limit,
        ),
    )(x, w1p, b1, w2c, b2, w3c, b3, wf1c, bf1, wf2c, bf2, wf3p, bf3p)

    return out[:B, :9].reshape(B, 3, 3)


# ---------------------------------------------------------------------------
# Parameters / reference
# ---------------------------------------------------------------------------
def _fold_bn(w, b, gamma, beta, mean, var, eps=1e-5):
    """Fold inference-mode BatchNorm into a (Cin, Cout) weight + (1, Cout) bias."""
    scale = gamma / jnp.sqrt(var + eps)          # (Cout,)
    w_eff = w * scale[None, :]                   # (Cin, Cout)
    b_eff = (b - mean) * scale + beta            # (Cout,)
    return w_eff, b_eff[None, :]


def make_params(key):
    """Deterministic synthetic parameters (shapes match STN3d.__init__)."""
    dims = [(3, 64), (64, 128), (128, 1024), (1024, 512), (512, 256), (256, 9)]
    keys = jax.random.split(key, 4 * len(dims))
    params = []
    ki = 0
    for i, (cin, cout) in enumerate(dims):
        w = jax.random.normal(keys[ki], (cin, cout), jnp.float32) * 0.05; ki += 1
        b = jax.random.normal(keys[ki], (cout,), jnp.float32) * 0.05; ki += 1
        if i < 5:  # layers followed by a BatchNorm (bn1..bn5)
            gamma = 1.0 + 0.1 * jax.random.normal(keys[ki], (cout,), jnp.float32); ki += 1
            beta = 0.1 * jax.random.normal(keys[ki], (cout,), jnp.float32); ki += 1
            mean = jnp.zeros((cout,), jnp.float32)
            var = jnp.ones((cout,), jnp.float32)
            w, b2d = _fold_bn(w, b, gamma, beta, mean, var)
            params.extend([w, b2d])
        else:
            ki += 2
            params.extend([w, b[None, :]])
    return tuple(params)


def _reference_forward(x_ncw, params):
    """Plain-JAX f32 reference (same folded-BN inference semantics)."""
    (w1, b1, w2, b2, w3, b3, wf1, bf1, wf2, bf2, wf3, bf3) = params
    x = jnp.transpose(x_ncw, (0, 2, 1))                      # (B, N, 3)
    h = jax.nn.relu(x @ w1 + b1)
    h = jax.nn.relu(h @ w2 + b2)
    h = jax.nn.relu(h @ w3 + b3)
    g = jnp.max(h, axis=1)                                   # (B, 1024)
    f = jax.nn.relu(g @ wf1 + bf1)
    f = jax.nn.relu(f @ wf2 + bf2)
    o = f @ wf3 + bf3
    iden = jnp.array([1, 0, 0, 0, 1, 0, 0, 0, 1], jnp.float32)[None, :]
    return (o + iden).reshape(-1, 3, 3)


if __name__ == "__main__":
    key = jax.random.PRNGKey(0)
    k_x, k_p = jax.random.split(key)

    B, N = 12, 128
    x = jax.random.normal(k_x, (B, 3, N), jnp.float32)   # PyTorch NCW input layout
    params = make_params(k_p)

    out = stn3d_forward(x, params)
    out = jax.block_until_ready(out)

    ref = _reference_forward(x, params)
    assert out.shape == (B, 3, 3)
    # bf16 MXU matmuls with f32 accumulation vs pure-f32 reference -> relaxed tol.
    assert jnp.allclose(out, ref, atol=3e-2, rtol=3e-2), "mismatch vs f32 reference"

    print("KERNEL_OK")
</pallas_src>

<mosaic_0001>
module attributes {stable_mosaic.version = 11 : i64} {
  func.func @_stn3d_kernel(%arg0: i32, %arg1: i32, %arg2: memref<8x128x8xbf16, #tpu.memory_space<vmem>>, %arg3: memref<8x64xbf16, #tpu.memory_space<vmem>>, %arg4: memref<1x64xf32, #tpu.memory_space<vmem>>, %arg5: memref<64x128xbf16, #tpu.memory_space<vmem>>, %arg6: memref<1x128xf32, #tpu.memory_space<vmem>>, %arg7: memref<128x1024xbf16, #tpu.memory_space<vmem>>, %arg8: memref<1x1024xf32, #tpu.memory_space<vmem>>, %arg9: memref<1024x512xbf16, #tpu.memory_space<vmem>>, %arg10: memref<1x512xf32, #tpu.memory_space<vmem>>, %arg11: memref<512x256xbf16, #tpu.memory_space<vmem>>, %arg12: memref<1x256xf32, #tpu.memory_space<vmem>>, %arg13: memref<256x128xf32, #tpu.memory_space<vmem>>, %arg14: memref<1x128xf32, #tpu.memory_space<vmem>>, %arg15: memref<8x128xf32, #tpu.memory_space<vmem>>, %arg16: memref<8x1024xf32, #tpu.memory_space<vmem>>) attributes {dimension_semantics = [#tpu.dimension_semantics<parallel>, #tpu.dimension_semantics<arbitrary>], iteration_bounds = array<i64: 2, 1>, scalar_prefetch = 0 : i64, scratch_operands = 1 : i64, tpu.core_type = #tpu.core_type<tc>, window_params = [{transform_indices = @transform_0, window_bounds = array<i64: 8, 128, 8>}, {pipeline_mode = #tpu.pipeline_mode<synchronous>, transform_indices = @transform_1, window_bounds = array<i64: 8, 64>}, {pipeline_mode = #tpu.pipeline_mode<synchronous>, transform_indices = @transform_2, window_bounds = array<i64: 1, 64>}, {pipeline_mode = #tpu.pipeline_mode<synchronous>, transform_indices = @transform_3, window_bounds = array<i64: 64, 128>}, {pipeline_mode = #tpu.pipeline_mode<synchronous>, transform_indices = @transform_4, window_bounds = array<i64: 1, 128>}, {pipeline_mode = #tpu.pipeline_mode<synchronous>, transform_indices = @transform_5, window_bounds = array<i64: 128, 1024>}, {pipeline_mode = #tpu.pipeline_mode<synchronous>, transform_indices = @transform_6, window_bounds = array<i64: 1, 1024>}, {pipeline_mode = #tpu.pipeline_mode<synchronous>, transform_indices = @transform_7, window_bounds = array<i64: 1024, 512>}, {pipeline_mode = #tpu.pipeline_mode<synchronous>, transform_indices = @transform_8, window_bounds = array<i64: 1, 512>}, {pipeline_mode = #tpu.pipeline_mode<synchronous>, transform_indices = @transform_9, window_bounds = array<i64: 512, 256>}, {pipeline_mode = #tpu.pipeline_mode<synchronous>, transform_indices = @transform_10, window_bounds = array<i64: 1, 256>}, {pipeline_mode = #tpu.pipeline_mode<synchronous>, transform_indices = @transform_11, window_bounds = array<i64: 256, 128>}, {pipeline_mode = #tpu.pipeline_mode<synchronous>, transform_indices = @transform_12, window_bounds = array<i64: 1, 128>}, {transform_indices = @transform_13, window_bounds = array<i64: 8, 128>}]} {
    %c0_i32 = arith.constant 0 : i32
    %0 = arith.cmpi eq, %arg1, %c0_i32 : i32
    %1 = arith.extui %0 : i1 to i32
    %c0_i32_0 = arith.constant 0 : i32
    %2 = arith.cmpi ne, %1, %c0_i32_0 : i32
    scf.if %2 {
      %cst_24 = arith.constant 0xFF800000 : f32
      %31 = vector.broadcast %cst_24 : f32 to vector<8x1024xf32>
      %c0_25 = arith.constant 0 : index
      %c0_26 = arith.constant 0 : index
      %32 = vector.load %arg16[%c0_25, %c0_26] : memref<8x1024xf32, #tpu.memory_space<vmem>>, vector<8x1024xf32>
      tpu.vector_store %arg16[%c0_25, %c0_26], %31 {strides = array<i32>} : memref<8x1024xf32, #tpu.memory_space<vmem>>, vector<8x1024xf32>,
    } else {
    }
    %c0 = arith.constant 0 : index
    %c0_1 = arith.constant 0 : index
    %c0_2 = arith.constant 0 : index
    %3 = vector.load %arg2[%c0, %c0_1, %c0_2] : memref<8x128x8xbf16, #tpu.memory_space<vmem>>, vector<8x128x8xbf16>
    %4 = vector.shape_cast %3 : vector<8x128x8xbf16> to vector<1024x8xbf16>
    %c0_3 = arith.constant 0 : index
    %c0_4 = arith.constant 0 : index
    %5 = vector.load %arg3[%c0_3, %c0_4] : memref<8x64xbf16, #tpu.memory_space<vmem>>, vector<8x64xbf16>
    %cst = arith.constant dense<0.000000e+00> : vector<1024x64xf32>
    %6 = tpu.matmul %4, %5, %cst {dimension_numbers = #tpu.dot_dimension_numbers<[1], [0], [0], [1], [0, 0, 1, 1], [], []>} : vector<1024x8xbf16>, vector<8x64xbf16>, vector<1024x64xf32> -> vector<1024x64xf32>
    %c0_5 = arith.constant 0 : index
    %c0_6 = arith.constant 0 : index
    %7 = vector.load %arg4[%c0_5, %c0_6] : memref<1x64xf32, #tpu.memory_space<vmem>>, vector<1x64xf32>
    %8 = vector.broadcast %7 : vector<1x64xf32> to vector<1024x64xf32>
    %9 = arith.addf %6, %8 : vector<1024x64xf32>
    %cst_7 = arith.constant 0.000000e+00 : f32
    %10 = vector.broadcast %cst_7 : f32 to vector<1024x64xf32>
    %11 = arith.maximumf %9, %10 : vector<1024x64xf32>
    %12 = arith.truncf %11 : vector<1024x64xf32> to vector<1024x64xbf16>
    %c0_8 = arith.constant 0 : index
    %c0_9 = arith.constant 0 : index
    %13 = vector.load %arg5[%c0_8, %c0_9] : memref<64x128xbf16, #tpu.memory_space<vmem>>, vector<64x128xbf16>
    %cst_10 = arith.constant dense<0.000000e+00> : vector<1024x128xf32>
    %14 = tpu.matmul %12, %13, %cst_10 {dimension_numbers = #tpu.dot_dimension_numbers<[1], [0], [0], [1], [0, 0, 1, 1], [], []>} : vector<1024x64xbf16>, vector<64x128xbf16>, vector<1024x128xf32> -> vector<1024x128xf32>
    %c0_11 = arith.constant 0 : index
    %c0_12 = arith.constant 0 : index
    %15 = vector.load %arg6[%c0_11, %c0_12] : memref<1x128xf32, #tpu.memory_space<vmem>>, vector<1x128xf32>
    %16 = vector.broadcast %15 : vector<1x128xf32> to vector<1024x128xf32>
    %17 = arith.addf %14, %16 : vector<1024x128xf32>
    %cst_13 = arith.constant 0.000000e+00 : f32
    %18 = vector.broadcast %cst_13 : f32 to vector<1024x128xf32>
    %19 = arith.maximumf %17, %18 : vector<1024x128xf32>
    %20 = arith.truncf %19 : vector<1024x128xf32> to vector<1024x128xbf16>
    %c0_14 = arith.constant 0 : index
    %c0_15 = arith.constant 0 : index
    %21 = vector.load %arg7[%c0_14, %c0_15] : memref<128x1024xbf16, #tpu.memory_space<vmem>>, vector<128x1024xbf16>
    %cst_16 = arith.constant dense<0.000000e+00> : vector<1024x1024xf32>
    %22 = tpu.matmul %20, %21, %cst_16 {dimension_numbers = #tpu.dot_dimension_numbers<[1], [0], [0], [1], [0, 0, 1, 1], [], []>} : vector<1024x128xbf16>, vector<128x1024xbf16>, vector<1024x1024xf32> -> vector<1024x1024xf32>
    %c0_17 = arith.constant 0 : index
    %c0_18 = arith.constant 0 : index
    %23 = vector.load %arg16[%c0_17, %c0_18] : memref<8x1024xf32, #tpu.memory_space<vmem>>, vector<8x1024xf32>
    %24 = vector.shape_cast %22 : vector<1024x1024xf32> to vector<8x128x1024xf32>
    %cst_19 = arith.constant dense<0xFF800000> : vector<8x1024xf32>
    %25 = vector.multi_reduction <maximumf>, %24, %cst_19 [1] : vector<8x128x1024xf32> to vector<8x1024xf32>
    %26 = arith.maximumf %23, %25 : vector<8x1024xf32>
    %c0_20 = arith.constant 0 : index
    %c0_21 = arith.constant 0 : index
    %27 = vector.load %arg16[%c0_20, %c0_21] : memref<8x1024xf32, #tpu.memory_space<vmem>>, vector<8x1024xf32>
    tpu.vector_store %arg16[%c0_20, %c0_21], %26 {strides = array<i32>} : memref<8x1024xf32, #tpu.memory_space<vmem>>, vector<8x1024xf32>,
    %c0_i32_22 = arith.constant 0 : i32
    %28 = arith.cmpi eq, %arg1, %c0_i32_22 : i32
    %29 = arith.extui %28 : i1 to i32
    %c0_i32_23 = arith.constant 0 : i32
    %30 = arith.cmpi ne, %29, %c0_i32_23 : i32
    scf.if %30 {
      %c0_24 = arith.constant 0 : index
      %c0_25 = arith.constant 0 : index
      %31 = vector.load %arg16[%c0_24, %c0_25] : memref<8x1024xf32, #tpu.memory_space<vmem>>, vector<8x1024xf32>
      %c0_26 = arith.constant 0 : index
      %c0_27 = arith.constant 0 : index
      %32 = vector.load %arg8[%c0_26, %c0_27] : memref<1x1024xf32, #tpu.memory_space<vmem>>, vector<1x1024xf32>
      %33 = vector.broadcast %32 : vector<1x1024xf32> to vector<8x1024xf32>
      %34 = arith.addf %31, %33 : vector<8x1024xf32>
      %cst_28 = arith.constant 0.000000e+00 : f32
      %35 = vector.broadcast %cst_28 : f32 to vector<8x1024xf32>
      %36 = arith.maximumf %34, %35 : vector<8x1024xf32>
      %37 = arith.truncf %36 : vector<8x1024xf32> to vector<8x1024xbf16>
      %c0_29 = arith.constant 0 : index
      %c0_30 = arith.constant 0 : index
      %38 = vector.load %arg9[%c0_29, %c0_30] : memref<1024x512xbf16, #tpu.memory_space<vmem>>, vector<1024x512xbf16>
      %cst_31 = arith.constant dense<0.000000e+00> : vector<8x512xf32>
      %39 = tpu.matmul %37, %38, %cst_31 {dimension_numbers = #tpu.dot_dimension_numbers<[1], [0], [0], [1], [0, 0, 1, 1], [], []>} : vector<8x1024xbf16>, vector<1024x512xbf16>, vector<8x512xf32> -> vector<8x512xf32>
      %c0_32 = arith.constant 0 : index
      %c0_33 = arith.constant 0 : index
      %40 = vector.load %arg10[%c0_32, %c0_33] : memref<1x512xf32, #tpu.memory_space<vmem>>, vector<1x512xf32>
      %41 = vector.broadcast %40 : vector<1x512xf32> to vector<8x512xf32>
      %42 = arith.addf %39, %41 : vector<8x512xf32>
      %cst_34 = arith.constant 0.000000e+00 : f32
      %43 = vector.broadcast %cst_34 : f32 to vector<8x512xf32>
      %44 = arith.maximumf %42, %43 : vector<8x512xf32>
      %45 = arith.truncf %44 : vector<8x512xf32> to vector<8x512xbf16>
      %c0_35 = arith.constant 0 : index
      %c0_36 = arith.constant 0 : index
      %46 = vector.load %arg11[%c0_35, %c0_36] : memref<512x256xbf16, #tpu.memory_space<vmem>>, vector<512x256xbf16>
      %cst_37 = arith.constant dense<0.000000e+00> : vector<8x256xf32>
      %47 = tpu.matmul %45, %46, %cst_37 {dimension_numbers = #tpu.dot_dimension_numbers<[1], [0], [0], [1], [0, 0, 1, 1], [], []>} : vector<8x512xbf16>, vector<512x256xbf16>, vector<8x256xf32> -> vector<8x256xf32>
      %c0_38 = arith.constant 0 : index
      %c0_39 = arith.constant 0 : index
      %48 = vector.load %arg12[%c0_38, %c0_39] : memref<1x256xf32, #tpu.memory_space<vmem>>, vector<1x256xf32>
      %49 = vector.broadcast %48 : vector<1x256xf32> to vector<8x256xf32>
      %50 = arith.addf %47, %49 : vector<8x256xf32>
      %cst_40 = arith.constant 0.000000e+00 : f32
      %51 = vector.broadcast %cst_40 : f32 to vector<8x256xf32>
      %52 = arith.maximumf %50, %51 : vector<8x256xf32>
      %c0_41 = arith.constant 0 : index
      %c0_42 = arith.constant 0 : index
      %53 = vector.load %arg13[%c0_41, %c0_42] : memref<256x128xf32, #tpu.memory_space<vmem>>, vector<256x128xf32>
      %cst_43 = arith.constant dense<0.000000e+00> : vector<8x128xf32>
      %54 = tpu.matmul %52, %53, %cst_43 {dimension_numbers = #tpu.dot_dimension_numbers<[1], [0], [0], [1], [0, 0, 1, 1], [], []>} : vector<8x256xf32>, vector<256x128xf32>, vector<8x128xf32> -> vector<8x128xf32>
      %c0_44 = arith.constant 0 : index
      %c0_45 = arith.constant 0 : index
      %55 = vector.load %arg14[%c0_44, %c0_45] : memref<1x128xf32, #tpu.memory_space<vmem>>, vector<1x128xf32>
      %56 = vector.broadcast %55 : vector<1x128xf32> to vector<8x128xf32>
      %57 = arith.addf %54, %56 : vector<8x128xf32>
      %c0_46 = arith.constant 0 : index
      %c0_47 = arith.constant 0 : index
      %58 = vector.load %arg15[%c0_46, %c0_47] : memref<8x128xf32, #tpu.memory_space<vmem>>, vector<8x128xf32>
      tpu.vector_store %arg15[%c0_46, %c0_47], %57 {strides = array<i32>} : memref<8x128xf32, #tpu.memory_space<vmem>>, vector<8x128xf32>,
    } else {
    }
    return
  }
  func.func @transform_0(%arg0: i32, %arg1: i32) -> (i32, i32, i32) {
    %c0_i32 = arith.constant 0 : i32
    %c0_i32_0 = arith.constant 0 : i32
    return %arg0, %arg1, %c0_i32 : i32, i32, i32
  }
  func.func @transform_1(%arg0: i32, %arg1: i32) -> (i32, i32) {
    %c0_i32 = arith.constant 0 : i32
    %c0_i32_0 = arith.constant 0 : i32
    %c0_i32_1 = arith.constant 0 : i32
    return %c0_i32, %c0_i32_0 : i32, i32
  }
  func.func @transform_2(%arg0: i32, %arg1: i32) -> (i32, i32) {
    %c0_i32 = arith.constant 0 : i32
    %c0_i32_0 = arith.constant 0 : i32
    %c0_i32_1 = arith.constant 0 : i32
    return %c0_i32, %c0_i32_0 : i32, i32
  }
  func.func @transform_3(%arg0: i32, %arg1: i32) -> (i32, i32) {
    %c0_i32 = arith.constant 0 : i32
    %c0_i32_0 = arith.constant 0 : i32
    %c0_i32_1 = arith.constant 0 : i32
    return %c0_i32, %c0_i32_0 : i32, i32
  }
  func.func @transform_4(%arg0: i32, %arg1: i32) -> (i32, i32) {
    %c0_i32 = arith.constant 0 : i32
    %c0_i32_0 = arith.constant 0 : i32
    %c0_i32_1 = arith.constant 0 : i32
    return %c0_i32, %c0_i32_0 : i32, i32
  }
  func.func @transform_5(%arg0: i32, %arg1: i32) -> (i32, i32) {
    %c0_i32 = arith.constant 0 : i32
    %c0_i32_0 = arith.constant 0 : i32
    %c0_i32_1 = arith.constant 0 : i32
    return %c0_i32, %c0_i32_0 : i32, i32
  }
  func.func @transform_6(%arg0: i32, %arg1: i32) -> (i32, i32) {
    %c0_i32 = arith.constant 0 : i32
    %c0_i32_0 = arith.constant 0 : i32
    %c0_i32_1 = arith.constant 0 : i32
    return %c0_i32, %c0_i32_0 : i32, i32
  }
  func.func @transform_7(%arg0: i32, %arg1: i32) -> (i32, i32) {
    %c0_i32 = arith.constant 0 : i32
    %c0_i32_0 = arith.constant 0 : i32
    %c0_i32_1 = arith.constant 0 : i32
    return %c0_i32, %c0_i32_0 : i32, i32
  }
  func.func @transform_8(%arg0: i32, %arg1: i32) -> (i32, i32) {
    %c0_i32 = arith.constant 0 : i32
    %c0_i32_0 = arith.constant 0 : i32
    %c0_i32_1 = arith.constant 0 : i32
    return %c0_i32, %c0_i32_0 : i32, i32
  }
  func.func @transform_9(%arg0: i32, %arg1: i32) -> (i32, i32) {
    %c0_i32 = arith.constant 0 : i32
    %c0_i32_0 = arith.constant 0 : i32
    %c0_i32_1 = arith.constant 0 : i32
    return %c0_i32, %c0_i32_0 : i32, i32
  }
  func.func @transform_10(%arg0: i32, %arg1: i32) -> (i32, i32) {
    %c0_i32 = arith.constant 0 : i32
    %c0_i32_0 = arith.constant 0 : i32
    %c0_i32_1 = arith.constant 0 : i32
    return %c0_i32, %c0_i32_0 : i32, i32
  }
  func.func @transform_11(%arg0: i32, %arg1: i32) -> (i32, i32) {
    %c0_i32 = arith.constant 0 : i32
    %c0_i32_0 = arith.constant 0 : i32
    %c0_i32_1 = arith.constant 0 : i32
    return %c0_i32, %c0_i32_0 : i32, i32
  }
  func.func @transform_12(%arg0: i32, %arg1: i32) -> (i32, i32) {
    %c0_i32 = arith.constant 0 : i32
    %c0_i32_0 = arith.constant 0 : i32
    %c0_i32_1 = arith.constant 0 : i32
    return %c0_i32, %c0_i32_0 : i32, i32
  }
  func.func @transform_13(%arg0: i32, %arg1: i32) -> (i32, i32) {
    %c0_i32 = arith.constant 0 : i32
    %c0_i32_0 = arith.constant 0 : i32
    return %arg0, %c0_i32 : i32, i32
  }
}

</mosaic_0001>

<bundles_post_ra>
// kernel: stn3d_forward.1
= control target key start
LH: loop header
LB: loop body
LE: loop exit
PB: predicated region body
PF: predicated region fallthrough
CT: control target
= control target key end

     0   :  { %s11821_s25 = smov 0   ;;  %s11823_s26 = smov 0   ;;  %s14610_s0 = inlined_call_operand.vmem [shape: bf16[16,128,8], index: 0, kind: input, shape index: {}]   ;;  %s14611_s1 = inlined_call_operand.vmem [shape: bf16[8,64], index: 1, kind: input, shape index: {}]   ;;  %s14612_s2 = inlined_call_operand.vmem [shape: f32[1,64], index: 2, kind: input, shape index: {}]   ;;  %s14613_s3 = inlined_call_operand.vmem [shape: bf16[64,128], index: 3, kind: input, shape index: {}]   ;;  %s14614_s4 = inlined_call_operand.vmem [shape: f32[1,128], index: 4, kind: input, shape index: {}]   ;;  %s14615_s5 = inlined_call_operand.vmem [shape: bf16[128,1024], index: 5, kind: input, shape index: {}]   ;;  %s14616_s6 = inlined_call_operand.vmem [shape: f32[1,1024], index: 6, kind: input, shape index: {}]   ;;  %s14617_s7 = inlined_call_operand.vmem [shape: bf16[1024,512], index: 7, kind: input, shape index: {}]   ;;  %s14618_s8 = inlined_call_operand.vmem [shape: f32[1,512], index: 8, kind: input, shape index: {}]   ;;  %s14619_s9 = inlined_call_operand.vmem [shape: bf16[512,256], index: 9, kind: input, shape index: {}]   ;;  %s14620_s10 = inlined_call_operand.vmem [shape: f32[1,256], index: 10, kind: input, shape index: {}]   ;;  %s14621_s11 = inlined_call_operand.vmem [shape: f32[256,128], index: 11, kind: input, shape index: {}]   ;;  %s14622_s12 = inlined_call_operand.vmem [shape: f32[1,128], index: 12, kind: input, shape index: {}]   ;;  %s14623_s13 = inlined_call_operand.vmem [shape: f32[16,128], index: 13, kind: output, shape index: {}]  }
   0x1   :  { %s11825_s27 = smov 0  }
   0x2 LB: > { %s35_s28 = sadd.s32 1, %s11744_s26  ;;  %p10055_p0 = scmp.ge.s32.totalorder %s11748_s27, 1  ;;  %s11748_s27 = sphi %s11825_s27, %s23_s27   ;;  %s11744_s26 = sphi %s11823_s26, %s14756_s26   ;;  %s11740_s25 = sphi %s11821_s25, %s14755_s25  }
   0x3   : > { %p37_p1 = scmp.ge.s32.totalorder %s35_s28, 2  ;;  %p408_p2 = scmp.lt.s32.totalorder %s11748_s27, 3 }
   0x5   : > { %s14758_s28 = smov (%p37_p1, %s35_s28), 0  ;;  %p409_p3 = pnand %p10055_p0, %p408_p2 }
   0x7   : > { %412 = sbr.rel (%p409_p3) target bundleno = 2502 (0x9c6), region = 72 }
   0xe   : > { %v613_v0 = vld [vmem:[%s14611_s1] sm:$0xf]  ;;  %vm1134_vm0 = vcmask 1043456   ;;  %s10056_s14 = sshll.u32 %s11740_s25, 3  ;;  %vm941_vm1 = vcmask 64512   ;;  %v11228_v24 = vld [vmem:[%s14613_s3 + $0x8] sm:$0xff]  }
   0xf   : > { %11148 = vmatprep.subr.msk.bf16.mxu0 %vm1134_vm0, %v613_v0  ;;  %v1136_v1 = vsel %vm1134_vm0, %v613_v0, 0  ;;  %p458_p4 = scmp.lt.s32.totalorder %s10056_s14, 15  ;;  %11149 = vmatprep.subr.msk.bf16.mxu1 %vm1134_vm0, %v613_v0  ;;  %v11221_v17 = vld [vmem:[%s14613_s3] sm:$0xff]   ;;  %v11235_v31 = vld [vmem:[%s14613_s3 + $0x10] sm:$0xff]   ;;  %v11240_v36 = vld [vmem:[%s14613_s3 + $0x18] sm:$0xff]   ;;  %vm1914_vm2 = vcmask 523264  }
  0x10   : > { %10815 = vmatpush3.bf16.msra.mxu0 %v1136_v1  ;;  %11113 = vmatpush3.bf16.msra.mxu1 %v1136_v1  ;;  %v2844_v49 = vld [vmem:[%s14615_s5] sm:$0xff]  ;;  %v11963_v57 = vld [vmem:[%s14615_s5 + $0x8] sm:$0xff]  ;;  %vm7336_vm3 = vcmask 1041409   ;;  %vm7338_vm4 = vcmask 1042434   ;;  %vm7340_vm5 = vcmask 1043459   ;;  %vm7342_vm6 = vcmask 1044484  }
  0x11   : > { %s14760_s14 = smov (!%p458_p4, %s10056_s14), 15  ;;  %10944 = vmatprep.subr.bf16.mxu1 %v11221_v17  ;;  %v2848_v50 = vld [vmem:[%s14615_s5 + $0x20] sm:$0xff]  ;;  %v11968_v58 = vld [vmem:[%s14615_s5 + $0x28] sm:$0xff]  ;;  %vm7344_vm7 = vcmask 1045509   ;;  %vm7346_vm8 = vcmask 1046534   ;;  %vm7348_vm9 = vcmask 1047559  }
  0x12   : > { %s10645_s15 = sshll.u32 %s14760_s14, 6  ;;  %v10258_v51 = vcombine.low %v2844_v49, %v2848_v50  ;;  %v10259_v52 = vcombine.high %v2844_v49, %v2848_v50  ;;  %v10260_v59 = vcombine.low %v11963_v57, %v11968_v58  ;;  %v10261_v60 = vcombine.high %v11963_v57, %v11968_v58  ;;  %v2852_v63 = vld [vmem:[%s14615_s5 + $0x40] sm:$0xff]  ;;  %p468_p5 = scmp.lt.s32.totalorder %s11740_s25, 1 }
  0x13   : > { %s11848_s18 = scalar_lea.vmem %s14610_s0, %s10645_s15  ;;  %v2856_v0 = vld [vmem:[%s14615_s5 + $0x60] sm:$0xff] }
  0x14   : > { %v11175_v2 = vld [vmem:[%s11848_s18] sm:$0xff]   ;;  %v11176_v3 = vld [vmem:[%s11848_s18 + $0x8] sm:$0xff]   ;;  %v11177_v4 = vld [vmem:[%s11848_s18 + $0x10] sm:$0xff]   ;;  %3228 = vmatprep.subr.bf16.mxu0 %v10259_v52  ;;  %v10266_v1 = vcombine.low %v2852_v63, %v2856_v0  ;;  %s14762_s25 = smov (!%p468_p5, %s11740_s25), 1 }
  0x15   : > { %10816 = vmatprep.mubr.msk.bf16.mxu0 %vm941_vm1, %v11175_v2  ;;  %v11178_v5 = vld [vmem:[%s11848_s18 + $0x18] sm:$0xff]   ;;  %v11179_v6 = vld [vmem:[%s11848_s18 + $0x20] sm:$0xff]   ;;  %v11180_v7 = vld [vmem:[%s11848_s18 + $0x28] sm:$0xff]   ;;  %v10267_v2 = vcombine.high %v2852_v63, %v2856_v0  ;;  %s10059_s19 = sshll.u32 %s14762_s25, 3 }
  0x16   : > { %10817 = vmatmul.mubr.msk.bf16.vlgmr.msra.gmra.mrb[0].mxu0 %vm941_vm1, %v11176_v3  ;;  %v11181_v8 = vld [vmem:[%s11848_s18 + $0x30] sm:$0xff]   ;;  %v11182_v9 = vld [vmem:[%s11848_s18 + $0x38] sm:$0xff]   ;;  %v11183_v10 = vld [vmem:[%s11848_s18 + $0x40] sm:$0xff]   ;;  %s471_s24 = scalar_lea.vmem %s14623_s13, %s10059_s19 }
  0x17   : > { %10820 = vmatprep.mubr.msk.bf16.mxu0 %vm941_vm1, %v11177_v4  ;;  %v11184_v11 = vld [vmem:[%s11848_s18 + $0x48] sm:$0xff]   ;;  %v11185_v12 = vld [vmem:[%s11848_s18 + $0x50] sm:$0xff]   ;;  %v11186_v13 = vld [vmem:[%s11848_s18 + $0x58] sm:$0xff]   ;;  %3229 = vmatpush1.bf16.msra.mxu0 %v10258_v51 }
  0x18   : > { %v11187_v14 = vld [vmem:[%s11848_s18 + $0x60] sm:$0xff]   ;;  %v11220_v16 = vld [vmem:[%s11848_s18 + $0x1a8] sm:$0xff]   ;;  %v11189_v19 = vld [vmem:[%s11848_s18 + $0x70] sm:$0xff]   ;;  %3230 = vmatprep.subr.bf16.mxu0 %v10267_v2 }
  0x19   : > { %v11219_v15 = vld [vmem:[%s11848_s18 + $0x1a0] sm:$0xff]   ;;  %v11188_v18 = vld [vmem:[%s11848_s18 + $0x68] sm:$0xff]   ;;  %v11224_v20 = vld [vmem:[%s11848_s18 + $0x1b0] sm:$0xff]  }
  0x1a   : > { %10920 = vmatprep.mubr.msk.bf16.mxu1 %vm941_vm1, %v11219_v15  ;;  %v11225_v21 = vld [vmem:[%s11848_s18 + $0x1b8] sm:$0xff]   ;;  %v11191_v23 = vld [vmem:[%s11848_s18 + $0x80] sm:$0xff]   ;;  %v11230_v26 = vld [vmem:[%s11848_s18 + $0x1c8] sm:$0xff]  }
  0x1b   : > { %10921 = vmatmul.mubr.msk.bf16.vlgmr.msra.gmra.mrb[0].mxu1 %vm941_vm1, %v11220_v16  ;;  %v11190_v22 = vld [vmem:[%s11848_s18 + $0x78] sm:$0xff]   ;;  %v11229_v25 = vld [vmem:[%s11848_s18 + $0x1c0] sm:$0xff]   ;;  %v11192_v27 = vld [vmem:[%s11848_s18 + $0x88] sm:$0xff]   ;;  %3231 = vmatpush1.bf16.msra.mxu0 %v10266_v1 }
  0x1c   : > { %10945 = vmatpush3.bf16.msra.mxu1 %v11221_v17  ;;  %10924 = vmatprep.mubr.msk.bf16.mxu1 %vm941_vm1, %v11224_v20  ;;  %v11193_v28 = vld [vmem:[%s11848_s18 + $0x90] sm:$0xff]   ;;  %v11234_v30 = vld [vmem:[%s11848_s18 + $0x1d8] sm:$0xff]   ;;  %v11195_v33 = vld [vmem:[%s11848_s18 + $0xa0] sm:$0xff]  }
  0x1d   : > { %10946 = vmatprep.subr.bf16.mxu1 %v11228_v24  ;;  %v11233_v29 = vld [vmem:[%s11848_s18 + $0x1d0] sm:$0xff]   ;;  %v11194_v32 = vld [vmem:[%s11848_s18 + $0x98] sm:$0xff]   ;;  %v11238_v34 = vld [vmem:[%s11848_s18 + $0x1e0] sm:$0xff]  }
  0x1e   : > { %10821 = vmatmul.mubr.msk.bf16.gmra.mrb[4].mxu0 %vm941_vm1, %v11178_v5  ;;  %v11239_v35 = vld [vmem:[%s11848_s18 + $0x1e8] sm:$0xff]   ;;  %v11241_v37 = vld [vmem:[%s11848_s18 + $0x1f0] sm:$0xff]   ;;  %v11242_v40 = vld [vmem:[%s11848_s18 + $0x1f8] sm:$0xff]  }
  0x1f   : > { %10824 = vmatprep.mubr.msk.bf16.mxu0 %vm941_vm1, %v11179_v6  ;;  %v11196_v38 = vld [vmem:[%s11848_s18 + $0xa8] sm:$0xff]   ;;  %v11197_v39 = vld [vmem:[%s11848_s18 + $0xb0] sm:$0xff]   ;;  %v11198_v41 = vld [vmem:[%s11848_s18 + $0xb8] sm:$0xff]  }
  0x20   : > { %10947 = vmatpush3.bf16.msra.mxu1 %v11228_v24  ;;  %v11199_v42 = vld [vmem:[%s11848_s18 + $0xc0] sm:$0xff]   ;;  %v11200_v43 = vld [vmem:[%s11848_s18 + $0xc8] sm:$0xff]   ;;  %v11201_v44 = vld [vmem:[%s11848_s18 + $0xd0] sm:$0xff]  }
  0x21   : > { %10948 = vmatprep.subr.bf16.mxu1 %v11235_v31  ;;  %v11202_v45 = vld [vmem:[%s11848_s18 + $0xd8] sm:$0xff]   ;;  %v11203_v46 = vld [vmem:[%s11848_s18 + $0xe0] sm:$0xff]   ;;  %v11204_v47 = vld [vmem:[%s11848_s18 + $0xe8] sm:$0xff]  }
  0x22   : > { %v11205_v48 = vld [vmem:[%s11848_s18 + $0xf0] sm:$0xff]   ;;  %v11206_v53 = vld [vmem:[%s11848_s18 + $0xf8] sm:$0xff]   ;;  %v11207_v54 = vld [vmem:[%s11848_s18 + $0x100] sm:$0xff]  }
  0x23   : > { %10925 = vmatmul.mubr.msk.bf16.gmra.mrb[4].mxu1 %vm941_vm1, %v11225_v21  ;;  %v11208_v55 = vld [vmem:[%s11848_s18 + $0x108] sm:$0xff]   ;;  %v11209_v56 = vld [vmem:[%s11848_s18 + $0x110] sm:$0xff]   ;;  %v11210_v61 = vld [vmem:[%s11848_s18 + $0x118] sm:$0xff]  }
  0x24   : > { %10928 = vmatprep.mubr.msk.bf16.mxu1 %vm941_vm1, %v11229_v25  ;;  %10949 = vmatpush3.bf16.msra.mxu1 %v11235_v31  ;;  %v11211_v62 = vld [vmem:[%s11848_s18 + $0x120] sm:$0xff]   ;;  %v11212_v3 = vld [vmem:[%s11848_s18 + $0x128] sm:$0xff]   ;;  %v11213_v4 = vld [vmem:[%s11848_s18 + $0x130] sm:$0xff]  }
  0x25   : > { %10950 = vmatprep.subr.bf16.mxu1 %v11240_v36  ;;  %v11214_v5 = vld [vmem:[%s11848_s18 + $0x138] sm:$0xff]   ;;  %v11215_v6 = vld [vmem:[%s11848_s18 + $0x140] sm:$0xff]   ;;  %v11223_v15 = vld [vmem:[%s11848_s18 + $0x168] sm:$0xff]  }
  0x26   : > { %10825 = vmatmul.mubr.msk.bf16.gmra.mrb[8].mxu0 %vm941_vm1, %v11180_v7  ;;  %v11216_v7 = vld [vmem:[%s11848_s18 + $0x148] sm:$0xff]   ;;  %v11226_v16 = vld [vmem:[%s11848_s18 + $0x170] sm:$0xff]   ;;  %v11227_v17 = vld [vmem:[%s11848_s18 + $0x178] sm:$0xff]  }
  0x27   : > { %10828 = vmatprep.mubr.msk.bf16.mxu0 %vm941_vm1, %v11181_v8  ;;  %v11217_v8 = vld [vmem:[%s11848_s18 + $0x150] sm:$0xff]   ;;  %v2872_v20 = vld [vmem:[%s14615_s5 + $0xe0] sm:$0xff]  ;;  %v11232_v21 = vld [vmem:[%s11848_s18 + $0x188] sm:$0xff]  }
  0x28   : > { %10951 = vmatpush3.bf16.msra.mxu1 %v11240_v36  ;;  %v11236_v24 = vld [vmem:[%s11848_s18 + $0x190] sm:$0xff]   ;;  %v11237_v25 = vld [vmem:[%s11848_s18 + $0x198] sm:$0xff]  }
  0x29   : > { %3901 = vmatprep.subr.bf16.mxu1 %v10261_v60 }
  0x2b   : > { %10929 = vmatmul.mubr.msk.bf16.gmra.mrb[8].mxu1 %vm941_vm1, %v11230_v26  ;;  %v12031_v26 = vld [vmem:[%s14612_s2] ss:$0 sm:$0xff] }
  0x2c   : > { %10932 = vmatprep.mubr.msk.bf16.mxu1 %vm941_vm1, %v11233_v29  ;;  %v2880_v29 = vld [vmem:[%s14615_s5 + $0x120] sm:$0xff] }
  0x2e   : > { %10829 = vmatmul.mubr.msk.bf16.gmra.mrb[12].mxu0 %vm941_vm1, %v11182_v9  ;;  %v11218_v9 = vld [vmem:[%s11848_s18 + $0x158] sm:$0xff]  }
  0x2f   : > { %10832 = vmatprep.mubr.msk.bf16.mxu0 %vm941_vm1, %v11183_v10  ;;  %v11222_v10 = vld [vmem:[%s11848_s18 + $0x160] sm:$0xff]  }
  0x33   : > { %10933 = vmatmul.mubr.msk.bf16.gmra.mrb[12].mxu1 %vm941_vm1, %v11234_v30 }
  0x34   : > { %10936 = vmatprep.mubr.msk.bf16.mxu1 %vm941_vm1, %v11238_v34 }
  0x36   : > { %10833 = vmatmul.mubr.msk.bf16.gmra.mrb[16].mxu0 %vm941_vm1, %v11184_v11  ;;  %v2860_v11 = vld [vmem:[%s14615_s5 + $0x80] sm:$0xff] }
  0x37   : > { %10836 = vmatprep.mubr.msk.bf16.mxu0 %vm941_vm1, %v11185_v12  ;;  %v2864_v12 = vld [vmem:[%s14615_s5 + $0xa0] sm:$0xff] }
  0x3b   : > { %10937 = vmatmul.mubr.msk.bf16.gmra.mrb[16].mxu1 %vm941_vm1, %v11239_v35 }
  0x3c   : > { %10940 = vmatprep.mubr.msk.bf16.mxu1 %vm941_vm1, %v11241_v37 }
  0x3e   : > { %10837 = vmatmul.mubr.msk.bf16.gmra.mrb[20].mxu0 %vm941_vm1, %v11186_v13  ;;  %v10274_v13 = vcombine.low %v2860_v11, %v2864_v12 }
  0x3f   : > { %10840 = vmatprep.mubr.msk.bf16.mxu0 %vm941_vm1, %v11187_v14  ;;  %v10275_v14 = vcombine.high %v2860_v11, %v2864_v12 }
  0x41   : > { %3232 = vmatprep.subr.bf16.mxu0 %v10275_v14 }
  0x42   : > { %3233 = vmatpush1.bf16.msra.mxu0 %v10274_v13 }
  0x43   : > { %10941 = vmatmul.mubr.msk.bf16.gmra.mrb[20].mxu1 %vm941_vm1, %v11242_v40 }
  0x46   : > { %10841 = vmatmul.mubr.msk.bf16.gmra.mrb[24].mxu0 %vm941_vm1, %v11188_v18  ;;  %v11231_v18 = vld [vmem:[%s11848_s18 + $0x180] sm:$0xff]  }
  0x47   : > { %10844 = vmatprep.mubr.msk.bf16.mxu0 %vm941_vm1, %v11189_v19  ;;  %v2868_v19 = vld [vmem:[%s14615_s5 + $0xc0] sm:$0xff] }
  0x4e   : > { %10845 = vmatmul.mubr.msk.bf16.gmra.mrb[28].mxu0 %vm941_vm1, %v11190_v22  ;;  %v10282_v22 = vcombine.low %v2868_v19, %v2872_v20 }
  0x4f   : > { %10848 = vmatprep.mubr.msk.bf16.mxu0 %vm941_vm1, %v11191_v23  ;;  %v10283_v23 = vcombine.high %v2868_v19, %v2872_v20 }
  0x51   : > { %3234 = vmatprep.subr.bf16.mxu0 %v10283_v23 }
  0x52   : > { %3235 = vmatpush1.bf16.msra.mxu0 %v10282_v22 }
  0x56   : > { %10849 = vmatmul.mubr.msk.bf16.gmra.mrb[32].mxu0 %vm941_vm1, %v11192_v27 }
  0x57   : > { %10852 = vmatprep.mubr.msk.bf16.mxu0 %vm941_vm1, %v11193_v28  ;;  %v2876_v28 = vld [vmem:[%s14615_s5 + $0x100] sm:$0xff] }
  0x5e   : > { %10853 = vmatmul.mubr.msk.bf16.gmra.mrb[36].mxu0 %vm941_vm1, %v11194_v32  ;;  %v10290_v32 = vcombine.low %v2876_v28, %v2880_v29 }
  0x5f   : > { %10856 = vmatprep.mubr.msk.bf16.mxu0 %vm941_vm1, %v11195_v33  ;;  %v10291_v33 = vcombine.high %v2876_v28, %v2880_v29 }
  0x61   : > { %3236 = vmatprep.subr.bf16.mxu0 %v10291_v33  ;;  %v2888_v33 = vld [vmem:[%s14615_s5 + $0x160] sm:$0xff] }
  0x62   : > { %3237 = vmatpush1.bf16.msra.mxu0 %v10290_v32  ;;  %v2884_v32 = vld [vmem:[%s14615_s5 + $0x140] sm:$0xff] }
  0x66   : > { %10857 = vmatmul.mubr.msk.bf16.gmra.mrb[40].mxu0 %vm941_vm1, %v11196_v38 }
  0x67   : > { %10860 = vmatprep.mubr.msk.bf16.mxu0 %vm941_vm1, %v11197_v39 }
  0x6e   : > { %10861 = vmatmul.mubr.msk.bf16.gmra.mrb[44].mxu0 %vm941_vm1, %v11198_v41 }
  0x6f   : > { %10864 = vmatprep.mubr.msk.bf16.mxu0 %vm941_vm1, %v11199_v42 }
  0x76   : > { %10865 = vmatmul.mubr.msk.bf16.gmra.mrb[48].mxu0 %vm941_vm1, %v11200_v43  ;;  %v2853_v43 = vld [vmem:[%s14615_s5 + $0x48] sm:$0xff] }
  0x77   : > { %10868 = vmatprep.mubr.msk.bf16.mxu0 %vm941_vm1, %v11201_v44  ;;  %v2857_v44 = vld [vmem:[%s14615_s5 + $0x68] sm:$0xff] }
  0x78   : > { %v10269_v50 = vcombine.high %v2853_v43, %v2857_v44  ;;  %v10268_v63 = vcombine.low %v2853_v43, %v2857_v44 }
  0x7e   : > { %10869 = vmatmul.mubr.msk.bf16.gmra.mrb[52].mxu0 %vm941_vm1, %v11202_v45 }
  0x7f   : > { %10872 = vmatprep.mubr.msk.bf16.mxu0 %vm941_vm1, %v11203_v46 }
  0x86   : > { %10873 = vmatmul.mubr.msk.bf16.gmra.mrb[56].mxu0 %vm941_vm1, %v11204_v47 }
  0x87   : > { %10876 = vmatprep.mubr.msk.bf16.mxu0 %vm941_vm1, %v11205_v48 }
  0x8e   : > { %10877 = vmatmul.mubr.msk.bf16.gmra.mrb[60].mxu0 %vm941_vm1, %v11206_v53  ;;  %v2861_v53 = vld [vmem:[%s14615_s5 + $0x88] sm:$0xff] }
  0x8f   : > { %10880 = vmatprep.mubr.msk.bf16.mxu0 %vm941_vm1, %v11207_v54  ;;  %v2865_v54 = vld [vmem:[%s14615_s5 + $0xa8] sm:$0xff] }
  0x90   : > { %v10277_v1 = vcombine.high %v2861_v53, %v2865_v54 }
  0x96   : > { %10881 = vmatmul.mubr.msk.bf16.gmra.mrb[64].mxu0 %vm941_vm1, %v11208_v55 }
  0x97   : > { %10884 = vmatprep.mubr.msk.bf16.mxu0 %vm941_vm1, %v11209_v56 }
  0x9e   : > { %10885 = vmatmul.mubr.msk.bf16.gmra.mrb[68].mxu0 %vm941_vm1, %v11210_v61 }
  0x9f   : > { %10888 = vmatprep.mubr.msk.bf16.mxu0 %vm941_vm1, %v11211_v62 }
  0xa6   : > { %10889 = vmatmul.mubr.msk.bf16.gmra.mrb[72].mxu0 %vm941_vm1, %v11212_v3  ;;  %v2869_v3 = vld [vmem:[%s14615_s5 + $0xc8] sm:$0xff] }
  0xa7   : > { %10892 = vmatprep.mubr.msk.bf16.mxu0 %vm941_vm1, %v11213_v4  ;;  %v2873_v4 = vld [vmem:[%s14615_s5 + $0xe8] sm:$0xff] }
  0xae   : > { %10893 = vmatmul.mubr.msk.bf16.gmra.mrb[76].mxu0 %vm941_vm1, %v11214_v5 }
  0xaf   : > { %10896 = vmatprep.mubr.msk.bf16.mxu0 %vm941_vm1, %v11215_v6 }
  0xb6   : > { %10897 = vmatmul.mubr.msk.bf16.gmra.mrb[80].mxu0 %vm941_vm1, %v11216_v7 }
  0xb7   : > { %10900 = vmatprep.mubr.msk.bf16.mxu0 %vm941_vm1, %v11217_v8  ;;  %v10276_v8 = vcombine.low %v2861_v53, %v2865_v54 }
  0xbe   : > { %10901 = vmatmul.mubr.msk.bf16.gmra.mrb[84].mxu0 %vm941_vm1, %v11218_v9 }
  0xbf   : > { %10904 = vmatprep.mubr.msk.bf16.mxu0 %vm941_vm1, %v11222_v10 }
  0xc6   : > { %10905 = vmatmul.mubr.msk.bf16.gmra.mrb[88].mxu0 %vm941_vm1, %v11223_v15 }
  0xc7   : > { %10908 = vmatprep.mubr.msk.bf16.mxu0 %vm941_vm1, %v11226_v16  ;;  %v10284_v16 = vcombine.low %v2869_v3, %v2873_v4 }
  0xce   : > { %10909 = vmatmul.mubr.msk.bf16.gmra.mrb[92].mxu0 %vm941_vm1, %v11227_v17 }
  0xcf   : > { %10912 = vmatprep.mubr.msk.bf16.mxu0 %vm941_vm1, %v11231_v18 }
  0xd6   : > { %10913 = vmatmul.mubr.msk.bf16.gmra.mrb[96].mxu0 %vm941_vm1, %v11232_v21 }
  0xd7   : > { %10916 = vmatprep.mubr.msk.bf16.mxu0 %vm941_vm1, %v11236_v24 }
  0xde   : > { %10917 = vmatmul.mubr.msk.bf16.gmra.mrb[100].mxu0 %vm941_vm1, %v11237_v25 }
  0xe9   : > { %v10818_v27 = vpop.f32.mrb[0].mxu0 }
  0xea   : > { %v1181_v30 = vadd.f32 %v10818_v27, %v12031_v26  ;;  %v1172_v31 = vpop.f32.mrb[1].mxu0 }
  0xeb   : > { %v1173_v34 = vadd.f32 %v12031_v26, %v1172_v31  ;;  %v10819_v35 = vpop.f32.mrb[2].mxu0 }
  0xec   : > { %v1184_v36 = vadd.f32 %v10819_v35, %v12031_v26  ;;  %v1175_v37 = vpop.f32.mrb[3].mxu0  ;;  %v1685_v39 = vmax.f32 %v1181_v30, 0.0  ;;  %v10298_v35 = vcombine.low %v2884_v32, %v2888_v33 }
  0xed   : > { %v1176_v38 = vadd.f32 %v12031_v26, %v1175_v37  ;;  %v1683_v41 = vmax.f32 %v1173_v34, 0.0 }
  0xee   : > { %v1686_v40 = vmax.f32 %v1184_v36, 0.0  ;;  %v10299_v36 = vcombine.high %v2884_v32, %v2888_v33 }
  0xef   : > { %v1684_v42 = vmax.f32 %v1176_v38, 0.0 }
  0xf0   : > { %v1812_v45 = vpack.c.bf16 %v1686_v40, %v1685_v39  ;;  %3238 = vmatprep.subr.bf16.mxu0 %v10299_v36 }
  0xf1   : > { %v1811_v46 = vpack.c.bf16 %v1684_v42, %v1683_v41  ;;  %v10822_v47 = vpop.f32.mrb[4].mxu0  ;;  %3239 = vmatpush1.bf16.msra.mxu0 %v10298_v35 }
  0xf2   : > { %v1197_v48 = vadd.f32 %v10822_v47, %v12031_v26  ;;  %v1188_v49 = vpop.f32.mrb[5].mxu0 }
  0xf3   : > { %v1189_v51 = vadd.f32 %v12031_v26, %v1188_v49  ;;  %v10823_v52 = vpop.f32.mrb[6].mxu0  ;;  %10952 = vmatprep.mubr.msk.bf16.mxu1 %vm1914_vm2, %v1811_v46 }
  0xf4   : > { %v1689_v55 = vmax.f32 %v1197_v48, 0.0  ;;  %v1200_v56 = vadd.f32 %v10823_v52, %v12031_v26  ;;  %v1191_v60 = vpop.f32.mrb[7].mxu0  ;;  %10953 = vmatmul.mubr.msk.bf16.vlgmr.msra.gmra.mrb[24].mxu1 %vm1914_vm2, %v1812_v45 }
  0xf5   : > { %v1687_v61 = vmax.f32 %v1189_v51, 0.0  ;;  %v1192_v62 = vadd.f32 %v12031_v26, %v1191_v60  ;;  %3902 = vmatpush1.bf16.msra.mxu1 %v10260_v59  ;;  %v10285_v59 = vcombine.high %v2869_v3, %v2873_v4 }
  0xf6   : > { %v1690_v0 = vmax.f32 %v1200_v56, 0.0  ;;  %3903 = vmatprep.subr.bf16.mxu1 %v10269_v50  ;;  %v2881_v56 = vld [vmem:[%s14615_s5 + $0x128] sm:$0xff] }
  0xf7   : > { %v1688_v2 = vmax.f32 %v1192_v62, 0.0 }
  0xf8   : > { %v1814_v5 = vpack.c.bf16 %v1690_v0, %v1689_v55  ;;  %v2877_v55 = vld [vmem:[%s14615_s5 + $0x108] sm:$0xff] }
  0xf9   : > { %v1813_v6 = vpack.c.bf16 %v1688_v2, %v1687_v61  ;;  %v10826_v7 = vpop.f32.mrb[8].mxu0  ;;  %3904 = vmatpush1.bf16.msra.mxu1 %v10268_v63  ;;  %v10292_v62 = vcombine.low %v2877_v55, %v2881_v56  ;;  %v10293_v63 = vcombine.high %v2877_v55, %v2881_v56 }
  0xfa   : > { %v1213_v57 = vadd.f32 %v10826_v7, %v12031_v26  ;;  %v1204_v58 = vpop.f32.mrb[9].mxu0  ;;  %3905 = vmatprep.subr.bf16.mxu1 %v10277_v1  ;;  %v10922_v7 = vpop.f32.mrb[0].mxu1 }
  0xfb   : > { %v1205_v9 = vadd.f32 %v12031_v26, %v1204_v58  ;;  %v10827_v10 = vpop.f32.mrb[10].mxu0  ;;  %10956 = vmatprep.mubr.msk.bf16.mxu1 %vm1914_vm2, %v1813_v6 }
  0xfc   : > { %v1693_v11 = vmax.f32 %v1213_v57, 0.0  ;;  %v1216_v12 = vadd.f32 %v10827_v10, %v12031_v26  ;;  %v1207_v13 = vpop.f32.mrb[11].mxu0  ;;  %10957 = vmatmul.mubr.msk.bf16.gmra.mrb[28].mxu1 %vm1914_vm2, %v1814_v5  ;;  %v1588_v57 = vpop.f32.mrb[1].mxu1  ;;  %v1597_v10 = vadd.f32 %v10922_v7, %v12031_v26 }
  0xfd   : > { %v1691_v14 = vmax.f32 %v1205_v9, 0.0  ;;  %v1208_v15 = vadd.f32 %v12031_v26, %v1207_v13  ;;  %3906 = vmatpush1.bf16.msra.mxu1 %v10276_v8 }
  0xfe   : > { %v1694_v17 = vmax.f32 %v1216_v12, 0.0  ;;  %3907 = vmatprep.subr.bf16.mxu1 %v10285_v59  ;;  %v10923_v59 = vpop.f32.mrb[2].mxu1 }
  0xff   : > { %v1692_v18 = vmax.f32 %v1208_v15, 0.0  ;;  %v1600_v12 = vadd.f32 %v10923_v59, %v12031_v26  ;;  %v1591_v13 = vpop.f32.mrb[3].mxu1 }
 0x100   : > { %v1816_v19 = vpack.c.bf16 %v1694_v17, %v1693_v11  ;;  %v1589_v11 = vadd.f32 %v12031_v26, %v1588_v57  ;;  %v10926_v33 = vpop.f32.mrb[4].mxu1 }
 0x101   : > { %v1815_v20 = vpack.c.bf16 %v1692_v18, %v1691_v14  ;;  %v10830_v21 = vpop.f32.mrb[12].mxu0  ;;  %3908 = vmatpush1.bf16.msra.mxu1 %v10284_v16  ;;  %v1592_v16 = vadd.f32 %v12031_v26, %v1591_v13  ;;  %v1604_v35 = vpop.f32.mrb[5].mxu1 }
 0x102   : > { %v1229_v22 = vadd.f32 %v10830_v21, %v12031_v26  ;;  %v1220_v23 = vpop.f32.mrb[13].mxu0  ;;  %3909 = vmatprep.subr.bf16.mxu1 %v10293_v63  ;;  %v1790_v21 = vmax.f32 %v1600_v12, 0.0 }
 0x103   : > { %v1221_v24 = vadd.f32 %v12031_v26, %v1220_v23  ;;  %v10831_v25 = vpop.f32.mrb[14].mxu0  ;;  %10960 = vmatprep.mubr.msk.bf16.mxu1 %vm1914_vm2, %v1815_v20  ;;  %v1787_v20 = vmax.f32 %v1589_v11, 0.0 }
 0x104   : > { %v1697_v27 = vmax.f32 %v1229_v22, 0.0  ;;  %v1232_v28 = vadd.f32 %v10831_v25, %v12031_v26  ;;  %v1223_v29 = vpop.f32.mrb[15].mxu0  ;;  %10961 = vmatmul.mubr.msk.bf16.gmra.mrb[32].mxu1 %vm1914_vm2, %v1816_v19  ;;  %v1789_v19 = vmax.f32 %v1597_v10, 0.0 }
 0x105   : > { %v1695_v30 = vmax.f32 %v1221_v24, 0.0  ;;  %v1224_v31 = vadd.f32 %v12031_v26, %v1223_v29  ;;  %3910 = vmatpush1.bf16.msra.mxu1 %v10292_v62  ;;  %v1788_v24 = vmax.f32 %v1592_v16, 0.0 }
 0x106   : > { %v1698_v34 = vmax.f32 %v1232_v28, 0.0  ;;  %v12115_v29 = vpack.c.bf16 %v1790_v21, %v1789_v19 }
 0x107   : > { %v1696_v37 = vmax.f32 %v1224_v31, 0.0  ;;  %v12118_v32 = vpack.c.bf16 %v1788_v24, %v1787_v20 }
 0x108   : > { %v1818_v38 = vpack.c.bf16 %v1698_v34, %v1697_v27 }
 0x109   : > { %v1817_v39 = vpack.c.bf16 %v1696_v37, %v1695_v30  ;;  %v10834_v40 = vpop.f32.mrb[16].mxu0  ;;  %v10927_v37 = vpop.f32.mrb[6].mxu1 }
 0x10a   : > { %v1245_v41 = vadd.f32 %v10834_v40, %v12031_v26  ;;  %v1236_v42 = vpop.f32.mrb[17].mxu0  ;;  %v1605_v40 = vadd.f32 %v12031_v26, %v1604_v35 }
 0x10b   : > { %v1237_v43 = vadd.f32 %v12031_v26, %v1236_v42  ;;  %v10835_v44 = vpop.f32.mrb[18].mxu0  ;;  %10964 = vmatprep.mubr.msk.bf16.mxu1 %vm1914_vm2, %v1817_v39  ;;  %v1613_v39 = vadd.f32 %v10926_v33, %v12031_v26  ;;  %v1607_v42 = vpop.f32.mrb[7].mxu1 }
 0x10c   : > { %v1701_v45 = vmax.f32 %v1245_v41, 0.0  ;;  %v1248_v46 = vadd.f32 %v10835_v44, %v12031_v26  ;;  %v1239_v47 = vpop.f32.mrb[19].mxu0  ;;  %10965 = vmatmul.mubr.msk.bf16.gmra.mrb[36].mxu1 %vm1914_vm2, %v1818_v38  ;;  %v1616_v41 = vadd.f32 %v10927_v37, %v12031_v26  ;;  %v1791_v55 = vmax.f32 %v1605_v40, 0.0 }
 0x10d   : > { %v1699_v48 = vmax.f32 %v1237_v43, 0.0  ;;  %v1240_v49 = vadd.f32 %v12031_v26, %v1239_v47  ;;  %v1608_v47 = vadd.f32 %v12031_v26, %v1607_v42 }
 0x10e   : > { %v1702_v50 = vmax.f32 %v1248_v46, 0.0  ;;  %v2896_v46 = vld [vmem:[%s14615_s5 + $0x1a0] sm:$0xff]  ;;  %v1794_v56 = vmax.f32 %v1616_v41, 0.0 }
 0x10f   : > { %v1700_v51 = vmax.f32 %v1240_v49, 0.0 }
 0x110   : > { %v1820_v52 = vpack.c.bf16 %v1702_v50, %v1701_v45  ;;  %v2892_v45 = vld [vmem:[%s14615_s5 + $0x180] sm:$0xff]  ;;  %v1793_v50 = vmax.f32 %v1613_v39, 0.0 }
 0x111   : > { %v1819_v53 = vpack.c.bf16 %v1700_v51, %v1699_v48  ;;  %v10838_v54 = vpop.f32.mrb[20].mxu0  ;;  %v10306_v51 = vcombine.low %v2892_v45, %v2896_v46 }
 0x112   : > { %v1261_v60 = vadd.f32 %v10838_v54, %v12031_v26  ;;  %v1252_v61 = vpop.f32.mrb[21].mxu0 }
 0x113   : > { %v1253_v0 = vadd.f32 %v12031_v26, %v1252_v61  ;;  %v10839_v1 = vpop.f32.mrb[22].mxu0  ;;  %10968 = vmatprep.mubr.msk.bf16.mxu1 %vm1914_vm2, %v1819_v53 }
 0x114   : > { %v1705_v2 = vmax.f32 %v1261_v60, 0.0  ;;  %v1264_v3 = vadd.f32 %v10839_v1, %v12031_v26  ;;  %v1255_v4 = vpop.f32.mrb[23].mxu0  ;;  %10969 = vmatmul.mubr.msk.bf16.gmra.mrb[40].mxu1 %vm1914_vm2, %v1820_v52  ;;  %v10307_v52 = vcombine.high %v2892_v45, %v2896_v46  ;;  %v1792_v60 = vmax.f32 %v1608_v47, 0.0  ;;  %v2885_v45 = vld [vmem:[%s14615_s5 + $0x148] sm:$0xff] }
 0x115   : > { %v1703_v5 = vmax.f32 %v1253_v0, 0.0  ;;  %v1256_v6 = vadd.f32 %v12031_v26, %v1255_v4  ;;  %v10930_v4 = vpop.f32.mrb[8].mxu1  ;;  %v2889_v46 = vld [vmem:[%s14615_s5 + $0x168] sm:$0xff] }
 0x116   : > { %v1706_v8 = vmax.f32 %v1264_v3, 0.0  ;;  %3240 = vmatprep.subr.bf16.mxu0 %v10307_v52  ;;  %v12138_v3 = vpack.c.bf16 %v1792_v60, %v1791_v55  ;;  %v10300_v55 = vcombine.low %v2885_v45, %v2889_v46 }
 0x117   : > { %v1704_v58 = vmax.f32 %v1256_v6, 0.0  ;;  %3241 = vmatpush1.bf16.msra.mxu0 %v10306_v51  ;;  %v1620_v6 = vpop.f32.mrb[9].mxu1 }
 0x118   : > { %v1822_v9 = vpack.c.bf16 %v1706_v8, %v1705_v2  ;;  %v12136_v2 = vpack.c.bf16 %v1794_v56, %v1793_v50  ;;  %v10931_v8 = vpop.f32.mrb[10].mxu1  ;;  %v1621_v59 = vadd.f32 %v12031_v26, %v1620_v6  ;;  %v10301_v56 = vcombine.high %v2885_v45, %v2889_v46 }
 0x119   : > { %v1821_v14 = vpack.c.bf16 %v1704_v58, %v1703_v5  ;;  %v10842_v15 = vpop.f32.mrb[24].mxu0  ;;  %v1629_v58 = vadd.f32 %v10930_v4, %v12031_v26  ;;  %v1623_v10 = vpop.f32.mrb[11].mxu1 }
 0x11a   : > { %v1277_v17 = vadd.f32 %v10842_v15, %v12031_v26  ;;  %v1268_v18 = vpop.f32.mrb[25].mxu0  ;;  %v1624_v13 = vadd.f32 %v12031_v26, %v1623_v10  ;;  %3911 = vmatprep.subr.bf16.mxu1 %v10301_v56 }
 0x11b   : > { %v1269_v22 = vadd.f32 %v12031_v26, %v1268_v18  ;;  %v10843_v23 = vpop.f32.mrb[26].mxu0  ;;  %10972 = vmatprep.mubr.msk.bf16.mxu1 %vm1914_vm2, %v1821_v14  ;;  %v1797_v16 = vmax.f32 %v1629_v58, 0.0  ;;  %3912 = vmatpush1.bf16.msra.mxu1 %v10300_v55 }
 0x11c   : > { %v1709_v25 = vmax.f32 %v1277_v17, 0.0  ;;  %v1280_v27 = vadd.f32 %v10843_v23, %v12031_v26  ;;  %v1271_v28 = vpop.f32.mrb[27].mxu0  ;;  %10973 = vmatmul.mubr.msk.bf16.gmra.mrb[44].mxu1 %vm1914_vm2, %v1822_v9  ;;  %v1632_v9 = vadd.f32 %v10931_v8, %v12031_v26  ;;  %v1795_v17 = vmax.f32 %v1621_v59, 0.0 }
 0x11d   : > { %v1707_v30 = vmax.f32 %v1269_v22, 0.0  ;;  %v1272_v31 = vadd.f32 %v12031_v26, %v1271_v28  ;;  %v1796_v21 = vmax.f32 %v1624_v13, 0.0 }
 0x11e   : > { %v1710_v34 = vmax.f32 %v1280_v27, 0.0  ;;  %v1798_v18 = vmax.f32 %v1632_v9, 0.0 }
 0x11f   : > { %v1708_v36 = vmax.f32 %v1272_v31, 0.0  ;;  %v10934_v31 = vpop.f32.mrb[12].mxu1 }
 0x120   : > { %v1824_v38 = vpack.c.bf16 %v1710_v34, %v1709_v25  ;;  %v12149_v25 = vpack.c.bf16 %v1798_v18, %v1797_v16  ;;  %v1636_v34 = vpop.f32.mrb[13].mxu1 }
 0x121   : > { %v1823_v43 = vpack.c.bf16 %v1708_v36, %v1707_v30  ;;  %v10846_v44 = vpop.f32.mrb[28].mxu0  ;;  %v12152_v30 = vpack.c.bf16 %v1796_v21, %v1795_v17  ;;  %v10935_v36 = vpop.f32.mrb[14].mxu1  ;;  %v1637_v39 = vadd.f32 %v12031_v26, %v1636_v34 }
 0x122   : > { %v1293_v48 = vadd.f32 %v10846_v44, %v12031_v26  ;;  %v1284_v49 = vpop.f32.mrb[29].mxu0  ;;  %v1648_v40 = vadd.f32 %v10935_v36, %v12031_v26  ;;  %v1639_v41 = vpop.f32.mrb[15].mxu1 }
 0x123   : > { %v1285_v53 = vadd.f32 %v12031_v26, %v1284_v49  ;;  %v10847_v54 = vpop.f32.mrb[30].mxu0  ;;  %10976 = vmatprep.mubr.msk.bf16.mxu1 %vm1914_vm2, %v1823_v43  ;;  %v1640_v44 = vadd.f32 %v12031_v26, %v1639_v41  ;;  %v1799_v50 = vmax.f32 %v1637_v39, 0.0 }
 0x124   : > { %v1713_v61 = vmax.f32 %v1293_v48, 0.0  ;;  %v1296_v62 = vadd.f32 %v10847_v54, %v12031_v26  ;;  %v1287_v63 = vpop.f32.mrb[31].mxu0  ;;  %10977 = vmatmul.mubr.msk.bf16.gmra.mrb[48].mxu1 %vm1914_vm2, %v1824_v38  ;;  %v1645_v38 = vadd.f32 %v10934_v31, %v12031_v26  ;;  %v1802_v51 = vmax.f32 %v1648_v40, 0.0 }
 0x125   : > { %v1711_v0 = vmax.f32 %v1285_v53, 0.0  ;;  %v1288_v1 = vadd.f32 %v12031_v26, %v1287_v63  ;;  %v1800_v54 = vmax.f32 %v1640_v44, 0.0 }
 0x126   : > { %v1714_v5 = vmax.f32 %v1296_v62, 0.0  ;;  %v1801_v49 = vmax.f32 %v1645_v38, 0.0 }
 0x127   : > { %v1712_v7 = vmax.f32 %v1288_v1, 0.0  ;;  %v12172_v4 = vpack.c.bf16 %v1800_v54, %v1799_v50 }
 0x128   : > { %v1826_v57 = vpack.c.bf16 %v1714_v5, %v1713_v61  ;;  %v12169_v63 = vpack.c.bf16 %v1802_v51, %v1801_v49  ;;  %v10938_v5 = vpop.f32.mrb[16].mxu1 }
 0x129   : > { %v1825_v11 = vpack.c.bf16 %v1712_v7, %v1711_v0  ;;  %v10850_v12 = vpop.f32.mrb[32].mxu0  ;;  %v1652_v7 = vpop.f32.mrb[17].mxu1  ;;  %v1661_v59 = vadd.f32 %v10938_v5, %v12031_v26 }
 0x12a   : > { %v1309_v14 = vadd.f32 %v10850_v12, %v12031_v26  ;;  %v1300_v15 = vpop.f32.mrb[33].mxu0  ;;  %v1653_v9 = vadd.f32 %v12031_v26, %v1652_v7 }
 0x12b   : > { %v1301_v19 = vadd.f32 %v12031_v26, %v1300_v15  ;;  %v10851_v20 = vpop.f32.mrb[34].mxu0  ;;  %10980 = vmatprep.mubr.msk.bf16.mxu1 %vm1914_vm2, %v1825_v11  ;;  %v2904_v15 = vld [vmem:[%s14615_s5 + $0x1e0] sm:$0xff] }
 0x12c   : > { %v1717_v22 = vmax.f32 %v1309_v14, 0.0  ;;  %v1312_v23 = vadd.f32 %v10851_v20, %v12031_v26  ;;  %v1303_v24 = vpop.f32.mrb[35].mxu0  ;;  %10981 = vmatmul.mubr.msk.bf16.gmra.mrb[52].mxu1 %vm1914_vm2, %v1826_v57  ;;  %v10939_v57 = vpop.f32.mrb[18].mxu1  ;;  %v2900_v14 = vld [vmem:[%s14615_s5 + $0x1c0] sm:$0xff]  ;;  %v1803_v20 = vmax.f32 %v1653_v9, 0.0 }
 0x12d   : > { %v1715_v27 = vmax.f32 %v1301_v19, 0.0  ;;  %v1304_v28 = vadd.f32 %v12031_v26, %v1303_v24  ;;  %v1664_v10 = vadd.f32 %v10939_v57, %v12031_v26  ;;  %v1655_v11 = vpop.f32.mrb[19].mxu1  ;;  %v1805_v19 = vmax.f32 %v1661_v59, 0.0 }
 0x12e   : > { %v1718_v33 = vmax.f32 %v1312_v23, 0.0  ;;  %v1656_v16 = vadd.f32 %v12031_v26, %v1655_v11  ;;  %v10314_v24 = vcombine.low %v2900_v14, %v2904_v15  ;;  %v10942_v39 = vpop.f32.mrb[20].mxu1 }
 0x12f   : > { %v1716_v35 = vmax.f32 %v1304_v28, 0.0  ;;  %v1806_v21 = vmax.f32 %v1664_v10, 0.0  ;;  %v1677_v41 = vadd.f32 %v10942_v39, %v12031_v26 }
 0x130   : > { %v1828_v37 = vpack.c.bf16 %v1718_v33, %v1717_v22  ;;  %v1804_v28 = vmax.f32 %v1656_v16, 0.0 }
 0x131   : > { %v1827_v42 = vpack.c.bf16 %v1716_v35, %v1715_v27  ;;  %v10854_v43 = vpop.f32.mrb[36].mxu0  ;;  %v10315_v27 = vcombine.high %v2900_v14, %v2904_v15  ;;  %v12189_v35 = vpack.c.bf16 %v1806_v21, %v1805_v19 }
 0x132   : > { %v1325_v47 = vadd.f32 %v10854_v43, %v12031_v26  ;;  %v1316_v48 = vpop.f32.mrb[37].mxu0  ;;  %v12192_v38 = vpack.c.bf16 %v1804_v28, %v1803_v20 }
 0x133   : > { %v1317_v52 = vadd.f32 %v12031_v26, %v1316_v48  ;;  %v10855_v53 = vpop.f32.mrb[38].mxu0  ;;  %10984 = vmatprep.mubr.msk.bf16.mxu1 %vm1914_vm2, %v1827_v42  ;;  %3242 = vmatprep.subr.bf16.mxu0 %v10315_v27  ;;  %v1668_v42 = vpop.f32.mrb[21].mxu1 }
 0x134   : > { %v1721_v60 = vmax.f32 %v1325_v47, 0.0  ;;  %v1328_v61 = vadd.f32 %v10855_v53, %v12031_v26  ;;  %v1319_v62 = vpop.f32.mrb[39].mxu0  ;;  %10985 = vmatmul.mubr.msk.bf16.gmra.mrb[56].mxu1 %vm1914_vm2, %v1828_v37  ;;  %3243 = vmatpush1.bf16.msra.mxu0 %v10314_v24  ;;  %v1669_v44 = vadd.f32 %v12031_v26, %v1668_v42  ;;  %v10943_v45 = vpop.f32.mrb[22].mxu1  ;;  %v1809_v47 = vmax.f32 %v1677_v41, 0.0  ;;  %v2897_v24 = vld [vmem:[%s14615_s5 + $0x1a8] sm:$0xff]  ;;  %v12230_v41 = vld [vmem:[%s14615_s5 + $0x30] sm:$0xff] }
 0x135   : > { %v1719_v0 = vmax.f32 %v1317_v52, 0.0  ;;  %v1320_v1 = vadd.f32 %v12031_v26, %v1319_v62  ;;  %v1680_v48 = vadd.f32 %v10943_v45, %v12031_v26  ;;  %v1671_v49 = vpop.f32.mrb[23].mxu1 }
 0x136   : > { %v1722_v6 = vmax.f32 %v1328_v61, 0.0  ;;  %v1807_v52 = vmax.f32 %v1669_v44, 0.0  ;;  %v1672_v53 = vadd.f32 %v12031_v26, %v1671_v49 }
 0x137   : > { %v1720_v8 = vmax.f32 %v1320_v1, 0.0  ;;  %v1810_v56 = vmax.f32 %v1680_v48, 0.0 }
 0x138   : > { %v1830_v58 = vpack.c.bf16 %v1722_v6, %v1721_v60  ;;  %v1808_v62 = vmax.f32 %v1672_v53, 0.0 }
 0x139   : > { %v1829_v12 = vpack.c.bf16 %v1720_v8, %v1719_v0  ;;  %v10858_v13 = vpop.f32.mrb[40].mxu0  ;;  %v12203_v6 = vpack.c.bf16 %v1810_v56, %v1809_v47 }
 0x13a   : > { %v1341_v17 = vadd.f32 %v10858_v13, %v12031_v26  ;;  %v1332_v18 = vpop.f32.mrb[41].mxu0  ;;  %v12206_v57 = vpack.c.bf16 %v1808_v62, %v1807_v52 }
 0x13b   : > { %v1333_v22 = vadd.f32 %v12031_v26, %v1332_v18  ;;  %v10859_v23 = vpop.f32.mrb[42].mxu0  ;;  %10988 = vmatprep.mubr.msk.bf16.mxu1 %vm1914_vm2, %v1829_v12 }
 0x13c   : > { %v1725_v31 = vmax.f32 %v1341_v17, 0.0  ;;  %v1344_v33 = vadd.f32 %v10859_v23, %v12031_v26  ;;  %v1335_v34 = vpop.f32.mrb[43].mxu0  ;;  %10989 = vmatmul.mubr.msk.bf16.gmra.mrb[60].mxu1 %vm1914_vm2, %v1830_v58  ;;  %v2893_v23 = vld [vmem:[%s14615_s5 + $0x188] sm:$0xff] }
 0x13d   : > { %v1723_v36 = vmax.f32 %v1333_v22, 0.0  ;;  %v1336_v37 = vadd.f32 %v12031_v26, %v1335_v34  ;;  %v10308_v28 = vcombine.low %v2893_v23, %v2897_v24 }
 0x13e   : > { %v1726_v40 = vmax.f32 %v1344_v33, 0.0  ;;  %v14624_v33 = vmov 0  }
 0x13f   : > { %v1724_v43 = vmax.f32 %v1336_v37, 0.0  ;;  %3260 = vmatprep.mubr.bf16.mxu0 %v14624_v33 }
 0x140   : > { %v1832_v46 = vpack.c.bf16 %v1726_v40, %v1725_v31  ;;  %v10309_v31 = vcombine.high %v2893_v23, %v2897_v24  ;;  %v12225_v40 = vld [vmem:[%s14615_s5 + $0x10] sm:$0xff] }
 0x141   : > { %v1831_v50 = vpack.c.bf16 %v1724_v43, %v1723_v36  ;;  %v10862_v51 = vpop.f32.mrb[44].mxu0  ;;  %v10262_v44 = vcombine.low %v12225_v40, %v12230_v41  ;;  %v10263_v45 = vcombine.high %v12225_v40, %v12230_v41 }
 0x142   : > { %v1357_v54 = vadd.f32 %v10862_v51, %v12031_v26  ;;  %v1348_v55 = vpop.f32.mrb[45].mxu0  ;;  %3913 = vmatprep.subr.bf16.mxu1 %v10309_v31 }
 0x143   : > { %v1349_v60 = vadd.f32 %v12031_v26, %v1348_v55  ;;  %v10863_v61 = vpop.f32.mrb[46].mxu0  ;;  %10992 = vmatprep.mubr.msk.bf16.mxu1 %vm1914_vm2, %v1831_v50  ;;  %3914 = vmatpush1.bf16.msra.mxu1 %v10308_v28 }
 0x144   : > { %v1729_v0 = vmax.f32 %v1357_v54, 0.0  ;;  %v1360_v1 = vadd.f32 %v10863_v61, %v12031_v26  ;;  %v1351_v5 = vpop.f32.mrb[47].mxu0  ;;  %10993 = vmatmul.mubr.msk.bf16.gmra.mrb[64].mxu1 %vm1914_vm2, %v1832_v46  ;;  %4574 = vmatprep.subr.bf16.mxu0 %v10263_v45  ;;  %v2905_v45 = vld [vmem:[%s14615_s5 + $0x1e8] sm:$0xff] }
 0x145   : > { %v1727_v7 = vmax.f32 %v1349_v60, 0.0  ;;  %v1352_v8 = vadd.f32 %v12031_v26, %v1351_v5 }
 0x146   : > { %v1730_v58 = vmax.f32 %v1360_v1, 0.0 }
 0x147   : > { %v1728_v59 = vmax.f32 %v1352_v8, 0.0 }
 0x148   : > { %v1834_v9 = vpack.c.bf16 %v1730_v58, %v1729_v0 }
 0x149   : > { %v1833_v10 = vpack.c.bf16 %v1728_v59, %v1727_v7  ;;  %v10866_v11 = vpop.f32.mrb[48].mxu0 }
 0x14a   : > { %v1373_v12 = vadd.f32 %v10866_v11, %v12031_v26  ;;  %v1364_v13 = vpop.f32.mrb[49].mxu0 }
 0x14b   : > { %v1365_v14 = vadd.f32 %v12031_v26, %v1364_v13  ;;  %v10867_v15 = vpop.f32.mrb[50].mxu0  ;;  %10996 = vmatprep.mubr.msk.bf16.mxu1 %vm1914_vm2, %v1833_v10 }
 0x14c   : > { %v1733_v16 = vmax.f32 %v1373_v12, 0.0  ;;  %v1376_v17 = vadd.f32 %v10867_v15, %v12031_v26  ;;  %v1367_v18 = vpop.f32.mrb[51].mxu0  ;;  %10997 = vmatmul.mubr.msk.bf16.gmra.mrb[68].mxu1 %vm1914_vm2, %v1834_v9 }
 0x14d   : > { %v1731_v19 = vmax.f32 %v1365_v14, 0.0  ;;  %v1368_v20 = vadd.f32 %v12031_v26, %v1367_v18 }
 0x14e   : > { %v1734_v21 = vmax.f32 %v1376_v17, 0.0 }
 0x14f   : > { %v1732_v22 = vmax.f32 %v1368_v20, 0.0 }
 0x150   : > { %v1836_v27 = vpack.c.bf16 %v1734_v21, %v1733_v16 }
 0x151   : > { %v1835_v34 = vpack.c.bf16 %v1732_v22, %v1731_v19  ;;  %v10870_v36 = vpop.f32.mrb[52].mxu0 }
 0x152   : > { %v1389_v37 = vadd.f32 %v10870_v36, %v12031_v26  ;;  %v1380_v39 = vpop.f32.mrb[53].mxu0 }
 0x153   : > { %v1381_v42 = vadd.f32 %v12031_v26, %v1380_v39  ;;  %v10871_v43 = vpop.f32.mrb[54].mxu0  ;;  %11000 = vmatprep.mubr.msk.bf16.mxu1 %vm1914_vm2, %v1835_v34 }
 0x154   : > { %v1737_v46 = vmax.f32 %v1389_v37, 0.0  ;;  %v1392_v47 = vadd.f32 %v10871_v43, %v12031_v26  ;;  %v1383_v48 = vpop.f32.mrb[55].mxu0  ;;  %11001 = vmatmul.mubr.msk.bf16.gmra.mrb[72].mxu1 %vm1914_vm2, %v1836_v27  ;;  %v2901_v43 = vld [vmem:[%s14615_s5 + $0x1c8] sm:$0xff] }
 0x155   : > { %v1735_v49 = vmax.f32 %v1381_v42, 0.0  ;;  %v1384_v50 = vadd.f32 %v12031_v26, %v1383_v48  ;;  %v10316_v48 = vcombine.low %v2901_v43, %v2905_v45 }
 0x156   : > { %v1738_v51 = vmax.f32 %v1392_v47, 0.0 }
 0x157   : > { %v1736_v52 = vmax.f32 %v1384_v50, 0.0 }
 0x158   : > { %v1838_v53 = vpack.c.bf16 %v1738_v51, %v1737_v46 }
 0x159   : > { %v1837_v54 = vpack.c.bf16 %v1736_v52, %v1735_v49  ;;  %v10874_v55 = vpop.f32.mrb[56].mxu0  ;;  %v10317_v49 = vcombine.high %v2901_v43, %v2905_v45 }
 0x15a   : > { %v1405_v56 = vadd.f32 %v10874_v55, %v12031_v26  ;;  %v1396_v60 = vpop.f32.mrb[57].mxu0 }
 0x15b   : > { %v1397_v61 = vadd.f32 %v12031_v26, %v1396_v60  ;;  %v10875_v62 = vpop.f32.mrb[58].mxu0  ;;  %11004 = vmatprep.mubr.msk.bf16.mxu1 %vm1914_vm2, %v1837_v54  ;;  %3915 = vmatprep.subr.bf16.mxu1 %v10317_v49 }
 0x15c   : > { %v1741_v0 = vmax.f32 %v1405_v56, 0.0  ;;  %v1408_v1 = vadd.f32 %v10875_v62, %v12031_v26  ;;  %v1399_v5 = vpop.f32.mrb[59].mxu0  ;;  %11005 = vmatmul.mubr.msk.bf16.gmra.mrb[76].mxu1 %vm1914_vm2, %v1838_v53 }
 0x15d   : > { %v1739_v7 = vmax.f32 %v1397_v61, 0.0  ;;  %v1400_v8 = vadd.f32 %v12031_v26, %v1399_v5  ;;  %3916 = vmatpush1.bf16.msra.mxu1 %v10316_v48 }
 0x15e   : > { %v1742_v58 = vmax.f32 %v1408_v1, 0.0 }
 0x15f   : > { %v1740_v59 = vmax.f32 %v1400_v8, 0.0 }
 0x160   : > { %v1840_v9 = vpack.c.bf16 %v1742_v58, %v1741_v0 }
 0x161   : > { %v1839_v10 = vpack.c.bf16 %v1740_v59, %v1739_v7  ;;  %v10878_v11 = vpop.f32.mrb[60].mxu0 }
 0x162   : > { %v1421_v12 = vadd.f32 %v10878_v11, %v12031_v26  ;;  %v1412_v13 = vpop.f32.mrb[61].mxu0 }
 0x163   : > { %v1413_v14 = vadd.f32 %v12031_v26, %v1412_v13  ;;  %v10879_v15 = vpop.f32.mrb[62].mxu0  ;;  %11008 = vmatprep.mubr.msk.bf16.mxu1 %vm1914_vm2, %v1839_v10 }
 0x164   : > { %v1745_v16 = vmax.f32 %v1421_v12, 0.0  ;;  %v1424_v17 = vadd.f32 %v10879_v15, %v12031_v26  ;;  %v1415_v18 = vpop.f32.mrb[63].mxu0  ;;  %11009 = vmatmul.mubr.msk.bf16.gmra.mrb[80].mxu1 %vm1914_vm2, %v1840_v9 }
 0x165   : > { %v1743_v19 = vmax.f32 %v1413_v14, 0.0  ;;  %v1416_v20 = vadd.f32 %v12031_v26, %v1415_v18 }
 0x166   : > { %v1746_v21 = vmax.f32 %v1424_v17, 0.0 }
 0x167   : > { %v1744_v22 = vmax.f32 %v1416_v20, 0.0 }
 0x168   : > { %v1842_v23 = vpack.c.bf16 %v1746_v21, %v1745_v16 }
 0x169   : > { %v1841_v24 = vpack.c.bf16 %v1744_v22, %v1743_v19  ;;  %v10882_v27 = vpop.f32.mrb[64].mxu0 }
 0x16a   : > { %v1437_v28 = vadd.f32 %v10882_v27, %v12031_v26  ;;  %v1428_v31 = vpop.f32.mrb[65].mxu0 }
 0x16b   : > { %v1429_v34 = vadd.f32 %v12031_v26, %v1428_v31  ;;  %v10883_v36 = vpop.f32.mrb[66].mxu0  ;;  %11012 = vmatprep.mubr.msk.bf16.mxu1 %vm1914_vm2, %v1841_v24 }
 0x16c   : > { %v1749_v37 = vmax.f32 %v1437_v28, 0.0  ;;  %v1440_v39 = vadd.f32 %v10883_v36, %v12031_v26  ;;  %v1431_v42 = vpop.f32.mrb[67].mxu0  ;;  %11013 = vmatmul.mubr.msk.bf16.gmra.mrb[84].mxu1 %vm1914_vm2, %v1842_v23 }
 0x16d   : > { %v1747_v46 = vmax.f32 %v1429_v34, 0.0  ;;  %v1432_v47 = vadd.f32 %v12031_v26, %v1431_v42 }
 0x16e   : > { %v1750_v50 = vmax.f32 %v1440_v39, 0.0 }
 0x16f   : > { %v1748_v51 = vmax.f32 %v1432_v47, 0.0 }
 0x170   : > { %v1844_v52 = vpack.c.bf16 %v1750_v50, %v1749_v37 }
 0x171   : > { %v1843_v53 = vpack.c.bf16 %v1748_v51, %v1747_v46  ;;  %v10886_v54 = vpop.f32.mrb[68].mxu0 }
 0x172   : > { %v1453_v55 = vadd.f32 %v10886_v54, %v12031_v26  ;;  %v1444_v56 = vpop.f32.mrb[69].mxu0 }
 0x173   : > { %v1445_v60 = vadd.f32 %v12031_v26, %v1444_v56  ;;  %v10887_v61 = vpop.f32.mrb[70].mxu0  ;;  %11016 = vmatprep.mubr.msk.bf16.mxu1 %vm1914_vm2, %v1843_v53 }
 0x174   : > { %v1753_v62 = vmax.f32 %v1453_v55, 0.0  ;;  %v1456_v0 = vadd.f32 %v10887_v61, %v12031_v26  ;;  %v1447_v1 = vpop.f32.mrb[71].mxu0  ;;  %11017 = vmatmul.mubr.msk.bf16.gmra.mrb[88].mxu1 %vm1914_vm2, %v1844_v52  ;;  %v12296_v61 = vld [vmem:[%s14615_s5 + $0x38] sm:$0xff] }
 0x175   : > { %v1751_v5 = vmax.f32 %v1445_v60, 0.0  ;;  %v1448_v7 = vadd.f32 %v12031_v26, %v1447_v1  ;;  %v12291_v60 = vld [vmem:[%s14615_s5 + $0x18] sm:$0xff] }
 0x176   : > { %v1754_v8 = vmax.f32 %v1456_v0, 0.0  ;;  %v10264_v1 = vcombine.low %v12291_v60, %v12296_v61 }
 0x177   : > { %v1752_v58 = vmax.f32 %v1448_v7, 0.0 }
 0x178   : > { %v1846_v59 = vpack.c.bf16 %v1754_v8, %v1753_v62 }
 0x179   : > { %v1845_v9 = vpack.c.bf16 %v1752_v58, %v1751_v5  ;;  %v10890_v10 = vpop.f32.mrb[72].mxu0  ;;  %v10265_v5 = vcombine.high %v12291_v60, %v12296_v61 }
 0x17a   : > { %v1469_v11 = vadd.f32 %v10890_v10, %v12031_v26  ;;  %v1460_v12 = vpop.f32.mrb[73].mxu0 }
 0x17b   : > { %v1461_v13 = vadd.f32 %v12031_v26, %v1460_v12  ;;  %v10891_v14 = vpop.f32.mrb[74].mxu0  ;;  %11020 = vmatprep.mubr.msk.bf16.mxu1 %vm1914_vm2, %v1845_v9  ;;  %5247 = vmatprep.subr.bf16.mxu1 %v10265_v5 }
 0x17c   : > { %v1757_v15 = vmax.f32 %v1469_v11, 0.0  ;;  %v1472_v16 = vadd.f32 %v10891_v14, %v12031_v26  ;;  %v1463_v17 = vpop.f32.mrb[75].mxu0  ;;  %11021 = vmatmul.mubr.msk.bf16.gmra.mrb[92].mxu1 %vm1914_vm2, %v1846_v59 }
 0x17d   : > { %v1755_v18 = vmax.f32 %v1461_v13, 0.0  ;;  %v1464_v19 = vadd.f32 %v12031_v26, %v1463_v17 }
 0x17e   : > { %v1758_v20 = vmax.f32 %v1472_v16, 0.0 }
 0x17f   : > { %v1756_v21 = vmax.f32 %v1464_v19, 0.0 }
 0x180   : > { %v1848_v22 = vpack.c.bf16 %v1758_v20, %v1757_v15 }
 0x181   : > { %v1847_v23 = vpack.c.bf16 %v1756_v21, %v1755_v18  ;;  %v10894_v24 = vpop.f32.mrb[76].mxu0 }
 0x182   : > { %v1485_v27 = vadd.f32 %v10894_v24, %v12031_v26  ;;  %v1476_v28 = vpop.f32.mrb[77].mxu0  ;;  %v11723_v24 = vld [vmem:[%s14612_s2] ss:$0 sm:$0xff] }
 0x183   : > { %v1477_v31 = vadd.f32 %v12031_v26, %v1476_v28  ;;  %v10895_v34 = vpop.f32.mrb[78].mxu0  ;;  %11024 = vmatprep.mubr.msk.bf16.mxu1 %vm1914_vm2, %v1847_v23 }
 0x184   : > { %v1761_v36 = vmax.f32 %v1485_v27, 0.0  ;;  %v1488_v37 = vadd.f32 %v10895_v34, %v12031_v26  ;;  %v1479_v39 = vpop.f32.mrb[79].mxu0  ;;  %11025 = vmatmul.mubr.msk.bf16.gmra.mrb[96].mxu1 %vm1914_vm2, %v1848_v22 }
 0x185   : > { %v1759_v42 = vmax.f32 %v1477_v31, 0.0  ;;  %v1480_v43 = vadd.f32 %v12031_v26, %v1479_v39 }
 0x186   : > { %v1762_v45 = vmax.f32 %v1488_v37, 0.0 }
 0x187   : > { %v1760_v46 = vmax.f32 %v1480_v43, 0.0 }
 0x188   : > { %v1850_v47 = vpack.c.bf16 %v1762_v45, %v1761_v36 }
 0x189   : > { %v1849_v48 = vpack.c.bf16 %v1760_v46, %v1759_v42  ;;  %v10898_v49 = vpop.f32.mrb[80].mxu0 }
 0x18a   : > { %v1501_v50 = vadd.f32 %v10898_v49, %v12031_v26  ;;  %v1492_v51 = vpop.f32.mrb[81].mxu0 }
 0x18b   : > { %v1493_v52 = vadd.f32 %v12031_v26, %v1492_v51  ;;  %v10899_v53 = vpop.f32.mrb[82].mxu0  ;;  %11028 = vmatprep.mubr.msk.bf16.mxu1 %vm1914_vm2, %v1849_v48 }
 0x18c   : > { %v1765_v54 = vmax.f32 %v1501_v50, 0.0  ;;  %v1504_v55 = vadd.f32 %v10899_v53, %v12031_v26  ;;  %v1495_v56 = vpop.f32.mrb[83].mxu0  ;;  %11029 = vmatmul.mubr.msk.bf16.gmra.mrb[100].mxu1 %vm1914_vm2, %v1850_v47 }
 0x18d   : > { %v1763_v62 = vmax.f32 %v1493_v52, 0.0  ;;  %v1496_v0 = vadd.f32 %v12031_v26, %v1495_v56 }
 0x18e   : > { %v1766_v7 = vmax.f32 %v1504_v55, 0.0 }
 0x18f   : > { %v1764_v8 = vmax.f32 %v1496_v0, 0.0 }
 0x190   : > { %v1852_v58 = vpack.c.bf16 %v1766_v7, %v1765_v54 }
 0x191   : > { %v1851_v59 = vpack.c.bf16 %v1764_v8, %v1763_v62  ;;  %v10902_v9 = vpop.f32.mrb[84].mxu0 }
 0x192   : > { %v1517_v10 = vadd.f32 %v10902_v9, %v12031_v26  ;;  %v1508_v11 = vpop.f32.mrb[85].mxu0 }
 0x193   : > { %v1509_v12 = vadd.f32 %v12031_v26, %v1508_v11  ;;  %v10903_v13 = vpop.f32.mrb[86].mxu0  ;;  %11032 = vmatprep.mubr.msk.bf16.mxu1 %vm1914_vm2, %v1851_v59 }
 0x194   : > { %v1769_v14 = vmax.f32 %v1517_v10, 0.0  ;;  %v1520_v15 = vadd.f32 %v10903_v13, %v12031_v26  ;;  %v1511_v16 = vpop.f32.mrb[87].mxu0  ;;  %11033 = vmatmul.mubr.msk.bf16.gmra.mrb[104].mxu1 %vm1914_vm2, %v1852_v58 }
 0x195   : > { %v1767_v17 = vmax.f32 %v1509_v12, 0.0  ;;  %v1512_v18 = vadd.f32 %v12031_v26, %v1511_v16 }
 0x196   : > { %v1770_v19 = vmax.f32 %v1520_v15, 0.0 }
 0x197   : > { %v1768_v20 = vmax.f32 %v1512_v18, 0.0 }
 0x198   : > { %v1854_v21 = vpack.c.bf16 %v1770_v19, %v1769_v14 }
 0x199   : > { %v1853_v22 = vpack.c.bf16 %v1768_v20, %v1767_v17  ;;  %v10906_v23 = vpop.f32.mrb[88].mxu0 }
 0x19a   : > { %v1533_v27 = vadd.f32 %v11723_v24, %v10906_v23  ;;  %v1524_v28 = vpop.f32.mrb[89].mxu0 }
 0x19b   : > { %v1525_v31 = vadd.f32 %v11723_v24, %v1524_v28  ;;  %v10907_v34 = vpop.f32.mrb[90].mxu0  ;;  %11036 = vmatprep.mubr.msk.bf16.mxu1 %vm1914_vm2, %v1853_v22 }
 0x19c   : > { %v1773_v36 = vmax.f32 %v1533_v27, 0.0  ;;  %v1536_v37 = vadd.f32 %v11723_v24, %v10907_v34  ;;  %v1527_v39 = vpop.f32.mrb[91].mxu0  ;;  %11037 = vmatmul.mubr.msk.bf16.gmra.mrb[108].mxu1 %vm1914_vm2, %v1854_v21 }
 0x19d   : > { %v1771_v26 = vmax.f32 %v1525_v31, 0.0  ;;  %v1528_v42 = vadd.f32 %v11723_v24, %v1527_v39 }
 0x19e   : > { %v1774_v43 = vmax.f32 %v1536_v37, 0.0 }
 0x19f   : > { %v1772_v45 = vmax.f32 %v1528_v42, 0.0 }
 0x1a0   : > { %v1856_v46 = vpack.c.bf16 %v1774_v43, %v1773_v36 }
 0x1a1   : > { %v1855_v47 = vpack.c.bf16 %v1772_v45, %v1771_v26  ;;  %v10910_v48 = vpop.f32.mrb[92].mxu0 }
 0x1a2   : > { %v1549_v49 = vadd.f32 %v11723_v24, %v10910_v48  ;;  %v1540_v50 = vpop.f32.mrb[93].mxu0 }
 0x1a3   : > { %v1541_v51 = vadd.f32 %v11723_v24, %v1540_v50  ;;  %v10911_v52 = vpop.f32.mrb[94].mxu0  ;;  %11040 = vmatprep.mubr.msk.bf16.mxu1 %vm1914_vm2, %v1855_v47 }
 0x1a4   : > { %v1777_v53 = vmax.f32 %v1549_v49, 0.0  ;;  %v1552_v54 = vadd.f32 %v11723_v24, %v10911_v52  ;;  %v1543_v55 = vpop.f32.mrb[95].mxu0  ;;  %11041 = vmatmul.mubr.msk.bf16.gmra.mrb[112].mxu1 %vm1914_vm2, %v1856_v46 }
 0x1a5   : > { %v1775_v56 = vmax.f32 %v1541_v51, 0.0  ;;  %v1544_v62 = vadd.f32 %v11723_v24, %v1543_v55 }
 0x1a6   : > { %v1778_v0 = vmax.f32 %v1552_v54, 0.0  ;;  %v2858_v54 = vld [vmem:[%s14615_s5 + $0x70] sm:$0xff] }
 0x1a7   : > { %v1776_v5 = vmax.f32 %v1544_v62, 0.0 }
 0x1a8   : > { %v1858_v7 = vpack.c.bf16 %v1778_v0, %v1777_v53 }
 0x1a9   : > { %v1857_v8 = vpack.c.bf16 %v1776_v5, %v1775_v56  ;;  %v10914_v58 = vpop.f32.mrb[96].mxu0 }
 0x1aa   : > { %v1565_v59 = vadd.f32 %v11723_v24, %v10914_v58  ;;  %v1556_v9 = vpop.f32.mrb[97].mxu0  ;;  %v2862_v58 = vld [vmem:[%s14615_s5 + $0x90] sm:$0xff] }
 0x1ab   : > { %v1557_v10 = vadd.f32 %v11723_v24, %v1556_v9  ;;  %v10915_v11 = vpop.f32.mrb[98].mxu0  ;;  %11044 = vmatprep.mubr.msk.bf16.mxu1 %vm1914_vm2, %v1857_v8 }
 0x1ac   : > { %v1781_v12 = vmax.f32 %v1565_v59, 0.0  ;;  %v1568_v13 = vadd.f32 %v11723_v24, %v10915_v11  ;;  %v1559_v14 = vpop.f32.mrb[99].mxu0  ;;  %11045 = vmatmul.mubr.msk.bf16.gmra.mrb[116].mxu1 %vm1914_vm2, %v1858_v7  ;;  %v2866_v59 = vld [vmem:[%s14615_s5 + $0xb0] sm:$0xff] }
 0x1ad   : > { %v1779_v15 = vmax.f32 %v1557_v10, 0.0  ;;  %v1560_v16 = vadd.f32 %v11723_v24, %v1559_v14  ;;  %v10278_v41 = vcombine.low %v2862_v58, %v2866_v59 }
 0x1ae   : > { %v1782_v17 = vmax.f32 %v1568_v13, 0.0 }
 0x1af   : > { %v1780_v18 = vmax.f32 %v1560_v16, 0.0  ;;  %v10279_v16 = vcombine.high %v2862_v58, %v2866_v59 }
 0x1b0   : > { %v1860_v19 = vpack.c.bf16 %v1782_v17, %v1781_v12 }
 0x1b1   : > { %v1859_v20 = vpack.c.bf16 %v1780_v18, %v1779_v15  ;;  %v10918_v21 = vpop.f32.mrb[100].mxu0 }
 0x1b2   : > { %v1581_v22 = vadd.f32 %v11723_v24, %v10918_v21  ;;  %v1572_v23 = vpop.f32.mrb[101].mxu0 }
 0x1b3   : > { %v1573_v27 = vadd.f32 %v11723_v24, %v1572_v23  ;;  %v10919_v28 = vpop.f32.mrb[102].mxu0  ;;  %11048 = vmatprep.mubr.msk.bf16.mxu1 %vm1914_vm2, %v1859_v20 }
 0x1b4   : > { %v1785_v31 = vmax.f32 %v1581_v22, 0.0  ;;  %v1584_v34 = vadd.f32 %v11723_v24, %v10919_v28  ;;  %v1575_v36 = vpop.f32.mrb[103].mxu0  ;;  %11049 = vmatmul.mubr.msk.bf16.gmra.mrb[120].mxu1 %vm1914_vm2, %v1860_v19 }
 0x1b5   : > { %v1783_v37 = vmax.f32 %v1573_v27, 0.0  ;;  %v1576_v39 = vadd.f32 %v11723_v24, %v1575_v36  ;;  %v12331_v24 = vld [vmem:[%s14614_s4] ss:$0 sm:$0xff] }
 0x1b6   : > { %v1786_v26 = vmax.f32 %v1584_v34, 0.0 }
 0x1b7   : > { %v1784_v42 = vmax.f32 %v1576_v39, 0.0 }
 0x1b8   : > { %v1862_v43 = vpack.c.bf16 %v1786_v26, %v1785_v31 }
 0x1b9   : > { %v1861_v45 = vpack.c.bf16 %v1784_v42, %v1783_v37 }
 0x1bb   : > { %11052 = vmatprep.mubr.msk.bf16.mxu1 %vm1914_vm2, %v1861_v45 }
 0x1bc   : > { %11053 = vmatmul.mubr.msk.bf16.gmra.mrb[124].mxu1 %vm1914_vm2, %v1862_v43 }
 0x1bd   : > { %11056 = vmatprep.mubr.msk.bf16.mxu1 %vm1914_vm2, %v12118_v32 }
 0x1c4   : > { %11057 = vmatmul.mubr.msk.bf16.gmra.mrb[128].mxu1 %vm1914_vm2, %v12115_v29 }
 0x1c5   : > { %11060 = vmatprep.mubr.msk.bf16.mxu1 %vm1914_vm2, %v12138_v3  ;;  %v2854_v3 = vld [vmem:[%s14615_s5 + $0x50] sm:$0xff] }
 0x1c6   : > { %v10271_v7 = vcombine.high %v2854_v3, %v2858_v54  ;;  %v10270_v13 = vcombine.low %v2854_v3, %v2858_v54 }
 0x1c7   : > { %v10954_v46 = vpop.f32.mrb[24].mxu1 }
 0x1c8   : > { %v2150_v47 = vadd.f32 %v10954_v46, %v12331_v24  ;;  %v2141_v48 = vpop.f32.mrb[25].mxu1 }
 0x1c9   : > { %v2142_v49 = vadd.f32 %v12331_v24, %v2141_v48  ;;  %v10955_v50 = vpop.f32.mrb[26].mxu1 }
 0x1ca   : > { %v2153_v32 = vadd.f32 %v10955_v50, %v12331_v24  ;;  %v2144_v51 = vpop.f32.mrb[27].mxu1  ;;  %v2654_v52 = vmax.f32 %v2150_v47, 0.0 }
 0x1cb   : > { %v2145_v29 = vadd.f32 %v12331_v24, %v2144_v51  ;;  %v2652_v55 = vmax.f32 %v2142_v49, 0.0 }
 0x1cc   : > { %v2655_v53 = vmax.f32 %v2153_v32, 0.0  ;;  %11061 = vmatmul.mubr.msk.bf16.gmra.mrb[132].mxu1 %vm1914_vm2, %v12136_v2 }
 0x1cd   : > { %v2653_v56 = vmax.f32 %v2145_v29, 0.0  ;;  %11064 = vmatprep.mubr.msk.bf16.mxu1 %vm1914_vm2, %v12152_v30 }
 0x1ce   : > { %v12347_v62 = vpack.c.bf16 %v2655_v53, %v2654_v52 }
 0x1cf   : > { %v12349_v0 = vpack.c.bf16 %v2653_v56, %v2652_v55  ;;  %v10958_v5 = vpop.f32.mrb[28].mxu1 }
 0x1d0   : > { %v2166_v2 = vadd.f32 %v10958_v5, %v12331_v24  ;;  %v2157_v8 = vpop.f32.mrb[29].mxu1 }
 0x1d1   : > { %v2158_v9 = vadd.f32 %v12331_v24, %v2157_v8  ;;  %3261 = vmatmul.mubr.bf16.vlgmr.msra.gmra.mrb[104].mxu0 %v12349_v0  ;;  %v10959_v30 = vpop.f32.mrb[30].mxu1 }
 0x1d2   : > { %v2658_v10 = vmax.f32 %v2166_v2, 0.0  ;;  %4575 = vmatpush1.bf16.msra.mxu0 %v10262_v44  ;;  %v2169_v11 = vadd.f32 %v10959_v30, %v12331_v24  ;;  %v2160_v12 = vpop.f32.mrb[31].mxu1  ;;  %3270 = vmatprep.mubr.bf16.mxu0 %v14624_v33  ;;  %v2855_v30 = vld [vmem:[%s14615_s5 + $0x58] sm:$0xff] }
 0x1d3   : > { %v2656_v14 = vmax.f32 %v2158_v9, 0.0  ;;  %v2161_v15 = vadd.f32 %v12331_v24, %v2160_v12  ;;  %4576 = vmatprep.subr.bf16.mxu0 %v10271_v7 }
 0x1d4   : > { %v2659_v17 = vmax.f32 %v2169_v11, 0.0  ;;  %11065 = vmatmul.mubr.msk.bf16.gmra.mrb[136].mxu1 %vm1914_vm2, %v12149_v25 }
 0x1d5   : > { %v2657_v18 = vmax.f32 %v2161_v15, 0.0  ;;  %11068 = vmatprep.mubr.msk.bf16.mxu1 %vm1914_vm2, %v12172_v4 }
 0x1d6   : > { %v12370_v40 = vpack.c.bf16 %v2659_v17, %v2658_v10  ;;  %4577 = vmatpush1.bf16.msra.mxu0 %v10270_v13  ;;  %v2859_v10 = vld [vmem:[%s14615_s5 + $0x78] sm:$0xff] }
 0x1d7   : > { %v12372_v44 = vpack.c.bf16 %v2657_v18, %v2656_v14  ;;  %v10962_v19 = vpop.f32.mrb[32].mxu1  ;;  %4578 = vmatprep.subr.bf16.mxu0 %v10279_v16  ;;  %v10273_v17 = vcombine.high %v2855_v30, %v2859_v10 }
 0x1d8   : > { %v2182_v20 = vadd.f32 %v10962_v19, %v12331_v24  ;;  %v2173_v21 = vpop.f32.mrb[33].mxu1 }
 0x1d9   : > { %3271 = vmatmul.mubr.bf16.gmra.mrb[108].mxu0 %v12347_v62  ;;  %v2174_v22 = vadd.f32 %v12331_v24, %v2173_v21  ;;  %v10963_v25 = vpop.f32.mrb[34].mxu1  ;;  %v10272_v21 = vcombine.low %v2855_v30, %v2859_v10 }
 0x1da   : > { %v2662_v23 = vmax.f32 %v2182_v20, 0.0  ;;  %3280 = vmatprep.mubr.bf16.mxu0 %v14624_v33  ;;  %v2185_v4 = vadd.f32 %v10963_v25, %v12331_v24  ;;  %v2176_v27 = vpop.f32.mrb[35].mxu1  ;;  %4579 = vmatpush1.bf16.msra.mxu0 %v10278_v41 }
 0x1db   : > { %v2660_v28 = vmax.f32 %v2174_v22, 0.0  ;;  %v2177_v31 = vadd.f32 %v12331_v24, %v2176_v27 }
 0x1dc   : > { %11069 = vmatmul.mubr.msk.bf16.gmra.mrb[140].mxu1 %vm1914_vm2, %v12169_v63  ;;  %v2663_v34 = vmax.f32 %v2185_v4, 0.0 }
 0x1dd   : > { %11072 = vmatprep.mubr.msk.bf16.mxu1 %vm1914_vm2, %v12192_v38  ;;  %v2661_v36 = vmax.f32 %v2177_v31, 0.0 }
 0x1de   : > { %v12384_v37 = vpack.c.bf16 %v2663_v34, %v2662_v23 }
 0x1df   : > { %v12386_v39 = vpack.c.bf16 %v2661_v36, %v2660_v28  ;;  %v10966_v26 = vpop.f32.mrb[36].mxu1 }
 0x1e0   : > { %v2198_v42 = vadd.f32 %v10966_v26, %v12331_v24  ;;  %v2189_v43 = vpop.f32.mrb[37].mxu1 }
 0x1e1   : > { %3281 = vmatmul.mubr.bf16.gmra.mrb[112].mxu0 %v12372_v44  ;;  %v2190_v45 = vadd.f32 %v12331_v24, %v2189_v43  ;;  %v10967_v46 = vpop.f32.mrb[38].mxu1 }
 0x1e2   : > { %3290 = vmatprep.mubr.bf16.mxu0 %v14624_v33  ;;  %v2666_v63 = vmax.f32 %v2198_v42, 0.0  ;;  %v2201_v47 = vadd.f32 %v10967_v46, %v12331_v24  ;;  %v2192_v38 = vpop.f32.mrb[39].mxu1 }
 0x1e3   : > { %v2664_v48 = vmax.f32 %v2190_v45, 0.0  ;;  %v2193_v49 = vadd.f32 %v12331_v24, %v2192_v38 }
 0x1e4   : > { %11073 = vmatmul.mubr.msk.bf16.gmra.mrb[144].mxu1 %vm1914_vm2, %v12189_v35  ;;  %v2667_v50 = vmax.f32 %v2201_v47, 0.0 }
 0x1e5   : > { %11076 = vmatprep.mubr.msk.bf16.mxu1 %vm1914_vm2, %v12206_v57  ;;  %v2665_v32 = vmax.f32 %v2193_v49, 0.0 }
 0x1e6   : > { %v12398_v51 = vpack.c.bf16 %v2667_v50, %v2666_v63 }
 0x1e7   : > { %v12400_v29 = vpack.c.bf16 %v2665_v32, %v2664_v48  ;;  %v10970_v52 = vpop.f32.mrb[40].mxu1 }
 0x1e8   : > { %14690 = vst [vmem:[#allocation3_spill] sm:$0xff] %v12398_v51  ;;  %v2214_v53 = vadd.f32 %v10970_v52, %v12331_v24  ;;  %v2205_v3 = vpop.f32.mrb[41].mxu1 }
 0x1e9   : > { %14691 = vst [vmem:[#allocation4_spill] sm:$0xff] %v12400_v29  ;;  %3291 = vmatmul.mubr.bf16.gmra.mrb[116].mxu0 %v12370_v40  ;;  %v2206_v54 = vadd.f32 %v12331_v24, %v2205_v3  ;;  %v10971_v55 = vpop.f32.mrb[42].mxu1 }
 0x1ea   : > { %3300 = vmatprep.mubr.bf16.mxu0 %v14624_v33  ;;  %v2670_v35 = vmax.f32 %v2214_v53, 0.0  ;;  %v2217_v56 = vadd.f32 %v10971_v55, %v12331_v24  ;;  %v2208_v57 = vpop.f32.mrb[43].mxu1 }
 0x1eb   : > { %v2668_v5 = vmax.f32 %v2206_v54, 0.0  ;;  %v2209_v7 = vadd.f32 %v12331_v24, %v2208_v57 }
 0x1ec   : > { %11077 = vmatmul.mubr.msk.bf16.gmra.mrb[148].mxu1 %vm1914_vm2, %v12203_v6  ;;  %v2671_v2 = vmax.f32 %v2217_v56, 0.0 }
 0x1ed   : > { %3933 = vmatprep.mubr.bf16.mxu1 %v14624_v33  ;;  %v2669_v8 = vmax.f32 %v2209_v7, 0.0 }
 0x1ee   : > { %v12411_v58 = vpack.c.bf16 %v2671_v2, %v2670_v35 }
 0x1ef   : > { %v12413_v59 = vpack.c.bf16 %v2669_v8, %v2668_v5  ;;  %v10974_v9 = vpop.f32.mrb[44].mxu1 }
 0x1f0   : > { %14692 = vst [vmem:[#allocation5_spill] sm:$0xff] %v12411_v58  ;;  %v2230_v11 = vadd.f32 %v10974_v9, %v12331_v24  ;;  %v2221_v6 = vpop.f32.mrb[45].mxu1 }
 0x1f1   : > { %14693 = vst [vmem:[#allocation6_spill] sm:$0xff] %v12413_v59  ;;  %3301 = vmatmul.mubr.bf16.gmra.mrb[120].mxu0 %v12386_v39  ;;  %v2222_v12 = vadd.f32 %v12331_v24, %v2221_v6  ;;  %v10975_v13 = vpop.f32.mrb[46].mxu1 }
 0x1f2   : > { %3310 = vmatprep.mubr.bf16.mxu0 %v14624_v33  ;;  %v2674_v14 = vmax.f32 %v2230_v11, 0.0  ;;  %v2233_v15 = vadd.f32 %v10975_v13, %v12331_v24  ;;  %v2224_v16 = vpop.f32.mrb[47].mxu1  ;;  %v2867_v13 = vld [vmem:[%s14615_s5 + $0xb8] sm:$0xff] }
 0x1f3   : > { %v2672_v18 = vmax.f32 %v2222_v12, 0.0  ;;  %v2225_v41 = vadd.f32 %v12331_v24, %v2224_v16  ;;  %v2863_v12 = vld [vmem:[%s14615_s5 + $0x98] sm:$0xff] }
 0x1f4   : > { %3934 = vmatmul.mubr.bf16.vlgmr.msra.gmra.mrb[152].mxu1 %v12349_v0  ;;  %v2675_v19 = vmax.f32 %v2233_v15, 0.0  ;;  %v10280_v16 = vcombine.low %v2863_v12, %v2867_v13 }
 0x1f5   : > { %3943 = vmatprep.mubr.bf16.mxu1 %v14624_v33  ;;  %v2673_v20 = vmax.f32 %v2225_v41, 0.0  ;;  %5248 = vmatpush1.bf16.msra.mxu1 %v10264_v1 }
 0x1f6   : > { %v12432_v22 = vpack.c.bf16 %v2675_v19, %v2674_v14  ;;  %5249 = vmatprep.subr.bf16.mxu1 %v10273_v17  ;;  %v2870_v14 = vld [vmem:[%s14615_s5 + $0xd0] sm:$0xff]  ;;  %v10281_v17 = vcombine.high %v2863_v12, %v2867_v13 }
 0x1f7   : > { %v12434_v25 = vpack.c.bf16 %v2673_v20, %v2672_v18  ;;  %v10978_v23 = vpop.f32.mrb[48].mxu1  ;;  %v2874_v18 = vld [vmem:[%s14615_s5 + $0xf0] sm:$0xff] }
 0x1f8   : > { %14694 = vst [vmem:[#allocation7_spill] sm:$0xff] %v12432_v22  ;;  %v2246_v4 = vadd.f32 %v10978_v23, %v12331_v24  ;;  %v2237_v27 = vpop.f32.mrb[49].mxu1  ;;  %v10286_v19 = vcombine.low %v2870_v14, %v2874_v18  ;;  %v10287_v20 = vcombine.high %v2870_v14, %v2874_v18 }
 0x1f9   : > { %14695 = vst [vmem:[#allocation8_spill] sm:$0xff] %v12434_v25  ;;  %3311 = vmatmul.mubr.bf16.gmra.mrb[124].mxu0 %v12384_v37  ;;  %v2238_v28 = vadd.f32 %v12331_v24, %v2237_v27  ;;  %v10979_v31 = vpop.f32.mrb[50].mxu1  ;;  %5250 = vmatpush1.bf16.msra.mxu1 %v10272_v21 }
 0x1fa   : > { %3320 = vmatprep.mubr.bf16.mxu0 %v14624_v33  ;;  %v2678_v60 = vmax.f32 %v2246_v4, 0.0  ;;  %v2249_v61 = vadd.f32 %v10979_v31, %v12331_v24  ;;  %v2240_v1 = vpop.f32.mrb[51].mxu1  ;;  %5251 = vmatprep.subr.bf16.mxu1 %v10281_v17 }
 0x1fb   : > { %v2676_v34 = vmax.f32 %v2238_v28, 0.0  ;;  %v2241_v36 = vadd.f32 %v12331_v24, %v2240_v1  ;;  %4580 = vmatprep.subr.bf16.mxu0 %v10287_v20 }
 0x1fc   : > { %3944 = vmatmul.mubr.bf16.gmra.mrb[156].mxu1 %v12347_v62  ;;  %v2679_v26 = vmax.f32 %v2249_v61, 0.0  ;;  %4581 = vmatpush1.bf16.msra.mxu0 %v10286_v19 }
 0x1fd   : > { %3953 = vmatprep.mubr.bf16.mxu1 %v14624_v33  ;;  %v2677_v42 = vmax.f32 %v2241_v36, 0.0  ;;  %5252 = vmatpush1.bf16.msra.mxu1 %v10280_v16 }
 0x1fe   : > { %v12444_v43 = vpack.c.bf16 %v2679_v26, %v2678_v60 }
 0x1ff   : > { %v12446_v45 = vpack.c.bf16 %v2677_v42, %v2676_v34  ;;  %v10982_v46 = vpop.f32.mrb[52].mxu1 }
 0x200   : > { %14696 = vst [vmem:[#allocation9_spill] sm:$0xff] %v12444_v43  ;;  %v2262_v63 = vadd.f32 %v10982_v46, %v12331_v24  ;;  %v2253_v47 = vpop.f32.mrb[53].mxu1 }
 0x201   : > { %14697 = vst [vmem:[#allocation10_spill] sm:$0xff] %v12446_v45  ;;  %3321 = vmatmul.mubr.bf16.gmra.mrb[128].mxu0 %v12400_v29  ;;  %v2254_v38 = vadd.f32 %v12331_v24, %v2253_v47  ;;  %v10983_v48 = vpop.f32.mrb[54].mxu1 }
 0x202   : > { %3330 = vmatprep.mubr.bf16.mxu0 %v14624_v33  ;;  %v2682_v49 = vmax.f32 %v2262_v63, 0.0  ;;  %v2265_v50 = vadd.f32 %v10983_v48, %v12331_v24  ;;  %v2256_v32 = vpop.f32.mrb[55].mxu1 }
 0x203   : > { %v2680_v52 = vmax.f32 %v2254_v38, 0.0  ;;  %v2257_v53 = vadd.f32 %v12331_v24, %v2256_v32 }
 0x204   : > { %3954 = vmatmul.mubr.bf16.gmra.mrb[160].mxu1 %v12372_v44  ;;  %v2683_v3 = vmax.f32 %v2265_v50, 0.0 }
 0x205   : > { %3963 = vmatprep.mubr.bf16.mxu1 %v14624_v33  ;;  %v2681_v54 = vmax.f32 %v2257_v53, 0.0 }
 0x206   : > { %v12456_v55 = vpack.c.bf16 %v2683_v3, %v2682_v49 }
 0x207   : > { %v12458_v35 = vpack.c.bf16 %v2681_v54, %v2680_v52  ;;  %v10986_v56 = vpop.f32.mrb[56].mxu1 }
 0x208   : > { %14698 = vst [vmem:[#allocation11_spill] sm:$0xff] %v12456_v55  ;;  %v2278_v57 = vadd.f32 %v10986_v56, %v12331_v24  ;;  %v2269_v5 = vpop.f32.mrb[57].mxu1 }
 0x209   : > { %14699 = vst [vmem:[#allocation12_spill] sm:$0xff] %v12458_v35  ;;  %3331 = vmatmul.mubr.bf16.gmra.mrb[132].mxu0 %v12398_v51  ;;  %v2270_v7 = vadd.f32 %v12331_v24, %v2269_v5  ;;  %v10987_v2 = vpop.f32.mrb[58].mxu1 }
 0x20a   : > { %3340 = vmatprep.mubr.bf16.mxu0 %v14624_v33  ;;  %v2686_v8 = vmax.f32 %v2278_v57, 0.0  ;;  %v2281_v9 = vadd.f32 %v10987_v2, %v12331_v24  ;;  %v2272_v30 = vpop.f32.mrb[59].mxu1 }
 0x20b   : > { %v2684_v10 = vmax.f32 %v2270_v7, 0.0  ;;  %v2273_v11 = vadd.f32 %v12331_v24, %v2272_v30 }
 0x20c   : > { %3964 = vmatmul.mubr.bf16.gmra.mrb[164].mxu1 %v12370_v40  ;;  %v2687_v6 = vmax.f32 %v2281_v9, 0.0 }
 0x20d   : > { %3973 = vmatprep.mubr.bf16.mxu1 %v14624_v33  ;;  %v2685_v15 = vmax.f32 %v2273_v11, 0.0 }
 0x20e   : > { %v12480_v41 = vpack.c.bf16 %v2687_v6, %v2686_v8 }
 0x20f   : > { %v12482_v21 = vpack.c.bf16 %v2685_v15, %v2684_v10  ;;  %v10990_v23 = vpop.f32.mrb[60].mxu1 }
 0x210   : > { %14700 = vst [vmem:[#allocation13_spill] sm:$0xff] %v12480_v41  ;;  %v2294_v4 = vadd.f32 %v10990_v23, %v12331_v24  ;;  %v2285_v27 = vpop.f32.mrb[61].mxu1 }
 0x211   : > { %14701 = vst [vmem:[#allocation14_spill] sm:$0xff] %v12482_v21  ;;  %3341 = vmatmul.mubr.bf16.gmra.mrb[136].mxu0 %v12413_v59  ;;  %v2286_v28 = vadd.f32 %v12331_v24, %v2285_v27  ;;  %v10991_v31 = vpop.f32.mrb[62].mxu1 }
 0x212   : > { %3350 = vmatprep.mubr.bf16.mxu0 %v14624_v33  ;;  %v2690_v60 = vmax.f32 %v2294_v4, 0.0  ;;  %v2297_v61 = vadd.f32 %v10991_v31, %v12331_v24  ;;  %v2288_v1 = vpop.f32.mrb[63].mxu1 }
 0x213   : > { %v2688_v34 = vmax.f32 %v2286_v28, 0.0  ;;  %v2289_v36 = vadd.f32 %v12331_v24, %v2288_v1 }
 0x214   : > { %3974 = vmatmul.mubr.bf16.gmra.mrb[168].mxu1 %v12386_v39  ;;  %v2691_v26 = vmax.f32 %v2297_v61, 0.0 }
 0x215   : > { %3983 = vmatprep.mubr.bf16.mxu1 %v14624_v33  ;;  %v2689_v42 = vmax.f32 %v2289_v36, 0.0 }
 0x216   : > { %v12492_v46 = vpack.c.bf16 %v2691_v26, %v2690_v60 }
 0x217   : > { %v12494_v63 = vpack.c.bf16 %v2689_v42, %v2688_v34  ;;  %v10994_v47 = vpop.f32.mrb[64].mxu1 }
 0x218   : > { %14702 = vst [vmem:[#allocation15_spill] sm:$0xff] %v12492_v46  ;;  %v2310_v38 = vadd.f32 %v10994_v47, %v12331_v24  ;;  %v2301_v48 = vpop.f32.mrb[65].mxu1 }
 0x219   : > { %14703 = vst [vmem:[#allocation16_spill] sm:$0xff] %v12494_v63  ;;  %3351 = vmatmul.mubr.bf16.gmra.mrb[140].mxu0 %v12411_v58  ;;  %v2302_v49 = vadd.f32 %v12331_v24, %v2301_v48  ;;  %v10995_v50 = vpop.f32.mrb[66].mxu1 }
 0x21a   : > { %3360 = vmatprep.mubr.bf16.mxu0 %v14624_v33  ;;  %v2694_v32 = vmax.f32 %v2310_v38, 0.0  ;;  %v2313_v52 = vadd.f32 %v10995_v50, %v12331_v24  ;;  %v2304_v53 = vpop.f32.mrb[67].mxu1 }
 0x21b   : > { %v2692_v3 = vmax.f32 %v2302_v49, 0.0  ;;  %v2305_v54 = vadd.f32 %v12331_v24, %v2304_v53 }
 0x21c   : > { %3984 = vmatmul.mubr.bf16.gmra.mrb[172].mxu1 %v12384_v37  ;;  %v2695_v56 = vmax.f32 %v2313_v52, 0.0 }
 0x21d   : > { %3993 = vmatprep.mubr.bf16.mxu1 %v14624_v33  ;;  %v2693_v57 = vmax.f32 %v2305_v54, 0.0 }
 0x21e   : > { %v12504_v5 = vpack.c.bf16 %v2695_v56, %v2694_v32 }
 0x21f   : > { %v12506_v7 = vpack.c.bf16 %v2693_v57, %v2692_v3  ;;  %v10998_v2 = vpop.f32.mrb[68].mxu1 }
 0x220   : > { %14704 = vst [vmem:[#allocation17_spill] sm:$0xff] %v12504_v5  ;;  %v2326_v8 = vadd.f32 %v10998_v2, %v12331_v24  ;;  %v2317_v9 = vpop.f32.mrb[69].mxu1 }
 0x221   : > { %14705 = vst [vmem:[#allocation18_spill] sm:$0xff] %v12506_v7  ;;  %3361 = vmatmul.mubr.bf16.gmra.mrb[144].mxu0 %v12434_v25  ;;  %v2318_v30 = vadd.f32 %v12331_v24, %v2317_v9  ;;  %v10999_v10 = vpop.f32.mrb[70].mxu1 }
 0x222   : > { %3370 = vmatprep.mubr.bf16.mxu0 %v14624_v33  ;;  %v2698_v11 = vmax.f32 %v2326_v8, 0.0  ;;  %v2329_v6 = vadd.f32 %v10999_v10, %v12331_v24  ;;  %v2320_v12 = vpop.f32.mrb[71].mxu1 }
 0x223   : > { %v2696_v13 = vmax.f32 %v2318_v30, 0.0  ;;  %v2321_v14 = vadd.f32 %v12331_v24, %v2320_v12 }
 0x224   : > { %3994 = vmatmul.mubr.bf16.gmra.mrb[176].mxu1 %v12400_v29  ;;  %v2699_v15 = vmax.f32 %v2329_v6, 0.0 }
 0x225   : > { %4003 = vmatprep.mubr.bf16.mxu1 %v14624_v33  ;;  %v2697_v16 = vmax.f32 %v2321_v14, 0.0 }
 0x226   : > { %v12516_v17 = vpack.c.bf16 %v2699_v15, %v2698_v11 }
 0x227   : > { %v12518_v18 = vpack.c.bf16 %v2697_v16, %v2696_v13  ;;  %v11002_v19 = vpop.f32.mrb[72].mxu1 }
 0x228   : > { %14706 = vst [vmem:[#allocation19_spill] sm:$0xff] %v12516_v17  ;;  %v2342_v20 = vadd.f32 %v11002_v19, %v12331_v24  ;;  %v2333_v23 = vpop.f32.mrb[73].mxu1 }
 0x229   : > { %14707 = vst [vmem:[#allocation20_spill] sm:$0xff] %v12518_v18  ;;  %3371 = vmatmul.mubr.bf16.gmra.mrb[148].mxu0 %v12432_v22  ;;  %v2334_v4 = vadd.f32 %v12331_v24, %v2333_v23  ;;  %v11003_v27 = vpop.f32.mrb[74].mxu1 }
 0x22a   : > { %3380 = vmatprep.mubr.bf16.mxu0 %v14624_v33  ;;  %v2702_v28 = vmax.f32 %v2342_v20, 0.0  ;;  %v2345_v31 = vadd.f32 %v11003_v27, %v12331_v24  ;;  %v2336_v60 = vpop.f32.mrb[75].mxu1 }
 0x22b   : > { %v2700_v61 = vmax.f32 %v2334_v4, 0.0  ;;  %v2337_v1 = vadd.f32 %v12331_v24, %v2336_v60 }
 0x22c   : > { %4004 = vmatmul.mubr.bf16.gmra.mrb[180].mxu1 %v12398_v51  ;;  %v2703_v34 = vmax.f32 %v2345_v31, 0.0 }
 0x22d   : > { %4013 = vmatprep.mubr.bf16.mxu1 %v14624_v33  ;;  %v2701_v36 = vmax.f32 %v2337_v1, 0.0 }
 0x22e   : > { %v12528_v26 = vpack.c.bf16 %v2703_v34, %v2702_v28 }
 0x22f   : > { %v12530_v42 = vpack.c.bf16 %v2701_v36, %v2700_v61  ;;  %v11006_v47 = vpop.f32.mrb[76].mxu1 }
 0x230   : > { %14708 = vst [vmem:[#allocation21_spill] sm:$0xff] %v12528_v26  ;;  %v2358_v38 = vadd.f32 %v11006_v47, %v12331_v24  ;;  %v2349_v48 = vpop.f32.mrb[77].mxu1 }
 0x231   : > { %14709 = vst [vmem:[#allocation22_spill] sm:$0xff] %v12530_v42  ;;  %3381 = vmatmul.mubr.bf16.gmra.mrb[152].mxu0 %v12446_v45  ;;  %v2350_v49 = vadd.f32 %v12331_v24, %v2349_v48  ;;  %v11007_v50 = vpop.f32.mrb[78].mxu1 }
 0x232   : > { %3390 = vmatprep.mubr.bf16.mxu0 %v14624_v33  ;;  %v2706_v32 = vmax.f32 %v2358_v38, 0.0  ;;  %v2361_v52 = vadd.f32 %v11007_v50, %v12331_v24  ;;  %v2352_v53 = vpop.f32.mrb[79].mxu1 }
 0x233   : > { %v2704_v3 = vmax.f32 %v2350_v49, 0.0  ;;  %v2353_v54 = vadd.f32 %v12331_v24, %v2352_v53 }
 0x234   : > { %4014 = vmatmul.mubr.bf16.gmra.mrb[184].mxu1 %v12413_v59  ;;  %v2707_v56 = vmax.f32 %v2361_v52, 0.0 }
 0x235   : > { %4023 = vmatprep.mubr.bf16.mxu1 %v14624_v33  ;;  %v2705_v57 = vmax.f32 %v2353_v54, 0.0 }
 0x236   : > { %v12540_v2 = vpack.c.bf16 %v2707_v56, %v2706_v32 }
 0x237   : > { %v12542_v8 = vpack.c.bf16 %v2705_v57, %v2704_v3  ;;  %v11010_v9 = vpop.f32.mrb[80].mxu1 }
 0x238   : > { %14710 = vst [vmem:[#allocation23_spill] sm:$0xff] %v12540_v2  ;;  %v2374_v30 = vadd.f32 %v11010_v9, %v12331_v24  ;;  %v2365_v10 = vpop.f32.mrb[81].mxu1 }
 0x239   : > { %14711 = vst [vmem:[#allocation24_spill] sm:$0xff] %v12542_v8  ;;  %3391 = vmatmul.mubr.bf16.gmra.mrb[156].mxu0 %v12444_v43  ;;  %v2366_v11 = vadd.f32 %v12331_v24, %v2365_v10  ;;  %v11011_v6 = vpop.f32.mrb[82].mxu1 }
 0x23a   : > { %3400 = vmatprep.mubr.bf16.mxu0 %v14624_v33  ;;  %v2710_v12 = vmax.f32 %v2374_v30, 0.0  ;;  %v2377_v13 = vadd.f32 %v11011_v6, %v12331_v24  ;;  %v2368_v14 = vpop.f32.mrb[83].mxu1 }
 0x23b   : > { %v2708_v15 = vmax.f32 %v2366_v11, 0.0  ;;  %v2369_v16 = vadd.f32 %v12331_v24, %v2368_v14 }
 0x23c   : > { %4024 = vmatmul.mubr.bf16.gmra.mrb[188].mxu1 %v12411_v58  ;;  %v2711_v19 = vmax.f32 %v2377_v13, 0.0 }
 0x23d   : > { %4033 = vmatprep.mubr.bf16.mxu1 %v14624_v33  ;;  %v2709_v20 = vmax.f32 %v2369_v16, 0.0 }
 0x23e   : > { %v12552_v23 = vpack.c.bf16 %v2711_v19, %v2710_v12 }
 0x23f   : > { %v12554_v4 = vpack.c.bf16 %v2709_v20, %v2708_v15  ;;  %v11014_v27 = vpop.f32.mrb[84].mxu1  ;;  %v2871_v20 = vld [vmem:[%s14615_s5 + $0xd8] sm:$0xff] }
 0x240   : > { %v2390_v28 = vadd.f32 %v11014_v27, %v12331_v24  ;;  %v2381_v31 = vpop.f32.mrb[85].mxu1  ;;  %v2875_v27 = vld [vmem:[%s14615_s5 + $0xf8] sm:$0xff] }
 0x241   : > { %3401 = vmatmul.mubr.bf16.gmra.mrb[160].mxu0 %v12458_v35  ;;  %v2382_v60 = vadd.f32 %v12331_v24, %v2381_v31  ;;  %v11015_v61 = vpop.f32.mrb[86].mxu1 }
 0x242   : > { %3410 = vmatprep.mubr.bf16.mxu0 %v14624_v33  ;;  %v2714_v1 = vmax.f32 %v2390_v28, 0.0  ;;  %v2393_v34 = vadd.f32 %v11015_v61, %v12331_v24  ;;  %v2384_v36 = vpop.f32.mrb[87].mxu1  ;;  %v10289_v61 = vcombine.high %v2871_v20, %v2875_v27 }
 0x243   : > { %v2712_v47 = vmax.f32 %v2382_v60, 0.0  ;;  %v2385_v38 = vadd.f32 %v12331_v24, %v2384_v36  ;;  %v10288_v60 = vcombine.low %v2871_v20, %v2875_v27 }
 0x244   : > { %4034 = vmatmul.mubr.bf16.gmra.mrb[192].mxu1 %v12434_v25  ;;  %v2715_v48 = vmax.f32 %v2393_v34, 0.0  ;;  %v2882_v34 = vld [vmem:[%s14615_s5 + $0x130] sm:$0xff]  ;;  %5253 = vmatprep.subr.bf16.mxu1 %v10289_v61 }
 0x245   : > { %4043 = vmatprep.mubr.bf16.mxu1 %v14624_v33  ;;  %v2713_v49 = vmax.f32 %v2385_v38, 0.0  ;;  %5254 = vmatpush1.bf16.msra.mxu1 %v10288_v60 }
 0x246   : > { %v12564_v50 = vpack.c.bf16 %v2715_v48, %v2714_v1  ;;  %v2878_v1 = vld [vmem:[%s14615_s5 + $0x110] sm:$0xff] }
 0x247   : > { %v12566_v32 = vpack.c.bf16 %v2713_v49, %v2712_v47  ;;  %v11018_v52 = vpop.f32.mrb[88].mxu1  ;;  %v10294_v48 = vcombine.low %v2878_v1, %v2882_v34  ;;  %v10295_v49 = vcombine.high %v2878_v1, %v2882_v34 }
 0x248   : > { %14712 = vst [vmem:[#allocation25_spill] sm:$0xff] %v12564_v50  ;;  %v2406_v53 = vadd.f32 %v11018_v52, %v12331_v24  ;;  %v2397_v3 = vpop.f32.mrb[89].mxu1 }
 0x249   : > { %14713 = vst [vmem:[#allocation26_spill] sm:$0xff] %v12566_v32  ;;  %3411 = vmatmul.mubr.bf16.gmra.mrb[164].mxu0 %v12456_v55  ;;  %v2398_v54 = vadd.f32 %v12331_v24, %v2397_v3  ;;  %v11019_v56 = vpop.f32.mrb[90].mxu1  ;;  %4582 = vmatprep.subr.bf16.mxu0 %v10295_v49 }
 0x24a   : > { %3420 = vmatprep.mubr.bf16.mxu0 %v14624_v33  ;;  %v2718_v57 = vmax.f32 %v2406_v53, 0.0  ;;  %v2409_v9 = vadd.f32 %v11019_v56, %v12331_v24  ;;  %v2400_v30 = vpop.f32.mrb[91].mxu1  ;;  %4583 = vmatpush1.bf16.msra.mxu0 %v10294_v48 }
 0x24b   : > { %v2716_v10 = vmax.f32 %v2398_v54, 0.0  ;;  %v2401_v11 = vadd.f32 %v12331_v24, %v2400_v30 }
 0x24c   : > { %4044 = vmatmul.mubr.bf16.gmra.mrb[196].mxu1 %v12432_v22  ;;  %v2719_v6 = vmax.f32 %v2409_v9, 0.0 }
 0x24d   : > { %4053 = vmatprep.mubr.bf16.mxu1 %v14624_v33  ;;  %v2717_v12 = vmax.f32 %v2401_v11, 0.0 }
 0x24e   : > { %v12576_v13 = vpack.c.bf16 %v2719_v6, %v2718_v57 }
 0x24f   : > { %v12578_v14 = vpack.c.bf16 %v2717_v12, %v2716_v10  ;;  %v11022_v15 = vpop.f32.mrb[92].mxu1 }
 0x250   : > { %14714 = vst [vmem:[#allocation27_spill] sm:$0xff] %v12576_v13  ;;  %v2422_v16 = vadd.f32 %v11022_v15, %v12331_v24  ;;  %v2413_v19 = vpop.f32.mrb[93].mxu1 }
 0x251   : > { %14715 = vst [vmem:[#allocation28_spill] sm:$0xff] %v12578_v14  ;;  %3421 = vmatmul.mubr.bf16.gmra.mrb[168].mxu0 %v12482_v21  ;;  %v2414_v28 = vadd.f32 %v12331_v24, %v2413_v19  ;;  %v11023_v31 = vpop.f32.mrb[94].mxu1 }
 0x252   : > { %3430 = vmatprep.mubr.bf16.mxu0 %v14624_v33  ;;  %v2722_v36 = vmax.f32 %v2422_v16, 0.0  ;;  %v2425_v47 = vadd.f32 %v11023_v31, %v12331_v24  ;;  %v2416_v38 = vpop.f32.mrb[95].mxu1 }
 0x253   : > { %v2720_v52 = vmax.f32 %v2414_v28, 0.0  ;;  %v2417_v53 = vadd.f32 %v12331_v24, %v2416_v38 }
 0x254   : > { %4054 = vmatmul.mubr.bf16.gmra.mrb[200].mxu1 %v12446_v45  ;;  %v2723_v3 = vmax.f32 %v2425_v47, 0.0 }
 0x255   : > { %4063 = vmatprep.mubr.bf16.mxu1 %v14624_v33  ;;  %v2721_v54 = vmax.f32 %v2417_v53, 0.0 }
 0x256   : > { %v12600_v56 = vpack.c.bf16 %v2723_v3, %v2722_v36 }
 0x257   : > { %v12602_v57 = vpack.c.bf16 %v2721_v54, %v2720_v52  ;;  %v11026_v9 = vpop.f32.mrb[96].mxu1 }
 0x258   : > { %14716 = vst [vmem:[#allocation29_spill] sm:$0xff] %v12600_v56  ;;  %v2438_v30 = vadd.f32 %v11026_v9, %v12331_v24  ;;  %v2429_v10 = vpop.f32.mrb[97].mxu1 }
 0x259   : > { %14717 = vst [vmem:[#allocation30_spill] sm:$0xff] %v12602_v57  ;;  %3431 = vmatmul.mubr.bf16.gmra.mrb[172].mxu0 %v12480_v41  ;;  %v2430_v11 = vadd.f32 %v12331_v24, %v2429_v10  ;;  %v11027_v6 = vpop.f32.mrb[98].mxu1 }
 0x25a   : > { %3440 = vmatprep.mubr.bf16.mxu0 %v14624_v33  ;;  %v2726_v12 = vmax.f32 %v2438_v30, 0.0  ;;  %v2441_v15 = vadd.f32 %v11027_v6, %v12331_v24  ;;  %v2432_v16 = vpop.f32.mrb[99].mxu1 }
 0x25b   : > { %v2724_v19 = vmax.f32 %v2430_v11, 0.0  ;;  %v2433_v20 = vadd.f32 %v12331_v24, %v2432_v16 }
 0x25c   : > { %4064 = vmatmul.mubr.bf16.gmra.mrb[204].mxu1 %v12444_v43  ;;  %v2727_v27 = vmax.f32 %v2441_v15, 0.0 }
 0x25d   : > { %4073 = vmatprep.mubr.bf16.mxu1 %v14624_v33  ;;  %v2725_v28 = vmax.f32 %v2433_v20, 0.0 }
 0x25e   : > { %v12612_v31 = vpack.c.bf16 %v2727_v27, %v2726_v12 }
 0x25f   : > { %v12614_v60 = vpack.c.bf16 %v2725_v28, %v2724_v19  ;;  %v11030_v61 = vpop.f32.mrb[100].mxu1 }
 0x260   : > { %14718 = vst [vmem:[#allocation31_spill] sm:$0xff] %v12612_v31  ;;  %v2454_v1 = vadd.f32 %v11030_v61, %v12331_v24  ;;  %v2445_v34 = vpop.f32.mrb[101].mxu1 }
 0x261   : > { %14719 = vst [vmem:[#allocation32_spill] sm:$0xff] %v12614_v60  ;;  %3441 = vmatmul.mubr.bf16.gmra.mrb[176].mxu0 %v12494_v63  ;;  %v2446_v36 = vadd.f32 %v12331_v24, %v2445_v34  ;;  %v11031_v47 = vpop.f32.mrb[102].mxu1 }
 0x262   : > { %3450 = vmatprep.mubr.bf16.mxu0 %v14624_v33  ;;  %v2730_v38 = vmax.f32 %v2454_v1, 0.0  ;;  %v2457_v48 = vadd.f32 %v11031_v47, %v12331_v24  ;;  %v2448_v49 = vpop.f32.mrb[103].mxu1 }
 0x263   : > { %v2728_v52 = vmax.f32 %v2446_v36, 0.0  ;;  %v2449_v53 = vadd.f32 %v12331_v24, %v2448_v49 }
 0x264   : > { %4074 = vmatmul.mubr.bf16.gmra.mrb[208].mxu1 %v12458_v35  ;;  %v2731_v3 = vmax.f32 %v2457_v48, 0.0 }
 0x265   : > { %4083 = vmatprep.mubr.bf16.mxu1 %v14624_v33  ;;  %v2729_v54 = vmax.f32 %v2449_v53, 0.0 }
 0x266   : > { %v12624_v9 = vpack.c.bf16 %v2731_v3, %v2730_v38 }
 0x267   : > { %v12626_v30 = vpack.c.bf16 %v2729_v54, %v2728_v52  ;;  %v11034_v10 = vpop.f32.mrb[104].mxu1 }
 0x268   : > { %v2470_v11 = vadd.f32 %v11034_v10, %v12331_v24  ;;  %v2461_v6 = vpop.f32.mrb[105].mxu1 }
 0x269   : > { %14720 = vst [vmem:[#allocation33_spill] sm:$0xff] %v12626_v30  ;;  %3451 = vmatmul.mubr.bf16.gmra.mrb[180].mxu0 %v12492_v46  ;;  %v2462_v12 = vadd.f32 %v12331_v24, %v2461_v6  ;;  %v11035_v15 = vpop.f32.mrb[106].mxu1 }
 0x26a   : > { %3460 = vmatprep.mubr.bf16.mxu0 %v14624_v33  ;;  %v2734_v16 = vmax.f32 %v2470_v11, 0.0  ;;  %v2473_v19 = vadd.f32 %v11035_v15, %v12331_v24  ;;  %v2464_v20 = vpop.f32.mrb[107].mxu1 }
 0x26b   : > { %v2732_v27 = vmax.f32 %v2462_v12, 0.0  ;;  %v2465_v28 = vadd.f32 %v12331_v24, %v2464_v20 }
 0x26c   : > { %4084 = vmatmul.mubr.bf16.gmra.mrb[212].mxu1 %v12456_v55  ;;  %v2735_v61 = vmax.f32 %v2473_v19, 0.0 }
 0x26d   : > { %4093 = vmatprep.mubr.bf16.mxu1 %v14624_v33  ;;  %v2733_v1 = vmax.f32 %v2465_v28, 0.0 }
 0x26e   : > { %v12636_v34 = vpack.c.bf16 %v2735_v61, %v2734_v16 }
 0x26f   : > { %v12638_v36 = vpack.c.bf16 %v2733_v1, %v2732_v27  ;;  %v11038_v47 = vpop.f32.mrb[108].mxu1 }
 0x270   : > { %v2486_v38 = vadd.f32 %v11038_v47, %v12331_v24  ;;  %v2477_v48 = vpop.f32.mrb[109].mxu1 }
 0x271   : > { %3461 = vmatmul.mubr.bf16.gmra.mrb[184].mxu0 %v12506_v7  ;;  %v2478_v49 = vadd.f32 %v12331_v24, %v2477_v48  ;;  %v11039_v52 = vpop.f32.mrb[110].mxu1 }
 0x272   : > { %3470 = vmatprep.mubr.bf16.mxu0 %v14624_v33  ;;  %v2738_v53 = vmax.f32 %v2486_v38, 0.0  ;;  %v2489_v3 = vadd.f32 %v11039_v52, %v12331_v24  ;;  %v2480_v54 = vpop.f32.mrb[111].mxu1 }
 0x273   : > { %v2736_v10 = vmax.f32 %v2478_v49, 0.0  ;;  %v2481_v11 = vadd.f32 %v12331_v24, %v2480_v54 }
 0x274   : > { %4094 = vmatmul.mubr.bf16.gmra.mrb[216].mxu1 %v12482_v21  ;;  %v2739_v6 = vmax.f32 %v2489_v3, 0.0 }
 0x275   : > { %4103 = vmatprep.mubr.bf16.mxu1 %v14624_v33  ;;  %v2737_v12 = vmax.f32 %v2481_v11, 0.0 }
 0x276   : > { %v12648_v15 = vpack.c.bf16 %v2739_v6, %v2738_v53 }
 0x277   : > { %v12650_v16 = vpack.c.bf16 %v2737_v12, %v2736_v10  ;;  %v11042_v19 = vpop.f32.mrb[112].mxu1 }
 0x278   : > { %v2502_v20 = vadd.f32 %v11042_v19, %v12331_v24  ;;  %v2493_v27 = vpop.f32.mrb[113].mxu1 }
 0x279   : > { %14721 = vst [vmem:[#allocation34_spill] sm:$0xff] %v12650_v16  ;;  %3471 = vmatmul.mubr.bf16.gmra.mrb[188].mxu0 %v12504_v5  ;;  %v2494_v28 = vadd.f32 %v12331_v24, %v2493_v27  ;;  %v11043_v61 = vpop.f32.mrb[114].mxu1 }
 0x27a   : > { %3480 = vmatprep.mubr.bf16.mxu0 %v14624_v33  ;;  %v2742_v1 = vmax.f32 %v2502_v20, 0.0  ;;  %v2505_v47 = vadd.f32 %v11043_v61, %v12331_v24  ;;  %v2496_v38 = vpop.f32.mrb[115].mxu1 }
 0x27b   : > { %v2740_v48 = vmax.f32 %v2494_v28, 0.0  ;;  %v2497_v49 = vadd.f32 %v12331_v24, %v2496_v38 }
 0x27c   : > { %4104 = vmatmul.mubr.bf16.gmra.mrb[220].mxu1 %v12480_v41  ;;  %v2743_v52 = vmax.f32 %v2505_v47, 0.0 }
 0x27d   : > { %4113 = vmatprep.mubr.bf16.mxu1 %v14624_v33  ;;  %v2741_v53 = vmax.f32 %v2497_v49, 0.0 }
 0x27e   : > { %v12660_v3 = vpack.c.bf16 %v2743_v52, %v2742_v1 }
 0x27f   : > { %v12662_v54 = vpack.c.bf16 %v2741_v53, %v2740_v48  ;;  %v11046_v10 = vpop.f32.mrb[116].mxu1 }
 0x280   : > { %v2518_v11 = vadd.f32 %v11046_v10, %v12331_v24  ;;  %v2509_v6 = vpop.f32.mrb[117].mxu1 }
 0x281   : > { %3481 = vmatmul.mubr.bf16.gmra.mrb[192].mxu0 %v12518_v18  ;;  %v2510_v12 = vadd.f32 %v12331_v24, %v2509_v6  ;;  %v11047_v19 = vpop.f32.mrb[118].mxu1 }
 0x282   : > { %3490 = vmatprep.mubr.bf16.mxu0 %v14624_v33  ;;  %v2746_v20 = vmax.f32 %v2518_v11, 0.0  ;;  %v2521_v27 = vadd.f32 %v11047_v19, %v12331_v24  ;;  %v2512_v28 = vpop.f32.mrb[119].mxu1 }
 0x283   : > { %v2744_v61 = vmax.f32 %v2510_v12, 0.0  ;;  %v2513_v1 = vadd.f32 %v12331_v24, %v2512_v28 }
 0x284   : > { %4114 = vmatmul.mubr.bf16.gmra.mrb[224].mxu1 %v12494_v63  ;;  %v2747_v47 = vmax.f32 %v2521_v27, 0.0 }
 0x285   : > { %4123 = vmatprep.mubr.bf16.mxu1 %v14624_v33  ;;  %v2745_v38 = vmax.f32 %v2513_v1, 0.0 }
 0x286   : > { %v12672_v48 = vpack.c.bf16 %v2747_v47, %v2746_v20 }
 0x287   : > { %v12674_v49 = vpack.c.bf16 %v2745_v38, %v2744_v61  ;;  %v11050_v52 = vpop.f32.mrb[120].mxu1 }
 0x288   : > { %v2534_v53 = vadd.f32 %v11050_v52, %v12331_v24  ;;  %v2525_v10 = vpop.f32.mrb[121].mxu1 }
 0x289   : > { %3491 = vmatmul.mubr.bf16.gmra.mrb[196].mxu0 %v12516_v17  ;;  %v2526_v11 = vadd.f32 %v12331_v24, %v2525_v10  ;;  %v11051_v6 = vpop.f32.mrb[122].mxu1 }
 0x28a   : > { %v2750_v12 = vmax.f32 %v2534_v53, 0.0  ;;  %3500 = vmatprep.mubr.bf16.mxu0 %v14624_v33  ;;  %v2537_v19 = vadd.f32 %v11051_v6, %v12331_v24  ;;  %v2528_v27 = vpop.f32.mrb[123].mxu1  ;;  %v2883_v6 = vld [vmem:[%s14615_s5 + $0x138] sm:$0xff] }
 0x28b   : > { %v2748_v28 = vmax.f32 %v2526_v11, 0.0  ;;  %v2529_v20 = vadd.f32 %v12331_v24, %v2528_v27  ;;  %v2879_v11 = vld [vmem:[%s14615_s5 + $0x118] sm:$0xff] }
 0x28c   : > { %4124 = vmatmul.mubr.bf16.gmra.mrb[228].mxu1 %v12492_v46  ;;  %v2751_v61 = vmax.f32 %v2537_v19, 0.0  ;;  %v10296_v27 = vcombine.low %v2879_v11, %v2883_v6  ;;  %v14722_v46 = vmov 0  }
 0x28d   : > { %v2749_v1 = vmax.f32 %v2529_v20, 0.0  ;;  %4133 = vmatprep.mubr.bf16.mxu1 %v14624_v33  ;;  %v2886_v20 = vld [vmem:[%s14615_s5 + $0x150] sm:$0xff] }
 0x28e   : > { %v12684_v47 = vpack.c.bf16 %v2751_v61, %v2750_v12  ;;  %v2890_v61 = vld [vmem:[%s14615_s5 + $0x170] sm:$0xff] }
 0x28f   : > { %v12686_v38 = vpack.c.bf16 %v2749_v1, %v2748_v28  ;;  %v11054_v52 = vpop.f32.mrb[124].mxu1  ;;  %v10297_v28 = vcombine.high %v2879_v11, %v2883_v6  ;;  %v10302_v63 = vcombine.low %v2886_v20, %v2890_v61  ;;  %v10303_v41 = vcombine.high %v2886_v20, %v2890_v61  ;;  %v12708_v11 = vld [vmem:[%s14614_s4] ss:$0 sm:$0xff] }
 0x290   : > { %v2550_v53 = vadd.f32 %v11054_v52, %v12331_v24  ;;  %v2541_v10 = vpop.f32.mrb[125].mxu1 }
 0x291   : > { %3501 = vmatmul.mubr.bf16.gmra.mrb[200].mxu0 %v12530_v42  ;;  %v2542_v19 = vadd.f32 %v12331_v24, %v2541_v10  ;;  %v11055_v12 = vpop.f32.mrb[126].mxu1  ;;  %5255 = vmatprep.subr.bf16.mxu1 %v10297_v28 }
 0x292   : > { %v2754_v1 = vmax.f32 %v2550_v53, 0.0  ;;  %v2553_v52 = vadd.f32 %v11055_v12, %v12331_v24  ;;  %v2544_v33 = vpop.f32.mrb[127].mxu1  ;;  %3510 = vmatprep.mubr.bf16.mxu0 %v14722_v46  ;;  %4584 = vmatprep.subr.bf16.mxu0 %v10303_v41 }
 0x293   : > { %v2752_v10 = vmax.f32 %v2542_v19, 0.0  ;;  %v2545_v6 = vadd.f32 %v12708_v11, %v2544_v33  ;;  %5256 = vmatpush1.bf16.msra.mxu1 %v10296_v27  ;;  %4585 = vmatpush1.bf16.msra.mxu0 %v10302_v63 }
 0x294   : > { %4134 = vmatmul.mubr.bf16.gmra.mrb[232].mxu1 %v12506_v7  ;;  %v2755_v21 = vmax.f32 %v2553_v52, 0.0 }
 0x295   : > { %v2753_v53 = vmax.f32 %v2545_v6, 0.0  ;;  %4143 = vmatprep.mubr.bf16.mxu1 %v14722_v46 }
 0x296   : > { %v12713_v24 = vpack.c.bf16 %v2755_v21, %v2754_v1 }
 0x297   : > { %v12715_v19 = vpack.c.bf16 %v2753_v53, %v2752_v10  ;;  %v11058_v12 = vpop.f32.mrb[128].mxu1 }
 0x298   : > { %v2566_v20 = vadd.f32 %v12708_v11, %v11058_v12  ;;  %v2557_v61 = vpop.f32.mrb[129].mxu1 }
 0x299   : > { %v2558_v33 = vadd.f32 %v12708_v11, %v2557_v61  ;;  %v11059_v28 = vpop.f32.mrb[130].mxu1  ;;  %3511 = vmatmul.mubr.bf16.gmra.mrb[204].mxu0 %v12528_v26 }
 0x29a   : > { %v2569_v41 = vadd.f32 %v12708_v11, %v11059_v28  ;;  %v2560_v52 = vpop.f32.mrb[131].mxu1  ;;  %3520 = vmatprep.mubr.bf16.mxu0 %v14722_v46  ;;  %v2758_v27 = vmax.f32 %v2566_v20, 0.0 }
 0x29b   : > { %v2561_v21 = vadd.f32 %v12708_v11, %v2560_v52  ;;  %v2756_v1 = vmax.f32 %v2558_v33, 0.0 }
 0x29c   : > { %v2759_v63 = vmax.f32 %v2569_v41, 0.0  ;;  %4144 = vmatmul.mubr.bf16.gmra.mrb[236].mxu1 %v12504_v5 }
 0x29d   : > { %v2757_v10 = vmax.f32 %v2561_v21, 0.0  ;;  %4153 = vmatprep.mubr.bf16.mxu1 %v14722_v46 }
 0x29e   : > { %v12725_v6 = vpack.c.bf16 %v2759_v63, %v2758_v27 }
 0x29f   : > { %v12727_v53 = vpack.c.bf16 %v2757_v10, %v2756_v1  ;;  %v11062_v12 = vpop.f32.mrb[132].mxu1 }
 0x2a0   : > { %v2582_v61 = vadd.f32 %v12708_v11, %v11062_v12  ;;  %v2573_v28 = vpop.f32.mrb[133].mxu1 }
 0x2a1   : > { %v2574_v7 = vadd.f32 %v12708_v11, %v2573_v28  ;;  %v11063_v55 = vpop.f32.mrb[134].mxu1  ;;  %3521 = vmatmul.mubr.bf16.gmra.mrb[208].mxu0 %v12542_v8 }
 0x2a2   : > { %v2585_v20 = vadd.f32 %v12708_v11, %v11063_v55  ;;  %v2576_v41 = vpop.f32.mrb[135].mxu1  ;;  %3530 = vmatprep.mubr.bf16.mxu0 %v14722_v46  ;;  %v2762_v52 = vmax.f32 %v2582_v61, 0.0 }
 0x2a3   : > { %v2577_v33 = vadd.f32 %v12708_v11, %v2576_v41  ;;  %v2760_v63 = vmax.f32 %v2574_v7, 0.0 }
 0x2a4   : > { %v2763_v21 = vmax.f32 %v2585_v20, 0.0  ;;  %v3262_v27 = vpop.f32.mrb[104].mxu0  ;;  %4154 = vmatmul.mubr.bf16.gmra.mrb[240].mxu1 %v12518_v18 }
 0x2a5   : > { %v2761_v1 = vmax.f32 %v2577_v33, 0.0  ;;  %v3264_v10 = vpop.f32.mrb[105].mxu0  ;;  %4163 = vmatprep.mubr.bf16.mxu1 %v14722_v46 }
 0x2a6   : > { %v12737_v12 = vpack.c.bf16 %v2763_v21, %v2762_v52  ;;  %v3266_v28 = vpop.f32.mrb[106].mxu0 }
 0x2a7   : > { %v12739_v5 = vpack.c.bf16 %v2761_v1, %v2760_v63  ;;  %v5928_v55 = vmax.f32 %v3262_v27, %v3266_v28  ;;  %v11066_v35 = vpop.f32.mrb[136].mxu1  ;;  %v3268_v43 = vpop.f32.mrb[107].mxu0 }
 0x2a8   : > { %v2598_v41 = vadd.f32 %v12708_v11, %v11066_v35  ;;  %v5949_v61 = vmax.f32 %v3264_v10, %v3268_v43  ;;  %v2589_v20 = vpop.f32.mrb[137].mxu1 }
 0x2a9   : > { %v2590_v45 = vadd.f32 %v12708_v11, %v2589_v20  ;;  %v11067_v18 = vpop.f32.mrb[138].mxu1  ;;  %3531 = vmatmul.mubr.bf16.gmra.mrb[212].mxu0 %v12540_v2 }
 0x2aa   : > { %v2601_v7 = vadd.f32 %v12708_v11, %v11067_v18  ;;  %v2592_v33 = vpop.f32.mrb[139].mxu1  ;;  %3540 = vmatprep.mubr.bf16.mxu0 %v14722_v46  ;;  %v2766_v21 = vmax.f32 %v2598_v41, 0.0 }
 0x2ab   : > { %v2593_v52 = vadd.f32 %v12708_v11, %v2592_v33  ;;  %v2764_v35 = vmax.f32 %v2590_v45, 0.0 }
 0x2ac   : > { %v2767_v27 = vmax.f32 %v2601_v7, 0.0  ;;  %v3272_v63 = vpop.f32.mrb[108].mxu0  ;;  %4164 = vmatmul.mubr.bf16.gmra.mrb[244].mxu1 %v12516_v17 }
 0x2ad   : > { %v2765_v43 = vmax.f32 %v2593_v52, 0.0  ;;  %v5929_v1 = vmax.f32 %v5928_v55, %v3272_v63  ;;  %v3274_v10 = vpop.f32.mrb[109].mxu0  ;;  %4173 = vmatprep.mubr.bf16.mxu1 %v14722_v46 }
 0x2ae   : > { %v12749_v28 = vpack.c.bf16 %v2767_v27, %v2766_v21  ;;  %v5950_v20 = vmax.f32 %v5949_v61, %v3274_v10  ;;  %v3276_v18 = vpop.f32.mrb[110].mxu0 }
 0x2af   : > { %v12751_v22 = vpack.c.bf16 %v2765_v43, %v2764_v35  ;;  %v5930_v25 = vmax.f32 %v5929_v1, %v3276_v18  ;;  %v11070_v58 = vpop.f32.mrb[140].mxu1  ;;  %v3278_v33 = vpop.f32.mrb[111].mxu0 }
 0x2b0   : > { %v2614_v41 = vadd.f32 %v12708_v11, %v11070_v58  ;;  %v5951_v7 = vmax.f32 %v5950_v20, %v3278_v33  ;;  %v2605_v59 = vpop.f32.mrb[141].mxu1 }
 0x2b1   : > { %v2606_v45 = vadd.f32 %v12708_v11, %v2605_v59  ;;  %v11071_v52 = vpop.f32.mrb[142].mxu1  ;;  %3541 = vmatmul.mubr.bf16.gmra.mrb[216].mxu0 %v12554_v4 }
 0x2b2   : > { %v2617_v55 = vadd.f32 %v12708_v11, %v11071_v52  ;;  %v2608_v21 = vpop.f32.mrb[143].mxu1  ;;  %3550 = vmatprep.mubr.bf16.mxu0 %v14722_v46  ;;  %v2770_v27 = vmax.f32 %v2614_v41, 0.0 }
 0x2b3   : > { %v2609_v61 = vadd.f32 %v12708_v11, %v2608_v21  ;;  %v2768_v58 = vmax.f32 %v2606_v45, 0.0 }
 0x2b4   : > { %v2771_v63 = vmax.f32 %v2617_v55, 0.0  ;;  %v3282_v35 = vpop.f32.mrb[112].mxu0  ;;  %4174 = vmatmul.mubr.bf16.gmra.mrb[248].mxu1 %v12530_v42 }
 0x2b5   : > { %v2769_v43 = vmax.f32 %v2609_v61, 0.0  ;;  %v5931_v1 = vmax.f32 %v5930_v25, %v3282_v35  ;;  %v3284_v10 = vpop.f32.mrb[113].mxu0  ;;  %4183 = vmatprep.mubr.bf16.mxu1 %v14722_v46 }
 0x2b6   : > { %v12761_v59 = vpack.c.bf16 %v2771_v63, %v2770_v27  ;;  %v5952_v20 = vmax.f32 %v5951_v7, %v3284_v10  ;;  %v3286_v18 = vpop.f32.mrb[114].mxu0 }
 0x2b7   : > { %v12763_v33 = vpack.c.bf16 %v2769_v43, %v2768_v58  ;;  %v5932_v52 = vmax.f32 %v5931_v1, %v3286_v18  ;;  %v11074_v17 = vpop.f32.mrb[144].mxu1  ;;  %v3288_v21 = vpop.f32.mrb[115].mxu0 }
 0x2b8   : > { %v2630_v41 = vadd.f32 %v12708_v11, %v11074_v17  ;;  %v5953_v55 = vmax.f32 %v5952_v20, %v3288_v21  ;;  %v2621_v51 = vpop.f32.mrb[145].mxu1 }
 0x2b9   : > { %v2622_v45 = vadd.f32 %v12708_v11, %v2621_v51  ;;  %v11075_v61 = vpop.f32.mrb[146].mxu1  ;;  %3551 = vmatmul.mubr.bf16.gmra.mrb[220].mxu0 %v12552_v23 }
 0x2ba   : > { %v2633_v25 = vadd.f32 %v12708_v11, %v11075_v61  ;;  %v2624_v27 = vpop.f32.mrb[147].mxu1  ;;  %3560 = vmatprep.mubr.bf16.mxu0 %v14722_v46  ;;  %v2774_v63 = vmax.f32 %v2630_v41, 0.0 }
 0x2bb   : > { %v2625_v7 = vadd.f32 %v12708_v11, %v2624_v27  ;;  %v2772_v17 = vmax.f32 %v2622_v45, 0.0 }
 0x2bc   : > { %v2775_v35 = vmax.f32 %v2633_v25, 0.0  ;;  %v3292_v58 = vpop.f32.mrb[116].mxu0  ;;  %4184 = vmatmul.mubr.bf16.gmra.mrb[252].mxu1 %v12528_v26 }
 0x2bd   : > { %v2773_v43 = vmax.f32 %v2625_v7, 0.0  ;;  %v5933_v1 = vmax.f32 %v5932_v52, %v3292_v58  ;;  %v3294_v10 = vpop.f32.mrb[117].mxu0  ;;  %4193 = vmatprep.mubr.bf16.mxu1 %v14722_v46 }
 0x2be   : > { %v12773_v51 = vpack.c.bf16 %v2775_v35, %v2774_v63  ;;  %v5954_v20 = vmax.f32 %v5953_v55, %v3294_v10  ;;  %v3296_v18 = vpop.f32.mrb[118].mxu0 }
 0x2bf   : > { %v12775_v21 = vpack.c.bf16 %v2773_v43, %v2772_v17  ;;  %v5934_v61 = vmax.f32 %v5933_v1, %v3296_v18  ;;  %v11078_v42 = vpop.f32.mrb[148].mxu1  ;;  %v3298_v27 = vpop.f32.mrb[119].mxu0 }
 0x2c0   : > { %v2646_v41 = vadd.f32 %v12708_v11, %v11078_v42  ;;  %v5955_v25 = vmax.f32 %v5954_v20, %v3298_v27  ;;  %v2637_v29 = vpop.f32.mrb[149].mxu1 }
 0x2c1   : > { %v2638_v45 = vadd.f32 %v12708_v11, %v2637_v29  ;;  %v11079_v7 = vpop.f32.mrb[150].mxu1  ;;  %3561 = vmatmul.mubr.bf16.gmra.mrb[224].mxu0 %v12566_v32 }
 0x2c2   : > { %v2649_v52 = vadd.f32 %v12708_v11, %v11079_v7  ;;  %v2640_v63 = vpop.f32.mrb[151].mxu1  ;;  %3570 = vmatprep.mubr.bf16.mxu0 %v14722_v46  ;;  %v2778_v35 = vmax.f32 %v2646_v41, 0.0 }
 0x2c3   : > { %v2641_v55 = vadd.f32 %v12708_v11, %v2640_v63  ;;  %v2776_v42 = vmax.f32 %v2638_v45, 0.0 }
 0x2c4   : > { %v2779_v58 = vmax.f32 %v2649_v52, 0.0  ;;  %v3302_v17 = vpop.f32.mrb[120].mxu0  ;;  %4194 = vmatmul.mubr.bf16.gmra.mrb[0].mxu1 %v12542_v8 }
 0x2c5   : > { %v2777_v43 = vmax.f32 %v2641_v55, 0.0  ;;  %v5935_v1 = vmax.f32 %v5934_v61, %v3302_v17  ;;  %v3304_v10 = vpop.f32.mrb[121].mxu0  ;;  %4203 = vmatprep.mubr.bf16.mxu1 %v14722_v46 }
 0x2c6   : > { %v12785_v29 = vpack.c.bf16 %v2779_v58, %v2778_v35  ;;  %v5956_v20 = vmax.f32 %v5955_v25, %v3304_v10  ;;  %v3306_v18 = vpop.f32.mrb[122].mxu0 }
 0x2c7   : > { %v12787_v27 = vpack.c.bf16 %v2777_v43, %v2776_v42  ;;  %v5936_v7 = vmax.f32 %v5935_v1, %v3306_v18  ;;  %v3308_v26 = vpop.f32.mrb[123].mxu0  ;;  %v3935_v11 = vpop.f32.mrb[152].mxu1 }
 0x2c8   : > { %v5957_v41 = vmax.f32 %v5956_v20, %v3308_v26  ;;  %v3937_v52 = vpop.f32.mrb[153].mxu1 }
 0x2c9   : > { %3571 = vmatmul.mubr.bf16.gmra.mrb[228].mxu0 %v12564_v50  ;;  %v3939_v63 = vpop.f32.mrb[154].mxu1 }
 0x2ca   : > { %v5970_v45 = vmax.f32 %v3935_v11, %v3939_v63  ;;  %v3941_v55 = vpop.f32.mrb[155].mxu1  ;;  %3580 = vmatprep.mubr.bf16.mxu0 %v14722_v46 }
 0x2cb   : > { %v5991_v61 = vmax.f32 %v3937_v52, %v3941_v55  ;;  %v2887_v52 = vld [vmem:[%s14615_s5 + $0x158] sm:$0xff] }
 0x2cc   : > { %v3312_v17 = vpop.f32.mrb[124].mxu0  ;;  %4204 = vmatmul.mubr.bf16.gmra.mrb[4].mxu1 %v12540_v2 }
 0x2cd   : > { %v5937_v25 = vmax.f32 %v5936_v7, %v3312_v17  ;;  %v3314_v35 = vpop.f32.mrb[125].mxu0  ;;  %4213 = vmatprep.mubr.bf16.mxu1 %v14722_v46  ;;  %v2891_v7 = vld [vmem:[%s14615_s5 + $0x178] sm:$0xff] }
 0x2ce   : > { %v5958_v58 = vmax.f32 %v5957_v41, %v3314_v35  ;;  %v3316_v42 = vpop.f32.mrb[126].mxu0  ;;  %v2894_v41 = vld [vmem:[%s14615_s5 + $0x190] sm:$0xff] }
 0x2cf   : > { %v5938_v43 = vmax.f32 %v5937_v25, %v3316_v42  ;;  %v3318_v26 = vpop.f32.mrb[127].mxu0  ;;  %v3945_v1 = vpop.f32.mrb[156].mxu1  ;;  %v2898_v25 = vld [vmem:[%s14615_s5 + $0x1b0] sm:$0xff] }
 0x2d0   : > { %v5959_v10 = vmax.f32 %v5958_v58, %v3318_v26  ;;  %v5971_v20 = vmax.f32 %v5970_v45, %v3945_v1  ;;  %v3947_v18 = vpop.f32.mrb[157].mxu1  ;;  %v10304_v45 = vcombine.low %v2887_v52, %v2891_v7  ;;  %v10310_v58 = vcombine.low %v2894_v41, %v2898_v25 }
 0x2d1   : > { %v5992_v11 = vmax.f32 %v5991_v61, %v3947_v18  ;;  %3581 = vmatmul.mubr.bf16.gmra.mrb[232].mxu0 %v12578_v14  ;;  %v3949_v63 = vpop.f32.mrb[158].mxu1  ;;  %v10305_v61 = vcombine.high %v2887_v52, %v2891_v7  ;;  %v10311_v42 = vcombine.high %v2894_v41, %v2898_v25 }
 0x2d2   : > { %v5972_v55 = vmax.f32 %v5971_v20, %v3949_v63  ;;  %v3951_v17 = vpop.f32.mrb[159].mxu1  ;;  %3590 = vmatprep.mubr.bf16.mxu0 %v14722_v46 }
 0x2d3   : > { %v5993_v35 = vmax.f32 %v5992_v11, %v3951_v17  ;;  %5257 = vmatprep.subr.bf16.mxu1 %v10305_v61  ;;  %4586 = vmatprep.subr.bf16.mxu0 %v10311_v42 }
 0x2d4   : > { %v3322_v26 = vpop.f32.mrb[128].mxu0  ;;  %4214 = vmatmul.mubr.bf16.gmra.mrb[8].mxu1 %v12554_v4  ;;  %4587 = vmatpush1.bf16.msra.mxu0 %v10310_v58 }
 0x2d5   : > { %v5939_v1 = vmax.f32 %v5938_v43, %v3322_v26  ;;  %v3324_v18 = vpop.f32.mrb[129].mxu0  ;;  %4223 = vmatprep.mubr.bf16.mxu1 %v14722_v46  ;;  %5258 = vmatpush1.bf16.msra.mxu1 %v10304_v45 }
 0x2d6   : > { %v5960_v20 = vmax.f32 %v5959_v10, %v3324_v18  ;;  %v3326_v63 = vpop.f32.mrb[130].mxu0 }
 0x2d7   : > { %v5940_v52 = vmax.f32 %v5939_v1, %v3326_v63  ;;  %v3328_v7 = vpop.f32.mrb[131].mxu0  ;;  %v3955_v2 = vpop.f32.mrb[160].mxu1 }
 0x2d8   : > { %v5961_v8 = vmax.f32 %v5960_v20, %v3328_v7  ;;  %v5973_v11 = vmax.f32 %v5972_v55, %v3955_v2  ;;  %v3957_v17 = vpop.f32.mrb[161].mxu1 }
 0x2d9   : > { %v5994_v41 = vmax.f32 %v5993_v35, %v3957_v17  ;;  %3591 = vmatmul.mubr.bf16.gmra.mrb[236].mxu0 %v12576_v13  ;;  %v3959_v25 = vpop.f32.mrb[162].mxu1 }
 0x2da   : > { %v5974_v61 = vmax.f32 %v5973_v11, %v3959_v25  ;;  %v3961_v43 = vpop.f32.mrb[163].mxu1  ;;  %3600 = vmatprep.mubr.bf16.mxu0 %v14722_v46 }
 0x2db   : > { %v5995_v26 = vmax.f32 %v5994_v41, %v3961_v43 }
 0x2dc   : > { %v3332_v42 = vpop.f32.mrb[132].mxu0  ;;  %4224 = vmatmul.mubr.bf16.gmra.mrb[12].mxu1 %v12552_v23 }
 0x2dd   : > { %v5941_v10 = vmax.f32 %v5940_v52, %v3332_v42  ;;  %v3334_v45 = vpop.f32.mrb[133].mxu0  ;;  %4233 = vmatprep.mubr.bf16.mxu1 %v14722_v46 }
 0x2de   : > { %v5962_v58 = vmax.f32 %v5961_v8, %v3334_v45  ;;  %v3336_v1 = vpop.f32.mrb[134].mxu0 }
 0x2df   : > { %v12813_v2 = vmax.f32 %v5941_v10, %v3336_v1  ;;  %v3338_v55 = vpop.f32.mrb[135].mxu0  ;;  %v3965_v35 = vpop.f32.mrb[164].mxu1 }
 0x2e0   : > { %v12815_v18 = vmax.f32 %v5962_v58, %v3338_v55  ;;  %v5975_v20 = vmax.f32 %v5974_v61, %v3965_v35  ;;  %v3967_v63 = vpop.f32.mrb[165].mxu1 }
 0x2e1   : > { %v5996_v7 = vmax.f32 %v5995_v26, %v3967_v63  ;;  %3601 = vmatmul.mubr.bf16.gmra.mrb[240].mxu0 %v12602_v57  ;;  %v3969_v11 = vpop.f32.mrb[166].mxu1 }
 0x2e2   : > { %v5976_v17 = vmax.f32 %v5975_v20, %v3969_v11  ;;  %v3971_v41 = vpop.f32.mrb[167].mxu1  ;;  %3610 = vmatprep.mubr.bf16.mxu0 %v14722_v46 }
 0x2e3   : > { %v5997_v52 = vmax.f32 %v5996_v7, %v3971_v41 }
 0x2e4   : > { %v3342_v25 = vpop.f32.mrb[136].mxu0  ;;  %4234 = vmatmul.mubr.bf16.gmra.mrb[16].mxu1 %v12566_v32 }
 0x2e5   : > { %v3344_v8 = vpop.f32.mrb[137].mxu0  ;;  %4243 = vmatprep.mubr.bf16.mxu1 %v14722_v46 }
 0x2e6   : > { %v3346_v43 = vpop.f32.mrb[138].mxu0 }
 0x2e7   : > { %v6096_v42 = vmax.f32 %v3342_v25, %v3346_v43  ;;  %v3348_v10 = vpop.f32.mrb[139].mxu0  ;;  %v3975_v61 = vpop.f32.mrb[168].mxu1 }
 0x2e8   : > { %v6117_v45 = vmax.f32 %v3344_v8, %v3348_v10  ;;  %v5977_v26 = vmax.f32 %v5976_v17, %v3975_v61  ;;  %v3977_v58 = vpop.f32.mrb[169].mxu1 }
 0x2e9   : > { %v5998_v1 = vmax.f32 %v5997_v52, %v3977_v58  ;;  %3611 = vmatmul.mubr.bf16.gmra.mrb[244].mxu0 %v12600_v56  ;;  %v3979_v55 = vpop.f32.mrb[170].mxu1 }
 0x2ea   : > { %v5978_v35 = vmax.f32 %v5977_v26, %v3979_v55  ;;  %v3981_v20 = vpop.f32.mrb[171].mxu1  ;;  %3620 = vmatprep.mubr.bf16.mxu0 %v14722_v46 }
 0x2eb   : > { %v5999_v63 = vmax.f32 %v5998_v1, %v3981_v20 }
 0x2ec   : > { %v3352_v7 = vpop.f32.mrb[140].mxu0  ;;  %4244 = vmatmul.mubr.bf16.gmra.mrb[20].mxu1 %v12564_v50 }
 0x2ed   : > { %v6097_v11 = vmax.f32 %v6096_v42, %v3352_v7  ;;  %v3354_v41 = vpop.f32.mrb[141].mxu0  ;;  %4253 = vmatprep.mubr.bf16.mxu1 %v14722_v46 }
 0x2ee   : > { %v6118_v25 = vmax.f32 %v6117_v45, %v3354_v41  ;;  %v3356_v8 = vpop.f32.mrb[142].mxu0 }
 0x2ef   : > { %v6098_v17 = vmax.f32 %v6097_v11, %v3356_v8  ;;  %v3358_v43 = vpop.f32.mrb[143].mxu0  ;;  %v3985_v52 = vpop.f32.mrb[172].mxu1 }
 0x2f0   : > { %v6119_v10 = vmax.f32 %v6118_v25, %v3358_v43  ;;  %v5979_v61 = vmax.f32 %v5978_v35, %v3985_v52  ;;  %v3987_v58 = vpop.f32.mrb[173].mxu1 }
 0x2f1   : > { %v6000_v26 = vmax.f32 %v5999_v63, %v3987_v58  ;;  %3621 = vmatmul.mubr.bf16.gmra.mrb[248].mxu0 %v12614_v60  ;;  %v3989_v55 = vpop.f32.mrb[174].mxu1 }
 0x2f2   : > { %v5980_v1 = vmax.f32 %v5979_v61, %v3989_v55  ;;  %v3991_v20 = vpop.f32.mrb[175].mxu1  ;;  %3630 = vmatprep.mubr.bf16.mxu0 %v14722_v46 }
 0x2f3   : > { %v6001_v42 = vmax.f32 %v6000_v26, %v3991_v20 }
 0x2f4   : > { %v3362_v7 = vpop.f32.mrb[144].mxu0  ;;  %4254 = vmatmul.mubr.bf16.gmra.mrb[24].mxu1 %v12578_v14 }
 0x2f5   : > { %v6099_v45 = vmax.f32 %v6098_v17, %v3362_v7  ;;  %v3364_v41 = vpop.f32.mrb[145].mxu0  ;;  %4263 = vmatprep.mubr.bf16.mxu1 %v14722_v46 }
 0x2f6   : > { %v6120_v11 = vmax.f32 %v6119_v10, %v3364_v41  ;;  %v3366_v25 = vpop.f32.mrb[146].mxu0 }
 0x2f7   : > { %v6100_v35 = vmax.f32 %v6099_v45, %v3366_v25  ;;  %v3368_v8 = vpop.f32.mrb[147].mxu0  ;;  %v3995_v63 = vpop.f32.mrb[176].mxu1 }
 0x2f8   : > { %v6121_v43 = vmax.f32 %v6120_v11, %v3368_v8  ;;  %v5981_v52 = vmax.f32 %v5980_v1, %v3995_v63  ;;  %v3997_v58 = vpop.f32.mrb[177].mxu1 }
 0x2f9   : > { %v6002_v61 = vmax.f32 %v6001_v42, %v3997_v58  ;;  %3631 = vmatmul.mubr.bf16.gmra.mrb[252].mxu0 %v12612_v31  ;;  %v3999_v55 = vpop.f32.mrb[178].mxu1 }
 0x2fa   : > { %v5982_v26 = vmax.f32 %v5981_v52, %v3999_v55  ;;  %v4001_v20 = vpop.f32.mrb[179].mxu1  ;;  %3640 = vmatprep.mubr.bf16.mxu0 %v14722_v46 }
 0x2fb   : > { %v6003_v17 = vmax.f32 %v6002_v61, %v4001_v20 }
 0x2fc   : > { %v3372_v7 = vpop.f32.mrb[148].mxu0  ;;  %4264 = vmatmul.mubr.bf16.gmra.mrb[28].mxu1 %v12576_v13 }
 0x2fd   : > { %v6101_v10 = vmax.f32 %v6100_v35, %v3372_v7  ;;  %v3374_v41 = vpop.f32.mrb[149].mxu0  ;;  %4273 = vmatprep.mubr.bf16.mxu1 %v14722_v46 }
 0x2fe   : > { %v6122_v45 = vmax.f32 %v6121_v43, %v3374_v41  ;;  %v3376_v11 = vpop.f32.mrb[150].mxu0 }
 0x2ff   : > { %v6102_v1 = vmax.f32 %v6101_v10, %v3376_v11  ;;  %v3378_v25 = vpop.f32.mrb[151].mxu0  ;;  %v4005_v42 = vpop.f32.mrb[180].mxu1 }
 0x300   : > { %v6123_v8 = vmax.f32 %v6122_v45, %v3378_v25  ;;  %v5983_v63 = vmax.f32 %v5982_v26, %v4005_v42  ;;  %v4007_v58 = vpop.f32.mrb[181].mxu1 }
 0x301   : > { %v6004_v52 = vmax.f32 %v6003_v17, %v4007_v58  ;;  %3641 = vmatmul.mubr.bf16.gmra.mrb[0].mxu0 %v12626_v30  ;;  %v4009_v55 = vpop.f32.mrb[182].mxu1 }
 0x302   : > { %v12834_v61 = vmax.f32 %v5983_v63, %v4009_v55  ;;  %v4011_v20 = vpop.f32.mrb[183].mxu1  ;;  %3650 = vmatprep.mubr.bf16.mxu0 %v14722_v46 }
 0x303   : > { %v12837_v35 = vmax.f32 %v6004_v52, %v4011_v20 }
 0x304   : > { %v3382_v7 = vpop.f32.mrb[152].mxu0  ;;  %4274 = vmatmul.mubr.bf16.gmra.mrb[32].mxu1 %v12602_v57 }
 0x305   : > { %v6103_v43 = vmax.f32 %v6102_v1, %v3382_v7  ;;  %v3384_v10 = vpop.f32.mrb[153].mxu0  ;;  %4283 = vmatprep.mubr.bf16.mxu1 %v14722_v46 }
 0x306   : > { %v6124_v26 = vmax.f32 %v6123_v8, %v3384_v10  ;;  %v3386_v41 = vpop.f32.mrb[154].mxu0 }
 0x307   : > { %v6104_v17 = vmax.f32 %v6103_v43, %v3386_v41  ;;  %v3388_v45 = vpop.f32.mrb[155].mxu0  ;;  %v4015_v11 = vpop.f32.mrb[184].mxu1 }
 0x308   : > { %v6125_v25 = vmax.f32 %v6124_v26, %v3388_v45  ;;  %v4017_v42 = vpop.f32.mrb[185].mxu1 }
 0x309   : > { %3651 = vmatmul.mubr.bf16.gmra.mrb[4].mxu0 %v12624_v9  ;;  %v4019_v63 = vpop.f32.mrb[186].mxu1 }
 0x30a   : > { %v6138_v58 = vmax.f32 %v4015_v11, %v4019_v63  ;;  %v4021_v52 = vpop.f32.mrb[187].mxu1  ;;  %3660 = vmatprep.mubr.bf16.mxu0 %v14722_v46 }
 0x30b   : > { %v6159_v55 = vmax.f32 %v4017_v42, %v4021_v52  ;;  %v2895_v42 = vld [vmem:[%s14615_s5 + $0x198] sm:$0xff] }
 0x30c   : > { %v3392_v20 = vpop.f32.mrb[156].mxu0  ;;  %4284 = vmatmul.mubr.bf16.gmra.mrb[36].mxu1 %v12600_v56 }
 0x30d   : > { %v6105_v1 = vmax.f32 %v6104_v17, %v3392_v20  ;;  %v3394_v7 = vpop.f32.mrb[157].mxu0  ;;  %4293 = vmatprep.mubr.bf16.mxu1 %v14722_v46  ;;  %v2899_v17 = vld [vmem:[%s14615_s5 + $0x1b8] sm:$0xff] }
 0x30e   : > { %v6126_v8 = vmax.f32 %v6125_v25, %v3394_v7  ;;  %v3396_v43 = vpop.f32.mrb[158].mxu0  ;;  %v2902_v25 = vld [vmem:[%s14615_s5 + $0x1d0] sm:$0xff] }
 0x30f   : > { %v6106_v10 = vmax.f32 %v6105_v1, %v3396_v43  ;;  %v3398_v26 = vpop.f32.mrb[159].mxu0  ;;  %v4025_v41 = vpop.f32.mrb[188].mxu1 }
 0x310   : > { %v6127_v45 = vmax.f32 %v6126_v8, %v3398_v26  ;;  %v6139_v57 = vmax.f32 %v6138_v58, %v4025_v41  ;;  %v4027_v13 = vpop.f32.mrb[189].mxu1  ;;  %v10313_v58 = vcombine.high %v2895_v42, %v2899_v17 }
 0x311   : > { %v6160_v11 = vmax.f32 %v6159_v55, %v4027_v13  ;;  %3661 = vmatmul.mubr.bf16.gmra.mrb[8].mxu0 %v12638_v36  ;;  %v4029_v63 = vpop.f32.mrb[190].mxu1  ;;  %v10312_v13 = vcombine.low %v2895_v42, %v2899_v17  ;;  %v2906_v55 = vld [vmem:[%s14615_s5 + $0x1f0] sm:$0xff]  ;;  %v5943_v42 = vrot.slane %v12813_v2, 4 }
 0x312   : > { %v6140_v52 = vmax.f32 %v6139_v57, %v4029_v63  ;;  %v4031_v20 = vpop.f32.mrb[191].mxu1  ;;  %3670 = vmatprep.mubr.bf16.mxu0 %v14722_v46  ;;  %v10318_v7 = vcombine.low %v2902_v25, %v2906_v55  ;;  %v10319_v8 = vcombine.high %v2902_v25, %v2906_v55  ;;  %5259 = vmatprep.subr.bf16.mxu1 %v10313_v58  ;;  %v5964_v25 = vrot.slane %v12815_v18, 4 }
 0x313   : > { %v6161_v1 = vmax.f32 %v6160_v11, %v4031_v20  ;;  %5260 = vmatpush1.bf16.msra.mxu1 %v10312_v13 }
 0x314   : > { %v3402_v43 = vpop.f32.mrb[160].mxu0  ;;  %4294 = vmatmul.mubr.bf16.gmra.mrb[40].mxu1 %v12614_v60  ;;  %4588 = vmatprep.subr.bf16.mxu0 %v10319_v8 }
 0x315   : > { %v6107_v26 = vmax.f32 %v6106_v10, %v3402_v43  ;;  %v3404_v41 = vpop.f32.mrb[161].mxu0  ;;  %4303 = vmatprep.mubr.bf16.mxu1 %v14722_v46  ;;  %4589 = vmatpush1.bf16.msra.mxu0 %v10318_v7  ;;  %v5965_v7 = vmax.f32 %v12815_v18, %v5964_v25 }
 0x316   : > { %v6128_v57 = vmax.f32 %v6127_v45, %v3404_v41  ;;  %v3406_v63 = vpop.f32.mrb[162].mxu0  ;;  %v5944_v45 = vmax.f32 %v12813_v2, %v5943_v42 }
 0x317   : > { %v6108_v17 = vmax.f32 %v6107_v26, %v3406_v63  ;;  %v3408_v56 = vpop.f32.mrb[163].mxu0  ;;  %v4035_v11 = vpop.f32.mrb[192].mxu1 }
 0x318   : > { %v6129_v20 = vmax.f32 %v6128_v57, %v3408_v56  ;;  %v6141_v55 = vmax.f32 %v6140_v52, %v4035_v11  ;;  %v4037_v60 = vpop.f32.mrb[193].mxu1 }
 0x319   : > { %v6162_v58 = vmax.f32 %v6161_v1, %v4037_v60  ;;  %3671 = vmatmul.mubr.bf16.gmra.mrb[12].mxu0 %v12636_v34  ;;  %v4039_v10 = vpop.f32.mrb[194].mxu1  ;;  %v5945_v1 = vrot.slane %v5944_v45, 2 }
 0x31a   : > { %v6142_v43 = vmax.f32 %v6141_v55, %v4039_v10  ;;  %v4041_v8 = vpop.f32.mrb[195].mxu1  ;;  %3680 = vmatprep.mubr.bf16.mxu0 %v14722_v46  ;;  %v5966_v55 = vrot.slane %v5965_v7, 2 }
 0x31b   : > { %v6163_v13 = vmax.f32 %v6162_v58, %v4041_v8 }
 0x31c   : > { %v3412_v26 = vpop.f32.mrb[164].mxu0  ;;  %4304 = vmatmul.mubr.bf16.gmra.mrb[44].mxu1 %v12612_v31 }
 0x31d   : > { %v6109_v41 = vmax.f32 %v6108_v17, %v3412_v26  ;;  %v3414_v56 = vpop.f32.mrb[165].mxu0  ;;  %4313 = vmatprep.mubr.bf16.mxu1 %v14722_v46 }
 0x31e   : > { %v6130_v60 = vmax.f32 %v6129_v20, %v3414_v56  ;;  %v3416_v52 = vpop.f32.mrb[166].mxu0  ;;  %v5946_v20 = vmax.f32 %v5944_v45, %v5945_v1 }
 0x31f   : > { %v6110_v57 = vmax.f32 %v6109_v41, %v3416_v52  ;;  %v3418_v63 = vpop.f32.mrb[167].mxu0  ;;  %v4045_v11 = vpop.f32.mrb[196].mxu1  ;;  %v5967_v41 = vmax.f32 %v5965_v7, %v5966_v55 }
 0x320   : > { %v6131_v10 = vmax.f32 %v6130_v60, %v3418_v63  ;;  %v6143_v14 = vmax.f32 %v6142_v43, %v4045_v11  ;;  %v4047_v2 = vpop.f32.mrb[197].mxu1  ;;  %v5947_v11 = vrot.slane %v5946_v20, 1 }
 0x321   : > { %v6111_v42 = vrot.slane %v6110_v57, 4  ;;  %v6164_v58 = vmax.f32 %v6163_v13, %v4047_v2  ;;  %3681 = vmatmul.mubr.bf16.gmra.mrb[16].mxu0 %v12650_v16  ;;  %v4049_v18 = vpop.f32.mrb[198].mxu1  ;;  %v5968_v32 = vrot.slane %v5967_v41, 1 }
 0x322   : > { %v6132_v25 = vrot.slane %v6131_v10, 4  ;;  %v6144_v17 = vmax.f32 %v6143_v14, %v4049_v18  ;;  %v4051_v8 = vpop.f32.mrb[199].mxu1  ;;  %3690 = vmatprep.mubr.bf16.mxu0 %v14722_v46 }
 0x323   : > { %v6112_v26 = vmax.f32 %v6110_v57, %v6111_v42  ;;  %v6165_v56 = vmax.f32 %v6164_v58, %v4051_v8 }
 0x324   : > { %v6133_v52 = vmax.f32 %v6131_v10, %v6132_v25  ;;  %v3422_v31 = vpop.f32.mrb[168].mxu0  ;;  %4314 = vmatmul.mubr.bf16.gmra.mrb[48].mxu1 %v12626_v30 }
 0x325   : > { %v6113_v43 = vrot.slane %v6112_v26, 2  ;;  %v3424_v60 = vpop.f32.mrb[169].mxu0  ;;  %4323 = vmatprep.mubr.bf16.mxu1 %v14722_v46 }
 0x326   : > { %v6134_v13 = vrot.slane %v6133_v52, 2  ;;  %v3426_v63 = vpop.f32.mrb[170].mxu0 }
 0x327   : > { %v6114_v2 = vmax.f32 %v6112_v26, %v6113_v43  ;;  %v6264_v14 = vmax.f32 %v3422_v31, %v3426_v63  ;;  %v3428_v18 = vpop.f32.mrb[171].mxu0  ;;  %v4055_v50 = vpop.f32.mrb[200].mxu1  ;;  %v5948_v26 = vmax.f32 %v5946_v20, %v5947_v11  ;;  %v5969_v63 = vmax.f32 %v5967_v41, %v5968_v32 }
 0x328   : > { %v6135_v45 = vmax.f32 %v6133_v52, %v6134_v13  ;;  %v6285_v1 = vmax.f32 %v3424_v60, %v3428_v18  ;;  %v6145_v57 = vmax.f32 %v6144_v17, %v4055_v50  ;;  %v4057_v7 = vpop.f32.mrb[201].mxu1 }
 0x329   : > { %v6115_v55 = vrot.slane %v6114_v2, 1  ;;  %v6166_v10 = vmax.f32 %v6165_v56, %v4057_v7  ;;  %3691 = vmatmul.mubr.bf16.gmra.mrb[20].mxu0 %v12648_v15  ;;  %v4059_v42 = vpop.f32.mrb[202].mxu1 }
 0x32a   : > { %v6136_v58 = vrot.slane %v6135_v45, 1  ;;  %v6146_v25 = vmax.f32 %v6145_v57, %v4059_v42  ;;  %v4061_v8 = vpop.f32.mrb[203].mxu1  ;;  %3700 = vmatprep.mubr.bf16.mxu0 %v14722_v46 }
 0x32b   : > { %v6116_v31 = vmax.f32 %v6114_v2, %v6115_v55  ;;  %v6167_v43 = vmax.f32 %v6166_v10, %v4061_v8 }
 0x32c   : > { %v6137_v30 = vmax.f32 %v6135_v45, %v6136_v58  ;;  %v3432_v52 = vpop.f32.mrb[172].mxu0  ;;  %4324 = vmatmul.mubr.bf16.gmra.mrb[52].mxu1 %v12624_v9 }
 0x32d   : > { %v12877_v50 = vsel %vm7336_vm3, %v6116_v31, %v5948_v26  ;;  %v6265_v17 = vmax.f32 %v6264_v14, %v3432_v52  ;;  %v3434_v56 = vpop.f32.mrb[173].mxu0  ;;  %4333 = vmatprep.mubr.bf16.mxu1 %v14722_v46 }
 0x32e   : > { %v12881_v60 = vsel %vm7336_vm3, %v6137_v30, %v5969_v63  ;;  %v6286_v13 = vmax.f32 %v6285_v1, %v3434_v56  ;;  %v3436_v18 = vpop.f32.mrb[174].mxu0 }
 0x32f   : > { %v6266_v20 = vmax.f32 %v6265_v17, %v3436_v18  ;;  %v3438_v11 = vpop.f32.mrb[175].mxu0  ;;  %v4065_v2 = vpop.f32.mrb[204].mxu1 }
 0x330   : > { %v6287_v32 = vmax.f32 %v6286_v13, %v3438_v11  ;;  %v6147_v41 = vmax.f32 %v6146_v25, %v4065_v2  ;;  %v4067_v45 = vpop.f32.mrb[205].mxu1  ;;  %v5985_v13 = vrot.slane %v12834_v61, 4 }
 0x331   : > { %v6168_v57 = vmax.f32 %v6167_v43, %v4067_v45  ;;  %3701 = vmatmul.mubr.bf16.gmra.mrb[24].mxu0 %v12662_v54  ;;  %v4069_v7 = vpop.f32.mrb[206].mxu1 }
 0x332   : > { %v6148_v55 = vmax.f32 %v6147_v41, %v4069_v7  ;;  %v4071_v14 = vpop.f32.mrb[207].mxu1  ;;  %3710 = vmatprep.mubr.bf16.mxu0 %v14722_v46 }
 0x333   : > { %v6169_v10 = vmax.f32 %v6168_v57, %v4071_v14  ;;  %v5986_v57 = vmax.f32 %v12834_v61, %v5985_v13 }
 0x334   : > { %v3442_v42 = vpop.f32.mrb[176].mxu0  ;;  %4334 = vmatmul.mubr.bf16.gmra.mrb[56].mxu1 %v12638_v36 }
 0x335   : > { %v6267_v30 = vmax.f32 %v6266_v20, %v3442_v42  ;;  %v3444_v1 = vpop.f32.mrb[177].mxu0  ;;  %4343 = vmatprep.mubr.bf16.mxu1 %v14722_v46  ;;  %v6006_v20 = vrot.slane %v12837_v35, 4 }
 0x336   : > { %v6288_v58 = vmax.f32 %v6287_v32, %v3444_v1  ;;  %v3446_v8 = vpop.f32.mrb[178].mxu0 }
 0x337   : > { %v6268_v25 = vmax.f32 %v6267_v30, %v3446_v8  ;;  %v3448_v26 = vpop.f32.mrb[179].mxu0  ;;  %v4075_v31 = vpop.f32.mrb[208].mxu1  ;;  %v6007_v14 = vmax.f32 %v12837_v35, %v6006_v20 }
 0x338   : > { %v6289_v43 = vmax.f32 %v6288_v58, %v3448_v26  ;;  %v6149_v63 = vmax.f32 %v6148_v55, %v4075_v31  ;;  %v4077_v52 = vpop.f32.mrb[209].mxu1 }
 0x339   : > { %v6170_v17 = vmax.f32 %v6169_v10, %v4077_v52  ;;  %3711 = vmatmul.mubr.bf16.gmra.mrb[28].mxu0 %v12660_v3  ;;  %v4079_v56 = vpop.f32.mrb[210].mxu1  ;;  %v6008_v61 = vrot.slane %v6007_v14, 2 }
 0x33a   : > { %v6150_v18 = vmax.f32 %v6149_v63, %v4079_v56  ;;  %v4081_v11 = vpop.f32.mrb[211].mxu1  ;;  %3720 = vmatprep.mubr.bf16.mxu0 %v14722_v46 }
 0x33b   : > { %v6171_v2 = vmax.f32 %v6170_v17, %v4081_v11 }
 0x33c   : > { %v3452_v32 = vpop.f32.mrb[180].mxu0  ;;  %4344 = vmatmul.mubr.bf16.gmra.mrb[60].mxu1 %v12636_v34 }
 0x33d   : > { %v6269_v41 = vmax.f32 %v6268_v25, %v3452_v32  ;;  %v3454_v45 = vpop.f32.mrb[181].mxu0  ;;  %4353 = vmatprep.mubr.bf16.mxu1 %v14722_v46  ;;  %v5987_v25 = vrot.slane %v5986_v57, 2 }
 0x33e   : > { %v6290_v7 = vmax.f32 %v6289_v43, %v3454_v45  ;;  %v3456_v55 = vpop.f32.mrb[182].mxu0 }
 0x33f   : > { %v6270_v10 = vmax.f32 %v6269_v41, %v3456_v55  ;;  %v3458_v42 = vpop.f32.mrb[183].mxu0  ;;  %v4085_v30 = vpop.f32.mrb[212].mxu1  ;;  %v6009_v41 = vmax.f32 %v6007_v14, %v6008_v61 }
 0x340   : > { %v6291_v1 = vmax.f32 %v6290_v7, %v3458_v42  ;;  %v6151_v58 = vmax.f32 %v6150_v18, %v4085_v30  ;;  %v4087_v8 = vpop.f32.mrb[213].mxu1  ;;  %v5988_v18 = vmax.f32 %v5986_v57, %v5987_v25 }
 0x341   : > { %v6172_v26 = vmax.f32 %v6171_v2, %v4087_v8  ;;  %3721 = vmatmul.mubr.bf16.gmra.mrb[32].mxu0 %v12674_v49  ;;  %v4089_v31 = vpop.f32.mrb[214].mxu1  ;;  %v6010_v57 = vrot.slane %v6009_v41, 1 }
 0x342   : > { %v6152_v63 = vmax.f32 %v6151_v58, %v4089_v31  ;;  %v4091_v52 = vpop.f32.mrb[215].mxu1  ;;  %3730 = vmatprep.mubr.bf16.mxu0 %v14722_v46 }
 0x343   : > { %v6173_v43 = vmax.f32 %v6172_v26, %v4091_v52 }
 0x344   : > { %v6153_v17 = vrot.slane %v6152_v63, 4  ;;  %v3462_v56 = vpop.f32.mrb[184].mxu0  ;;  %4354 = vmatmul.mubr.bf16.gmra.mrb[64].mxu1 %v12650_v16 }
 0x345   : > { %v6174_v35 = vrot.slane %v6173_v43, 4  ;;  %v6271_v13 = vmax.f32 %v6270_v10, %v3462_v56  ;;  %v3464_v11 = vpop.f32.mrb[185].mxu0  ;;  %4363 = vmatprep.mubr.bf16.mxu1 %v14722_v46  ;;  %v5989_v10 = vrot.slane %v5988_v18, 1 }
 0x346   : > { %v6154_v20 = vmax.f32 %v6152_v63, %v6153_v17  ;;  %v6292_v2 = vmax.f32 %v6291_v1, %v3464_v11  ;;  %v3466_v32 = vpop.f32.mrb[186].mxu0 }
 0x347   : > { %v6175_v45 = vmax.f32 %v6173_v43, %v6174_v35  ;;  %v6272_v7 = vmax.f32 %v6271_v13, %v3466_v32  ;;  %v3468_v55 = vpop.f32.mrb[187].mxu0  ;;  %v4095_v42 = vpop.f32.mrb[216].mxu1  ;;  %v5990_v35 = vmax.f32 %v5988_v18, %v5989_v10 }
 0x348   : > { %v6155_v30 = vrot.slane %v6154_v20, 2  ;;  %v6293_v58 = vmax.f32 %v6292_v2, %v3468_v55  ;;  %v4097_v8 = vpop.f32.mrb[217].mxu1  ;;  %v6011_v2 = vmax.f32 %v6009_v41, %v6010_v57  ;;  %v2903_v41 = vld [vmem:[%s14615_s5 + $0x1d8] sm:$0xff] }
 0x349   : > { %v6176_v26 = vrot.slane %v6175_v45, 2  ;;  %3731 = vmatmul.mubr.bf16.gmra.mrb[36].mxu0 %v12672_v48  ;;  %v4099_v31 = vpop.f32.mrb[218].mxu1 }
 0x34a   : > { %v6156_v52 = vmax.f32 %v6154_v20, %v6155_v30  ;;  %v6306_v56 = vmax.f32 %v4095_v42, %v4099_v31  ;;  %v4101_v16 = vpop.f32.mrb[219].mxu1  ;;  %3740 = vmatprep.mubr.bf16.mxu0 %v14722_v46 }
 0x34b   : > { %v6177_v1 = vmax.f32 %v6175_v45, %v6176_v26  ;;  %v6327_v14 = vmax.f32 %v4097_v8, %v4101_v16 }
 0x34c   : > { %v6157_v25 = vrot.slane %v6156_v52, 1  ;;  %v3472_v63 = vpop.f32.mrb[188].mxu0  ;;  %4364 = vmatmul.mubr.bf16.gmra.mrb[68].mxu1 %v12648_v15 }
 0x34d   : > { %v6178_v61 = vrot.slane %v6177_v1, 1  ;;  %v6273_v43 = vmax.f32 %v6272_v7, %v3472_v63  ;;  %v3474_v17 = vpop.f32.mrb[189].mxu0  ;;  %4373 = vmatprep.mubr.bf16.mxu1 %v14722_v46 }
 0x34e   : > { %v6158_v13 = vmax.f32 %v6156_v52, %v6157_v25  ;;  %v6294_v11 = vmax.f32 %v6293_v58, %v3474_v17  ;;  %v3476_v20 = vpop.f32.mrb[190].mxu0  ;;  %v2907_v58 = vld [vmem:[%s14615_s5 + $0x1f8] sm:$0xff] }
 0x34f   : > { %v6179_v32 = vmax.f32 %v6177_v1, %v6178_v61  ;;  %v6274_v55 = vmax.f32 %v6273_v43, %v3476_v20  ;;  %v3478_v42 = vpop.f32.mrb[191].mxu0  ;;  %v4105_v30 = vpop.f32.mrb[220].mxu1  ;;  %v10321_v57 = vcombine.high %v2903_v41, %v2907_v58 }
 0x350   : > { %v12904_v16 = vsel %vm7336_vm3, %v6158_v13, %v5990_v35  ;;  %v6295_v45 = vmax.f32 %v6294_v11, %v3478_v42  ;;  %v6307_v8 = vmax.f32 %v6306_v56, %v4105_v30  ;;  %v4107_v26 = vpop.f32.mrb[221].mxu1  ;;  %v10320_v56 = vcombine.low %v2903_v41, %v2907_v58 }
 0x351   : > { %v12907_v7 = vsel %vm7336_vm3, %v6179_v32, %v6011_v2  ;;  %v6328_v31 = vmax.f32 %v6327_v14, %v4107_v26  ;;  %3741 = vmatmul.mubr.bf16.gmra.mrb[40].mxu0 %v12686_v38  ;;  %v4109_v18 = vpop.f32.mrb[222].mxu1  ;;  %5261 = vmatprep.subr.bf16.mxu1 %v10321_v57 }
 0x352   : > { %v6308_v10 = vmax.f32 %v6307_v8, %v4109_v18  ;;  %v4111_v52 = vpop.f32.mrb[223].mxu1  ;;  %3750 = vmatprep.mubr.bf16.mxu0 %v14722_v46  ;;  %5262 = vmatpush1.bf16.msra.mxu1 %v10320_v56 }
 0x353   : > { %v6329_v1 = vmax.f32 %v6328_v31, %v4111_v52 }
 0x354   : > { %v3482_v25 = vpop.f32.mrb[192].mxu0  ;;  %4374 = vmatmul.mubr.bf16.gmra.mrb[72].mxu1 %v12662_v54 }
 0x355   : > { %v6275_v14 = vmax.f32 %v6274_v55, %v3482_v25  ;;  %v3484_v63 = vpop.f32.mrb[193].mxu0  ;;  %4383 = vmatprep.mubr.bf16.mxu1 %v14722_v46 }
 0x356   : > { %v6296_v61 = vmax.f32 %v6295_v45, %v3484_v63  ;;  %v3486_v43 = vpop.f32.mrb[194].mxu0 }
 0x357   : > { %v6276_v17 = vmax.f32 %v6275_v14, %v3486_v43  ;;  %v3488_v35 = vpop.f32.mrb[195].mxu0  ;;  %v4115_v13 = vpop.f32.mrb[224].mxu1 }
 0x358   : > { %v6297_v11 = vmax.f32 %v6296_v61, %v3488_v35  ;;  %v6309_v20 = vmax.f32 %v6308_v10, %v4115_v13  ;;  %v4117_v2 = vpop.f32.mrb[225].mxu1 }
 0x359   : > { %v6330_v32 = vmax.f32 %v6329_v1, %v4117_v2  ;;  %3751 = vmatmul.mubr.bf16.gmra.mrb[44].mxu0 %v12684_v47  ;;  %v4119_v42 = vpop.f32.mrb[226].mxu1 }
 0x35a   : > { %v6310_v30 = vmax.f32 %v6309_v20, %v4119_v42  ;;  %v4121_v8 = vpop.f32.mrb[227].mxu1  ;;  %3760 = vmatprep.mubr.bf16.mxu0 %v14722_v46 }
 0x35b   : > { %v6331_v55 = vmax.f32 %v6330_v32, %v4121_v8 }
 0x35c   : > { %v3492_v26 = vpop.f32.mrb[196].mxu0  ;;  %4384 = vmatmul.mubr.bf16.gmra.mrb[76].mxu1 %v12660_v3 }
 0x35d   : > { %v6277_v45 = vmax.f32 %v6276_v17, %v3492_v26  ;;  %v3494_v31 = vpop.f32.mrb[197].mxu0  ;;  %4393 = vmatprep.mubr.bf16.mxu1 %v14722_v46 }
 0x35e   : > { %v6298_v18 = vmax.f32 %v6297_v11, %v3494_v31  ;;  %v3496_v41 = vpop.f32.mrb[198].mxu0 }
 0x35f   : > { %v6278_v58 = vmax.f32 %v6277_v45, %v3496_v41  ;;  %v3498_v10 = vpop.f32.mrb[199].mxu0  ;;  %v4125_v52 = vpop.f32.mrb[228].mxu1 }
 0x360   : > { %v6299_v56 = vmax.f32 %v6298_v18, %v3498_v10  ;;  %v6311_v57 = vmax.f32 %v6310_v30, %v4125_v52  ;;  %v4127_v1 = vpop.f32.mrb[229].mxu1 }
 0x361   : > { %v6279_v25 = vrot.slane %v6278_v58, 4  ;;  %v6332_v14 = vmax.f32 %v6331_v55, %v4127_v1  ;;  %3761 = vmatmul.mubr.bf16.gmra.mrb[48].mxu0 %v12715_v19  ;;  %v4129_v63 = vpop.f32.mrb[230].mxu1 }
 0x362   : > { %v6300_v61 = vrot.slane %v6299_v56, 4  ;;  %v6312_v43 = vmax.f32 %v6311_v57, %v4129_v63  ;;  %v4131_v35 = vpop.f32.mrb[231].mxu1  ;;  %3770 = vmatprep.mubr.bf16.mxu0 %v14722_v46 }
 0x363   : > { %v6280_v17 = vmax.f32 %v6278_v58, %v6279_v25  ;;  %v6333_v13 = vmax.f32 %v6332_v14, %v4131_v35 }
 0x364   : > { %v6301_v11 = vmax.f32 %v6299_v56, %v6300_v61  ;;  %v3502_v20 = vpop.f32.mrb[200].mxu0  ;;  %4394 = vmatmul.mubr.bf16.gmra.mrb[80].mxu1 %v12674_v49 }
 0x365   : > { %v6281_v2 = vrot.slane %v6280_v17, 2  ;;  %v3504_v32 = vpop.f32.mrb[201].mxu0  ;;  %4403 = vmatprep.mubr.bf16.mxu1 %v14722_v46 }
 0x366   : > { %v6302_v42 = vrot.slane %v6301_v11, 2  ;;  %v3506_v30 = vpop.f32.mrb[202].mxu0 }
 0x367   : > { %v6282_v8 = vmax.f32 %v6280_v17, %v6281_v2  ;;  %v6432_v55 = vmax.f32 %v3502_v20, %v3506_v30  ;;  %v3508_v26 = vpop.f32.mrb[203].mxu0  ;;  %v4135_v45 = vpop.f32.mrb[232].mxu1 }
 0x368   : > { %v6303_v31 = vmax.f32 %v6301_v11, %v6302_v42  ;;  %v6453_v18 = vmax.f32 %v3504_v32, %v3508_v26  ;;  %v6313_v41 = vmax.f32 %v6312_v43, %v4135_v45  ;;  %v4137_v10 = vpop.f32.mrb[233].mxu1 }
 0x369   : > { %v6283_v58 = vrot.slane %v6282_v8, 1  ;;  %v6334_v52 = vmax.f32 %v6333_v13, %v4137_v10  ;;  %3771 = vmatmul.mubr.bf16.gmra.mrb[52].mxu0 %v12713_v24  ;;  %v4139_v56 = vpop.f32.mrb[234].mxu1 }
 0x36a   : > { %v6304_v57 = vrot.slane %v6303_v31, 1  ;;  %v6314_v1 = vmax.f32 %v6313_v41, %v4139_v56  ;;  %v4141_v25 = vpop.f32.mrb[235].mxu1  ;;  %3780 = vmatprep.mubr.bf16.mxu0 %v14722_v46 }
 0x36b   : > { %v6284_v14 = vmax.f32 %v6282_v8, %v6283_v58  ;;  %v6335_v63 = vmax.f32 %v6334_v52, %v4141_v25 }
 0x36c   : > { %v6305_v61 = vmax.f32 %v6303_v31, %v6304_v57  ;;  %v3512_v35 = vpop.f32.mrb[204].mxu0  ;;  %4404 = vmatmul.mubr.bf16.gmra.mrb[84].mxu1 %v12672_v48 }
 0x36d   : > { %v12932_v43 = vsel %vm7338_vm4, %v6284_v14, %v12877_v50  ;;  %v6433_v17 = vmax.f32 %v6432_v55, %v3512_v35  ;;  %v3514_v13 = vpop.f32.mrb[205].mxu0  ;;  %4413 = vmatprep.mubr.bf16.mxu1 %v14722_v46 }
 0x36e   : > { %v12937_v11 = vsel %vm7338_vm4, %v6305_v61, %v12881_v60  ;;  %v6454_v20 = vmax.f32 %v6453_v18, %v3514_v13  ;;  %v3516_v2 = vpop.f32.mrb[206].mxu0 }
 0x36f   : > { %v6434_v32 = vmax.f32 %v6433_v17, %v3516_v2  ;;  %v3518_v42 = vpop.f32.mrb[207].mxu0  ;;  %v4145_v30 = vpop.f32.mrb[236].mxu1 }
 0x370   : > { %v6455_v8 = vmax.f32 %v6454_v20, %v3518_v42  ;;  %v6315_v26 = vmax.f32 %v6314_v1, %v4145_v30  ;;  %v4147_v45 = vpop.f32.mrb[237].mxu1 }
 0x371   : > { %v6336_v31 = vmax.f32 %v6335_v63, %v4147_v45  ;;  %3781 = vmatmul.mubr.bf16.gmra.mrb[56].mxu0 %v12727_v53  ;;  %v4149_v50 = vpop.f32.mrb[238].mxu1 }
 0x372   : > { %v6316_v55 = vmax.f32 %v6315_v26, %v4149_v50  ;;  %v4151_v41 = vpop.f32.mrb[239].mxu1  ;;  %3790 = vmatprep.mubr.bf16.mxu0 %v14722_v46 }
 0x373   : > { %v6337_v10 = vmax.f32 %v6336_v31, %v4151_v41 }
 0x374   : > { %v3522_v58 = vpop.f32.mrb[208].mxu0  ;;  %4414 = vmatmul.mubr.bf16.gmra.mrb[88].mxu1 %v12686_v38 }
 0x375   : > { %v6435_v60 = vmax.f32 %v6434_v32, %v3522_v58  ;;  %v3524_v18 = vpop.f32.mrb[209].mxu0  ;;  %4423 = vmatprep.mubr.bf16.mxu1 %v14722_v46 }
 0x376   : > { %v6456_v52 = vmax.f32 %v6455_v8, %v3524_v18  ;;  %v3526_v56 = vpop.f32.mrb[210].mxu0 }
 0x377   : > { %v6436_v57 = vmax.f32 %v6435_v60, %v3526_v56  ;;  %v3528_v1 = vpop.f32.mrb[211].mxu0  ;;  %v4155_v25 = vpop.f32.mrb[240].mxu1 }
 0x378   : > { %v6457_v14 = vmax.f32 %v6456_v52, %v3528_v1  ;;  %v6317_v63 = vmax.f32 %v6316_v55, %v4155_v25  ;;  %v4157_v61 = vpop.f32.mrb[241].mxu1 }
 0x379   : > { %v6338_v35 = vmax.f32 %v6337_v10, %v4157_v61  ;;  %3791 = vmatmul.mubr.bf16.gmra.mrb[60].mxu0 %v12725_v6  ;;  %v4159_v17 = vpop.f32.mrb[242].mxu1 }
 0x37a   : > { %v6318_v13 = vmax.f32 %v6317_v63, %v4159_v17  ;;  %v4161_v20 = vpop.f32.mrb[243].mxu1  ;;  %3800 = vmatprep.mubr.bf16.mxu0 %v14722_v46 }
 0x37b   : > { %v6339_v2 = vmax.f32 %v6338_v35, %v4161_v20 }
 0x37c   : > { %v3532_v32 = vpop.f32.mrb[212].mxu0  ;;  %4424 = vmatmul.mubr.bf16.gmra.mrb[92].mxu1 %v12684_v47 }
 0x37d   : > { %v6437_v42 = vmax.f32 %v6436_v57, %v3532_v32  ;;  %v3534_v30 = vpop.f32.mrb[213].mxu0  ;;  %4433 = vmatprep.mubr.bf16.mxu1 %v14722_v46 }
 0x37e   : > { %v6458_v8 = vmax.f32 %v6457_v14, %v3534_v30  ;;  %v3536_v26 = vpop.f32.mrb[214].mxu0 }
 0x37f   : > { %v6438_v45 = vmax.f32 %v6437_v42, %v3536_v26  ;;  %v3538_v31 = vpop.f32.mrb[215].mxu0  ;;  %v4165_v50 = vpop.f32.mrb[244].mxu1 }
 0x380   : > { %v6459_v55 = vmax.f32 %v6458_v8, %v3538_v31  ;;  %v6319_v41 = vmax.f32 %v6318_v13, %v4165_v50  ;;  %v4167_v10 = vpop.f32.mrb[245].mxu1 }
 0x381   : > { %v6340_v58 = vmax.f32 %v6339_v2, %v4167_v10  ;;  %3801 = vmatmul.mubr.bf16.gmra.mrb[64].mxu0 %v12739_v5  ;;  %v4169_v60 = vpop.f32.mrb[246].mxu1 }
 0x382   : > { %v6320_v18 = vmax.f32 %v6319_v41, %v4169_v60  ;;  %v4171_v52 = vpop.f32.mrb[247].mxu1  ;;  %3810 = vmatprep.mubr.bf16.mxu0 %v14722_v46 }
 0x383   : > { %v6341_v56 = vmax.f32 %v6340_v58, %v4171_v52 }
 0x384   : > { %v6321_v57 = vrot.slane %v6320_v18, 4  ;;  %v3542_v1 = vpop.f32.mrb[216].mxu0  ;;  %4434 = vmatmul.mubr.bf16.gmra.mrb[96].mxu1 %v12715_v19 }
 0x385   : > { %v6342_v25 = vrot.slane %v6341_v56, 4  ;;  %v6439_v14 = vmax.f32 %v6438_v45, %v3542_v1  ;;  %v3544_v63 = vpop.f32.mrb[217].mxu0  ;;  %4443 = vmatprep.mubr.bf16.mxu1 %v14722_v46 }
 0x386   : > { %v6322_v61 = vmax.f32 %v6320_v18, %v6321_v57  ;;  %v6460_v35 = vmax.f32 %v6459_v55, %v3544_v63  ;;  %v3546_v17 = vpop.f32.mrb[218].mxu0 }
 0x387   : > { %v6343_v13 = vmax.f32 %v6341_v56, %v6342_v25  ;;  %v6440_v20 = vmax.f32 %v6439_v14, %v3546_v17  ;;  %v3548_v2 = vpop.f32.mrb[219].mxu0  ;;  %v4175_v32 = vpop.f32.mrb[248].mxu1 }
 0x388   : > { %v6323_v42 = vrot.slane %v6322_v61, 2  ;;  %v6461_v30 = vmax.f32 %v6460_v35, %v3548_v2  ;;  %v4177_v8 = vpop.f32.mrb[249].mxu1 }
 0x389   : > { %v6344_v26 = vrot.slane %v6343_v13, 2  ;;  %3811 = vmatmul.mubr.bf16.gmra.mrb[68].mxu0 %v12737_v12  ;;  %v4179_v31 = vpop.f32.mrb[250].mxu1 }
 0x38a   : > { %v6324_v50 = vmax.f32 %v6322_v61, %v6323_v42  ;;  %v6474_v41 = vmax.f32 %v4175_v32, %v4179_v31  ;;  %v4181_v45 = vpop.f32.mrb[251].mxu1  ;;  %3820 = vmatprep.mubr.bf16.mxu0 %v14722_v46 }
 0x38b   : > { %v6345_v10 = vmax.f32 %v6343_v13, %v6344_v26  ;;  %v6495_v58 = vmax.f32 %v4177_v8, %v4181_v45 }
 0x38c   : > { %v6325_v55 = vrot.slane %v6324_v50, 1  ;;  %v3552_v60 = vpop.f32.mrb[220].mxu0  ;;  %4444 = vmatmul.mubr.bf16.gmra.mrb[100].mxu1 %v12713_v24 }
 0x38d   : > { %v6346_v18 = vrot.slane %v6345_v10, 1  ;;  %v6441_v52 = vmax.f32 %v6440_v20, %v3552_v60  ;;  %v3554_v56 = vpop.f32.mrb[221].mxu0  ;;  %4453 = vmatprep.mubr.bf16.mxu1 %v14722_v46 }
 0x38e   : > { %v6326_v57 = vmax.f32 %v6324_v50, %v6325_v55  ;;  %v6462_v1 = vmax.f32 %v6461_v30, %v3554_v56  ;;  %v3556_v25 = vpop.f32.mrb[222].mxu0 }
 0x38f   : > { %v6347_v14 = vmax.f32 %v6345_v10, %v6346_v18  ;;  %v6442_v63 = vmax.f32 %v6441_v52, %v3556_v25  ;;  %v3558_v61 = vpop.f32.mrb[223].mxu0  ;;  %v4185_v35 = vpop.f32.mrb[252].mxu1 }
 0x390   : > { %v12957_v17 = vsel %vm7338_vm4, %v6326_v57, %v12904_v16  ;;  %v6463_v13 = vmax.f32 %v6462_v1, %v3558_v61  ;;  %v6475_v2 = vmax.f32 %v6474_v41, %v4185_v35  ;;  %v4187_v32 = vpop.f32.mrb[253].mxu1 }
 0x391   : > { %v12961_v20 = vsel %vm7338_vm4, %v6347_v14, %v12907_v7  ;;  %v6496_v42 = vmax.f32 %v6495_v58, %v4187_v32  ;;  %3821 = vmatmul.mubr.bf16.gmra.mrb[72].mxu0 %v12751_v22  ;;  %v4189_v30 = vpop.f32.mrb[254].mxu1 }
 0x392   : > { %v6476_v8 = vmax.f32 %v6475_v2, %v4189_v30  ;;  %v4191_v26 = vpop.f32.mrb[255].mxu1  ;;  %3830 = vmatprep.mubr.bf16.mxu0 %v14722_v46 }
 0x393   : > { %v6497_v31 = vmax.f32 %v6496_v42, %v4191_v26 }
 0x394   : > { %v3562_v50 = vpop.f32.mrb[224].mxu0  ;;  %4454 = vmatmul.mubr.bf16.gmra.mrb[104].mxu1 %v12727_v53 }
 0x395   : > { %v6443_v16 = vmax.f32 %v6442_v63, %v3562_v50  ;;  %v3564_v45 = vpop.f32.mrb[225].mxu0  ;;  %4463 = vmatprep.mubr.bf16.mxu1 %v14722_v46 }
 0x396   : > { %v6464_v41 = vmax.f32 %v6463_v13, %v3564_v45  ;;  %v3566_v10 = vpop.f32.mrb[226].mxu0 }
 0x397   : > { %v6444_v7 = vmax.f32 %v6443_v16, %v3566_v10  ;;  %v3568_v55 = vpop.f32.mrb[227].mxu0  ;;  %v4195_v58 = vpop.f32.mrb[0].mxu1 }
 0x398   : > { %v6465_v60 = vmax.f32 %v6464_v41, %v3568_v55  ;;  %v6477_v18 = vmax.f32 %v6476_v8, %v4195_v58  ;;  %v4197_v52 = vpop.f32.mrb[1].mxu1 }
 0x399   : > { %v6498_v56 = vmax.f32 %v6497_v31, %v4197_v52  ;;  %3831 = vmatmul.mubr.bf16.gmra.mrb[76].mxu0 %v12749_v28  ;;  %v4199_v57 = vpop.f32.mrb[2].mxu1 }
 0x39a   : > { %v6478_v1 = vmax.f32 %v6477_v18, %v4199_v57  ;;  %v4201_v25 = vpop.f32.mrb[3].mxu1  ;;  %3840 = vmatprep.mubr.bf16.mxu0 %v14722_v46 }
 0x39b   : > { %v6499_v14 = vmax.f32 %v6498_v56, %v4201_v25 }
 0x39c   : > { %v3572_v63 = vpop.f32.mrb[228].mxu0  ;;  %4464 = vmatmul.mubr.bf16.gmra.mrb[108].mxu1 %v12725_v6 }
 0x39d   : > { %v6445_v61 = vmax.f32 %v6444_v7, %v3572_v63  ;;  %v3574_v35 = vpop.f32.mrb[229].mxu0  ;;  %4473 = vmatprep.mubr.bf16.mxu1 %v14722_v46 }
 0x39e   : > { %v6466_v13 = vmax.f32 %v6465_v60, %v3574_v35  ;;  %v3576_v2 = vpop.f32.mrb[230].mxu0 }
 0x39f   : > { %v6446_v32 = vmax.f32 %v6445_v61, %v3576_v2  ;;  %v3578_v42 = vpop.f32.mrb[231].mxu0  ;;  %v4205_v30 = vpop.f32.mrb[4].mxu1 }
 0x3a0   : > { %v6467_v8 = vmax.f32 %v6466_v13, %v3578_v42  ;;  %v6479_v26 = vmax.f32 %v6478_v1, %v4205_v30  ;;  %v4207_v31 = vpop.f32.mrb[5].mxu1 }
 0x3a1   : > { %v6447_v50 = vrot.slane %v6446_v32, 4  ;;  %v6500_v16 = vmax.f32 %v6499_v14, %v4207_v31  ;;  %3841 = vmatmul.mubr.bf16.gmra.mrb[80].mxu0 %v12763_v33  ;;  %v4209_v45 = vpop.f32.mrb[6].mxu1 }
 0x3a2   : > { %v6468_v41 = vrot.slane %v6467_v8, 4  ;;  %v6480_v10 = vmax.f32 %v6479_v26, %v4209_v45  ;;  %v4211_v55 = vpop.f32.mrb[7].mxu1  ;;  %3850 = vmatprep.mubr.bf16.mxu0 %v14722_v46 }
 0x3a3   : > { %v6448_v7 = vmax.f32 %v6446_v32, %v6447_v50  ;;  %v6501_v58 = vmax.f32 %v6500_v16, %v4211_v55 }
 0x3a4   : > { %v6469_v60 = vmax.f32 %v6467_v8, %v6468_v41  ;;  %v3582_v18 = vpop.f32.mrb[232].mxu0  ;;  %4474 = vmatmul.mubr.bf16.gmra.mrb[112].mxu1 %v12739_v5 }
 0x3a5   : > { %v6449_v52 = vrot.slane %v6448_v7, 2  ;;  %v3584_v56 = vpop.f32.mrb[233].mxu0  ;;  %4483 = vmatprep.mubr.bf16.mxu1 %v14722_v46 }
 0x3a6   : > { %v6470_v57 = vrot.slane %v6469_v60, 2  ;;  %v3586_v1 = vpop.f32.mrb[234].mxu0 }
 0x3a7   : > { %v6450_v25 = vmax.f32 %v6448_v7, %v6449_v52  ;;  %v6600_v14 = vmax.f32 %v3582_v18, %v3586_v1  ;;  %v3588_v63 = vpop.f32.mrb[235].mxu0  ;;  %v4215_v61 = vpop.f32.mrb[8].mxu1 }
 0x3a8   : > { %v6471_v35 = vmax.f32 %v6469_v60, %v6470_v57  ;;  %v6621_v13 = vmax.f32 %v3584_v56, %v3588_v63  ;;  %v6481_v2 = vmax.f32 %v6480_v10, %v4215_v61  ;;  %v4217_v42 = vpop.f32.mrb[9].mxu1 }
 0x3a9   : > { %v6451_v32 = vrot.slane %v6450_v25, 1  ;;  %v6502_v30 = vmax.f32 %v6501_v58, %v4217_v42  ;;  %3851 = vmatmul.mubr.bf16.gmra.mrb[84].mxu0 %v12761_v59  ;;  %v4219_v8 = vpop.f32.mrb[10].mxu1 }
 0x3aa   : > { %v6472_v26 = vrot.slane %v6471_v35, 1  ;;  %v6482_v31 = vmax.f32 %v6481_v2, %v4219_v8  ;;  %v4221_v50 = vpop.f32.mrb[11].mxu1  ;;  %3860 = vmatprep.mubr.bf16.mxu0 %v14722_v46 }
 0x3ab   : > { %v6452_v16 = vmax.f32 %v6450_v25, %v6451_v32  ;;  %v6503_v45 = vmax.f32 %v6502_v30, %v4221_v50 }
 0x3ac   : > { %v6473_v41 = vmax.f32 %v6471_v35, %v6472_v26  ;;  %v3592_v55 = vpop.f32.mrb[236].mxu0  ;;  %4484 = vmatmul.mubr.bf16.gmra.mrb[116].mxu1 %v12737_v12  ;;  %v11245_v26 = vld [vmem:[%s14617_s7 + $0x4] ss:$16 sps:$4 sm:$0xff]  }
 0x3ad   : > { %v12980_v10 = vsel %vm7340_vm5, %v6452_v16, %v12932_v43  ;;  %v6601_v7 = vmax.f32 %v6600_v14, %v3592_v55  ;;  %v3594_v58 = vpop.f32.mrb[237].mxu0  ;;  %4493 = vmatprep.mubr.bf16.mxu1 %v14722_v46  ;;  %9058 = vmatprep.subr.bf16.mxu0 %v11245_v26 }
 0x3ae   : > { %v12985_v60 = vsel %vm7340_vm5, %v6473_v41, %v12937_v11  ;;  %v6622_v18 = vmax.f32 %v6621_v13, %v3594_v58  ;;  %v3596_v52 = vpop.f32.mrb[238].mxu0 }
 0x3af   : > { %v6602_v56 = vmax.f32 %v6601_v7, %v3596_v52  ;;  %v3598_v57 = vpop.f32.mrb[239].mxu0  ;;  %v4225_v1 = vpop.f32.mrb[12].mxu1 }
 0x3b0   : > { %v6623_v25 = vmax.f32 %v6622_v18, %v3598_v57  ;;  %v6483_v63 = vmax.f32 %v6482_v31, %v4225_v1  ;;  %v4227_v61 = vpop.f32.mrb[13].mxu1 }
 0x3b1   : > { %v6504_v35 = vmax.f32 %v6503_v45, %v4227_v61  ;;  %3861 = vmatmul.mubr.bf16.gmra.mrb[88].mxu0 %v12775_v21  ;;  %v4229_v43 = vpop.f32.mrb[14].mxu1 }
 0x3b2   : > { %v6484_v14 = vmax.f32 %v6483_v63, %v4229_v43  ;;  %v4231_v2 = vpop.f32.mrb[15].mxu1  ;;  %3870 = vmatprep.mubr.bf16.mxu0 %v14722_v46 }
 0x3b3   : > { %v6505_v42 = vmax.f32 %v6504_v35, %v4231_v2 }
 0x3b4   : > { %v3602_v32 = vpop.f32.mrb[240].mxu0  ;;  %4494 = vmatmul.mubr.bf16.gmra.mrb[120].mxu1 %v12751_v22 }
 0x3b5   : > { %v6603_v11 = vmax.f32 %v6602_v56, %v3602_v32  ;;  %v3604_v13 = vpop.f32.mrb[241].mxu0  ;;  %4503 = vmatprep.mubr.bf16.mxu1 %v14722_v46 }
 0x3b6   : > { %v6624_v30 = vmax.f32 %v6623_v25, %v3604_v13  ;;  %v3606_v8 = vpop.f32.mrb[242].mxu0 }
 0x3b7   : > { %v6604_v31 = vmax.f32 %v6603_v11, %v3606_v8  ;;  %v3608_v50 = vpop.f32.mrb[243].mxu0  ;;  %v4235_v16 = vpop.f32.mrb[16].mxu1 }
 0x3b8   : > { %v6625_v45 = vmax.f32 %v6624_v30, %v3608_v50  ;;  %v6485_v41 = vmax.f32 %v6484_v14, %v4235_v16  ;;  %v4237_v55 = vpop.f32.mrb[17].mxu1 }
 0x3b9   : > { %v6506_v7 = vmax.f32 %v6505_v42, %v4237_v55  ;;  %3871 = vmatmul.mubr.bf16.gmra.mrb[92].mxu0 %v12773_v51  ;;  %v4239_v58 = vpop.f32.mrb[18].mxu1 }
 0x3ba   : > { %v6486_v18 = vmax.f32 %v6485_v41, %v4239_v58  ;;  %v4241_v52 = vpop.f32.mrb[19].mxu1  ;;  %3880 = vmatprep.mubr.bf16.mxu0 %v14722_v46 }
 0x3bb   : > { %v6507_v56 = vmax.f32 %v6506_v7, %v4241_v52 }
 0x3bc   : > { %v3612_v57 = vpop.f32.mrb[244].mxu0  ;;  %4504 = vmatmul.mubr.bf16.gmra.mrb[124].mxu1 %v12749_v28 }
 0x3bd   : > { %v6605_v1 = vmax.f32 %v6604_v31, %v3612_v57  ;;  %v3614_v25 = vpop.f32.mrb[245].mxu0  ;;  %4513 = vmatprep.mubr.bf16.mxu1 %v14722_v46 }
 0x3be   : > { %v6626_v63 = vmax.f32 %v6625_v45, %v3614_v25  ;;  %v3616_v61 = vpop.f32.mrb[246].mxu0 }
 0x3bf   : > { %v6606_v35 = vmax.f32 %v6605_v1, %v3616_v61  ;;  %v3618_v43 = vpop.f32.mrb[247].mxu0  ;;  %v4245_v14 = vpop.f32.mrb[20].mxu1 }
 0x3c0   : > { %v6627_v2 = vmax.f32 %v6626_v63, %v3618_v43  ;;  %v6487_v42 = vmax.f32 %v6486_v18, %v4245_v14  ;;  %v4247_v32 = vpop.f32.mrb[21].mxu1 }
 0x3c1   : > { %v6508_v11 = vmax.f32 %v6507_v56, %v4247_v32  ;;  %3881 = vmatmul.mubr.bf16.gmra.mrb[96].mxu0 %v12787_v27  ;;  %v4249_v13 = vpop.f32.mrb[22].mxu1 }
 0x3c2   : > { %v6488_v30 = vmax.f32 %v6487_v42, %v4249_v13  ;;  %v4251_v8 = vpop.f32.mrb[23].mxu1  ;;  %3890 = vmatprep.mubr.bf16.mxu0 %v14722_v46 }
 0x3c3   : > { %v6509_v26 = vmax.f32 %v6508_v11, %v4251_v8 }
 0x3c4   : > { %v6489_v31 = vrot.slane %v6488_v30, 4  ;;  %v3622_v50 = vpop.f32.mrb[248].mxu0  ;;  %4514 = vmatmul.mubr.bf16.gmra.mrb[128].mxu1 %v12763_v33 }
 0x3c5   : > { %v6510_v16 = vrot.slane %v6509_v26, 4  ;;  %v6607_v45 = vmax.f32 %v6606_v35, %v3622_v50  ;;  %v3624_v41 = vpop.f32.mrb[249].mxu0  ;;  %4523 = vmatprep.mubr.bf16.mxu1 %v14722_v46 }
 0x3c6   : > { %v6490_v55 = vmax.f32 %v6488_v30, %v6489_v31  ;;  %v6628_v7 = vmax.f32 %v6627_v2, %v3624_v41  ;;  %v3626_v58 = vpop.f32.mrb[250].mxu0 }
 0x3c7   : > { %v6511_v18 = vmax.f32 %v6509_v26, %v6510_v16  ;;  %v6608_v52 = vmax.f32 %v6607_v45, %v3626_v58  ;;  %v3628_v56 = vpop.f32.mrb[251].mxu0  ;;  %v4255_v57 = vpop.f32.mrb[24].mxu1  ;;  %v11243_v45 = vld [vmem:[%s14617_s7] ss:$16 sps:$4 sm:$0xff]  }
 0x3c8   : > { %v6491_v1 = vrot.slane %v6490_v55, 2  ;;  %v6629_v25 = vmax.f32 %v6628_v7, %v3628_v56  ;;  %v4257_v63 = vpop.f32.mrb[25].mxu1 }
 0x3c9   : > { %v6512_v61 = vrot.slane %v6511_v18, 2  ;;  %3891 = vmatmul.mubr.bf16.gmra.mrb[100].mxu0 %v12785_v29  ;;  %v4259_v43 = vpop.f32.mrb[26].mxu1 }
 0x3ca   : > { %v6492_v14 = vmax.f32 %v6490_v55, %v6491_v1  ;;  %v6642_v42 = vmax.f32 %v4255_v57, %v4259_v43  ;;  %v4261_v35 = vpop.f32.mrb[27].mxu1  ;;  %4606 = vmatprep.mubr.bf16.mxu0 %v14722_v46 }
 0x3cb   : > { %v6513_v32 = vmax.f32 %v6511_v18, %v6512_v61  ;;  %v6663_v11 = vmax.f32 %v4257_v63, %v4261_v35 }
 0x3cc   : > { %v6493_v2 = vrot.slane %v6492_v14, 1  ;;  %v3632_v13 = vpop.f32.mrb[252].mxu0  ;;  %4524 = vmatmul.mubr.bf16.gmra.mrb[132].mxu1 %v12761_v59 }
 0x3cd   : > { %v6514_v30 = vrot.slane %v6513_v32, 1  ;;  %v6609_v8 = vmax.f32 %v6608_v52, %v3632_v13  ;;  %v3634_v26 = vpop.f32.mrb[253].mxu0  ;;  %4533 = vmatprep.mubr.bf16.mxu1 %v14722_v46 }
 0x3ce   : > { %v6494_v31 = vmax.f32 %v6492_v14, %v6493_v2  ;;  %v6630_v50 = vmax.f32 %v6629_v25, %v3634_v26  ;;  %v3636_v16 = vpop.f32.mrb[254].mxu0  ;;  %v11248_v2 = vld [vmem:[%s14617_s7 + $0x24] ss:$16 sps:$4 sm:$0xff]  }
 0x3cf   : > { %v6515_v41 = vmax.f32 %v6513_v32, %v6514_v30  ;;  %v6610_v55 = vmax.f32 %v6609_v8, %v3636_v16  ;;  %v3638_v7 = vpop.f32.mrb[255].mxu0  ;;  %v4265_v58 = vpop.f32.mrb[28].mxu1 }
 0x3d0   : > { %v13011_v18 = vsel %vm7340_vm5, %v6494_v31, %v12957_v17  ;;  %v6631_v56 = vmax.f32 %v6630_v50, %v3638_v7  ;;  %v6643_v52 = vmax.f32 %v6642_v42, %v4265_v58  ;;  %v4267_v57 = vpop.f32.mrb[29].mxu1 }
 0x3d1   : > { %v13015_v1 = vsel %vm7340_vm5, %v6515_v41, %v12961_v20  ;;  %v6664_v25 = vmax.f32 %v6663_v11, %v4267_v57  ;;  %v4269_v63 = vpop.f32.mrb[30].mxu1  ;;  %4607 = vmatmul.mubr.bf16.vlgmr.msra.gmra.mrb[104].mxu0 %v12349_v0  ;;  %v11246_v11 = vld [vmem:[%s14617_s7 + $0x20] ss:$16 sps:$4 sm:$0xff]  }
 0x3d2   : > { %v6644_v61 = vmax.f32 %v6643_v52, %v4269_v63  ;;  %v4271_v43 = vpop.f32.mrb[31].mxu1  ;;  %4616 = vmatprep.mubr.bf16.mxu0 %v14722_v46  ;;  %9059 = vmatpush1.bf16.msra.mxu0 %v11243_v45 }
 0x3d3   : > { %v6665_v14 = vmax.f32 %v6664_v25, %v4271_v43  ;;  %9060 = vmatprep.subr.bf16.mxu0 %v11248_v2 }
 0x3d4   : > { %v3642_v35 = vpop.f32.mrb[0].mxu0  ;;  %4534 = vmatmul.mubr.bf16.gmra.mrb[136].mxu1 %v12775_v21 }
 0x3d5   : > { %v6611_v17 = vmax.f32 %v6610_v55, %v3642_v35  ;;  %v3644_v42 = vpop.f32.mrb[1].mxu0  ;;  %4543 = vmatprep.mubr.bf16.mxu1 %v14722_v46 }
 0x3d6   : > { %v6632_v32 = vmax.f32 %v6631_v56, %v3644_v42  ;;  %v3646_v20 = vpop.f32.mrb[2].mxu0  ;;  %9061 = vmatpush1.bf16.msra.mxu0 %v11246_v11 }
 0x3d7   : > { %v6612_v13 = vmax.f32 %v6611_v17, %v3646_v20  ;;  %v3648_v30 = vpop.f32.mrb[3].mxu0  ;;  %v4275_v8 = vpop.f32.mrb[32].mxu1 }
 0x3d8   : > { %v6633_v26 = vmax.f32 %v6632_v32, %v3648_v30  ;;  %v6645_v31 = vmax.f32 %v6644_v61, %v4275_v8  ;;  %v4277_v50 = vpop.f32.mrb[33].mxu1 }
 0x3d9   : > { %v6666_v16 = vmax.f32 %v6665_v14, %v4277_v50  ;;  %v4279_v45 = vpop.f32.mrb[34].mxu1  ;;  %4617 = vmatmul.mubr.bf16.gmra.mrb[108].mxu0 %v12347_v62 }
 0x3da   : > { %v6646_v41 = vmax.f32 %v6645_v31, %v4279_v45  ;;  %v4281_v55 = vpop.f32.mrb[35].mxu1  ;;  %4626 = vmatprep.mubr.bf16.mxu0 %v14722_v46 }
 0x3db   : > { %v6667_v7 = vmax.f32 %v6666_v16, %v4281_v55 }
 0x3dc   : > { %v3652_v58 = vpop.f32.mrb[4].mxu0  ;;  %4544 = vmatmul.mubr.bf16.gmra.mrb[140].mxu1 %v12773_v51 }
 0x3dd   : > { %v6613_v56 = vmax.f32 %v6612_v13, %v3652_v58  ;;  %v3654_v52 = vpop.f32.mrb[5].mxu0  ;;  %4553 = vmatprep.mubr.bf16.mxu1 %v14722_v46 }
 0x3de   : > { %v6634_v57 = vmax.f32 %v6633_v26, %v3654_v52  ;;  %v3656_v25 = vpop.f32.mrb[6].mxu0 }
 0x3df   : > { %v6614_v63 = vmax.f32 %v6613_v56, %v3656_v25  ;;  %v3658_v61 = vpop.f32.mrb[7].mxu0  ;;  %v4285_v43 = vpop.f32.mrb[36].mxu1 }
 0x3e0   : > { %v6635_v14 = vmax.f32 %v6634_v57, %v3658_v61  ;;  %v6647_v35 = vmax.f32 %v6646_v41, %v4285_v43  ;;  %v4287_v17 = vpop.f32.mrb[37].mxu1 }
 0x3e1   : > { %v6615_v42 = vrot.slane %v6614_v63, 4  ;;  %v6668_v32 = vmax.f32 %v6667_v7, %v4287_v17  ;;  %v4289_v20 = vpop.f32.mrb[38].mxu1  ;;  %4627 = vmatmul.mubr.bf16.gmra.mrb[112].mxu0 %v12372_v44 }
 0x3e2   : > { %v6636_v11 = vrot.slane %v6635_v14, 4  ;;  %v6648_v2 = vmax.f32 %v6647_v35, %v4289_v20  ;;  %v4291_v30 = vpop.f32.mrb[39].mxu1  ;;  %4636 = vmatprep.mubr.bf16.mxu0 %v14722_v46 }
 0x3e3   : > { %v6616_v13 = vmax.f32 %v6614_v63, %v6615_v42  ;;  %v6669_v8 = vmax.f32 %v6668_v32, %v4291_v30 }
 0x3e4   : > { %v6637_v26 = vmax.f32 %v6635_v14, %v6636_v11  ;;  %v3662_v31 = vpop.f32.mrb[8].mxu0  ;;  %4554 = vmatmul.mubr.bf16.gmra.mrb[144].mxu1 %v12787_v27 }
 0x3e5   : > { %v6617_v50 = vrot.slane %v6616_v13, 2  ;;  %v3664_v16 = vpop.f32.mrb[9].mxu0  ;;  %4563 = vmatprep.mubr.bf16.mxu1 %v14722_v46 }
 0x3e6   : > { %v6638_v45 = vrot.slane %v6637_v26, 2  ;;  %v3666_v41 = vpop.f32.mrb[10].mxu0 }
 0x3e7   : > { %v6618_v55 = vmax.f32 %v6616_v13, %v6617_v50  ;;  %v6768_v7 = vmax.f32 %v3662_v31, %v3666_v41  ;;  %v3668_v58 = vpop.f32.mrb[11].mxu0  ;;  %v4295_v56 = vpop.f32.mrb[40].mxu1 }
 0x3e8   : > { %v6639_v52 = vmax.f32 %v6637_v26, %v6638_v45  ;;  %v6789_v57 = vmax.f32 %v3664_v16, %v3668_v58  ;;  %v6649_v25 = vmax.f32 %v6648_v2, %v4295_v56  ;;  %v4297_v61 = vpop.f32.mrb[41].mxu1 }
 0x3e9   : > { %v6619_v63 = vrot.slane %v6618_v55, 1  ;;  %v6670_v43 = vmax.f32 %v6669_v8, %v4297_v61  ;;  %v4299_v14 = vpop.f32.mrb[42].mxu1  ;;  %4637 = vmatmul.mubr.bf16.gmra.mrb[116].mxu0 %v12370_v40 }
 0x3ea   : > { %v6640_v35 = vrot.slane %v6639_v52, 1  ;;  %v6650_v17 = vmax.f32 %v6649_v25, %v4299_v14  ;;  %v4301_v42 = vpop.f32.mrb[43].mxu1  ;;  %4646 = vmatprep.mubr.bf16.mxu0 %v14722_v46  ;;  %v11251_v14 = vld [vmem:[%s14617_s7 + $0xc] ss:$16 sps:$4 sm:$0xff]  }
 0x3eb   : > { %v6620_v32 = vmax.f32 %v6618_v55, %v6619_v63  ;;  %v6671_v20 = vmax.f32 %v6670_v43, %v4301_v42  ;;  %v11249_v43 = vld [vmem:[%s14617_s7 + $0x8] ss:$16 sps:$4 sm:$0xff]   ;;  %v11252_v42 = vld [vmem:[%s14617_s7 + $0x40] ss:$16 sps:$4 sm:$0xff]   ;;  %9222 = vmatprep.subr.bf16.mxu1 %v11251_v14 }
 0x3ec   : > { %v6641_v11 = vmax.f32 %v6639_v52, %v6640_v35  ;;  %v3672_v30 = vpop.f32.mrb[12].mxu0  ;;  %4564 = vmatmul.mubr.bf16.gmra.mrb[148].mxu1 %v12785_v29 }
 0x3ed   : > { %v13040_v2 = vsel %vm7342_vm6, %v6620_v32, %v12980_v10  ;;  %v6769_v13 = vmax.f32 %v6768_v7, %v3672_v30  ;;  %v3674_v8 = vpop.f32.mrb[13].mxu0  ;;  %5279 = vmatprep.mubr.bf16.mxu1 %v14722_v46 }
 0x3ee   : > { %v6790_v26 = vmax.f32 %v6789_v57, %v3674_v8  ;;  %v3676_v31 = vpop.f32.mrb[14].mxu0  ;;  %v13045_v50 = vsel %vm7342_vm6, %v6641_v11, %v12985_v60 }
 0x3ef   : > { %v6770_v16 = vmax.f32 %v6769_v13, %v3676_v31  ;;  %v3678_v45 = vpop.f32.mrb[15].mxu0  ;;  %v4305_v41 = vpop.f32.mrb[44].mxu1 }
 0x3f0   : > { %v6791_v55 = vmax.f32 %v6790_v26, %v3678_v45  ;;  %v6651_v58 = vmax.f32 %v6650_v17, %v4305_v41  ;;  %v4307_v56 = vpop.f32.mrb[45].mxu1 }
 0x3f1   : > { %v6672_v52 = vmax.f32 %v6671_v20, %v4307_v56  ;;  %v4309_v25 = vpop.f32.mrb[46].mxu1  ;;  %4647 = vmatmul.mubr.bf16.gmra.mrb[120].mxu0 %v12386_v39 }
 0x3f2   : > { %v6652_v10 = vmax.f32 %v6651_v58, %v4309_v25  ;;  %v4311_v7 = vpop.f32.mrb[47].mxu1  ;;  %4656 = vmatprep.mubr.bf16.mxu0 %v14722_v46 }
 0x3f3   : > { %v6673_v57 = vmax.f32 %v6672_v52, %v4311_v7 }
 0x3f4   : > { %v3682_v61 = vpop.f32.mrb[16].mxu0  ;;  %5280 = vmatmul.mubr.bf16.vlgmr.msra.gmra.mrb[152].mxu1 %v12349_v0  ;;  %v11254_v0 = vld [vmem:[%s14617_s7 + $0x44] ss:$16 sps:$4 sm:$0xff]  }
 0x3f5   : > { %v6771_v60 = vmax.f32 %v6770_v16, %v3682_v61  ;;  %v3684_v63 = vpop.f32.mrb[17].mxu0  ;;  %5289 = vmatprep.mubr.bf16.mxu1 %v14722_v46  ;;  %9062 = vmatprep.subr.bf16.mxu0 %v11254_v0 }
 0x3f6   : > { %v6792_v35 = vmax.f32 %v6791_v55, %v3684_v63  ;;  %v3686_v17 = vpop.f32.mrb[18].mxu0  ;;  %9223 = vmatpush1.bf16.msra.mxu1 %v11249_v43  ;;  %9063 = vmatpush1.bf16.msra.mxu0 %v11252_v42 }
 0x3f7   : > { %v6772_v32 = vmax.f32 %v6771_v60, %v3686_v17  ;;  %v3688_v20 = vpop.f32.mrb[19].mxu0  ;;  %v4315_v11 = vpop.f32.mrb[48].mxu1 }
 0x3f8   : > { %v6793_v30 = vmax.f32 %v6792_v35, %v3688_v20  ;;  %v6653_v13 = vmax.f32 %v6652_v10, %v4315_v11  ;;  %v4317_v8 = vpop.f32.mrb[49].mxu1  ;;  %v14723_v35 = vld [vmem:[#allocation4_spill] sm:$0xff] }
 0x3f9   : > { %v6674_v26 = vmax.f32 %v6673_v57, %v4317_v8  ;;  %v4319_v31 = vpop.f32.mrb[50].mxu1  ;;  %4657 = vmatmul.mubr.bf16.gmra.mrb[124].mxu0 %v12384_v37 }
 0x3fa   : > { %v6654_v16 = vmax.f32 %v6653_v13, %v4319_v31  ;;  %v4321_v45 = vpop.f32.mrb[51].mxu1  ;;  %4666 = vmatprep.mubr.bf16.mxu0 %v14722_v46 }
 0x3fb   : > { %v6675_v41 = vmax.f32 %v6674_v26, %v4321_v45 }
 0x3fc   : > { %v3692_v55 = vpop.f32.mrb[20].mxu0  ;;  %5290 = vmatmul.mubr.bf16.gmra.mrb[156].mxu1 %v12347_v62 }
 0x3fd   : > { %v6773_v58 = vmax.f32 %v6772_v32, %v3692_v55  ;;  %v3694_v56 = vpop.f32.mrb[21].mxu0  ;;  %5299 = vmatprep.mubr.bf16.mxu1 %v14722_v46 }
 0x3fe   : > { %v6794_v52 = vmax.f32 %v6793_v30, %v3694_v56  ;;  %v3696_v25 = vpop.f32.mrb[22].mxu0 }
 0x3ff   : > { %v6774_v10 = vmax.f32 %v6773_v58, %v3696_v25  ;;  %v3698_v7 = vpop.f32.mrb[23].mxu0  ;;  %v4325_v57 = vpop.f32.mrb[52].mxu1 }
 0x400   : > { %v6795_v61 = vmax.f32 %v6794_v52, %v3698_v7  ;;  %v6655_v60 = vmax.f32 %v6654_v16, %v4325_v57  ;;  %v4327_v63 = vpop.f32.mrb[53].mxu1  ;;  %v14724_v7 = vld [vmem:[#allocation3_spill] sm:$0xff] }
 0x401   : > { %v6676_v43 = vmax.f32 %v6675_v41, %v4327_v63  ;;  %v4329_v14 = vpop.f32.mrb[54].mxu1  ;;  %4667 = vmatmul.mubr.bf16.gmra.mrb[128].mxu0 %v14723_v35 }
 0x402   : > { %v6656_v17 = vmax.f32 %v6655_v60, %v4329_v14  ;;  %v4331_v42 = vpop.f32.mrb[55].mxu1  ;;  %4676 = vmatprep.mubr.bf16.mxu0 %v14722_v46 }
 0x403   : > { %v6677_v62 = vmax.f32 %v6676_v43, %v4331_v42 }
 0x404   : > { %v6657_v0 = vrot.slane %v6656_v17, 4  ;;  %v3702_v32 = vpop.f32.mrb[24].mxu0  ;;  %5300 = vmatmul.mubr.bf16.gmra.mrb[160].mxu1 %v12372_v44 }
 0x405   : > { %v6678_v20 = vrot.slane %v6677_v62, 4  ;;  %v6775_v11 = vmax.f32 %v6774_v10, %v3702_v32  ;;  %v3704_v30 = vpop.f32.mrb[25].mxu0  ;;  %5309 = vmatprep.mubr.bf16.mxu1 %v14722_v46 }
 0x406   : > { %v6658_v13 = vmax.f32 %v6656_v17, %v6657_v0  ;;  %v6796_v8 = vmax.f32 %v6795_v61, %v3704_v30  ;;  %v3706_v26 = vpop.f32.mrb[26].mxu0 }
 0x407   : > { %v6679_v31 = vmax.f32 %v6677_v62, %v6678_v20  ;;  %v6776_v16 = vmax.f32 %v6775_v11, %v3706_v26  ;;  %v3708_v45 = vpop.f32.mrb[27].mxu0  ;;  %v4335_v41 = vpop.f32.mrb[56].mxu1 }
 0x408   : > { %v6659_v55 = vrot.slane %v6658_v13, 2  ;;  %v6797_v58 = vmax.f32 %v6796_v8, %v3708_v45  ;;  %v4337_v56 = vpop.f32.mrb[57].mxu1 }
 0x409   : > { %v6680_v52 = vrot.slane %v6679_v31, 2  ;;  %v4339_v25 = vpop.f32.mrb[58].mxu1  ;;  %4677 = vmatmul.mubr.bf16.gmra.mrb[132].mxu0 %v14724_v7 }
 0x40a   : > { %v6660_v44 = vmax.f32 %v6658_v13, %v6659_v55  ;;  %v6810_v57 = vmax.f32 %v4335_v41, %v4339_v25  ;;  %v4341_v10 = vpop.f32.mrb[59].mxu1  ;;  %4686 = vmatprep.mubr.bf16.mxu0 %v14722_v46 }
 0x40b   : > { %v6681_v60 = vmax.f32 %v6679_v31, %v6680_v52  ;;  %v6831_v63 = vmax.f32 %v4337_v56, %v4341_v10 }
 0x40c   : > { %v6661_v61 = vrot.slane %v6660_v44, 1  ;;  %v3712_v43 = vpop.f32.mrb[28].mxu0  ;;  %5310 = vmatmul.mubr.bf16.gmra.mrb[164].mxu1 %v12370_v40 }
 0x40d   : > { %v6682_v14 = vrot.slane %v6681_v60, 1  ;;  %v6777_v17 = vmax.f32 %v6776_v16, %v3712_v43  ;;  %v3714_v42 = vpop.f32.mrb[29].mxu0  ;;  %5319 = vmatprep.mubr.bf16.mxu1 %v14722_v46  ;;  %v14725_v16 = vld [vmem:[#allocation6_spill] sm:$0xff] }
 0x40e   : > { %v6662_v62 = vmax.f32 %v6660_v44, %v6661_v61  ;;  %v6798_v0 = vmax.f32 %v6797_v58, %v3714_v42  ;;  %v3716_v32 = vpop.f32.mrb[30].mxu0 }
 0x40f   : > { %v6683_v20 = vmax.f32 %v6681_v60, %v6682_v14  ;;  %v6778_v11 = vmax.f32 %v6777_v17, %v3716_v32  ;;  %v3718_v30 = vpop.f32.mrb[31].mxu0  ;;  %v4345_v13 = vpop.f32.mrb[60].mxu1 }
 0x410   : > { %v13077_v8 = vsel %vm7342_vm6, %v6662_v62, %v13011_v18  ;;  %v6799_v26 = vmax.f32 %v6798_v0, %v3718_v30  ;;  %v6811_v31 = vmax.f32 %v6810_v57, %v4345_v13  ;;  %v4347_v45 = vpop.f32.mrb[61].mxu1  ;;  %v11255_v57 = vld [vmem:[%s14617_s7 + $0x28] ss:$16 sps:$4 sm:$0xff]  }
 0x411   : > { %v6832_v40 = vmax.f32 %v6831_v63, %v4347_v45  ;;  %v4349_v41 = vpop.f32.mrb[62].mxu1  ;;  %4687 = vmatmul.mubr.bf16.gmra.mrb[136].mxu0 %v14725_v16  ;;  %v13082_v55 = vsel %vm7342_vm6, %v6683_v20, %v13015_v1  ;;  %v11257_v1 = vld [vmem:[%s14617_s7 + $0x2c] ss:$16 sps:$4 sm:$0xff]   ;;  %v11258_v63 = vld [vmem:[%s14617_s7 + $0x60] ss:$16 sps:$4 sm:$0xff]  }
 0x412   : > { %v6812_v58 = vmax.f32 %v6811_v31, %v4349_v41  ;;  %v4351_v56 = vpop.f32.mrb[63].mxu1  ;;  %4696 = vmatprep.mubr.bf16.mxu0 %v14722_v46  ;;  %9224 = vmatprep.subr.bf16.mxu1 %v11257_v1  ;;  %v14726_v20 = vld [vmem:[#allocation5_spill] sm:$0xff] }
 0x413   : > { %v6833_v52 = vmax.f32 %v6832_v40, %v4351_v56  ;;  %9225 = vmatpush1.bf16.msra.mxu1 %v11255_v57 }
 0x414   : > { %v3722_v25 = vpop.f32.mrb[32].mxu0  ;;  %5320 = vmatmul.mubr.bf16.gmra.mrb[168].mxu1 %v12386_v39  ;;  %v11260_v39 = vld [vmem:[%s14617_s7 + $0x64] ss:$16 sps:$4 sm:$0xff]  }
 0x415   : > { %v6779_v18 = vmax.f32 %v6778_v11, %v3722_v25  ;;  %v3724_v44 = vpop.f32.mrb[33].mxu0  ;;  %5329 = vmatprep.mubr.bf16.mxu1 %v14722_v46  ;;  %9064 = vmatprep.subr.bf16.mxu0 %v11260_v39 }
 0x416   : > { %v6800_v10 = vmax.f32 %v6799_v26, %v3724_v44  ;;  %v3726_v60 = vpop.f32.mrb[34].mxu0  ;;  %9065 = vmatpush1.bf16.msra.mxu0 %v11258_v63 }
 0x417   : > { %v6780_v61 = vmax.f32 %v6779_v18, %v3726_v60  ;;  %v3728_v43 = vpop.f32.mrb[35].mxu0  ;;  %v4355_v14 = vpop.f32.mrb[64].mxu1  ;;  %v14727_v60 = vld [vmem:[#allocation8_spill] sm:$0xff] }
 0x418   : > { %v6801_v17 = vmax.f32 %v6800_v10, %v3728_v43  ;;  %v6813_v42 = vmax.f32 %v6812_v58, %v4355_v14  ;;  %v4357_v62 = vpop.f32.mrb[65].mxu1 }
 0x419   : > { %v6834_v0 = vmax.f32 %v6833_v52, %v4357_v62  ;;  %v4359_v32 = vpop.f32.mrb[66].mxu1  ;;  %4697 = vmatmul.mubr.bf16.gmra.mrb[140].mxu0 %v14726_v20 }
 0x41a   : > { %v6814_v11 = vmax.f32 %v6813_v42, %v4359_v32  ;;  %v4361_v30 = vpop.f32.mrb[67].mxu1  ;;  %4706 = vmatprep.mubr.bf16.mxu0 %v14722_v46 }
 0x41b   : > { %v6835_v13 = vmax.f32 %v6834_v0, %v4361_v30 }
 0x41c   : > { %v3732_v26 = vpop.f32.mrb[36].mxu0  ;;  %5330 = vmatmul.mubr.bf16.gmra.mrb[172].mxu1 %v12384_v37 }
 0x41d   : > { %v6781_v31 = vmax.f32 %v6780_v61, %v3732_v26  ;;  %v3734_v45 = vpop.f32.mrb[37].mxu0  ;;  %5339 = vmatprep.mubr.bf16.mxu1 %v14722_v46 }
 0x41e   : > { %v6802_v40 = vmax.f32 %v6801_v17, %v3734_v45  ;;  %v3736_v41 = vpop.f32.mrb[38].mxu0 }
 0x41f   : > { %v6782_v58 = vmax.f32 %v6781_v31, %v3736_v41  ;;  %v3738_v56 = vpop.f32.mrb[39].mxu0  ;;  %v4365_v52 = vpop.f32.mrb[68].mxu1 }
 0x420   : > { %v6803_v25 = vmax.f32 %v6802_v40, %v3738_v56  ;;  %v6815_v18 = vmax.f32 %v6814_v11, %v4365_v52  ;;  %v4367_v44 = vpop.f32.mrb[69].mxu1 }
 0x421   : > { %v6783_v57 = vrot.slane %v6782_v58, 4  ;;  %v6836_v1 = vmax.f32 %v6835_v13, %v4367_v44  ;;  %v4369_v10 = vpop.f32.mrb[70].mxu1  ;;  %4707 = vmatmul.mubr.bf16.gmra.mrb[144].mxu0 %v14727_v60 }
 0x422   : > { %v6804_v63 = vrot.slane %v6803_v25, 4  ;;  %v6816_v39 = vmax.f32 %v6815_v18, %v4369_v10  ;;  %v4371_v37 = vpop.f32.mrb[71].mxu1  ;;  %4716 = vmatprep.mubr.bf16.mxu0 %v14722_v46 }
 0x423   : > { %v6784_v61 = vmax.f32 %v6782_v58, %v6783_v57  ;;  %v6837_v43 = vmax.f32 %v6836_v1, %v4371_v37 }
 0x424   : > { %v6805_v14 = vmax.f32 %v6803_v25, %v6804_v63  ;;  %v3742_v17 = vpop.f32.mrb[40].mxu0  ;;  %5340 = vmatmul.mubr.bf16.gmra.mrb[176].mxu1 %v14723_v35  ;;  %v14728_v25 = vld [vmem:[#allocation7_spill] sm:$0xff] }
 0x425   : > { %v6785_v42 = vrot.slane %v6784_v61, 2  ;;  %v3744_v62 = vpop.f32.mrb[41].mxu0  ;;  %5349 = vmatprep.mubr.bf16.mxu1 %v14722_v46 }
 0x426   : > { %v6806_v0 = vrot.slane %v6805_v14, 2  ;;  %v3746_v32 = vpop.f32.mrb[42].mxu0 }
 0x427   : > { %v6786_v11 = vmax.f32 %v6784_v61, %v6785_v42  ;;  %v6936_v30 = vmax.f32 %v3742_v17, %v3746_v32  ;;  %v3748_v13 = vpop.f32.mrb[43].mxu0  ;;  %v4375_v26 = vpop.f32.mrb[72].mxu1 }
 0x428   : > { %v6807_v31 = vmax.f32 %v6805_v14, %v6806_v0  ;;  %v6957_v45 = vmax.f32 %v3744_v62, %v3748_v13  ;;  %v6817_v40 = vmax.f32 %v6816_v39, %v4375_v26  ;;  %v4377_v41 = vpop.f32.mrb[73].mxu1 }
 0x429   : > { %v6787_v58 = vrot.slane %v6786_v11, 1  ;;  %v6838_v56 = vmax.f32 %v6837_v43, %v4377_v41  ;;  %v4379_v52 = vpop.f32.mrb[74].mxu1  ;;  %4717 = vmatmul.mubr.bf16.gmra.mrb[148].mxu0 %v14728_v25 }
 0x42a   : > { %v6808_v35 = vrot.slane %v6807_v31, 1  ;;  %v6818_v18 = vmax.f32 %v6817_v40, %v4379_v52  ;;  %v4381_v44 = vpop.f32.mrb[75].mxu1  ;;  %4726 = vmatprep.mubr.bf16.mxu0 %v14722_v46 }
 0x42b   : > { %v6788_v57 = vmax.f32 %v6786_v11, %v6787_v58  ;;  %v6839_v1 = vmax.f32 %v6838_v56, %v4381_v44  ;;  %v11261_v58 = vld [vmem:[%s14617_s7 + $0x48] ss:$16 sps:$4 sm:$0xff]   ;;  %v11263_v56 = vld [vmem:[%s14617_s7 + $0x4c] ss:$16 sps:$4 sm:$0xff]  }
 0x42c   : > { %v6809_v10 = vmax.f32 %v6807_v31, %v6808_v35  ;;  %v3752_v63 = vpop.f32.mrb[44].mxu0  ;;  %5350 = vmatmul.mubr.bf16.gmra.mrb[180].mxu1 %v14724_v7  ;;  %9226 = vmatprep.subr.bf16.mxu1 %v11263_v56 }
 0x42d   : > { %v13112_v39 = vsel %vm7344_vm7, %v6788_v57, %v13040_v2  ;;  %v6937_v37 = vmax.f32 %v6936_v30, %v3752_v63  ;;  %v3754_v61 = vpop.f32.mrb[45].mxu0  ;;  %5359 = vmatprep.mubr.bf16.mxu1 %v14722_v46  ;;  %v14729_v2 = vld [vmem:[#allocation10_spill] sm:$0xff]  ;;  %9227 = vmatpush1.bf16.msra.mxu1 %v11261_v58 }
 0x42e   : > { %v6958_v43 = vmax.f32 %v6957_v45, %v3754_v61  ;;  %v3756_v14 = vpop.f32.mrb[46].mxu0  ;;  %v13117_v17 = vsel %vm7344_vm7, %v6809_v10, %v13045_v50 }
 0x42f   : > { %v6938_v42 = vmax.f32 %v6937_v37, %v3756_v14  ;;  %v3758_v62 = vpop.f32.mrb[47].mxu0  ;;  %v4385_v0 = vpop.f32.mrb[76].mxu1  ;;  %v14730_v14 = vld [vmem:[#allocation9_spill] sm:$0xff] }
 0x430   : > { %v6959_v32 = vmax.f32 %v6958_v43, %v3758_v62  ;;  %v6819_v11 = vmax.f32 %v6818_v18, %v4385_v0  ;;  %v4387_v7 = vpop.f32.mrb[77].mxu1  ;;  %v11264_v18 = vld [vmem:[%s14617_s7 + $0x80] ss:$16 sps:$4 sm:$0xff]  }
 0x431   : > { %v6840_v13 = vmax.f32 %v6839_v1, %v4387_v7  ;;  %v4389_v26 = vpop.f32.mrb[78].mxu1  ;;  %4727 = vmatmul.mubr.bf16.gmra.mrb[152].mxu0 %v14729_v2 }
 0x432   : > { %v6820_v30 = vmax.f32 %v6819_v11, %v4389_v26  ;;  %v4391_v31 = vpop.f32.mrb[79].mxu1  ;;  %4736 = vmatprep.mubr.bf16.mxu0 %v14722_v46 }
 0x433   : > { %v6841_v45 = vmax.f32 %v6840_v13, %v4391_v31 }
 0x434   : > { %v3762_v40 = vpop.f32.mrb[48].mxu0  ;;  %5360 = vmatmul.mubr.bf16.gmra.mrb[184].mxu1 %v14725_v16  ;;  %v11266_v16 = vld [vmem:[%s14617_s7 + $0x84] ss:$16 sps:$4 sm:$0xff]  }
 0x435   : > { %v6939_v50 = vmax.f32 %v6938_v42, %v3762_v40  ;;  %v3764_v41 = vpop.f32.mrb[49].mxu0  ;;  %5369 = vmatprep.mubr.bf16.mxu1 %v14722_v46  ;;  %9066 = vmatprep.subr.bf16.mxu0 %v11266_v16 }
 0x436   : > { %v6960_v52 = vmax.f32 %v6959_v32, %v3764_v41  ;;  %v3766_v35 = vpop.f32.mrb[50].mxu0  ;;  %9067 = vmatpush1.bf16.msra.mxu0 %v11264_v18 }
 0x437   : > { %v6940_v44 = vmax.f32 %v6939_v50, %v3766_v35  ;;  %v3768_v57 = vpop.f32.mrb[51].mxu0  ;;  %v4395_v1 = vpop.f32.mrb[80].mxu1 }
 0x438   : > { %v6961_v10 = vmax.f32 %v6960_v52, %v3768_v57  ;;  %v6821_v63 = vmax.f32 %v6820_v30, %v4395_v1  ;;  %v4397_v37 = vpop.f32.mrb[81].mxu1  ;;  %v14731_v52 = vld [vmem:[#allocation12_spill] sm:$0xff] }
 0x439   : > { %v6842_v61 = vmax.f32 %v6841_v45, %v4397_v37  ;;  %v4399_v43 = vpop.f32.mrb[82].mxu1  ;;  %4737 = vmatmul.mubr.bf16.gmra.mrb[156].mxu0 %v14730_v14 }
 0x43a   : > { %v6822_v42 = vmax.f32 %v6821_v63, %v4399_v43  ;;  %v4401_v62 = vpop.f32.mrb[83].mxu1  ;;  %4746 = vmatprep.mubr.bf16.mxu0 %v14722_v46 }
 0x43b   : > { %v6843_v0 = vmax.f32 %v6842_v61, %v4401_v62 }
 0x43c   : > { %v3772_v32 = vpop.f32.mrb[52].mxu0  ;;  %5370 = vmatmul.mubr.bf16.gmra.mrb[188].mxu1 %v14726_v20 }
 0x43d   : > { %v6941_v11 = vmax.f32 %v6940_v44, %v3772_v32  ;;  %v3774_v7 = vpop.f32.mrb[53].mxu0  ;;  %5379 = vmatprep.mubr.bf16.mxu1 %v14722_v46 }
 0x43e   : > { %v6962_v13 = vmax.f32 %v6961_v10, %v3774_v7  ;;  %v3776_v26 = vpop.f32.mrb[54].mxu0 }
 0x43f   : > { %v6942_v30 = vmax.f32 %v6941_v11, %v3776_v26  ;;  %v3778_v31 = vpop.f32.mrb[55].mxu0  ;;  %v4405_v45 = vpop.f32.mrb[84].mxu1 }
 0x440   : > { %v6963_v40 = vmax.f32 %v6962_v13, %v3778_v31  ;;  %v6823_v50 = vmax.f32 %v6822_v42, %v4405_v45  ;;  %v4407_v41 = vpop.f32.mrb[85].mxu1  ;;  %v14732_v31 = vld [vmem:[#allocation11_spill] sm:$0xff] }
 0x441   : > { %v6844_v58 = vmax.f32 %v6843_v0, %v4407_v41  ;;  %v4409_v56 = vpop.f32.mrb[86].mxu1  ;;  %4747 = vmatmul.mubr.bf16.gmra.mrb[160].mxu0 %v14731_v52 }
 0x442   : > { %v6824_v35 = vmax.f32 %v6823_v50, %v4409_v56  ;;  %v4411_v18 = vpop.f32.mrb[87].mxu1  ;;  %4756 = vmatprep.mubr.bf16.mxu0 %v14722_v46 }
 0x443   : > { %v6845_v20 = vmax.f32 %v6844_v58, %v4411_v18 }
 0x444   : > { %v6825_v16 = vrot.slane %v6824_v35, 4  ;;  %v3782_v44 = vpop.f32.mrb[56].mxu0  ;;  %5380 = vmatmul.mubr.bf16.gmra.mrb[192].mxu1 %v14727_v60 }
 0x445   : > { %v6846_v57 = vrot.slane %v6845_v20, 4  ;;  %v6943_v1 = vmax.f32 %v6942_v30, %v3782_v44  ;;  %v3784_v10 = vpop.f32.mrb[57].mxu0  ;;  %5389 = vmatprep.mubr.bf16.mxu1 %v14722_v46 }
 0x446   : > { %v6826_v63 = vmax.f32 %v6824_v35, %v6825_v16  ;;  %v6964_v37 = vmax.f32 %v6963_v40, %v3784_v10  ;;  %v3786_v61 = vpop.f32.mrb[58].mxu0 }
 0x447   : > { %v6847_v43 = vmax.f32 %v6845_v20, %v6846_v57  ;;  %v6944_v42 = vmax.f32 %v6943_v1, %v3786_v61  ;;  %v3788_v62 = vpop.f32.mrb[59].mxu0  ;;  %v4415_v0 = vpop.f32.mrb[88].mxu1 }
 0x448   : > { %v6827_v32 = vrot.slane %v6826_v63, 2  ;;  %v6965_v11 = vmax.f32 %v6964_v37, %v3788_v62  ;;  %v4417_v7 = vpop.f32.mrb[89].mxu1 }
 0x449   : > { %v6848_v13 = vrot.slane %v6847_v43, 2  ;;  %v4419_v26 = vpop.f32.mrb[90].mxu1  ;;  %4757 = vmatmul.mubr.bf16.gmra.mrb[164].mxu0 %v14732_v31 }
 0x44a   : > { %v6828_v60 = vmax.f32 %v6826_v63, %v6827_v32  ;;  %v6978_v45 = vmax.f32 %v4415_v0, %v4419_v26  ;;  %v4421_v30 = vpop.f32.mrb[91].mxu1  ;;  %4766 = vmatprep.mubr.bf16.mxu0 %v14722_v46 }
 0x44b   : > { %v6849_v50 = vmax.f32 %v6847_v43, %v6848_v13  ;;  %v6999_v41 = vmax.f32 %v4417_v7, %v4421_v30 }
 0x44c   : > { %v6829_v40 = vrot.slane %v6828_v60, 1  ;;  %v3792_v58 = vpop.f32.mrb[60].mxu0  ;;  %5390 = vmatmul.mubr.bf16.gmra.mrb[196].mxu1 %v14728_v25 }
 0x44d   : > { %v6850_v56 = vrot.slane %v6849_v50, 1  ;;  %v6945_v35 = vmax.f32 %v6944_v42, %v3792_v58  ;;  %v3794_v18 = vpop.f32.mrb[61].mxu0  ;;  %5399 = vmatprep.mubr.bf16.mxu1 %v14722_v46  ;;  %v14733_v42 = vld [vmem:[#allocation14_spill] sm:$0xff] }
 0x44e   : > { %v6830_v20 = vmax.f32 %v6828_v60, %v6829_v40  ;;  %v6966_v16 = vmax.f32 %v6965_v11, %v3794_v18  ;;  %v3796_v44 = vpop.f32.mrb[62].mxu0 }
 0x44f   : > { %v6851_v57 = vmax.f32 %v6849_v50, %v6850_v56  ;;  %v6946_v1 = vmax.f32 %v6945_v35, %v3796_v44  ;;  %v3798_v10 = vpop.f32.mrb[63].mxu0  ;;  %v4425_v63 = vpop.f32.mrb[92].mxu1 }
 0x450   : > { %v13149_v37 = vsel %vm7344_vm7, %v6830_v20, %v13077_v8  ;;  %v6967_v61 = vmax.f32 %v6966_v16, %v3798_v10  ;;  %v6979_v43 = vmax.f32 %v6978_v45, %v4425_v63  ;;  %v4427_v62 = vpop.f32.mrb[93].mxu1  ;;  %v11267_v45 = vld [vmem:[%s14617_s7 + $0x68] ss:$16 sps:$4 sm:$0xff]  }
 0x451   : > { %v7000_v25 = vmax.f32 %v6999_v41, %v4427_v62  ;;  %v4429_v0 = vpop.f32.mrb[94].mxu1  ;;  %4767 = vmatmul.mubr.bf16.gmra.mrb[168].mxu0 %v14733_v42  ;;  %v13154_v32 = vsel %vm7344_vm7, %v6851_v57, %v13082_v55  ;;  %v11269_v55 = vld [vmem:[%s14617_s7 + $0x6c] ss:$16 sps:$4 sm:$0xff]   ;;  %v11270_v41 = vld [vmem:[%s14617_s7 + $0xa0] ss:$16 sps:$4 sm:$0xff]  }
 0x452   : > { %v6980_v11 = vmax.f32 %v6979_v43, %v4429_v0  ;;  %v4431_v7 = vpop.f32.mrb[95].mxu1  ;;  %4776 = vmatprep.mubr.bf16.mxu0 %v14722_v46  ;;  %9228 = vmatprep.subr.bf16.mxu1 %v11269_v55  ;;  %v14734_v57 = vld [vmem:[#allocation13_spill] sm:$0xff] }
 0x453   : > { %v7001_v13 = vmax.f32 %v7000_v25, %v4431_v7  ;;  %9229 = vmatpush1.bf16.msra.mxu1 %v11267_v45 }
 0x454   : > { %v3802_v26 = vpop.f32.mrb[64].mxu0  ;;  %5400 = vmatmul.mubr.bf16.gmra.mrb[200].mxu1 %v14729_v2  ;;  %v11272_v2 = vld [vmem:[%s14617_s7 + $0xa4] ss:$16 sps:$4 sm:$0xff]  }
 0x455   : > { %v6947_v8 = vmax.f32 %v6946_v1, %v3802_v26  ;;  %v3804_v60 = vpop.f32.mrb[65].mxu0  ;;  %5409 = vmatprep.mubr.bf16.mxu1 %v14722_v46  ;;  %9068 = vmatprep.subr.bf16.mxu0 %v11272_v2 }
 0x456   : > { %v6968_v30 = vmax.f32 %v6967_v61, %v3804_v60  ;;  %v3806_v50 = vpop.f32.mrb[66].mxu0  ;;  %9069 = vmatpush1.bf16.msra.mxu0 %v11270_v41 }
 0x457   : > { %v6948_v40 = vmax.f32 %v6947_v8, %v3806_v50  ;;  %v3808_v58 = vpop.f32.mrb[67].mxu0  ;;  %v4435_v56 = vpop.f32.mrb[96].mxu1  ;;  %v14735_v50 = vld [vmem:[#allocation16_spill] sm:$0xff] }
 0x458   : > { %v6969_v35 = vmax.f32 %v6968_v30, %v3808_v58  ;;  %v6981_v18 = vmax.f32 %v6980_v11, %v4435_v56  ;;  %v4437_v20 = vpop.f32.mrb[97].mxu1 }
 0x459   : > { %v7002_v16 = vmax.f32 %v7001_v13, %v4437_v20  ;;  %v4439_v44 = vpop.f32.mrb[98].mxu1  ;;  %4777 = vmatmul.mubr.bf16.gmra.mrb[172].mxu0 %v14734_v57 }
 0x45a   : > { %v6982_v1 = vmax.f32 %v6981_v18, %v4439_v44  ;;  %v4441_v10 = vpop.f32.mrb[99].mxu1  ;;  %4786 = vmatprep.mubr.bf16.mxu0 %v14722_v46 }
 0x45b   : > { %v7003_v63 = vmax.f32 %v7002_v16, %v4441_v10 }
 0x45c   : > { %v3812_v61 = vpop.f32.mrb[68].mxu0  ;;  %5410 = vmatmul.mubr.bf16.gmra.mrb[204].mxu1 %v14730_v14 }
 0x45d   : > { %v6949_v43 = vmax.f32 %v6948_v40, %v3812_v61  ;;  %v3814_v62 = vpop.f32.mrb[69].mxu0  ;;  %5419 = vmatprep.mubr.bf16.mxu1 %v14722_v46 }
 0x45e   : > { %v6970_v25 = vmax.f32 %v6969_v35, %v3814_v62  ;;  %v3816_v0 = vpop.f32.mrb[70].mxu0 }
 0x45f   : > { %v6950_v11 = vmax.f32 %v6949_v43, %v3816_v0  ;;  %v3818_v7 = vpop.f32.mrb[71].mxu0  ;;  %v4445_v13 = vpop.f32.mrb[100].mxu1 }
 0x460   : > { %v6971_v26 = vmax.f32 %v6970_v25, %v3818_v7  ;;  %v6983_v8 = vmax.f32 %v6982_v1, %v4445_v13  ;;  %v4447_v60 = vpop.f32.mrb[101].mxu1 }
 0x461   : > { %v6951_v45 = vrot.slane %v6950_v11, 4  ;;  %v7004_v55 = vmax.f32 %v7003_v63, %v4447_v60  ;;  %v4449_v30 = vpop.f32.mrb[102].mxu1  ;;  %4787 = vmatmul.mubr.bf16.gmra.mrb[176].mxu0 %v14735_v50 }
 0x462   : > { %v6972_v41 = vrot.slane %v6971_v26, 4  ;;  %v6984_v2 = vmax.f32 %v6983_v8, %v4449_v30  ;;  %v4451_v14 = vpop.f32.mrb[103].mxu1  ;;  %4796 = vmatprep.mubr.bf16.mxu0 %v14722_v46 }
 0x463   : > { %v6952_v40 = vmax.f32 %v6950_v11, %v6951_v45  ;;  %v7005_v58 = vmax.f32 %v7004_v55, %v4451_v14 }
 0x464   : > { %v6973_v56 = vmax.f32 %v6971_v26, %v6972_v41  ;;  %v3822_v35 = vpop.f32.mrb[72].mxu0  ;;  %5420 = vmatmul.mubr.bf16.gmra.mrb[208].mxu1 %v14731_v52  ;;  %v14736_v26 = vld [vmem:[#allocation15_spill] sm:$0xff] }
 0x465   : > { %v6953_v18 = vrot.slane %v6952_v40, 2  ;;  %v3824_v20 = vpop.f32.mrb[73].mxu0  ;;  %5429 = vmatprep.mubr.bf16.mxu1 %v14722_v46 }
 0x466   : > { %v6974_v16 = vrot.slane %v6973_v56, 2  ;;  %v3826_v44 = vpop.f32.mrb[74].mxu0 }
 0x467   : > { %v6954_v1 = vmax.f32 %v6952_v40, %v6953_v18  ;;  %v7104_v10 = vmax.f32 %v3822_v35, %v3826_v44  ;;  %v3828_v63 = vpop.f32.mrb[75].mxu0  ;;  %v4455_v61 = vpop.f32.mrb[104].mxu1 }
 0x468   : > { %v6975_v43 = vmax.f32 %v6973_v56, %v6974_v16  ;;  %v7125_v62 = vmax.f32 %v3824_v20, %v3828_v63  ;;  %v6985_v25 = vmax.f32 %v6984_v2, %v4455_v61  ;;  %v4457_v0 = vpop.f32.mrb[105].mxu1 }
 0x469   : > { %v6955_v11 = vrot.slane %v6954_v1, 1  ;;  %v7006_v7 = vmax.f32 %v7005_v58, %v4457_v0  ;;  %v4459_v13 = vpop.f32.mrb[106].mxu1  ;;  %4797 = vmatmul.mubr.bf16.gmra.mrb[180].mxu0 %v14736_v26 }
 0x46a   : > { %v6976_v52 = vrot.slane %v6975_v43, 1  ;;  %v6986_v8 = vmax.f32 %v6985_v25, %v4459_v13  ;;  %v4461_v60 = vpop.f32.mrb[107].mxu1  ;;  %4806 = vmatprep.mubr.bf16.mxu0 %v14722_v46 }
 0x46b   : > { %v6956_v45 = vmax.f32 %v6954_v1, %v6955_v11  ;;  %v7007_v55 = vmax.f32 %v7006_v7, %v4461_v60  ;;  %v11273_v11 = vld [vmem:[%s14617_s7 + $0x88] ss:$16 sps:$4 sm:$0xff]   ;;  %v11275_v7 = vld [vmem:[%s14617_s7 + $0x8c] ss:$16 sps:$4 sm:$0xff]  }
 0x46c   : > { %v6977_v30 = vmax.f32 %v6975_v43, %v6976_v52  ;;  %v3832_v41 = vpop.f32.mrb[76].mxu0  ;;  %5430 = vmatmul.mubr.bf16.gmra.mrb[212].mxu1 %v14732_v31  ;;  %9230 = vmatprep.subr.bf16.mxu1 %v11275_v7 }
 0x46d   : > { %v13184_v2 = vsel %vm7346_vm8, %v6956_v45, %v13112_v39  ;;  %v7105_v14 = vmax.f32 %v7104_v10, %v3832_v41  ;;  %v3834_v40 = vpop.f32.mrb[77].mxu0  ;;  %5439 = vmatprep.mubr.bf16.mxu1 %v14722_v46  ;;  %v14737_v39 = vld [vmem:[#allocation18_spill] sm:$0xff]  ;;  %9231 = vmatpush1.bf16.msra.mxu1 %v11273_v11 }
 0x46e   : > { %v7126_v58 = vmax.f32 %v7125_v62, %v3834_v40  ;;  %v3836_v56 = vpop.f32.mrb[78].mxu0  ;;  %v13189_v35 = vsel %vm7346_vm8, %v6977_v30, %v13117_v17 }
 0x46f   : > { %v7106_v18 = vmax.f32 %v7105_v14, %v3836_v56  ;;  %v3838_v20 = vpop.f32.mrb[79].mxu0  ;;  %v4465_v16 = vpop.f32.mrb[108].mxu1  ;;  %v14738_v56 = vld [vmem:[#allocation17_spill] sm:$0xff] }
 0x470   : > { %v7127_v44 = vmax.f32 %v7126_v58, %v3838_v20  ;;  %v6987_v1 = vmax.f32 %v6986_v8, %v4465_v16  ;;  %v4467_v31 = vpop.f32.mrb[109].mxu1  ;;  %v11276_v8 = vld [vmem:[%s14617_s7 + $0xc0] ss:$16 sps:$4 sm:$0xff]  }
 0x471   : > { %v7008_v63 = vmax.f32 %v7007_v55, %v4467_v31  ;;  %v4469_v61 = vpop.f32.mrb[110].mxu1  ;;  %4807 = vmatmul.mubr.bf16.gmra.mrb[184].mxu0 %v14737_v39 }
 0x472   : > { %v6988_v10 = vmax.f32 %v6987_v1, %v4469_v61  ;;  %v4471_v43 = vpop.f32.mrb[111].mxu1  ;;  %4816 = vmatprep.mubr.bf16.mxu0 %v14722_v46 }
 0x473   : > { %v7009_v62 = vmax.f32 %v7008_v63, %v4471_v43 }
 0x474   : > { %v3842_v25 = vpop.f32.mrb[80].mxu0  ;;  %5440 = vmatmul.mubr.bf16.gmra.mrb[216].mxu1 %v14733_v42  ;;  %v11278_v42 = vld [vmem:[%s14617_s7 + $0xc4] ss:$16 sps:$4 sm:$0xff]  }
 0x475   : > { %v7107_v17 = vmax.f32 %v7106_v18, %v3842_v25  ;;  %v3844_v0 = vpop.f32.mrb[81].mxu0  ;;  %5449 = vmatprep.mubr.bf16.mxu1 %v14722_v46  ;;  %9070 = vmatprep.subr.bf16.mxu0 %v11278_v42 }
 0x476   : > { %v7128_v13 = vmax.f32 %v7127_v44, %v3844_v0  ;;  %v3846_v52 = vpop.f32.mrb[82].mxu0  ;;  %9071 = vmatpush1.bf16.msra.mxu0 %v11276_v8 }
 0x477   : > { %v7108_v60 = vmax.f32 %v7107_v17, %v3846_v52  ;;  %v3848_v45 = vpop.f32.mrb[83].mxu0  ;;  %v4475_v55 = vpop.f32.mrb[112].mxu1 }
 0x478   : > { %v7129_v30 = vmax.f32 %v7128_v13, %v3848_v45  ;;  %v6989_v41 = vmax.f32 %v6988_v10, %v4475_v55  ;;  %v4477_v14 = vpop.f32.mrb[113].mxu1  ;;  %v14739_v13 = vld [vmem:[#allocation20_spill] sm:$0xff] }
 0x479   : > { %v7010_v40 = vmax.f32 %v7009_v62, %v4477_v14  ;;  %v4479_v58 = vpop.f32.mrb[114].mxu1  ;;  %4817 = vmatmul.mubr.bf16.gmra.mrb[188].mxu0 %v14738_v56 }
 0x47a   : > { %v6990_v18 = vmax.f32 %v6989_v41, %v4479_v58  ;;  %v4481_v20 = vpop.f32.mrb[115].mxu1  ;;  %4826 = vmatprep.mubr.bf16.mxu0 %v14722_v46 }
 0x47b   : > { %v7011_v16 = vmax.f32 %v7010_v40, %v4481_v20 }
 0x47c   : > { %v3852_v44 = vpop.f32.mrb[84].mxu0  ;;  %5450 = vmatmul.mubr.bf16.gmra.mrb[220].mxu1 %v14734_v57 }
 0x47d   : > { %v7109_v1 = vmax.f32 %v7108_v60, %v3852_v44  ;;  %v3854_v31 = vpop.f32.mrb[85].mxu0  ;;  %5459 = vmatprep.mubr.bf16.mxu1 %v14722_v46 }
 0x47e   : > { %v7130_v63 = vmax.f32 %v7129_v30, %v3854_v31  ;;  %v3856_v61 = vpop.f32.mrb[86].mxu0 }
 0x47f   : > { %v7110_v10 = vmax.f32 %v7109_v1, %v3856_v61  ;;  %v3858_v43 = vpop.f32.mrb[87].mxu0  ;;  %v4485_v62 = vpop.f32.mrb[116].mxu1 }
 0x480   : > { %v7131_v25 = vmax.f32 %v7130_v63, %v3858_v43  ;;  %v6991_v17 = vmax.f32 %v6990_v18, %v4485_v62  ;;  %v4487_v0 = vpop.f32.mrb[117].mxu1  ;;  %v14740_v43 = vld [vmem:[#allocation19_spill] sm:$0xff] }
 0x481   : > { %v7012_v11 = vmax.f32 %v7011_v16, %v4487_v0  ;;  %v4489_v7 = vpop.f32.mrb[118].mxu1  ;;  %4827 = vmatmul.mubr.bf16.gmra.mrb[192].mxu0 %v14739_v13 }
 0x482   : > { %v6992_v52 = vmax.f32 %v6991_v17, %v4489_v7  ;;  %v4491_v8 = vpop.f32.mrb[119].mxu1  ;;  %4836 = vmatprep.mubr.bf16.mxu0 %v14722_v46 }
 0x483   : > { %v7013_v57 = vmax.f32 %v7012_v11, %v4491_v8 }
 0x484   : > { %v6993_v42 = vrot.slane %v6992_v52, 4  ;;  %v3862_v60 = vpop.f32.mrb[88].mxu0  ;;  %5460 = vmatmul.mubr.bf16.gmra.mrb[224].mxu1 %v14735_v50 }
 0x485   : > { %v7014_v45 = vrot.slane %v7013_v57, 4  ;;  %v7111_v55 = vmax.f32 %v7110_v10, %v3862_v60  ;;  %v3864_v30 = vpop.f32.mrb[89].mxu0  ;;  %5469 = vmatprep.mubr.bf16.mxu1 %v14722_v46 }
 0x486   : > { %v6994_v41 = vmax.f32 %v6992_v52, %v6993_v42  ;;  %v7132_v14 = vmax.f32 %v7131_v25, %v3864_v30  ;;  %v3866_v40 = vpop.f32.mrb[90].mxu0 }
 0x487   : > { %v7015_v58 = vmax.f32 %v7013_v57, %v7014_v45  ;;  %v7112_v18 = vmax.f32 %v7111_v55, %v3866_v40  ;;  %v3868_v20 = vpop.f32.mrb[91].mxu0  ;;  %v4495_v16 = vpop.f32.mrb[120].mxu1 }
 0x488   : > { %v6995_v44 = vrot.slane %v6994_v41, 2  ;;  %v7133_v1 = vmax.f32 %v7132_v14, %v3868_v20  ;;  %v4497_v31 = vpop.f32.mrb[121].mxu1 }
 0x489   : > { %v7016_v63 = vrot.slane %v7015_v58, 2  ;;  %v4499_v61 = vpop.f32.mrb[122].mxu1  ;;  %4837 = vmatmul.mubr.bf16.gmra.mrb[196].mxu0 %v14740_v43 }
 0x48a   : > { %v6996_v50 = vmax.f32 %v6994_v41, %v6995_v44  ;;  %v7146_v62 = vmax.f32 %v4495_v16, %v4499_v61  ;;  %v4501_v10 = vpop.f32.mrb[123].mxu1  ;;  %4846 = vmatprep.mubr.bf16.mxu0 %v14722_v46 }
 0x48b   : > { %v7017_v17 = vmax.f32 %v7015_v58, %v7016_v63  ;;  %v7167_v0 = vmax.f32 %v4497_v31, %v4501_v10 }
 0x48c   : > { %v6997_v25 = vrot.slane %v6996_v50, 1  ;;  %v3872_v11 = vpop.f32.mrb[92].mxu0  ;;  %5470 = vmatmul.mubr.bf16.gmra.mrb[228].mxu1 %v14736_v26 }
 0x48d   : > { %v7018_v7 = vrot.slane %v7017_v17, 1  ;;  %v7113_v52 = vmax.f32 %v7112_v18, %v3872_v11  ;;  %v3874_v8 = vpop.f32.mrb[93].mxu0  ;;  %5479 = vmatprep.mubr.bf16.mxu1 %v14722_v46  ;;  %v14741_v18 = vld [vmem:[#allocation22_spill] sm:$0xff] }
 0x48e   : > { %v6998_v57 = vmax.f32 %v6996_v50, %v6997_v25  ;;  %v7134_v42 = vmax.f32 %v7133_v1, %v3874_v8  ;;  %v3876_v60 = vpop.f32.mrb[94].mxu0 }
 0x48f   : > { %v7019_v45 = vmax.f32 %v7017_v17, %v7018_v7  ;;  %v7114_v55 = vmax.f32 %v7113_v52, %v3876_v60  ;;  %v3878_v30 = vpop.f32.mrb[95].mxu0  ;;  %v4505_v41 = vpop.f32.mrb[124].mxu1 }
 0x490   : > { %v13221_v14 = vsel %vm7346_vm8, %v6998_v57, %v13149_v37  ;;  %v7135_v40 = vmax.f32 %v7134_v42, %v3878_v30  ;;  %v7147_v58 = vmax.f32 %v7146_v62, %v4505_v41  ;;  %v4507_v20 = vpop.f32.mrb[125].mxu1  ;;  %v11279_v62 = vld [vmem:[%s14617_s7 + $0xa8] ss:$16 sps:$4 sm:$0xff]  }
 0x491   : > { %v7168_v26 = vmax.f32 %v7167_v0, %v4507_v20  ;;  %v4509_v16 = vpop.f32.mrb[126].mxu1  ;;  %4847 = vmatmul.mubr.bf16.gmra.mrb[200].mxu0 %v14741_v18  ;;  %v13226_v44 = vsel %vm7346_vm8, %v7019_v45, %v13154_v32  ;;  %v11281_v32 = vld [vmem:[%s14617_s7 + $0xac] ss:$16 sps:$4 sm:$0xff]   ;;  %v11282_v0 = vld [vmem:[%s14617_s7 + $0xe0] ss:$16 sps:$4 sm:$0xff]  }
 0x492   : > { %v7148_v1 = vmax.f32 %v7147_v58, %v4509_v16  ;;  %v4511_v31 = vpop.f32.mrb[127].mxu1  ;;  %4856 = vmatprep.mubr.bf16.mxu0 %v14722_v46  ;;  %9232 = vmatprep.subr.bf16.mxu1 %v11281_v32  ;;  %v14742_v45 = vld [vmem:[#allocation21_spill] sm:$0xff] }
 0x493   : > { %v7169_v63 = vmax.f32 %v7168_v26, %v4511_v31  ;;  %9233 = vmatpush1.bf16.msra.mxu1 %v11279_v62 }
 0x494   : > { %v3882_v61 = vpop.f32.mrb[96].mxu0  ;;  %5480 = vmatmul.mubr.bf16.gmra.mrb[232].mxu1 %v14737_v39  ;;  %v11284_v39 = vld [vmem:[%s14617_s7 + $0xe4] ss:$16 sps:$4 sm:$0xff]  }
 0x495   : > { %v7115_v37 = vmax.f32 %v7114_v55, %v3882_v61  ;;  %v3884_v50 = vpop.f32.mrb[97].mxu0  ;;  %5489 = vmatprep.mubr.bf16.mxu1 %v14722_v46  ;;  %9072 = vmatprep.subr.bf16.mxu0 %v11284_v39 }
 0x496   : > { %v7136_v10 = vmax.f32 %v7135_v40, %v3884_v50  ;;  %v3886_v17 = vpop.f32.mrb[98].mxu0  ;;  %9073 = vmatpush1.bf16.msra.mxu0 %v11282_v0 }
 0x497   : > { %v7116_v25 = vmax.f32 %v7115_v37, %v3886_v17  ;;  %v3888_v11 = vpop.f32.mrb[99].mxu0  ;;  %v4515_v7 = vpop.f32.mrb[128].mxu1  ;;  %v14743_v17 = vld [vmem:[#allocation24_spill] sm:$0xff] }
 0x498   : > { %v7137_v52 = vmax.f32 %v7136_v10, %v3888_v11  ;;  %v7149_v8 = vmax.f32 %v7148_v1, %v4515_v7  ;;  %v4517_v57 = vpop.f32.mrb[129].mxu1 }
 0x499   : > { %v7170_v42 = vmax.f32 %v7169_v63, %v4517_v57  ;;  %v4519_v60 = vpop.f32.mrb[130].mxu1  ;;  %4857 = vmatmul.mubr.bf16.gmra.mrb[204].mxu0 %v14742_v45 }
 0x49a   : > { %v7150_v55 = vmax.f32 %v7149_v8, %v4519_v60  ;;  %v4521_v30 = vpop.f32.mrb[131].mxu1  ;;  %4866 = vmatprep.mubr.bf16.mxu0 %v14722_v46 }
 0x49b   : > { %v7171_v41 = vmax.f32 %v7170_v42, %v4521_v30 }
 0x49c   : > { %v3892_v40 = vpop.f32.mrb[100].mxu0  ;;  %5490 = vmatmul.mubr.bf16.gmra.mrb[236].mxu1 %v14738_v56 }
 0x49d   : > { %v7117_v58 = vmax.f32 %v7116_v25, %v3892_v40  ;;  %v3894_v20 = vpop.f32.mrb[101].mxu0  ;;  %5499 = vmatprep.mubr.bf16.mxu1 %v14722_v46 }
 0x49e   : > { %v7138_v26 = vmax.f32 %v7137_v52, %v3894_v20  ;;  %v3896_v16 = vpop.f32.mrb[102].mxu0 }
 0x49f   : > { %v7118_v1 = vmax.f32 %v7117_v58, %v3896_v16  ;;  %v3898_v31 = vpop.f32.mrb[103].mxu0  ;;  %v4525_v63 = vpop.f32.mrb[132].mxu1 }
 0x4a0   : > { %v7139_v61 = vmax.f32 %v7138_v26, %v3898_v31  ;;  %v7151_v37 = vmax.f32 %v7150_v55, %v4525_v63  ;;  %v4527_v50 = vpop.f32.mrb[133].mxu1 }
 0x4a1   : > { %v7119_v62 = vrot.slane %v7118_v1, 4  ;;  %v7172_v32 = vmax.f32 %v7171_v41, %v4527_v50  ;;  %v4529_v10 = vpop.f32.mrb[134].mxu1  ;;  %4867 = vmatmul.mubr.bf16.gmra.mrb[208].mxu0 %v14743_v17 }
 0x4a2   : > { %v7140_v0 = vrot.slane %v7139_v61, 4  ;;  %v7152_v39 = vmax.f32 %v7151_v37, %v4529_v10  ;;  %v4531_v56 = vpop.f32.mrb[135].mxu1  ;;  %4876 = vmatprep.mubr.bf16.mxu0 %v14722_v46 }
 0x4a3   : > { %v7120_v25 = vmax.f32 %v7118_v1, %v7119_v62  ;;  %v7173_v11 = vmax.f32 %v7172_v32, %v4531_v56 }
 0x4a4   : > { %v7141_v7 = vmax.f32 %v7139_v61, %v7140_v0  ;;  %v4608_v52 = vpop.f32.mrb[104].mxu0  ;;  %5500 = vmatmul.mubr.bf16.gmra.mrb[240].mxu1 %v14739_v13  ;;  %v14744_v61 = vld [vmem:[#allocation23_spill] sm:$0xff] }
 0x4a5   : > { %v7121_v8 = vrot.slane %v7120_v25, 2  ;;  %v4610_v57 = vpop.f32.mrb[105].mxu0  ;;  %5509 = vmatprep.mubr.bf16.mxu1 %v14722_v46 }
 0x4a6   : > { %v7142_v42 = vrot.slane %v7141_v7, 2  ;;  %v4612_v60 = vpop.f32.mrb[106].mxu0 }
 0x4a7   : > { %v7122_v55 = vmax.f32 %v7120_v25, %v7121_v8  ;;  %v4535_v30 = vpop.f32.mrb[136].mxu1  ;;  %v4614_v41 = vpop.f32.mrb[107].mxu0  ;;  %v6012_v40 = vmax.f32 %v4608_v52, %v4612_v60 }
 0x4a8   : > { %v7143_v58 = vmax.f32 %v7141_v7, %v7142_v42  ;;  %v7153_v20 = vmax.f32 %v7152_v39, %v4535_v30  ;;  %v4537_v26 = vpop.f32.mrb[137].mxu1  ;;  %v6033_v16 = vmax.f32 %v4610_v57, %v4614_v41 }
 0x4a9   : > { %v7123_v1 = vrot.slane %v7122_v55, 1  ;;  %v7174_v31 = vmax.f32 %v7173_v11, %v4537_v26  ;;  %v4539_v63 = vpop.f32.mrb[138].mxu1  ;;  %4877 = vmatmul.mubr.bf16.gmra.mrb[212].mxu0 %v14744_v61 }
 0x4aa   : > { %v7144_v13 = vrot.slane %v7143_v58, 1  ;;  %v7154_v37 = vmax.f32 %v7153_v20, %v4539_v63  ;;  %v4541_v50 = vpop.f32.mrb[139].mxu1  ;;  %4886 = vmatprep.mubr.bf16.mxu0 %v14722_v46 }
 0x4ab   : > { %v7124_v62 = vmax.f32 %v7122_v55, %v7123_v1  ;;  %v7175_v32 = vmax.f32 %v7174_v31, %v4541_v50  ;;  %v11287_v1 = vld [vmem:[%s14617_s7 + $0xcc] ss:$16 sps:$4 sm:$0xff]  }
 0x4ac   : > { %v7145_v10 = vmax.f32 %v7143_v58, %v7144_v13  ;;  %v4618_v0 = vpop.f32.mrb[108].mxu0  ;;  %5510 = vmatmul.mubr.bf16.gmra.mrb[244].mxu1 %v14740_v43  ;;  %v11288_v13 = vld [vmem:[%s14617_s7 + $0x100] ss:$16 sps:$4 sm:$0xff]   ;;  %9234 = vmatprep.subr.bf16.mxu1 %v11287_v1 }
 0x4ad   : > { %v13256_v39 = vsel %vm7348_vm9, %v7124_v62, %v13184_v2  ;;  %v4620_v56 = vpop.f32.mrb[109].mxu0  ;;  %5519 = vmatprep.mubr.bf16.mxu1 %v14722_v46  ;;  %v6013_v25 = vmax.f32 %v6012_v40, %v4618_v0 }
 0x4ae   : > { %v4622_v11 = vpop.f32.mrb[110].mxu0  ;;  %v6034_v7 = vmax.f32 %v6033_v16, %v4620_v56  ;;  %v13261_v52 = vsel %vm7348_vm9, %v7145_v10, %v13189_v35  ;;  %v11285_v16 = vld [vmem:[%s14617_s7 + $0xc8] ss:$16 sps:$4 sm:$0xff]  }
 0x4af   : > { %v4545_v8 = vpop.f32.mrb[140].mxu1  ;;  %v4624_v57 = vpop.f32.mrb[111].mxu0  ;;  %v6014_v42 = vmax.f32 %v6013_v25, %v4622_v11  ;;  %9235 = vmatpush1.bf16.msra.mxu1 %v11285_v16  ;;  %v14745_v16 = vld [vmem:[#allocation26_spill] sm:$0xff] }
 0x4b0   : > { %v7155_v60 = vmax.f32 %v7154_v37, %v4545_v8  ;;  %v4547_v55 = vpop.f32.mrb[141].mxu1  ;;  %v6035_v43 = vmax.f32 %v6034_v7, %v4624_v57 }
 0x4b1   : > { %v7176_v30 = vmax.f32 %v7175_v32, %v4547_v55  ;;  %v4549_v41 = vpop.f32.mrb[142].mxu1  ;;  %4887 = vmatmul.mubr.bf16.gmra.mrb[216].mxu0 %v12554_v4 }
 0x4b2   : > { %v7156_v2 = vmax.f32 %v7155_v60, %v4549_v41  ;;  %v4551_v58 = vpop.f32.mrb[143].mxu1  ;;  %4896 = vmatprep.mubr.bf16.mxu0 %v14722_v46 }
 0x4b3   : > { %v7177_v40 = vmax.f32 %v7176_v30, %v4551_v58 }
 0x4b4   : > { %v4628_v20 = vpop.f32.mrb[112].mxu0  ;;  %5520 = vmatmul.mubr.bf16.gmra.mrb[248].mxu1 %v14741_v18  ;;  %v11290_v18 = vld [vmem:[%s14617_s7 + $0x104] ss:$16 sps:$4 sm:$0xff]  }
 0x4b5   : > { %v6015_v35 = vmax.f32 %v6014_v42, %v4628_v20  ;;  %v4630_v26 = vpop.f32.mrb[113].mxu0  ;;  %5529 = vmatprep.mubr.bf16.mxu1 %v14722_v46  ;;  %9074 = vmatprep.subr.bf16.mxu0 %v11290_v18 }
 0x4b6   : > { %v6036_v31 = vmax.f32 %v6035_v43, %v4630_v26  ;;  %v4632_v63 = vpop.f32.mrb[114].mxu0  ;;  %9075 = vmatpush1.bf16.msra.mxu0 %v11288_v13 }
 0x4b7   : > { %v6016_v37 = vmax.f32 %v6015_v35, %v4632_v63  ;;  %v4555_v50 = vpop.f32.mrb[144].mxu1  ;;  %v4634_v62 = vpop.f32.mrb[115].mxu0 }
 0x4b8   : > { %v7157_v32 = vmax.f32 %v7156_v2, %v4555_v50  ;;  %v6037_v10 = vmax.f32 %v6036_v31, %v4634_v62  ;;  %v4557_v0 = vpop.f32.mrb[145].mxu1 }
 0x4b9   : > { %v7178_v56 = vmax.f32 %v7177_v40, %v4557_v0  ;;  %v4559_v25 = vpop.f32.mrb[146].mxu1  ;;  %4897 = vmatmul.mubr.bf16.gmra.mrb[220].mxu0 %v12552_v23 }
 0x4ba   : > { %v7158_v11 = vmax.f32 %v7157_v32, %v4559_v25  ;;  %v4561_v7 = vpop.f32.mrb[147].mxu1  ;;  %4906 = vmatprep.mubr.bf16.mxu0 %v14722_v46 }
 0x4bb   : > { %v7179_v8 = vmax.f32 %v7178_v56, %v4561_v7 }
 0x4bc   : > { %v4638_v57 = vpop.f32.mrb[116].mxu0  ;;  %5530 = vmatmul.mubr.bf16.gmra.mrb[252].mxu1 %v14742_v45 }
 0x4bd   : > { %v6017_v42 = vmax.f32 %v6016_v37, %v4638_v57  ;;  %v4640_v60 = vpop.f32.mrb[117].mxu0  ;;  %5539 = vmatprep.mubr.bf16.mxu1 %v14722_v46 }
 0x4be   : > { %v6038_v55 = vmax.f32 %v6037_v10, %v4640_v60  ;;  %v4642_v43 = vpop.f32.mrb[118].mxu0  ;;  %v14746_v60 = vld [vmem:[#allocation25_spill] sm:$0xff] }
 0x4bf   : > { %v6018_v30 = vmax.f32 %v6017_v42, %v4642_v43  ;;  %v4565_v41 = vpop.f32.mrb[148].mxu1  ;;  %v4644_v2 = vpop.f32.mrb[119].mxu0 }
 0x4c0   : > { %v7159_v58 = vmax.f32 %v7158_v11, %v4565_v41  ;;  %v6039_v40 = vmax.f32 %v6038_v55, %v4644_v2  ;;  %v4567_v20 = vpop.f32.mrb[149].mxu1 }
 0x4c1   : > { %v7180_v35 = vmax.f32 %v7179_v8, %v4567_v20  ;;  %v4569_v26 = vpop.f32.mrb[150].mxu1  ;;  %4907 = vmatmul.mubr.bf16.gmra.mrb[224].mxu0 %v14745_v16 }
 0x4c2   : > { %v7160_v1 = vmax.f32 %v7159_v58, %v4569_v26  ;;  %v4571_v31 = vpop.f32.mrb[151].mxu1  ;;  %4916 = vmatprep.mubr.bf16.mxu0 %v14722_v46 }
 0x4c3   : > { %v7181_v45 = vmax.f32 %v7180_v35, %v4571_v31 }
 0x4c4   : > { %v7161_v63 = vrot.slane %v7160_v1, 4  ;;  %v4648_v13 = vpop.f32.mrb[120].mxu0  ;;  %5540 = vmatmul.mubr.bf16.gmra.mrb[0].mxu1 %v14743_v17 }
 0x4c5   : > { %v7182_v18 = vrot.slane %v7181_v45, 4  ;;  %v6019_v37 = vmax.f32 %v6018_v30, %v4648_v13  ;;  %v4650_v50 = vpop.f32.mrb[121].mxu0  ;;  %5549 = vmatprep.mubr.bf16.mxu1 %v14722_v46 }
 0x4c6   : > { %v7162_v62 = vmax.f32 %v7160_v1, %v7161_v63  ;;  %v6040_v32 = vmax.f32 %v6039_v40, %v4650_v50  ;;  %v4652_v10 = vpop.f32.mrb[122].mxu0 }
 0x4c7   : > { %v7183_v0 = vmax.f32 %v7181_v45, %v7182_v18  ;;  %v6020_v56 = vmax.f32 %v6019_v37, %v4652_v10  ;;  %v4654_v25 = vpop.f32.mrb[123].mxu0  ;;  %v5281_v11 = vpop.f32.mrb[152].mxu1 }
 0x4c8   : > { %v7163_v7 = vrot.slane %v7162_v62, 2  ;;  %v6041_v8 = vmax.f32 %v6040_v32, %v4654_v25  ;;  %v5283_v57 = vpop.f32.mrb[153].mxu1 }
 0x4c9   : > { %v7184_v42 = vrot.slane %v7183_v0, 2  ;;  %4917 = vmatmul.mubr.bf16.gmra.mrb[228].mxu0 %v14746_v60  ;;  %v5285_v55 = vpop.f32.mrb[154].mxu1 }
 0x4ca   : > { %v7164_v17 = vmax.f32 %v7162_v62, %v7163_v7  ;;  %v5287_v43 = vpop.f32.mrb[155].mxu1  ;;  %4926 = vmatprep.mubr.bf16.mxu0 %v14722_v46  ;;  %v6054_v30 = vmax.f32 %v5281_v11, %v5285_v55  ;;  %v11291_v55 = vld [vmem:[%s14617_s7 + $0xe8] ss:$16 sps:$4 sm:$0xff]  }
 0x4cb   : > { %v7185_v41 = vmax.f32 %v7183_v0, %v7184_v42  ;;  %v6075_v2 = vmax.f32 %v5283_v57, %v5287_v43 }
 0x4cc   : > { %v7165_v58 = vrot.slane %v7164_v17, 1  ;;  %v4658_v40 = vpop.f32.mrb[124].mxu0  ;;  %5550 = vmatmul.mubr.bf16.gmra.mrb[4].mxu1 %v14744_v61  ;;  %v14747_v61 = vld [vmem:[#allocation28_spill] sm:$0xff] }
 0x4cd   : > { %v7186_v20 = vrot.slane %v7185_v41, 1  ;;  %v6021_v35 = vmax.f32 %v6020_v56, %v4658_v40  ;;  %v4660_v26 = vpop.f32.mrb[125].mxu0  ;;  %5559 = vmatprep.mubr.bf16.mxu1 %v14722_v46 }
 0x4ce   : > { %v7166_v1 = vmax.f32 %v7164_v17, %v7165_v58  ;;  %v6042_v31 = vmax.f32 %v6041_v8, %v4660_v26  ;;  %v4662_v45 = vpop.f32.mrb[126].mxu0 }
 0x4cf   : > { %v7187_v63 = vmax.f32 %v7185_v41, %v7186_v20  ;;  %v6022_v13 = vmax.f32 %v6021_v35, %v4662_v45  ;;  %v4664_v18 = vpop.f32.mrb[127].mxu0  ;;  %v5291_v37 = vpop.f32.mrb[156].mxu1 }
 0x4d0   : > { %v13293_v50 = vsel %vm7348_vm9, %v7166_v1, %v13221_v14  ;;  %v6043_v62 = vmax.f32 %v6042_v31, %v4664_v18  ;;  %v5293_v32 = vpop.f32.mrb[157].mxu1  ;;  %v6055_v10 = vmax.f32 %v6054_v30, %v5291_v37  ;;  %v11294_v30 = vld [vmem:[%s14617_s7 + $0x120] ss:$16 sps:$4 sm:$0xff]  }
 0x4d1   : > { %4927 = vmatmul.mubr.bf16.gmra.mrb[232].mxu0 %v14747_v61  ;;  %v5295_v0 = vpop.f32.mrb[158].mxu1  ;;  %v6076_v56 = vmax.f32 %v6075_v2, %v5293_v32  ;;  %v13298_v25 = vsel %vm7348_vm9, %v7187_v63, %v13226_v44  ;;  %v11293_v44 = vld [vmem:[%s14617_s7 + $0xec] ss:$16 sps:$4 sm:$0xff]   ;;  %v14748_v1 = vld [vmem:[#allocation27_spill] sm:$0xff] }
 0x4d2   : > { %v6056_v11 = vmax.f32 %v6055_v10, %v5295_v0  ;;  %v5297_v7 = vpop.f32.mrb[159].mxu1  ;;  %4936 = vmatprep.mubr.bf16.mxu0 %v14722_v46  ;;  %9236 = vmatprep.subr.bf16.mxu1 %v11293_v44 }
 0x4d3   : > { %v6077_v8 = vmax.f32 %v6076_v56, %v5297_v7  ;;  %9237 = vmatpush1.bf16.msra.mxu1 %v11291_v55 }
 0x4d4   : > { %v4668_v57 = vpop.f32.mrb[128].mxu0  ;;  %5560 = vmatmul.mubr.bf16.gmra.mrb[8].mxu1 %v12554_v4  ;;  %v11296_v4 = vld [vmem:[%s14617_s7 + $0x124] ss:$16 sps:$4 sm:$0xff]  }
 0x4d5   : > { %v6023_v14 = vmax.f32 %v6022_v13, %v4668_v57  ;;  %v4670_v42 = vpop.f32.mrb[129].mxu0  ;;  %5569 = vmatprep.mubr.bf16.mxu1 %v14722_v46  ;;  %9076 = vmatprep.subr.bf16.mxu0 %v11296_v4 }
 0x4d6   : > { %v6044_v17 = vmax.f32 %v6043_v62, %v4670_v42  ;;  %v4672_v43 = vpop.f32.mrb[130].mxu0  ;;  %9077 = vmatpush1.bf16.msra.mxu0 %v11294_v30  ;;  %v14749_v42 = vld [vmem:[#allocation30_spill] sm:$0xff] }
 0x4d7   : > { %v6024_v41 = vmax.f32 %v6023_v14, %v4672_v43  ;;  %v4674_v2 = vpop.f32.mrb[131].mxu0  ;;  %v5301_v58 = vpop.f32.mrb[160].mxu1 }
 0x4d8   : > { %v6045_v40 = vmax.f32 %v6044_v17, %v4674_v2  ;;  %v6057_v20 = vmax.f32 %v6056_v11, %v5301_v58  ;;  %v5303_v35 = vpop.f32.mrb[161].mxu1 }
 0x4d9   : > { %v6078_v26 = vmax.f32 %v6077_v8, %v5303_v35  ;;  %4937 = vmatmul.mubr.bf16.gmra.mrb[236].mxu0 %v14748_v1  ;;  %v5305_v31 = vpop.f32.mrb[162].mxu1 }
 0x4da   : > { %v6058_v45 = vmax.f32 %v6057_v20, %v5305_v31  ;;  %v5307_v63 = vpop.f32.mrb[163].mxu1  ;;  %4946 = vmatprep.mubr.bf16.mxu0 %v14722_v46  ;;  %v14750_v31 = vld [vmem:[#allocation29_spill] sm:$0xff] }
 0x4db   : > { %v6079_v13 = vmax.f32 %v6078_v26, %v5307_v63 }
 0x4dc   : > { %v4678_v18 = vpop.f32.mrb[132].mxu0  ;;  %5570 = vmatmul.mubr.bf16.gmra.mrb[12].mxu1 %v12552_v23 }
 0x4dd   : > { %v6025_v37 = vmax.f32 %v6024_v41, %v4678_v18  ;;  %v4680_v62 = vpop.f32.mrb[133].mxu0  ;;  %5579 = vmatprep.mubr.bf16.mxu1 %v14722_v46 }
 0x4de   : > { %v6046_v32 = vmax.f32 %v6045_v40, %v4680_v62  ;;  %v4682_v10 = vpop.f32.mrb[134].mxu0 }
 0x4df   : > { %v13319_v0 = vmax.f32 %v6025_v37, %v4682_v10  ;;  %v4684_v56 = vpop.f32.mrb[135].mxu0  ;;  %v5311_v11 = vpop.f32.mrb[164].mxu1 }
 0x4e0   : > { %v13321_v7 = vmax.f32 %v6046_v32, %v4684_v56  ;;  %v6059_v8 = vmax.f32 %v6058_v45, %v5311_v11  ;;  %v5313_v57 = vpop.f32.mrb[165].mxu1 }
 0x4e1   : > { %v6080_v14 = vmax.f32 %v6079_v13, %v5313_v57  ;;  %4947 = vmatmul.mubr.bf16.gmra.mrb[240].mxu0 %v14749_v42  ;;  %v5315_v55 = vpop.f32.mrb[166].mxu1 }
 0x4e2   : > { %v6060_v44 = vmax.f32 %v6059_v8, %v5315_v55  ;;  %v5317_v23 = vpop.f32.mrb[167].mxu1  ;;  %4956 = vmatprep.mubr.bf16.mxu0 %v14722_v46 }
 0x4e3   : > { %v6081_v17 = vmax.f32 %v6080_v14, %v5317_v23  ;;  %v14751_v23 = vld [vmem:[#allocation32_spill] sm:$0xff] }
 0x4e4   : > { %v4688_v43 = vpop.f32.mrb[136].mxu0  ;;  %5580 = vmatmul.mubr.bf16.gmra.mrb[16].mxu1 %v14745_v16 }
 0x4e5   : > { %v4690_v30 = vpop.f32.mrb[137].mxu0  ;;  %5589 = vmatprep.mubr.bf16.mxu1 %v14722_v46 }
 0x4e6   : > { %v4692_v4 = vpop.f32.mrb[138].mxu0 }
 0x4e7   : > { %v6180_v41 = vmax.f32 %v4688_v43, %v4692_v4  ;;  %v4694_v2 = vpop.f32.mrb[139].mxu0  ;;  %v5321_v58 = vpop.f32.mrb[168].mxu1 }
 0x4e8   : > { %v6201_v40 = vmax.f32 %v4690_v30, %v4694_v2  ;;  %v6061_v20 = vmax.f32 %v6060_v44, %v5321_v58  ;;  %v5323_v35 = vpop.f32.mrb[169].mxu1  ;;  %v11297_v58 = vld [vmem:[%s14617_s7 + $0x108] ss:$16 sps:$4 sm:$0xff]  }
 0x4e9   : > { %v6082_v26 = vmax.f32 %v6081_v17, %v5323_v35  ;;  %4957 = vmatmul.mubr.bf16.gmra.mrb[244].mxu0 %v14750_v31  ;;  %v5325_v45 = vpop.f32.mrb[170].mxu1 }
 0x4ea   : > { %v6062_v63 = vmax.f32 %v6061_v20, %v5325_v45  ;;  %v5327_v13 = vpop.f32.mrb[171].mxu1  ;;  %4966 = vmatprep.mubr.bf16.mxu0 %v14722_v46 }
 0x4eb   : > { %v6083_v18 = vmax.f32 %v6082_v26, %v5327_v13  ;;  %v11300_v26 = vld [vmem:[%s14617_s7 + $0x140] ss:$16 sps:$4 sm:$0xff]  }
 0x4ec   : > { %v4698_v16 = vpop.f32.mrb[140].mxu0  ;;  %5590 = vmatmul.mubr.bf16.gmra.mrb[20].mxu1 %v14746_v60 }
 0x4ed   : > { %v6181_v37 = vmax.f32 %v6180_v41, %v4698_v16  ;;  %v4700_v62 = vpop.f32.mrb[141].mxu0  ;;  %5599 = vmatprep.mubr.bf16.mxu1 %v14722_v46 }
 0x4ee   : > { %v6202_v32 = vmax.f32 %v6201_v40, %v4700_v62  ;;  %v4702_v10 = vpop.f32.mrb[142].mxu0  ;;  %v11299_v40 = vld [vmem:[%s14617_s7 + $0x10c] ss:$16 sps:$4 sm:$0xff]  }
 0x4ef   : > { %v6182_v56 = vmax.f32 %v6181_v37, %v4702_v10  ;;  %v4704_v11 = vpop.f32.mrb[143].mxu0  ;;  %v5331_v8 = vpop.f32.mrb[172].mxu1  ;;  %9238 = vmatprep.subr.bf16.mxu1 %v11299_v40  ;;  %v14753_v40 = vld [vmem:[#allocation33_spill] sm:$0xff] }
 0x4f0   : > { %v6203_v57 = vmax.f32 %v6202_v32, %v4704_v11  ;;  %v6063_v14 = vmax.f32 %v6062_v63, %v5331_v8  ;;  %v5333_v55 = vpop.f32.mrb[173].mxu1  ;;  %9239 = vmatpush1.bf16.msra.mxu1 %v11297_v58  ;;  %v14752_v32 = vld [vmem:[#allocation31_spill] sm:$0xff] }
 0x4f1   : > { %v6084_v44 = vmax.f32 %v6083_v18, %v5333_v55  ;;  %4967 = vmatmul.mubr.bf16.gmra.mrb[248].mxu0 %v14751_v23  ;;  %v5335_v17 = vpop.f32.mrb[174].mxu1 }
 0x4f2   : > { %v6064_v43 = vmax.f32 %v6063_v14, %v5335_v17  ;;  %v5337_v30 = vpop.f32.mrb[175].mxu1  ;;  %4976 = vmatprep.mubr.bf16.mxu0 %v14722_v46 }
 0x4f3   : > { %v6085_v60 = vmax.f32 %v6084_v44, %v5337_v30 }
 0x4f4   : > { %v4708_v4 = vpop.f32.mrb[144].mxu0  ;;  %5600 = vmatmul.mubr.bf16.gmra.mrb[24].mxu1 %v14747_v61  ;;  %v11302_v61 = vld [vmem:[%s14617_s7 + $0x144] ss:$16 sps:$4 sm:$0xff]  }
 0x4f5   : > { %v6183_v41 = vmax.f32 %v6182_v56, %v4708_v4  ;;  %v4710_v2 = vpop.f32.mrb[145].mxu0  ;;  %5609 = vmatprep.mubr.bf16.mxu1 %v14722_v46  ;;  %9078 = vmatprep.subr.bf16.mxu0 %v11302_v61 }
 0x4f6   : > { %v6204_v20 = vmax.f32 %v6203_v57, %v4710_v2  ;;  %v4712_v35 = vpop.f32.mrb[146].mxu0  ;;  %9079 = vmatpush1.bf16.msra.mxu0 %v11300_v26 }
 0x4f7   : > { %v6184_v45 = vmax.f32 %v6183_v41, %v4712_v35  ;;  %v4714_v63 = vpop.f32.mrb[147].mxu0  ;;  %v5341_v13 = vpop.f32.mrb[176].mxu1 }
 0x4f8   : > { %v6205_v18 = vmax.f32 %v6204_v20, %v4714_v63  ;;  %v6065_v16 = vmax.f32 %v6064_v43, %v5341_v13  ;;  %v5343_v37 = vpop.f32.mrb[177].mxu1 }
 0x4f9   : > { %v6086_v62 = vmax.f32 %v6085_v60, %v5343_v37  ;;  %4977 = vmatmul.mubr.bf16.gmra.mrb[252].mxu0 %v14752_v32  ;;  %v5345_v10 = vpop.f32.mrb[178].mxu1 }
 0x4fa   : > { %v6066_v56 = vmax.f32 %v6065_v16, %v5345_v10  ;;  %v5347_v11 = vpop.f32.mrb[179].mxu1  ;;  %4986 = vmatprep.mubr.bf16.mxu0 %v14722_v46 }
 0x4fb   : > { %v6087_v8 = vmax.f32 %v6086_v62, %v5347_v11 }
 0x4fc   : > { %v4718_v57 = vpop.f32.mrb[148].mxu0  ;;  %5610 = vmatmul.mubr.bf16.gmra.mrb[28].mxu1 %v14748_v1 }
 0x4fd   : > { %v6185_v14 = vmax.f32 %v6184_v45, %v4718_v57  ;;  %v4720_v55 = vpop.f32.mrb[149].mxu0  ;;  %5619 = vmatprep.mubr.bf16.mxu1 %v14722_v46 }
 0x4fe   : > { %v6206_v44 = vmax.f32 %v6205_v18, %v4720_v55  ;;  %v4722_v17 = vpop.f32.mrb[150].mxu0 }
 0x4ff   : > { %v6186_v43 = vmax.f32 %v6185_v14, %v4722_v17  ;;  %v4724_v30 = vpop.f32.mrb[151].mxu0  ;;  %v5351_v60 = vpop.f32.mrb[180].mxu1 }
 0x500   : > { %v6207_v4 = vmax.f32 %v6206_v44, %v4724_v30  ;;  %v6067_v41 = vmax.f32 %v6066_v56, %v5351_v60  ;;  %v5353_v2 = vpop.f32.mrb[181].mxu1 }
 0x501   : > { %v6088_v58 = vmax.f32 %v6087_v8, %v5353_v2  ;;  %4987 = vmatmul.mubr.bf16.gmra.mrb[0].mxu0 %v14753_v40  ;;  %v5355_v20 = vpop.f32.mrb[182].mxu1 }
 0x502   : > { %v13352_v35 = vmax.f32 %v6067_v41, %v5355_v20  ;;  %v5357_v26 = vpop.f32.mrb[183].mxu1  ;;  %4996 = vmatprep.mubr.bf16.mxu0 %v14722_v46 }
 0x503   : > { %v13355_v1 = vmax.f32 %v6088_v58, %v5357_v26 }
 0x504   : > { %v4728_v61 = vpop.f32.mrb[152].mxu0  ;;  %5620 = vmatmul.mubr.bf16.gmra.mrb[32].mxu1 %v14749_v42 }
 0x505   : > { %v6187_v45 = vmax.f32 %v6186_v43, %v4728_v61  ;;  %v4730_v63 = vpop.f32.mrb[153].mxu0  ;;  %5629 = vmatprep.mubr.bf16.mxu1 %v14722_v46 }
 0x506   : > { %v6208_v13 = vmax.f32 %v6207_v4, %v4730_v63  ;;  %v4732_v18 = vpop.f32.mrb[154].mxu0 }
 0x507   : > { %v6188_v16 = vmax.f32 %v6187_v45, %v4732_v18  ;;  %v4734_v37 = vpop.f32.mrb[155].mxu0  ;;  %v5361_v62 = vpop.f32.mrb[184].mxu1 }
 0x508   : > { %v6209_v10 = vmax.f32 %v6208_v13, %v4734_v37  ;;  %v5363_v56 = vpop.f32.mrb[185].mxu1  ;;  %v11305_v37 = vld [vmem:[%s14617_s7 + $0x12c] ss:$16 sps:$4 sm:$0xff]  }
 0x509   : > { %4997 = vmatmul.mubr.bf16.gmra.mrb[4].mxu0 %v12624_v9  ;;  %v5365_v11 = vpop.f32.mrb[186].mxu1  ;;  %9240 = vmatprep.subr.bf16.mxu1 %v11305_v37 }
 0x50a   : > { %v6222_v8 = vmax.f32 %v5361_v62, %v5365_v11  ;;  %v5367_v57 = vpop.f32.mrb[187].mxu1  ;;  %5006 = vmatprep.mubr.bf16.mxu0 %v14722_v46  ;;  %v6027_v11 = vrot.slane %v13319_v0, 4 }
 0x50b   : > { %v6243_v14 = vmax.f32 %v5363_v56, %v5367_v57  ;;  %v11306_v56 = vld [vmem:[%s14617_s7 + $0x160] ss:$16 sps:$4 sm:$0xff]  }
 0x50c   : > { %v4738_v42 = vpop.f32.mrb[156].mxu0  ;;  %5630 = vmatmul.mubr.bf16.gmra.mrb[36].mxu1 %v14750_v31 }
 0x50d   : > { %v6189_v55 = vmax.f32 %v6188_v16, %v4738_v42  ;;  %v4740_v44 = vpop.f32.mrb[157].mxu0  ;;  %5639 = vmatprep.mubr.bf16.mxu1 %v14722_v46  ;;  %v11303_v16 = vld [vmem:[%s14617_s7 + $0x128] ss:$16 sps:$4 sm:$0xff]   ;;  %v6048_v42 = vrot.slane %v13321_v7, 4 }
 0x50e   : > { %v6210_v17 = vmax.f32 %v6209_v10, %v4740_v44  ;;  %v4742_v43 = vpop.f32.mrb[158].mxu0  ;;  %9241 = vmatpush1.bf16.msra.mxu1 %v11303_v16 }
 0x50f   : > { %v6190_v30 = vmax.f32 %v6189_v55, %v4742_v43  ;;  %v4744_v60 = vpop.f32.mrb[159].mxu0  ;;  %v5371_v4 = vpop.f32.mrb[188].mxu1 }
 0x510   : > { %v6211_v41 = vmax.f32 %v6210_v17, %v4744_v60  ;;  %v6223_v2 = vmax.f32 %v6222_v8, %v5371_v4  ;;  %v5373_v58 = vpop.f32.mrb[189].mxu1 }
 0x511   : > { %v6244_v20 = vmax.f32 %v6243_v14, %v5373_v58  ;;  %5007 = vmatmul.mubr.bf16.gmra.mrb[8].mxu0 %v12638_v36  ;;  %v5375_v26 = vpop.f32.mrb[190].mxu1  ;;  %v6049_v58 = vmax.f32 %v13321_v7, %v6048_v42  ;;  %v14754_v7 = vld [vmem:[#allocation34_spill] sm:$0xff] }
 0x512   : > { %v6224_v61 = vmax.f32 %v6223_v2, %v5375_v26  ;;  %v5377_v45 = vpop.f32.mrb[191].mxu1  ;;  %5016 = vmatprep.mubr.bf16.mxu0 %v14722_v46 }
 0x513   : > { %v6245_v31 = vmax.f32 %v6244_v20, %v5377_v45  ;;  %v6050_v37 = vrot.slane %v6049_v58, 2 }
 0x514   : > { %v4748_v63 = vpop.f32.mrb[160].mxu0  ;;  %5640 = vmatmul.mubr.bf16.gmra.mrb[40].mxu1 %v14751_v23  ;;  %v11308_v23 = vld [vmem:[%s14617_s7 + $0x164] ss:$16 sps:$4 sm:$0xff]  }
 0x515   : > { %v6191_v13 = vmax.f32 %v6190_v30, %v4748_v63  ;;  %v4750_v18 = vpop.f32.mrb[161].mxu0  ;;  %5649 = vmatprep.mubr.bf16.mxu1 %v14722_v46  ;;  %9080 = vmatprep.subr.bf16.mxu0 %v11308_v23 }
 0x516   : > { %v6212_v62 = vmax.f32 %v6211_v41, %v4750_v18  ;;  %v4752_v10 = vpop.f32.mrb[162].mxu0  ;;  %9081 = vmatpush1.bf16.msra.mxu0 %v11306_v56  ;;  %v6028_v41 = vmax.f32 %v13319_v0, %v6027_v11 }
 0x517   : > { %v6192_v8 = vmax.f32 %v6191_v13, %v4752_v10  ;;  %v4754_v57 = vpop.f32.mrb[163].mxu0  ;;  %v5381_v14 = vpop.f32.mrb[192].mxu1 }
 0x518   : > { %v6213_v55 = vmax.f32 %v6212_v62, %v4754_v57  ;;  %v6225_v44 = vmax.f32 %v6224_v61, %v5381_v14  ;;  %v5383_v17 = vpop.f32.mrb[193].mxu1  ;;  %v6029_v63 = vrot.slane %v6028_v41, 2 }
 0x519   : > { %v6246_v43 = vmax.f32 %v6245_v31, %v5383_v17  ;;  %5017 = vmatmul.mubr.bf16.gmra.mrb[12].mxu0 %v12636_v34  ;;  %v5385_v30 = vpop.f32.mrb[194].mxu1 }
 0x51a   : > { %v6226_v60 = vmax.f32 %v6225_v44, %v5385_v30  ;;  %v5387_v4 = vpop.f32.mrb[195].mxu1  ;;  %5026 = vmatprep.mubr.bf16.mxu0 %v14722_v46  ;;  %v6030_v14 = vmax.f32 %v6028_v41, %v6029_v63  ;;  %v6051_v44 = vmax.f32 %v6049_v58, %v6050_v37 }
 0x51b   : > { %v6247_v2 = vmax.f32 %v6246_v43, %v5387_v4 }
 0x51c   : > { %v4758_v20 = vpop.f32.mrb[164].mxu0  ;;  %5650 = vmatmul.mubr.bf16.gmra.mrb[44].mxu1 %v14752_v32 }
 0x51d   : > { %v6193_v26 = vmax.f32 %v6192_v8, %v4758_v20  ;;  %v4760_v61 = vpop.f32.mrb[165].mxu0  ;;  %5659 = vmatprep.mubr.bf16.mxu1 %v14722_v46  ;;  %v6031_v20 = vrot.slane %v6030_v14, 1 }
 0x51e   : > { %v6214_v45 = vmax.f32 %v6213_v55, %v4760_v61  ;;  %v4762_v31 = vpop.f32.mrb[166].mxu0 }
 0x51f   : > { %v6194_v13 = vmax.f32 %v6193_v26, %v4762_v31  ;;  %v4764_v18 = vpop.f32.mrb[167].mxu0  ;;  %v5391_v16 = vpop.f32.mrb[196].mxu1 }
 0x520   : > { %v6215_v62 = vmax.f32 %v6214_v45, %v4764_v18  ;;  %v6227_v10 = vmax.f32 %v6226_v60, %v5391_v16  ;;  %v5393_v0 = vpop.f32.mrb[197].mxu1  ;;  %v6052_v18 = vrot.slane %v6051_v44, 1 }
 0x521   : > { %v6195_v56 = vrot.slane %v6194_v13, 4  ;;  %v6248_v23 = vmax.f32 %v6247_v2, %v5393_v0  ;;  %5027 = vmatmul.mubr.bf16.gmra.mrb[16].mxu0 %v14754_v7  ;;  %v5395_v11 = vpop.f32.mrb[198].mxu1 }
 0x522   : > { %v6216_v32 = vrot.slane %v6215_v62, 4  ;;  %v6228_v8 = vmax.f32 %v6227_v10, %v5395_v11  ;;  %v5397_v57 = vpop.f32.mrb[199].mxu1  ;;  %5036 = vmatprep.mubr.bf16.mxu0 %v14722_v46 }
 0x523   : > { %v6196_v42 = vmax.f32 %v6194_v13, %v6195_v56  ;;  %v6249_v55 = vmax.f32 %v6248_v23, %v5397_v57  ;;  %v6032_v56 = vmax.f32 %v6030_v14, %v6031_v20 }
 0x524   : > { %v6217_v17 = vmax.f32 %v6215_v62, %v6216_v32  ;;  %v4768_v43 = vpop.f32.mrb[168].mxu0  ;;  %5660 = vmatmul.mubr.bf16.gmra.mrb[48].mxu1 %v14753_v40  ;;  %v6053_v32 = vmax.f32 %v6051_v44, %v6052_v18 }
 0x525   : > { %v6197_v30 = vrot.slane %v6196_v42, 2  ;;  %v4770_v60 = vpop.f32.mrb[169].mxu0  ;;  %5669 = vmatprep.mubr.bf16.mxu1 %v14722_v46 }
 0x526   : > { %v6218_v4 = vrot.slane %v6217_v17, 2  ;;  %v4772_v2 = vpop.f32.mrb[170].mxu0 }
 0x527   : > { %v6198_v26 = vmax.f32 %v6196_v42, %v6197_v30  ;;  %v6348_v61 = vmax.f32 %v4768_v43, %v4772_v2  ;;  %v4774_v45 = vpop.f32.mrb[171].mxu0  ;;  %v5401_v31 = vpop.f32.mrb[200].mxu1 }
 0x528   : > { %v6219_v41 = vmax.f32 %v6217_v17, %v6218_v4  ;;  %v6369_v63 = vmax.f32 %v4770_v60, %v4774_v45  ;;  %v6229_v13 = vmax.f32 %v6228_v8, %v5401_v31  ;;  %v5403_v58 = vpop.f32.mrb[201].mxu1 }
 0x529   : > { %v6199_v16 = vrot.slane %v6198_v26, 1  ;;  %v6250_v37 = vmax.f32 %v6249_v55, %v5403_v58  ;;  %5037 = vmatmul.mubr.bf16.gmra.mrb[20].mxu0 %v12648_v15  ;;  %v5405_v40 = vpop.f32.mrb[202].mxu1  ;;  %v11309_v58 = vld [vmem:[%s14617_s7 + $0x148] ss:$16 sps:$4 sm:$0xff]  }
 0x52a   : > { %v6220_v62 = vrot.slane %v6219_v41, 1  ;;  %v6230_v10 = vmax.f32 %v6229_v13, %v5405_v40  ;;  %v5407_v0 = vpop.f32.mrb[203].mxu1  ;;  %5046 = vmatprep.mubr.bf16.mxu0 %v14722_v46 }
 0x52b   : > { %v6200_v23 = vmax.f32 %v6198_v26, %v6199_v16  ;;  %v6251_v11 = vmax.f32 %v6250_v37, %v5407_v0  ;;  %v11311_v16 = vld [vmem:[%s14617_s7 + $0x14c] ss:$16 sps:$4 sm:$0xff]  }
 0x52c   : > { %v6221_v57 = vmax.f32 %v6219_v41, %v6220_v62  ;;  %v4778_v42 = vpop.f32.mrb[172].mxu0  ;;  %5670 = vmatmul.mubr.bf16.gmra.mrb[52].mxu1 %v12624_v9  ;;  %v11312_v62 = vld [vmem:[%s14617_s7 + $0x180] ss:$16 sps:$4 sm:$0xff]   ;;  %9242 = vmatprep.subr.bf16.mxu1 %v11311_v16 }
 0x52d   : > { %v13395_v8 = vsel %vm7336_vm3, %v6200_v23, %v6032_v56  ;;  %v6349_v55 = vmax.f32 %v6348_v61, %v4778_v42  ;;  %v4780_v17 = vpop.f32.mrb[173].mxu0  ;;  %5679 = vmatprep.mubr.bf16.mxu1 %v14722_v46  ;;  %9243 = vmatpush1.bf16.msra.mxu1 %v11309_v58 }
 0x52e   : > { %v13399_v43 = vsel %vm7336_vm3, %v6221_v57, %v6053_v32  ;;  %v6370_v30 = vmax.f32 %v6369_v63, %v4780_v17  ;;  %v4782_v60 = vpop.f32.mrb[174].mxu0 }
 0x52f   : > { %v6350_v14 = vmax.f32 %v6349_v55, %v4782_v60  ;;  %v4784_v4 = vpop.f32.mrb[175].mxu0  ;;  %v5411_v2 = vpop.f32.mrb[204].mxu1  ;;  %v6069_v55 = vrot.slane %v13352_v35, 4  ;;  %v6090_v60 = vrot.slane %v13355_v1, 4 }
 0x530   : > { %v6371_v44 = vmax.f32 %v6370_v30, %v4784_v4  ;;  %v6231_v20 = vmax.f32 %v6230_v10, %v5411_v2  ;;  %v5413_v26 = vpop.f32.mrb[205].mxu1 }
 0x531   : > { %v6252_v45 = vmax.f32 %v6251_v11, %v5413_v26  ;;  %5047 = vmatmul.mubr.bf16.gmra.mrb[24].mxu0 %v12662_v54  ;;  %v5415_v9 = vpop.f32.mrb[206].mxu1 }
 0x532   : > { %v6232_v31 = vmax.f32 %v6231_v20, %v5415_v9  ;;  %v5417_v61 = vpop.f32.mrb[207].mxu1  ;;  %5056 = vmatprep.mubr.bf16.mxu0 %v14722_v46  ;;  %v6070_v20 = vmax.f32 %v13352_v35, %v6069_v55  ;;  %v6091_v9 = vmax.f32 %v13355_v1, %v6090_v60  ;;  %v11317_v35 = vld [vmem:[%s14617_s7 + $0x1a4] ss:$16 sps:$4 sm:$0xff]  }
 0x533   : > { %v6253_v18 = vmax.f32 %v6252_v45, %v5417_v61 }
 0x534   : > { %v4788_v41 = vpop.f32.mrb[176].mxu0  ;;  %5680 = vmatmul.mubr.bf16.gmra.mrb[56].mxu1 %v12638_v36  ;;  %v11314_v36 = vld [vmem:[%s14617_s7 + $0x184] ss:$16 sps:$4 sm:$0xff]   ;;  %v6071_v16 = vrot.slane %v6070_v20, 2  ;;  %v6092_v1 = vrot.slane %v6091_v9, 2 }
 0x535   : > { %v6351_v63 = vmax.f32 %v6350_v14, %v4788_v41  ;;  %v4790_v13 = vpop.f32.mrb[177].mxu0  ;;  %5689 = vmatprep.mubr.bf16.mxu1 %v14722_v46  ;;  %9082 = vmatprep.subr.bf16.mxu0 %v11314_v36  ;;  %v11315_v36 = vld [vmem:[%s14617_s7 + $0x1a0] ss:$16 sps:$4 sm:$0xff]  }
 0x536   : > { %v6372_v37 = vmax.f32 %v6371_v44, %v4790_v13  ;;  %v4792_v40 = vpop.f32.mrb[178].mxu0  ;;  %9083 = vmatpush1.bf16.msra.mxu0 %v11312_v62 }
 0x537   : > { %v6352_v10 = vmax.f32 %v6351_v63, %v4792_v40  ;;  %v4794_v0 = vpop.f32.mrb[179].mxu0  ;;  %v5421_v56 = vpop.f32.mrb[208].mxu1  ;;  %9084 = vmatprep.subr.bf16.mxu0 %v11317_v35 }
 0x538   : > { %v6373_v23 = vmax.f32 %v6372_v37, %v4794_v0  ;;  %v6233_v11 = vmax.f32 %v6232_v31, %v5421_v56  ;;  %v5423_v32 = vpop.f32.mrb[209].mxu1 }
 0x539   : > { %v6254_v57 = vmax.f32 %v6253_v18, %v5423_v32  ;;  %5057 = vmatmul.mubr.bf16.gmra.mrb[28].mxu0 %v12660_v3  ;;  %v5425_v42 = vpop.f32.mrb[210].mxu1  ;;  %v6072_v32 = vmax.f32 %v6070_v20, %v6071_v16  ;;  %v11321_v16 = vld [vmem:[%s14617_s7 + $0x1e0] ss:$16 sps:$4 sm:$0xff]  }
 0x53a   : > { %v6234_v17 = vmax.f32 %v6233_v11, %v5425_v42  ;;  %v5427_v30 = vpop.f32.mrb[211].mxu1  ;;  %5066 = vmatprep.mubr.bf16.mxu0 %v14722_v46  ;;  %9085 = vmatpush1.bf16.msra.mxu0 %v11315_v36 }
 0x53b   : > { %v6255_v14 = vmax.f32 %v6254_v57, %v5427_v30  ;;  %v6093_v30 = vmax.f32 %v6091_v9, %v6092_v1 }
 0x53c   : > { %v4798_v4 = vpop.f32.mrb[180].mxu0  ;;  %5690 = vmatmul.mubr.bf16.gmra.mrb[60].mxu1 %v12636_v34 }
 0x53d   : > { %v6353_v2 = vmax.f32 %v6352_v10, %v4798_v4  ;;  %v4800_v44 = vpop.f32.mrb[181].mxu0  ;;  %5699 = vmatprep.mubr.bf16.mxu1 %v14722_v46 }
 0x53e   : > { %v6374_v26 = vmax.f32 %v6373_v23, %v4800_v44  ;;  %v4802_v45 = vpop.f32.mrb[182].mxu0 }
 0x53f   : > { %v6354_v31 = vmax.f32 %v6353_v2, %v4802_v45  ;;  %v4804_v61 = vpop.f32.mrb[183].mxu0  ;;  %v5431_v18 = vpop.f32.mrb[212].mxu1  ;;  %v11318_v2 = vld [vmem:[%s14617_s7 + $0x1c0] ss:$16 sps:$4 sm:$0xff]  }
 0x540   : > { %v6375_v41 = vmax.f32 %v6374_v26, %v4804_v61  ;;  %v6235_v63 = vmax.f32 %v6234_v17, %v5431_v18  ;;  %v5433_v13 = vpop.f32.mrb[213].mxu1  ;;  %v11320_v17 = vld [vmem:[%s14617_s7 + $0x1c4] ss:$16 sps:$4 sm:$0xff]   ;;  %v6073_v61 = vrot.slane %v6072_v32, 1 }
 0x541   : > { %v6256_v58 = vmax.f32 %v6255_v14, %v5433_v13  ;;  %5067 = vmatmul.mubr.bf16.gmra.mrb[32].mxu0 %v12674_v49  ;;  %v5435_v34 = vpop.f32.mrb[214].mxu1  ;;  %9086 = vmatprep.subr.bf16.mxu0 %v11320_v17  ;;  %v6094_v13 = vrot.slane %v6093_v30, 1 }
 0x542   : > { %v6236_v37 = vmax.f32 %v6235_v63, %v5435_v34  ;;  %v5437_v40 = vpop.f32.mrb[215].mxu1  ;;  %5076 = vmatprep.mubr.bf16.mxu0 %v14722_v46  ;;  %9087 = vmatpush1.bf16.msra.mxu0 %v11318_v2  ;;  %v11323_v63 = vld [vmem:[%s14617_s7 + $0x1e4] ss:$16 sps:$4 sm:$0xff]   ;;  %v6074_v36 = vmax.f32 %v6072_v32, %v6073_v61  ;;  %v11330_v61 = vld [vmem:[%s14617_s7 + $0x168] ss:$16 sps:$4 sm:$0xff]  }
 0x543   : > { %v6257_v62 = vmax.f32 %v6256_v58, %v5437_v40  ;;  %9088 = vmatprep.subr.bf16.mxu0 %v11323_v63 }
 0x544   : > { %v6237_v10 = vrot.slane %v6236_v37, 4  ;;  %v4808_v0 = vpop.f32.mrb[184].mxu0  ;;  %5700 = vmatmul.mubr.bf16.gmra.mrb[64].mxu1 %v14754_v7 }
 0x545   : > { %v6258_v56 = vrot.slane %v6257_v62, 4  ;;  %v6355_v23 = vmax.f32 %v6354_v31, %v4808_v0  ;;  %v4810_v11 = vpop.f32.mrb[185].mxu0  ;;  %5709 = vmatprep.mubr.bf16.mxu1 %v14722_v46 }
 0x546   : > { %v6238_v57 = vmax.f32 %v6236_v37, %v6237_v10  ;;  %v6376_v42 = vmax.f32 %v6375_v41, %v4810_v11  ;;  %v4812_v55 = vpop.f32.mrb[186].mxu0  ;;  %9089 = vmatpush1.bf16.msra.mxu0 %v11321_v16  ;;  %v6095_v11 = vmax.f32 %v6093_v30, %v6094_v13 }
 0x547   : > { %v6259_v60 = vmax.f32 %v6257_v62, %v6258_v56  ;;  %v6356_v14 = vmax.f32 %v6355_v23, %v4812_v55  ;;  %v4814_v4 = vpop.f32.mrb[187].mxu0  ;;  %v5441_v7 = vpop.f32.mrb[216].mxu1  ;;  %v11326_v23 = vld [vmem:[%s14617_s7 + $0x204] ss:$16 sps:$4 sm:$0xff]  }
 0x548   : > { %v6239_v44 = vrot.slane %v6238_v57, 2  ;;  %v6377_v26 = vmax.f32 %v6376_v42, %v4814_v4  ;;  %v5443_v45 = vpop.f32.mrb[217].mxu1  ;;  %9099 = vmatprep.subr.bf16.mxu0 %v11326_v23 }
 0x549   : > { %v6260_v20 = vrot.slane %v6259_v60, 2  ;;  %5077 = vmatmul.mubr.bf16.gmra.mrb[36].mxu0 %v12672_v48  ;;  %v5445_v31 = vpop.f32.mrb[218].mxu1 }
 0x54a   : > { %v6240_v18 = vmax.f32 %v6238_v57, %v6239_v44  ;;  %v6390_v41 = vmax.f32 %v5441_v7, %v5445_v31  ;;  %v5447_v9 = vpop.f32.mrb[219].mxu1  ;;  %5086 = vmatprep.mubr.bf16.mxu0 %v14722_v46 }
 0x54b   : > { %v6261_v58 = vmax.f32 %v6259_v60, %v6260_v20  ;;  %v6411_v34 = vmax.f32 %v5443_v45, %v5447_v9 }
 0x54c   : > { %v6241_v37 = vrot.slane %v6240_v18, 1  ;;  %v4818_v40 = vpop.f32.mrb[188].mxu0  ;;  %5710 = vmatmul.mubr.bf16.gmra.mrb[68].mxu1 %v12648_v15 }
 0x54d   : > { %v6262_v35 = vrot.slane %v6261_v58, 1  ;;  %v6357_v1 = vmax.f32 %v6356_v14, %v4818_v40  ;;  %v4820_v62 = vpop.f32.mrb[189].mxu0  ;;  %5719 = vmatprep.mubr.bf16.mxu1 %v14722_v46 }
 0x54e   : > { %v6242_v10 = vmax.f32 %v6240_v18, %v6241_v37  ;;  %v6378_v0 = vmax.f32 %v6377_v26, %v4820_v62  ;;  %v4822_v56 = vpop.f32.mrb[190].mxu0  ;;  %v11332_v18 = vld [vmem:[%s14617_s7 + $0x16c] ss:$16 sps:$4 sm:$0xff]  }
 0x54f   : > { %v6263_v57 = vmax.f32 %v6261_v58, %v6262_v35  ;;  %v6358_v42 = vmax.f32 %v6357_v1, %v4822_v56  ;;  %v4824_v55 = vpop.f32.mrb[191].mxu0  ;;  %v5451_v15 = vpop.f32.mrb[220].mxu1  ;;  %9244 = vmatprep.subr.bf16.mxu1 %v11332_v18 }
 0x550   : > { %v13455_v17 = vsel %vm7336_vm3, %v6242_v10, %v6074_v36  ;;  %v6379_v60 = vmax.f32 %v6378_v0, %v4824_v55  ;;  %v6391_v14 = vmax.f32 %v6390_v41, %v5451_v15  ;;  %v5453_v4 = vpop.f32.mrb[221].mxu1  ;;  %9245 = vmatpush1.bf16.msra.mxu1 %v11330_v61 }
 0x551   : > { %v13458_v32 = vsel %vm7336_vm3, %v6263_v57, %v6095_v11  ;;  %v6412_v7 = vmax.f32 %v6411_v34, %v5453_v4  ;;  %5087 = vmatmul.mubr.bf16.gmra.mrb[40].mxu0 %v12686_v38  ;;  %v5455_v2 = vpop.f32.mrb[222].mxu1 }
 0x552   : > { %v6392_v44 = vmax.f32 %v6391_v14, %v5455_v2  ;;  %v5457_v30 = vpop.f32.mrb[223].mxu1  ;;  %5096 = vmatprep.mubr.bf16.mxu0 %v14722_v46 }
 0x553   : > { %v6413_v26 = vmax.f32 %v6412_v7, %v5457_v30  ;;  %v11344_v30 = vld [vmem:[%s14617_s7 + $0x18c] ss:$16 sps:$4 sm:$0xff]  }
 0x554   : > { %v4828_v45 = vpop.f32.mrb[192].mxu0  ;;  %5720 = vmatmul.mubr.bf16.gmra.mrb[72].mxu1 %v12662_v54  ;;  %9246 = vmatprep.subr.bf16.mxu1 %v11344_v30 }
 0x555   : > { %v6359_v20 = vmax.f32 %v6358_v42, %v4828_v45  ;;  %v4830_v31 = vpop.f32.mrb[193].mxu0  ;;  %5729 = vmatprep.mubr.bf16.mxu1 %v14722_v46 }
 0x556   : > { %v6380_v41 = vmax.f32 %v6379_v60, %v4830_v31  ;;  %v4832_v9 = vpop.f32.mrb[194].mxu0 }
 0x557   : > { %v6360_v63 = vmax.f32 %v6359_v20, %v4832_v9  ;;  %v4834_v13 = vpop.f32.mrb[195].mxu0  ;;  %v5461_v58 = vpop.f32.mrb[224].mxu1  ;;  %v11342_v20 = vld [vmem:[%s14617_s7 + $0x188] ss:$16 sps:$4 sm:$0xff]  }
 0x558   : > { %v6381_v34 = vmax.f32 %v6380_v41, %v4834_v13  ;;  %v6393_v54 = vmax.f32 %v6392_v44, %v5461_v58  ;;  %v5463_v16 = vpop.f32.mrb[225].mxu1  ;;  %9247 = vmatpush1.bf16.msra.mxu1 %v11342_v20  ;;  %v11350_v13 = vld [vmem:[%s14617_s7 + $0x1ac] ss:$16 sps:$4 sm:$0xff]  }
 0x559   : > { %v6414_v37 = vmax.f32 %v6413_v26, %v5463_v16  ;;  %5097 = vmatmul.mubr.bf16.gmra.mrb[44].mxu0 %v12684_v47  ;;  %v5465_v40 = vpop.f32.mrb[226].mxu1  ;;  %9248 = vmatprep.subr.bf16.mxu1 %v11350_v13 }
 0x55a   : > { %v6394_v35 = vmax.f32 %v6393_v54, %v5465_v40  ;;  %v5467_v1 = vpop.f32.mrb[227].mxu1  ;;  %5106 = vmatprep.mubr.bf16.mxu0 %v14722_v46 }
 0x55b   : > { %v6415_v62 = vmax.f32 %v6414_v37, %v5467_v1 }
 0x55c   : > { %v4838_v36 = vpop.f32.mrb[196].mxu0  ;;  %5730 = vmatmul.mubr.bf16.gmra.mrb[76].mxu1 %v12660_v3 }
 0x55d   : > { %v6361_v10 = vmax.f32 %v6360_v63, %v4838_v36  ;;  %v4840_v0 = vpop.f32.mrb[197].mxu0  ;;  %5739 = vmatprep.mubr.bf16.mxu1 %v14722_v46 }
 0x55e   : > { %v6382_v56 = vmax.f32 %v6381_v34, %v4840_v0  ;;  %v4842_v23 = vpop.f32.mrb[198].mxu0 }
 0x55f   : > { %v6362_v11 = vmax.f32 %v6361_v10, %v4842_v23  ;;  %v4844_v57 = vpop.f32.mrb[199].mxu0  ;;  %v5471_v42 = vpop.f32.mrb[228].mxu1 }
 0x560   : > { %v6383_v55 = vmax.f32 %v6382_v56, %v4844_v57  ;;  %v6395_v15 = vmax.f32 %v6394_v35, %v5471_v42  ;;  %v5473_v60 = vpop.f32.mrb[229].mxu1 }
 0x561   : > { %v6363_v14 = vrot.slane %v6362_v11, 4  ;;  %v6416_v4 = vmax.f32 %v6415_v62, %v5473_v60  ;;  %5107 = vmatmul.mubr.bf16.gmra.mrb[48].mxu0 %v12715_v19  ;;  %v5475_v7 = vpop.f32.mrb[230].mxu1 }
 0x562   : > { %v6384_v2 = vrot.slane %v6383_v55, 4  ;;  %v6396_v44 = vmax.f32 %v6395_v15, %v5475_v7  ;;  %v5477_v3 = vpop.f32.mrb[231].mxu1  ;;  %5116 = vmatprep.mubr.bf16.mxu0 %v14722_v46 }
 0x563   : > { %v6364_v26 = vmax.f32 %v6362_v11, %v6363_v14  ;;  %v6417_v45 = vmax.f32 %v6416_v4, %v5477_v3  ;;  %v11356_v11 = vld [vmem:[%s14617_s7 + $0x1cc] ss:$16 sps:$4 sm:$0xff]  }
 0x564   : > { %v6385_v31 = vmax.f32 %v6383_v55, %v6384_v2  ;;  %v4848_v61 = vpop.f32.mrb[200].mxu0  ;;  %5740 = vmatmul.mubr.bf16.gmra.mrb[80].mxu1 %v12674_v49  ;;  %v11348_v49 = vld [vmem:[%s14617_s7 + $0x1a8] ss:$16 sps:$4 sm:$0xff]  }
 0x565   : > { %v6365_v18 = vrot.slane %v6364_v26, 2  ;;  %v4850_v41 = vpop.f32.mrb[201].mxu0  ;;  %5749 = vmatprep.mubr.bf16.mxu1 %v14722_v46  ;;  %9249 = vmatpush1.bf16.msra.mxu1 %v11348_v49  ;;  %v11354_v55 = vld [vmem:[%s14617_s7 + $0x1c8] ss:$16 sps:$4 sm:$0xff]  }
 0x566   : > { %v6386_v9 = vrot.slane %v6385_v31, 2  ;;  %v4852_v63 = vpop.f32.mrb[202].mxu0  ;;  %9250 = vmatprep.subr.bf16.mxu1 %v11356_v11 }
 0x567   : > { %v6366_v58 = vmax.f32 %v6364_v26, %v6365_v18  ;;  %v6516_v34 = vmax.f32 %v4848_v61, %v4852_v63  ;;  %v4854_v54 = vpop.f32.mrb[203].mxu0  ;;  %v5481_v16 = vpop.f32.mrb[232].mxu1  ;;  %v11368_v63 = vld [vmem:[%s14617_s7 + $0x20c] ss:$16 sps:$4 sm:$0xff]  }
 0x568   : > { %v6387_v37 = vmax.f32 %v6385_v31, %v6386_v9  ;;  %v6537_v40 = vmax.f32 %v4850_v41, %v4854_v54  ;;  %v6397_v35 = vmax.f32 %v6396_v44, %v5481_v16  ;;  %v5483_v1 = vpop.f32.mrb[233].mxu1 }
 0x569   : > { %v6367_v62 = vrot.slane %v6366_v58, 1  ;;  %v6418_v36 = vmax.f32 %v6417_v45, %v5483_v1  ;;  %5117 = vmatmul.mubr.bf16.gmra.mrb[52].mxu0 %v12713_v24  ;;  %v5485_v10 = vpop.f32.mrb[234].mxu1  ;;  %9251 = vmatpush1.bf16.msra.mxu1 %v11354_v55 }
 0x56a   : > { %v6388_v0 = vrot.slane %v6387_v37, 1  ;;  %v6398_v56 = vmax.f32 %v6397_v35, %v5485_v10  ;;  %v5487_v23 = vpop.f32.mrb[235].mxu1  ;;  %5126 = vmatprep.mubr.bf16.mxu0 %v14722_v46 }
 0x56b   : > { %v6368_v57 = vmax.f32 %v6366_v58, %v6367_v62  ;;  %v6419_v42 = vmax.f32 %v6418_v36, %v5487_v23 }
 0x56c   : > { %v6389_v15 = vmax.f32 %v6387_v37, %v6388_v0  ;;  %v4858_v60 = vpop.f32.mrb[204].mxu0  ;;  %5750 = vmatmul.mubr.bf16.gmra.mrb[84].mxu1 %v12672_v48  ;;  %v11362_v48 = vld [vmem:[%s14617_s7 + $0x1ec] ss:$16 sps:$4 sm:$0xff]  }
 0x56d   : > { %v13501_v14 = vsel %vm7338_vm4, %v6368_v57, %v13395_v8  ;;  %v6517_v4 = vmax.f32 %v6516_v34, %v4858_v60  ;;  %v4860_v7 = vpop.f32.mrb[205].mxu0  ;;  %5759 = vmatprep.mubr.bf16.mxu1 %v14722_v46  ;;  %v11360_v8 = vld [vmem:[%s14617_s7 + $0x1e8] ss:$16 sps:$4 sm:$0xff]   ;;  %9252 = vmatprep.subr.bf16.mxu1 %v11362_v48 }
 0x56e   : > { %v13506_v2 = vsel %vm7338_vm4, %v6389_v15, %v13399_v43  ;;  %v6538_v44 = vmax.f32 %v6537_v40, %v4860_v7  ;;  %v4862_v3 = vpop.f32.mrb[206].mxu0  ;;  %9253 = vmatpush1.bf16.msra.mxu1 %v11360_v8 }
 0x56f   : > { %v6518_v30 = vmax.f32 %v6517_v4, %v4862_v3  ;;  %v4864_v26 = vpop.f32.mrb[207].mxu0  ;;  %v5491_v45 = vpop.f32.mrb[236].mxu1  ;;  %9263 = vmatprep.subr.bf16.mxu1 %v11368_v63 }
 0x570   : > { %v6539_v20 = vmax.f32 %v6538_v44, %v4864_v26  ;;  %v6399_v31 = vmax.f32 %v6398_v56, %v5491_v45  ;;  %v5493_v61 = vpop.f32.mrb[237].mxu1 }
 0x571   : > { %v6420_v18 = vmax.f32 %v6419_v42, %v5493_v61  ;;  %5127 = vmatmul.mubr.bf16.gmra.mrb[56].mxu0 %v12727_v53  ;;  %v5495_v43 = vpop.f32.mrb[238].mxu1 }
 0x572   : > { %v6400_v41 = vmax.f32 %v6399_v31, %v5495_v43  ;;  %v5497_v9 = vpop.f32.mrb[239].mxu1  ;;  %5136 = vmatprep.mubr.bf16.mxu0 %v14722_v46 }
 0x573   : > { %v6421_v13 = vmax.f32 %v6420_v18, %v5497_v9 }
 0x574   : > { %v4868_v58 = vpop.f32.mrb[208].mxu0  ;;  %5760 = vmatmul.mubr.bf16.gmra.mrb[88].mxu1 %v12686_v38 }
 0x575   : > { %v6519_v34 = vmax.f32 %v6518_v30, %v4868_v58  ;;  %v4870_v54 = vpop.f32.mrb[209].mxu0  ;;  %5769 = vmatprep.mubr.bf16.mxu1 %v14722_v46 }
 0x576   : > { %v6540_v16 = vmax.f32 %v6539_v20, %v4870_v54  ;;  %v4872_v49 = vpop.f32.mrb[210].mxu0 }
 0x577   : > { %v6520_v37 = vmax.f32 %v6519_v34, %v4872_v49  ;;  %v4874_v40 = vpop.f32.mrb[211].mxu0  ;;  %v5501_v35 = vpop.f32.mrb[240].mxu1 }
 0x578   : > { %v6541_v1 = vmax.f32 %v6540_v16, %v4874_v40  ;;  %v6401_v62 = vmax.f32 %v6400_v41, %v5501_v35  ;;  %v5503_v36 = vpop.f32.mrb[241].mxu1 }
 0x579   : > { %v6422_v10 = vmax.f32 %v6421_v13, %v5503_v36  ;;  %5137 = vmatmul.mubr.bf16.gmra.mrb[60].mxu0 %v12725_v6  ;;  %v5505_v0 = vpop.f32.mrb[242].mxu1 }
 0x57a   : > { %v6402_v56 = vmax.f32 %v6401_v62, %v5505_v0  ;;  %v5507_v23 = vpop.f32.mrb[243].mxu1  ;;  %5146 = vmatprep.mubr.bf16.mxu0 %v14722_v46 }
 0x57b   : > { %v6423_v38 = vmax.f32 %v6422_v10, %v5507_v23 }
 0x57c   : > { %v4878_v11 = vpop.f32.mrb[212].mxu0  ;;  %5770 = vmatmul.mubr.bf16.gmra.mrb[92].mxu1 %v12684_v47 }
 0x57d   : > { %v6521_v57 = vmax.f32 %v6520_v37, %v4878_v11  ;;  %v4880_v42 = vpop.f32.mrb[213].mxu0  ;;  %5779 = vmatprep.mubr.bf16.mxu1 %v14722_v46 }
 0x57e   : > { %v6542_v55 = vmax.f32 %v6541_v1, %v4880_v42  ;;  %v4882_v15 = vpop.f32.mrb[214].mxu0 }
 0x57f   : > { %v6522_v60 = vmax.f32 %v6521_v57, %v4882_v15  ;;  %v4884_v4 = vpop.f32.mrb[215].mxu0  ;;  %v5511_v7 = vpop.f32.mrb[244].mxu1 }
 0x580   : > { %v6543_v44 = vmax.f32 %v6542_v55, %v4884_v4  ;;  %v6403_v3 = vmax.f32 %v6402_v56, %v5511_v7  ;;  %v5513_v48 = vpop.f32.mrb[245].mxu1 }
 0x581   : > { %v6424_v30 = vmax.f32 %v6423_v38, %v5513_v48  ;;  %5147 = vmatmul.mubr.bf16.gmra.mrb[64].mxu0 %v12739_v5  ;;  %v5515_v26 = vpop.f32.mrb[246].mxu1 }
 0x582   : > { %v6404_v45 = vmax.f32 %v6403_v3, %v5515_v26  ;;  %v5517_v8 = vpop.f32.mrb[247].mxu1  ;;  %5156 = vmatprep.mubr.bf16.mxu0 %v14722_v46 }
 0x583   : > { %v6425_v47 = vmax.f32 %v6424_v30, %v5517_v8 }
 0x584   : > { %v6405_v20 = vrot.slane %v6404_v45, 4  ;;  %v4888_v31 = vpop.f32.mrb[216].mxu0  ;;  %5780 = vmatmul.mubr.bf16.gmra.mrb[96].mxu1 %v12715_v19 }
 0x585   : > { %v6426_v61 = vrot.slane %v6425_v47, 4  ;;  %v6523_v18 = vmax.f32 %v6522_v60, %v4888_v31  ;;  %v4890_v43 = vpop.f32.mrb[217].mxu0  ;;  %5789 = vmatprep.mubr.bf16.mxu1 %v14722_v46 }
 0x586   : > { %v6406_v41 = vmax.f32 %v6404_v45, %v6405_v20  ;;  %v6544_v9 = vmax.f32 %v6543_v44, %v4890_v43  ;;  %v4892_v63 = vpop.f32.mrb[218].mxu0 }
 0x587   : > { %v6427_v13 = vmax.f32 %v6425_v47, %v6426_v61  ;;  %v6524_v58 = vmax.f32 %v6523_v18, %v4892_v63  ;;  %v4894_v34 = vpop.f32.mrb[219].mxu0  ;;  %v5521_v54 = vpop.f32.mrb[248].mxu1 }
 0x588   : > { %v6407_v16 = vrot.slane %v6406_v41, 2  ;;  %v6545_v49 = vmax.f32 %v6544_v9, %v4894_v34  ;;  %v5523_v37 = vpop.f32.mrb[249].mxu1 }
 0x589   : > { %v6428_v40 = vrot.slane %v6427_v13, 2  ;;  %5157 = vmatmul.mubr.bf16.gmra.mrb[68].mxu0 %v12737_v12  ;;  %v5525_v35 = vpop.f32.mrb[250].mxu1 }
 0x58a   : > { %v6408_v19 = vmax.f32 %v6406_v41, %v6407_v16  ;;  %v6558_v1 = vmax.f32 %v5521_v54, %v5525_v35  ;;  %v5527_v62 = vpop.f32.mrb[251].mxu1  ;;  %5166 = vmatprep.mubr.bf16.mxu0 %v14722_v46 }
 0x58b   : > { %v6429_v36 = vmax.f32 %v6427_v13, %v6428_v40  ;;  %v6579_v10 = vmax.f32 %v5523_v37, %v5527_v62 }
 0x58c   : > { %v6409_v0 = vrot.slane %v6408_v19, 1  ;;  %v4898_v56 = vpop.f32.mrb[220].mxu0  ;;  %5790 = vmatmul.mubr.bf16.gmra.mrb[100].mxu1 %v12713_v24 }
 0x58d   : > { %v6430_v23 = vrot.slane %v6429_v36, 1  ;;  %v6525_v38 = vmax.f32 %v6524_v58, %v4898_v56  ;;  %v4900_v11 = vpop.f32.mrb[221].mxu0  ;;  %5799 = vmatprep.mubr.bf16.mxu1 %v14722_v46 }
 0x58e   : > { %v6410_v57 = vmax.f32 %v6408_v19, %v6409_v0  ;;  %v6546_v42 = vmax.f32 %v6545_v49, %v4900_v11  ;;  %v4902_v55 = vpop.f32.mrb[222].mxu0 }
 0x58f   : > { %v6431_v15 = vmax.f32 %v6429_v36, %v6430_v23  ;;  %v6526_v60 = vmax.f32 %v6525_v38, %v4902_v55  ;;  %v4904_v4 = vpop.f32.mrb[223].mxu0  ;;  %v5531_v7 = vpop.f32.mrb[252].mxu1 }
 0x590   : > { %v13535_v44 = vsel %vm7338_vm4, %v6410_v57, %v13455_v17  ;;  %v6547_v3 = vmax.f32 %v6546_v42, %v4904_v4  ;;  %v6559_v48 = vmax.f32 %v6558_v1, %v5531_v7  ;;  %v5533_v30 = vpop.f32.mrb[253].mxu1 }
 0x591   : > { %v13539_v24 = vsel %vm7338_vm4, %v6431_v15, %v13458_v32  ;;  %v6580_v26 = vmax.f32 %v6579_v10, %v5533_v30  ;;  %5167 = vmatmul.mubr.bf16.gmra.mrb[72].mxu0 %v12751_v22  ;;  %v5535_v45 = vpop.f32.mrb[254].mxu1 }
 0x592   : > { %v6560_v8 = vmax.f32 %v6559_v48, %v5535_v45  ;;  %v5537_v47 = vpop.f32.mrb[255].mxu1  ;;  %5176 = vmatprep.mubr.bf16.mxu0 %v14722_v46 }
 0x593   : > { %v6581_v20 = vmax.f32 %v6580_v26, %v5537_v47 }
 0x594   : > { %v4908_v31 = vpop.f32.mrb[224].mxu0  ;;  %5800 = vmatmul.mubr.bf16.gmra.mrb[104].mxu1 %v12727_v53 }
 0x595   : > { %v6527_v17 = vmax.f32 %v6526_v60, %v4908_v31  ;;  %v4910_v61 = vpop.f32.mrb[225].mxu0  ;;  %5809 = vmatprep.mubr.bf16.mxu1 %v14722_v46 }
 0x596   : > { %v6548_v18 = vmax.f32 %v6547_v3, %v4910_v61  ;;  %v4912_v43 = vpop.f32.mrb[226].mxu0 }
 0x597   : > { %v6528_v32 = vmax.f32 %v6527_v17, %v4912_v43  ;;  %v4914_v41 = vpop.f32.mrb[227].mxu0  ;;  %v5541_v9 = vpop.f32.mrb[0].mxu1 }
 0x598   : > { %v6549_v63 = vmax.f32 %v6548_v18, %v4914_v41  ;;  %v6561_v13 = vmax.f32 %v6560_v8, %v5541_v9  ;;  %v5543_v58 = vpop.f32.mrb[1].mxu1 }
 0x599   : > { %v6582_v34 = vmax.f32 %v6581_v20, %v5543_v58  ;;  %5177 = vmatmul.mubr.bf16.gmra.mrb[76].mxu0 %v12749_v28  ;;  %v5545_v54 = vpop.f32.mrb[2].mxu1 }
 0x59a   : > { %v6562_v16 = vmax.f32 %v6561_v13, %v5545_v54  ;;  %v5547_v49 = vpop.f32.mrb[3].mxu1  ;;  %5186 = vmatprep.mubr.bf16.mxu0 %v14722_v46 }
 0x59b   : > { %v6583_v53 = vmax.f32 %v6582_v34, %v5547_v49 }
 0x59c   : > { %v4918_v37 = vpop.f32.mrb[228].mxu0  ;;  %5810 = vmatmul.mubr.bf16.gmra.mrb[108].mxu1 %v12725_v6 }
 0x59d   : > { %v6529_v40 = vmax.f32 %v6528_v32, %v4918_v37  ;;  %v4920_v35 = vpop.f32.mrb[229].mxu0  ;;  %5819 = vmatprep.mubr.bf16.mxu1 %v14722_v46 }
 0x59e   : > { %v6550_v19 = vmax.f32 %v6549_v63, %v4920_v35  ;;  %v4922_v1 = vpop.f32.mrb[230].mxu0 }
 0x59f   : > { %v6530_v62 = vmax.f32 %v6529_v40, %v4922_v1  ;;  %v4924_v36 = vpop.f32.mrb[231].mxu0  ;;  %v5551_v10 = vpop.f32.mrb[4].mxu1 }
 0x5a0   : > { %v6551_v0 = vmax.f32 %v6550_v19, %v4924_v36  ;;  %v6563_v56 = vmax.f32 %v6562_v16, %v5551_v10  ;;  %v5553_v23 = vpop.f32.mrb[5].mxu1  ;;  %v7436_v36 = vlaneseq }
 0x5a1   : > { %v6531_v38 = vrot.slane %v6530_v62, 4  ;;  %v6584_v11 = vmax.f32 %v6583_v53, %v5553_v23  ;;  %5187 = vmatmul.mubr.bf16.gmra.mrb[80].mxu0 %v12763_v33  ;;  %v5555_v57 = vpop.f32.mrb[6].mxu1 }
 0x5a2   : > { %v6552_v42 = vrot.slane %v6551_v0, 4  ;;  %v6564_v55 = vmax.f32 %v6563_v56, %v5555_v57  ;;  %v5557_v6 = vpop.f32.mrb[7].mxu1  ;;  %5196 = vmatprep.mubr.bf16.mxu0 %v14722_v46 }
 0x5a3   : > { %v6532_v15 = vmax.f32 %v6530_v62, %v6531_v38  ;;  %v6585_v60 = vmax.f32 %v6584_v11, %v5557_v6 }
 0x5a4   : > { %v6553_v4 = vmax.f32 %v6551_v0, %v6552_v42  ;;  %v4928_v7 = vpop.f32.mrb[232].mxu0  ;;  %5820 = vmatmul.mubr.bf16.gmra.mrb[112].mxu1 %v12739_v5 }
 0x5a5   : > { %v6533_v3 = vrot.slane %v6532_v15, 2  ;;  %v4930_v48 = vpop.f32.mrb[233].mxu0  ;;  %5829 = vmatprep.mubr.bf16.mxu1 %v14722_v46 }
 0x5a6   : > { %v6554_v30 = vrot.slane %v6553_v4, 2  ;;  %v4932_v26 = vpop.f32.mrb[234].mxu0 }
 0x5a7   : > { %v6534_v45 = vmax.f32 %v6532_v15, %v6533_v3  ;;  %v6684_v8 = vmax.f32 %v4928_v7, %v4932_v26  ;;  %v4934_v47 = vpop.f32.mrb[235].mxu0  ;;  %v5561_v20 = vpop.f32.mrb[8].mxu1 }
 0x5a8   : > { %v6555_v31 = vmax.f32 %v6553_v4, %v6554_v30  ;;  %v6705_v17 = vmax.f32 %v4930_v48, %v4934_v47  ;;  %v6565_v61 = vmax.f32 %v6564_v55, %v5561_v20  ;;  %v5563_v18 = vpop.f32.mrb[9].mxu1 }
 0x5a9   : > { %v6535_v43 = vrot.slane %v6534_v45, 1  ;;  %v6586_v32 = vmax.f32 %v6585_v60, %v5563_v18  ;;  %5197 = vmatmul.mubr.bf16.gmra.mrb[84].mxu0 %v12761_v59  ;;  %v5565_v41 = vpop.f32.mrb[10].mxu1 }
 0x5aa   : > { %v6556_v5 = vrot.slane %v6555_v31, 1  ;;  %v6566_v9 = vmax.f32 %v6565_v61, %v5565_v41  ;;  %v5567_v63 = vpop.f32.mrb[11].mxu1  ;;  %5206 = vmatprep.mubr.bf16.mxu0 %v14722_v46 }
 0x5ab   : > { %v6536_v13 = vmax.f32 %v6534_v45, %v6535_v43  ;;  %v6587_v58 = vmax.f32 %v6586_v32, %v5567_v63  ;;  %v13577_v45 = vld [vmem:[%s14616_s6] sm:$0xff] }
 0x5ac   : > { %v6557_v34 = vmax.f32 %v6555_v31, %v6556_v5  ;;  %v4938_v54 = vpop.f32.mrb[236].mxu0  ;;  %5830 = vmatmul.mubr.bf16.gmra.mrb[116].mxu1 %v12737_v12 }
 0x5ad   : > { %v13558_v16 = vsel %vm7340_vm5, %v6536_v13, %v13501_v14  ;;  %v6685_v49 = vmax.f32 %v6684_v8, %v4938_v54  ;;  %v4940_v53 = vpop.f32.mrb[237].mxu0  ;;  %5839 = vmatprep.mubr.bf16.mxu1 %v14722_v46 }
 0x5ae   : > { %v13563_v37 = vsel %vm7340_vm5, %v6557_v34, %v13506_v2  ;;  %v6706_v40 = vmax.f32 %v6705_v17, %v4940_v53  ;;  %v4942_v35 = vpop.f32.mrb[238].mxu0  ;;  %v13567_v2 = vshrl.u32 %v7436_v36, 7 }
 0x5af   : > { %v6686_v19 = vmax.f32 %v6685_v49, %v4942_v35  ;;  %v4944_v1 = vpop.f32.mrb[239].mxu0  ;;  %v5571_v62 = vpop.f32.mrb[12].mxu1 }
 0x5b0   : > { %v6707_v10 = vmax.f32 %v6706_v40, %v4944_v1  ;;  %v6567_v12 = vmax.f32 %v6566_v9, %v5571_v62  ;;  %v5573_v0 = vpop.f32.mrb[13].mxu1  ;;  %v13572_v26 = vsub.s32 1, %v13567_v2  ;;  %v13586_v5 = vsub.s32 0, %v13567_v2 }
 0x5b1   : > { %v6588_v56 = vmax.f32 %v6587_v58, %v5573_v0  ;;  %5207 = vmatmul.mubr.bf16.gmra.mrb[88].mxu0 %v12775_v21  ;;  %v5575_v14 = vpop.f32.mrb[14].mxu1  ;;  %v7450_v49 = vsub.s32 3, %v13567_v2 }
 0x5b2   : > { %v6568_v23 = vmax.f32 %v6567_v12, %v5575_v14  ;;  %v5577_v38 = vpop.f32.mrb[15].mxu1  ;;  %5216 = vmatprep.mubr.bf16.mxu0 %v14722_v46  ;;  %v7443_v61 = vrot.slane %v13577_v45, %v13572_v26  ;;  %v7439_v1 = vrot.slane %v13577_v45, %v13586_v5 }
 0x5b3   : > { %v6589_v11 = vmax.f32 %v6588_v56, %v5577_v38 }
 0x5b4   : > { %v4948_v57 = vpop.f32.mrb[240].mxu0  ;;  %5840 = vmatmul.mubr.bf16.gmra.mrb[120].mxu1 %v12751_v22 }
 0x5b5   : > { %v6687_v42 = vmax.f32 %v6686_v19, %v4948_v57  ;;  %v4950_v55 = vpop.f32.mrb[241].mxu0  ;;  %5849 = vmatprep.mubr.bf16.mxu1 %v14722_v46  ;;  %v7476_v57 = vadd.f32 %v7439_v1, %v13256_v39 }
 0x5b6   : > { %v6708_v6 = vmax.f32 %v6707_v10, %v4950_v55  ;;  %v4952_v15 = vpop.f32.mrb[242].mxu0 }
 0x5b7   : > { %v6688_v60 = vmax.f32 %v6687_v42, %v4952_v15  ;;  %v4954_v4 = vpop.f32.mrb[243].mxu0  ;;  %v5581_v7 = vpop.f32.mrb[16].mxu1  ;;  %v7484_v39 = vmax.f32 %v7476_v57, 0.0 }
 0x5b8   : > { %v6709_v3 = vmax.f32 %v6708_v6, %v4954_v4  ;;  %v6569_v48 = vmax.f32 %v6568_v23, %v5581_v7  ;;  %v5583_v30 = vpop.f32.mrb[17].mxu1 }
 0x5b9   : > { %v6590_v22 = vmax.f32 %v6589_v11, %v5583_v30  ;;  %5217 = vmatmul.mubr.bf16.gmra.mrb[92].mxu0 %v12773_v51  ;;  %v5585_v8 = vpop.f32.mrb[18].mxu1 }
 0x5ba   : > { %v6570_v47 = vmax.f32 %v6569_v48, %v5585_v8  ;;  %v5587_v20 = vpop.f32.mrb[19].mxu1  ;;  %5226 = vmatprep.mubr.bf16.mxu0 %v14722_v46 }
 0x5bb   : > { %v6591_v31 = vmax.f32 %v6590_v22, %v5587_v20 }
 0x5bc   : > { %v4958_v17 = vpop.f32.mrb[244].mxu0  ;;  %5850 = vmatmul.mubr.bf16.gmra.mrb[124].mxu1 %v12749_v28  ;;  %v7477_v28 = vadd.f32 %v7443_v61, %v13261_v52  ;;  %v7451_v52 = vrot.slane %v13577_v45, %v7450_v49 }
 0x5bd   : > { %v6689_v18 = vmax.f32 %v6688_v60, %v4958_v17  ;;  %v4960_v43 = vpop.f32.mrb[245].mxu0  ;;  %5859 = vmatprep.mubr.bf16.mxu1 %v14722_v46 }
 0x5be   : > { %v6710_v32 = vmax.f32 %v6709_v3, %v4960_v43  ;;  %v4962_v41 = vpop.f32.mrb[246].mxu0  ;;  %v7485_v12 = vmax.f32 %v7477_v28, 0.0  ;;  %v7479_v3 = vadd.f32 %v7451_v52, %v13298_v25 }
 0x5bf   : > { %v6690_v9 = vmax.f32 %v6689_v18, %v4962_v41  ;;  %v4964_v63 = vpop.f32.mrb[247].mxu0  ;;  %v5591_v13 = vpop.f32.mrb[20].mxu1 }
 0x5c0   : > { %v6711_v58 = vmax.f32 %v6710_v32, %v4964_v63  ;;  %v6571_v34 = vmax.f32 %v6570_v47, %v5591_v13  ;;  %v5593_v54 = vpop.f32.mrb[21].mxu1  ;;  %v13600_v7 = vpack.c.bf16 %v7485_v12, %v7485_v12  ;;  %v7487_v18 = vmax.f32 %v7479_v3, 0.0  ;;  %v11324_v13 = vld [vmem:[%s14617_s7 + $0x200] ss:$16 sps:$4 sm:$0xff]  }
 0x5c1   : > { %v6592_v53 = vmax.f32 %v6591_v31, %v5593_v54  ;;  %5227 = vmatmul.mubr.bf16.gmra.mrb[96].mxu0 %v12787_v27  ;;  %v5595_v40 = vpop.f32.mrb[22].mxu1 }
 0x5c2   : > { %v6572_v35 = vmax.f32 %v6571_v34, %v5595_v40  ;;  %v5597_v19 = vpop.f32.mrb[23].mxu1  ;;  %5236 = vmatprep.mubr.bf16.mxu0 %v14722_v46 }
 0x5c3   : > { %v6593_v62 = vmax.f32 %v6592_v53, %v5597_v19 }
 0x5c4   : > { %v6573_v36 = vrot.slane %v6572_v35, 4  ;;  %v4968_v10 = vpop.f32.mrb[248].mxu0  ;;  %5860 = vmatmul.mubr.bf16.gmra.mrb[128].mxu1 %v12763_v33 }
 0x5c5   : > { %v6594_v0 = vrot.slane %v6593_v62, 4  ;;  %v6691_v56 = vmax.f32 %v6690_v9, %v4968_v10  ;;  %v4970_v14 = vpop.f32.mrb[249].mxu0  ;;  %5869 = vmatprep.mubr.bf16.mxu1 %v14722_v46 }
 0x5c6   : > { %v6574_v23 = vmax.f32 %v6572_v35, %v6573_v36  ;;  %v6712_v38 = vmax.f32 %v6711_v58, %v4970_v14  ;;  %v4972_v11 = vpop.f32.mrb[250].mxu0  ;;  %v13610_v58 = vpack.c.bf16 %v7484_v39, %v7484_v39  ;;  %v11341_v39 = vld [vmem:[%s14617_s7 + $0x284] ss:$16 sps:$4 sm:$0xff]  }
 0x5c7   : > { %v6595_v42 = vmax.f32 %v6593_v62, %v6594_v0  ;;  %v6692_v55 = vmax.f32 %v6691_v56, %v4972_v11  ;;  %v4974_v6 = vpop.f32.mrb[251].mxu0  ;;  %v5601_v15 = vpop.f32.mrb[24].mxu1  ;;  %v13619_v62 = vpack.c.bf16 %v7487_v18, %v7487_v18 }
 0x5c8   : > { %v6575_v33 = vrot.slane %v6574_v23, 2  ;;  %v6713_v60 = vmax.f32 %v6712_v38, %v4974_v6  ;;  %v5603_v4 = vpop.f32.mrb[25].mxu1 }
 0x5c9   : > { %v6596_v48 = vrot.slane %v6595_v42, 2  ;;  %5237 = vmatmul.mubr.bf16.gmra.mrb[100].mxu0 %v12785_v29  ;;  %v5605_v30 = vpop.f32.mrb[26].mxu1 }
 0x5ca   : > { %v6576_v22 = vmax.f32 %v6574_v23, %v6575_v33  ;;  %v6726_v8 = vmax.f32 %v5601_v15, %v5605_v30  ;;  %v5607_v47 = vpop.f32.mrb[27].mxu1  ;;  %9090 = vmatprep.mubr.bf16.mxu0 %v13600_v7  ;;  %v11338_v33 = vld [vmem:[%s14617_s7 + $0x264] ss:$16 sps:$4 sm:$0xff]  }
 0x5cb   : > { %v6597_v20 = vmax.f32 %v6595_v42, %v6596_v48  ;;  %v6747_v31 = vmax.f32 %v5603_v4, %v5607_v47  ;;  %v11333_v42 = vld [vmem:[%s14617_s7 + $0x240] ss:$16 sps:$4 sm:$0xff]  }
 0x5cc   : > { %v6577_v17 = vrot.slane %v6576_v22, 1  ;;  %v4978_v61 = vpop.f32.mrb[252].mxu0  ;;  %5870 = vmatmul.mubr.bf16.gmra.mrb[132].mxu1 %v12761_v59  ;;  %v11329_v59 = vld [vmem:[%s14617_s7 + $0x224] ss:$16 sps:$4 sm:$0xff]  }
 0x5cd   : > { %v6598_v43 = vrot.slane %v6597_v20, 1  ;;  %v6693_v32 = vmax.f32 %v6692_v55, %v4978_v61  ;;  %v4980_v25 = vpop.f32.mrb[253].mxu0  ;;  %5879 = vmatprep.mubr.bf16.mxu1 %v14722_v46 }
 0x5ce   : > { %v6578_v41 = vmax.f32 %v6576_v22, %v6577_v17  ;;  %v6714_v9 = vmax.f32 %v6713_v60, %v4980_v25  ;;  %v4982_v63 = vpop.f32.mrb[254].mxu0 }
 0x5cf   : > { %v6599_v34 = vmax.f32 %v6597_v20, %v6598_v43  ;;  %v6694_v54 = vmax.f32 %v6693_v32, %v4982_v63  ;;  %v4984_v28 = vpop.f32.mrb[255].mxu0  ;;  %v5611_v53 = vpop.f32.mrb[28].mxu1  ;;  %v11339_v43 = vld [vmem:[%s14617_s7 + $0x280] ss:$16 sps:$4 sm:$0xff]  }
 0x5d0   : > { %v13617_v40 = vsel %vm7340_vm5, %v6578_v41, %v13535_v44  ;;  %v6715_v35 = vmax.f32 %v6714_v9, %v4984_v28  ;;  %v6727_v19 = vmax.f32 %v6726_v8, %v5611_v53  ;;  %v5613_v1 = vpop.f32.mrb[29].mxu1  ;;  %v11327_v44 = vld [vmem:[%s14617_s7 + $0x220] ss:$16 sps:$4 sm:$0xff]   ;;  %v11347_v9 = vld [vmem:[%s14617_s7 + $0x2a4] ss:$16 sps:$4 sm:$0xff]  }
 0x5d1   : > { %v13623_v36 = vsel %vm7340_vm5, %v6599_v34, %v13539_v24  ;;  %v6748_v10 = vmax.f32 %v6747_v31, %v5613_v1  ;;  %v5615_v12 = vpop.f32.mrb[30].mxu1  ;;  %9091 = vmatmul.mubr.bf16.vlgmr.msra.gmra.mrb[104].mxu0 %v13610_v58  ;;  %v11335_v24 = vld [vmem:[%s14617_s7 + $0x244] ss:$16 sps:$4 sm:$0xff]   ;;  %v11336_v8 = vld [vmem:[%s14617_s7 + $0x260] ss:$16 sps:$4 sm:$0xff]  }
 0x5d2   : > { %v6728_v52 = vmax.f32 %v6727_v19, %v5615_v12  ;;  %9100 = vmatpush1.bf16.msra.mxu0 %v11324_v13  ;;  %v5617_v0 = vpop.f32.mrb[31].mxu1  ;;  %9131 = vmatprep.mubr.bf16.mxu0 %v13619_v62  ;;  %v11345_v19 = vld [vmem:[%s14617_s7 + $0x2a0] ss:$16 sps:$4 sm:$0xff]   ;;  %v11353_v12 = vld [vmem:[%s14617_s7 + $0x2c4] ss:$16 sps:$4 sm:$0xff]  }
 0x5d3   : > { %v6749_v56 = vmax.f32 %v6748_v10, %v5617_v0  ;;  %9101 = vmatprep.subr.bf16.mxu0 %v11329_v59 }
 0x5d4   : > { %v4988_v14 = vpop.f32.mrb[0].mxu0  ;;  %5880 = vmatmul.mubr.bf16.gmra.mrb[136].mxu1 %v12775_v21 }
 0x5d5   : > { %v6695_v23 = vmax.f32 %v6694_v54, %v4988_v14  ;;  %v4990_v38 = vpop.f32.mrb[1].mxu0  ;;  %5889 = vmatprep.mubr.bf16.mxu1 %v14722_v46 }
 0x5d6   : > { %v6716_v11 = vmax.f32 %v6715_v35, %v4990_v38  ;;  %9102 = vmatpush1.bf16.msra.mxu0 %v11327_v44  ;;  %v4992_v57 = vpop.f32.mrb[2].mxu0 }
 0x5d7   : > { %v6696_v55 = vmax.f32 %v6695_v23, %v4992_v57  ;;  %v4994_v6 = vpop.f32.mrb[3].mxu0  ;;  %v5621_v15 = vpop.f32.mrb[32].mxu1  ;;  %9103 = vmatprep.subr.bf16.mxu0 %v11335_v24  ;;  %v11351_v23 = vld [vmem:[%s14617_s7 + $0x2c0] ss:$16 sps:$4 sm:$0xff]  }
 0x5d8   : > { %v6717_v21 = vmax.f32 %v6716_v11, %v4994_v6  ;;  %v6729_v60 = vmax.f32 %v6728_v52, %v5621_v15  ;;  %v5623_v4 = vpop.f32.mrb[33].mxu1 }
 0x5d9   : > { %v6750_v3 = vmax.f32 %v6749_v56, %v5623_v4  ;;  %v5625_v48 = vpop.f32.mrb[34].mxu1 }
 0x5da   : > { %v6730_v30 = vmax.f32 %v6729_v60, %v5625_v48  ;;  %9104 = vmatpush1.bf16.msra.mxu0 %v11333_v42  ;;  %v5627_v22 = vpop.f32.mrb[35].mxu1 }
 0x5db   : > { %v6751_v47 = vmax.f32 %v6750_v3, %v5627_v22  ;;  %9105 = vmatprep.subr.bf16.mxu0 %v11338_v33 }
 0x5dc   : > { %v4998_v20 = vpop.f32.mrb[4].mxu0  ;;  %5890 = vmatmul.mubr.bf16.gmra.mrb[140].mxu1 %v12773_v51 }
 0x5dd   : > { %v6697_v31 = vmax.f32 %v6696_v55, %v4998_v20  ;;  %v5000_v17 = vpop.f32.mrb[5].mxu0  ;;  %5899 = vmatprep.mubr.bf16.mxu1 %v14722_v46 }
 0x5de   : > { %v6718_v61 = vmax.f32 %v6717_v21, %v5000_v17  ;;  %9106 = vmatpush1.bf16.msra.mxu0 %v11336_v8  ;;  %v5002_v18 = vpop.f32.mrb[6].mxu0 }
 0x5df   : > { %v6698_v32 = vmax.f32 %v6697_v31, %v5002_v18  ;;  %v5004_v25 = vpop.f32.mrb[7].mxu0  ;;  %v5631_v41 = vpop.f32.mrb[36].mxu1  ;;  %9107 = vmatprep.subr.bf16.mxu0 %v11341_v39 }
 0x5e0   : > { %v6719_v51 = vmax.f32 %v6718_v61, %v5004_v25  ;;  %v6731_v63 = vmax.f32 %v6730_v30, %v5631_v41  ;;  %v5633_v13 = vpop.f32.mrb[37].mxu1  ;;  %v11357_v30 = vld [vmem:[%s14617_s7 + $0x2e0] ss:$16 sps:$4 sm:$0xff]  }
 0x5e1   : > { %v6699_v34 = vrot.slane %v6698_v32, 4  ;;  %v6752_v54 = vmax.f32 %v6751_v47, %v5633_v13  ;;  %v5635_v28 = vpop.f32.mrb[38].mxu1  ;;  %v11365_v47 = vld [vmem:[%s14617_s7 + $0x304] ss:$16 sps:$4 sm:$0xff]   ;;  %v11363_v25 = vld [vmem:[%s14617_s7 + $0x300] ss:$16 sps:$4 sm:$0xff]  }
 0x5e2   : > { %v6720_v53 = vrot.slane %v6719_v51, 4  ;;  %v6732_v59 = vmax.f32 %v6731_v63, %v5635_v28  ;;  %9108 = vmatpush1.bf16.msra.mxu0 %v11339_v43  ;;  %v5637_v35 = vpop.f32.mrb[39].mxu1 }
 0x5e3   : > { %v6700_v1 = vmax.f32 %v6698_v32, %v6699_v34  ;;  %v6753_v10 = vmax.f32 %v6752_v54, %v5637_v35  ;;  %9109 = vmatprep.subr.bf16.mxu0 %v11347_v9  ;;  %v11366_v34 = vld [vmem:[%s14617_s7 + $0x208] ss:$16 sps:$4 sm:$0xff]  }
 0x5e4   : > { %v6721_v52 = vmax.f32 %v6719_v51, %v6720_v53  ;;  %v5008_v0 = vpop.f32.mrb[8].mxu0  ;;  %5900 = vmatmul.mubr.bf16.gmra.mrb[144].mxu1 %v12787_v27  ;;  %v11359_v27 = vld [vmem:[%s14617_s7 + $0x2e4] ss:$16 sps:$4 sm:$0xff]   ;;  %v11369_v53 = vld [vmem:[%s14617_s7 + $0x320] ss:$16 sps:$4 sm:$0xff]  }
 0x5e5   : > { %v6701_v44 = vrot.slane %v6700_v1, 2  ;;  %v5010_v56 = vpop.f32.mrb[9].mxu0  ;;  %5909 = vmatprep.mubr.bf16.mxu1 %v14722_v46 }
 0x5e6   : > { %v6722_v24 = vrot.slane %v6721_v52, 2  ;;  %9110 = vmatpush1.bf16.msra.mxu0 %v11345_v19  ;;  %v5012_v14 = vpop.f32.mrb[10].mxu0  ;;  %v11377_v19 = vld [vmem:[%s14617_s7 + $0x344] ss:$16 sps:$4 sm:$0xff]  }
 0x5e7   : > { %v6702_v38 = vmax.f32 %v6700_v1, %v6701_v44  ;;  %v6852_v11 = vmax.f32 %v5008_v0, %v5012_v14  ;;  %v5014_v57 = vpop.f32.mrb[11].mxu0  ;;  %v5641_v42 = vpop.f32.mrb[40].mxu1  ;;  %9111 = vmatprep.subr.bf16.mxu0 %v11353_v12 }
 0x5e8   : > { %v6723_v55 = vmax.f32 %v6721_v52, %v6722_v24  ;;  %v6873_v6 = vmax.f32 %v5010_v56, %v5014_v57  ;;  %v6733_v15 = vmax.f32 %v6732_v59, %v5641_v42  ;;  %v5643_v46 = vpop.f32.mrb[41].mxu1  ;;  %v11374_v59 = vld [vmem:[%s14617_s7 + $0x22c] ss:$16 sps:$4 sm:$0xff]   ;;  %v11372_v52 = vld [vmem:[%s14617_s7 + $0x228] ss:$16 sps:$4 sm:$0xff]  }
 0x5e9   : > { %v6703_v33 = vrot.slane %v6702_v38, 1  ;;  %v6754_v21 = vmax.f32 %v6753_v10, %v5643_v46  ;;  %v5645_v60 = vpop.f32.mrb[42].mxu1  ;;  %v11375_v56 = vld [vmem:[%s14617_s7 + $0x340] ss:$16 sps:$4 sm:$0xff]  }
 0x5ea   : > { %v6724_v4 = vrot.slane %v6723_v55, 1  ;;  %v6734_v3 = vmax.f32 %v6733_v15, %v5645_v60  ;;  %9112 = vmatpush1.bf16.msra.mxu0 %v11351_v23  ;;  %v5647_v48 = vpop.f32.mrb[43].mxu1  ;;  %v11381_v46 = vld [vmem:[%s14617_s7 + $0x360] ss:$16 sps:$4 sm:$0xff]   ;;  %v11389_v60 = vld [vmem:[%s14617_s7 + $0x384] ss:$16 sps:$4 sm:$0xff]  }
 0x5eb   : > { %v6704_v22 = vmax.f32 %v6702_v38, %v6703_v33  ;;  %v6755_v8 = vmax.f32 %v6754_v21, %v5647_v48  ;;  %9113 = vmatprep.subr.bf16.mxu0 %v11359_v27  ;;  %v11386_v33 = vld [vmem:[%s14617_s7 + $0x26c] ss:$16 sps:$4 sm:$0xff]  }
 0x5ec   : > { %v6725_v39 = vmax.f32 %v6723_v55, %v6724_v4  ;;  %v5018_v20 = vpop.f32.mrb[12].mxu0  ;;  %5910 = vmatmul.mubr.bf16.gmra.mrb[148].mxu1 %v12785_v29  ;;  %v11378_v55 = vld [vmem:[%s14617_s7 + $0x248] ss:$16 sps:$4 sm:$0xff]  }
 0x5ed   : > { %v13678_v31 = vsel %vm7342_vm6, %v6704_v22, %v13558_v16  ;;  %v6853_v17 = vmax.f32 %v6852_v11, %v5018_v20  ;;  %v5020_v61 = vpop.f32.mrb[13].mxu0  ;;  %9254 = vmatprep.mubr.bf16.mxu1 %v13600_v7  ;;  %v11371_v16 = vld [vmem:[%s14617_s7 + $0x324] ss:$16 sps:$4 sm:$0xff]   ;;  %v7446_v20 = vsub.s32 2, %v13567_v2 }
 0x5ee   : > { %v13683_v18 = vsel %vm7342_vm6, %v6725_v39, %v13563_v37  ;;  %v6874_v43 = vmax.f32 %v6873_v6, %v5020_v61  ;;  %9114 = vmatpush1.bf16.msra.mxu0 %v11357_v30  ;;  %v5022_v32 = vpop.f32.mrb[14].mxu0  ;;  %v11384_v30 = vld [vmem:[%s14617_s7 + $0x268] ss:$16 sps:$4 sm:$0xff]   ;;  %v11392_v39 = vld [vmem:[%s14617_s7 + $0x28c] ss:$16 sps:$4 sm:$0xff]  }
 0x5ef   : > { %v6854_v29 = vmax.f32 %v6853_v17, %v5022_v32  ;;  %v5024_v41 = vpop.f32.mrb[15].mxu0  ;;  %v5651_v9 = vpop.f32.mrb[44].mxu1  ;;  %9115 = vmatprep.subr.bf16.mxu0 %v11365_v47  ;;  %v11387_v47 = vld [vmem:[%s14617_s7 + $0x380] ss:$16 sps:$4 sm:$0xff]   ;;  %v11395_v32 = vld [vmem:[%s14617_s7 + $0x3a4] ss:$16 sps:$4 sm:$0xff]  }
 0x5f0   : > { %v6875_v7 = vmax.f32 %v6874_v43, %v5024_v41  ;;  %v6735_v51 = vmax.f32 %v6734_v3, %v5651_v9  ;;  %v5653_v63 = vpop.f32.mrb[45].mxu1 }
 0x5f1   : > { %v6756_v37 = vmax.f32 %v6755_v8, %v5653_v63  ;;  %v5655_v13 = vpop.f32.mrb[46].mxu1 }
 0x5f2   : > { %v6736_v54 = vmax.f32 %v6735_v51, %v5655_v13  ;;  %9116 = vmatpush1.bf16.msra.mxu0 %v11363_v25  ;;  %v5657_v28 = vpop.f32.mrb[47].mxu1  ;;  %v11398_v13 = vld [vmem:[%s14617_s7 + $0x2ac] ss:$16 sps:$4 sm:$0xff]  }
 0x5f3   : > { %v6757_v35 = vmax.f32 %v6756_v37, %v5657_v28  ;;  %9117 = vmatprep.subr.bf16.mxu0 %v11371_v16  ;;  %v11393_v37 = vld [vmem:[%s14617_s7 + $0x3a0] ss:$16 sps:$4 sm:$0xff]   ;;  %v11401_v28 = vld [vmem:[%s14617_s7 + $0x3c4] ss:$16 sps:$4 sm:$0xff]  }
 0x5f4   : > { %v5028_v1 = vpop.f32.mrb[16].mxu0  ;;  %9255 = vmatmul.mubr.bf16.vlgmr.msra.gmra.mrb[152].mxu1 %v13610_v58  ;;  %v11380_v58 = vld [vmem:[%s14617_s7 + $0x24c] ss:$16 sps:$4 sm:$0xff]  }
 0x5f5   : > { %v6855_v10 = vmax.f32 %v6854_v29, %v5028_v1  ;;  %9264 = vmatpush1.bf16.msra.mxu1 %v11366_v34  ;;  %v5030_v12 = vpop.f32.mrb[17].mxu0  ;;  %9295 = vmatprep.mubr.bf16.mxu1 %v13619_v62  ;;  %v11383_v62 = vld [vmem:[%s14617_s7 + $0x364] ss:$16 sps:$4 sm:$0xff]   ;;  %v7447_v34 = vrot.slane %v13577_v45, %v7446_v20 }
 0x5f6   : > { %v6876_v0 = vmax.f32 %v6875_v7, %v5030_v12  ;;  %9118 = vmatpush1.bf16.msra.mxu0 %v11369_v53  ;;  %v5032_v44 = vpop.f32.mrb[18].mxu0  ;;  %9265 = vmatprep.subr.bf16.mxu1 %v11374_v59  ;;  %v11390_v7 = vld [vmem:[%s14617_s7 + $0x288] ss:$16 sps:$4 sm:$0xff]  }
 0x5f7   : > { %v6856_v24 = vmax.f32 %v6855_v10, %v5032_v44  ;;  %v5034_v14 = vpop.f32.mrb[19].mxu0  ;;  %v5661_v23 = vpop.f32.mrb[48].mxu1  ;;  %9119 = vmatprep.subr.bf16.mxu0 %v11377_v19  ;;  %v11396_v10 = vld [vmem:[%s14617_s7 + $0x2a8] ss:$16 sps:$4 sm:$0xff]   ;;  %v11404_v44 = vld [vmem:[%s14617_s7 + $0x2cc] ss:$16 sps:$4 sm:$0xff]  }
 0x5f8   : > { %v6877_v38 = vmax.f32 %v6876_v0, %v5034_v14  ;;  %v6737_v11 = vmax.f32 %v6736_v54, %v5661_v23  ;;  %v5663_v57 = vpop.f32.mrb[49].mxu1  ;;  %v11399_v0 = vld [vmem:[%s14617_s7 + $0x3c0] ss:$16 sps:$4 sm:$0xff]  }
 0x5f9   : > { %v6758_v42 = vmax.f32 %v6757_v35, %v5663_v57  ;;  %9266 = vmatpush1.bf16.msra.mxu1 %v11372_v52  ;;  %v5665_v27 = vpop.f32.mrb[50].mxu1 }
 0x5fa   : > { %v6738_v6 = vmax.f32 %v6737_v11, %v5665_v27  ;;  %9120 = vmatpush1.bf16.msra.mxu0 %v11375_v56  ;;  %v5667_v15 = vpop.f32.mrb[51].mxu1  ;;  %9267 = vmatprep.subr.bf16.mxu1 %v11380_v58  ;;  %v7478_v56 = vadd.f32 %v7447_v34, %v13293_v50 }
 0x5fb   : > { %v6759_v21 = vmax.f32 %v6758_v42, %v5667_v15  ;;  %9121 = vmatprep.subr.bf16.mxu0 %v11383_v62  ;;  %v11407_v62 = vld [vmem:[%s14617_s7 + $0x3e4] ss:$16 sps:$4 sm:$0xff]  }
 0x5fc   : > { %v5038_v4 = vpop.f32.mrb[20].mxu0 }
 0x5fd   : > { %v6857_v3 = vmax.f32 %v6856_v24, %v5038_v4  ;;  %9268 = vmatpush1.bf16.msra.mxu1 %v11378_v55  ;;  %v5040_v48 = vpop.f32.mrb[21].mxu0  ;;  %v11402_v55 = vld [vmem:[%s14617_s7 + $0x2c8] ss:$16 sps:$4 sm:$0xff]  }
 0x5fe   : > { %v6878_v22 = vmax.f32 %v6877_v38, %v5040_v48  ;;  %9122 = vmatpush1.bf16.msra.mxu0 %v11381_v46  ;;  %v5042_v8 = vpop.f32.mrb[22].mxu0  ;;  %9269 = vmatprep.subr.bf16.mxu1 %v11386_v33  ;;  %v11405_v46 = vld [vmem:[%s14617_s7 + $0x3e0] ss:$16 sps:$4 sm:$0xff]   ;;  %v11410_v33 = vld [vmem:[%s14617_s7 + $0x2ec] ss:$16 sps:$4 sm:$0xff]  }
 0x5ff   : > { %v6858_v17 = vmax.f32 %v6857_v3, %v5042_v8  ;;  %v5044_v61 = vpop.f32.mrb[23].mxu0  ;;  %v5671_v43 = vpop.f32.mrb[52].mxu1  ;;  %9123 = vmatprep.subr.bf16.mxu0 %v11389_v60  ;;  %v11437_v3 = vld [vmem:[%s14617_s7 + $0x404] ss:$16 sps:$4 sm:$0xff]  }
 0x600   : > { %v6879_v25 = vmax.f32 %v6878_v22, %v5044_v61  ;;  %v6739_v29 = vmax.f32 %v6738_v6, %v5671_v43  ;;  %v5673_v41 = vpop.f32.mrb[53].mxu1 }
 0x601   : > { %v6760_v9 = vmax.f32 %v6759_v21, %v5673_v41  ;;  %9270 = vmatpush1.bf16.msra.mxu1 %v11384_v30  ;;  %v5675_v16 = vpop.f32.mrb[54].mxu1  ;;  %v7486_v21 = vmax.f32 %v7478_v56, 0.0 }
 0x602   : > { %v6740_v51 = vmax.f32 %v6739_v29, %v5675_v16  ;;  %9124 = vmatpush1.bf16.msra.mxu0 %v11387_v47  ;;  %v5677_v63 = vpop.f32.mrb[55].mxu1  ;;  %9271 = vmatprep.subr.bf16.mxu1 %v11392_v39  ;;  %v11408_v39 = vld [vmem:[%s14617_s7 + $0x2e8] ss:$16 sps:$4 sm:$0xff]  }
 0x603   : > { %v6761_v54 = vmax.f32 %v6760_v9, %v5677_v63  ;;  %9125 = vmatprep.subr.bf16.mxu0 %v11395_v32  ;;  %v11413_v32 = vld [vmem:[%s14617_s7 + $0x30c] ss:$16 sps:$4 sm:$0xff]   ;;  %v13791_v29 = vpack.c.bf16 %v7486_v21, %v7486_v21 }
 0x604   : > { %v6741_v53 = vrot.slane %v6740_v51, 4  ;;  %v5048_v59 = vpop.f32.mrb[24].mxu0 }
 0x605   : > { %v6762_v35 = vrot.slane %v6761_v54, 4  ;;  %v6859_v19 = vmax.f32 %v6858_v17, %v5048_v59  ;;  %9272 = vmatpush1.bf16.msra.mxu1 %v11390_v7  ;;  %v5050_v1 = vpop.f32.mrb[25].mxu0  ;;  %v11411_v59 = vld [vmem:[%s14617_s7 + $0x308] ss:$16 sps:$4 sm:$0xff]  }
 0x606   : > { %v6742_v12 = vmax.f32 %v6740_v51, %v6741_v53  ;;  %v6880_v52 = vmax.f32 %v6879_v25, %v5050_v1  ;;  %9126 = vmatpush1.bf16.msra.mxu0 %v11393_v37  ;;  %v5052_v45 = vpop.f32.mrb[26].mxu0  ;;  %9273 = vmatprep.subr.bf16.mxu1 %v11398_v13  ;;  %v11435_v25 = vld [vmem:[%s14617_s7 + $0x400] ss:$16 sps:$4 sm:$0xff]   ;;  %v11443_v51 = vld [vmem:[%s14617_s7 + $0x424] ss:$16 sps:$4 sm:$0xff]  }
 0x607   : > { %v6763_v58 = vmax.f32 %v6761_v54, %v6762_v35  ;;  %v6860_v24 = vmax.f32 %v6859_v19, %v5052_v45  ;;  %v5054_v14 = vpop.f32.mrb[27].mxu0  ;;  %v5681_v23 = vpop.f32.mrb[56].mxu1  ;;  %9127 = vmatprep.subr.bf16.mxu0 %v11401_v28 }
 0x608   : > { %v6743_v38 = vrot.slane %v6742_v12, 2  ;;  %v6881_v11 = vmax.f32 %v6880_v52, %v5054_v14  ;;  %v5683_v57 = vpop.f32.mrb[57].mxu1 }
 0x609   : > { %v6764_v42 = vrot.slane %v6763_v58, 2  ;;  %9274 = vmatpush1.bf16.msra.mxu1 %v11396_v10  ;;  %v5685_v27 = vpop.f32.mrb[58].mxu1  ;;  %v11449_v10 = vld [vmem:[%s14617_s7 + $0x444] ss:$16 sps:$4 sm:$0xff]  }
 0x60a   : > { %v6744_v50 = vmax.f32 %v6742_v12, %v6743_v38  ;;  %v6894_v6 = vmax.f32 %v5681_v23, %v5685_v27  ;;  %9128 = vmatpush1.bf16.msra.mxu0 %v11399_v0  ;;  %v5687_v15 = vpop.f32.mrb[59].mxu1  ;;  %9275 = vmatprep.subr.bf16.mxu1 %v11404_v44  ;;  %v11414_v0 = vld [vmem:[%s14617_s7 + $0x328] ss:$16 sps:$4 sm:$0xff]   ;;  %v11455_v38 = vld [vmem:[%s14617_s7 + $0x464] ss:$16 sps:$4 sm:$0xff]  }
 0x60b   : > { %v6765_v60 = vmax.f32 %v6763_v58, %v6764_v42  ;;  %v6915_v4 = vmax.f32 %v5683_v57, %v5687_v15  ;;  %9129 = vmatprep.subr.bf16.mxu0 %v11407_v62  ;;  %v11419_v58 = vld [vmem:[%s14617_s7 + $0x34c] ss:$16 sps:$4 sm:$0xff]  }
 0x60c   : > { %v6745_v48 = vrot.slane %v6744_v50, 1  ;;  %v5058_v30 = vpop.f32.mrb[28].mxu0 }
 0x60d   : > { %v6766_v22 = vrot.slane %v6765_v60, 1  ;;  %v6861_v8 = vmax.f32 %v6860_v24, %v5058_v30  ;;  %9276 = vmatpush1.bf16.msra.mxu1 %v11402_v55  ;;  %v5060_v47 = vpop.f32.mrb[29].mxu0  ;;  %v11447_v24 = vld [vmem:[%s14617_s7 + $0x440] ss:$16 sps:$4 sm:$0xff]   ;;  %v11420_v30 = vld [vmem:[%s14617_s7 + $0x368] ss:$16 sps:$4 sm:$0xff]  }
 0x60e   : > { %v6746_v17 = vmax.f32 %v6744_v50, %v6745_v48  ;;  %v6882_v61 = vmax.f32 %v6881_v11, %v5060_v47  ;;  %9130 = vmatpush1.bf16.msra.mxu0 %v11405_v46  ;;  %v5062_v43 = vpop.f32.mrb[30].mxu0  ;;  %9277 = vmatprep.subr.bf16.mxu1 %v11410_v33  ;;  %v11417_v50 = vld [vmem:[%s14617_s7 + $0x348] ss:$16 sps:$4 sm:$0xff]   ;;  %v11422_v46 = vld [vmem:[%s14617_s7 + $0x36c] ss:$16 sps:$4 sm:$0xff]  }
 0x60f   : > { %v6767_v41 = vmax.f32 %v6765_v60, %v6766_v22  ;;  %v6862_v9 = vmax.f32 %v6861_v8, %v5062_v43  ;;  %v5064_v16 = vpop.f32.mrb[31].mxu0  ;;  %v5691_v7 = vpop.f32.mrb[60].mxu1  ;;  %9140 = vmatprep.subr.bf16.mxu0 %v11437_v3  ;;  %v11453_v33 = vld [vmem:[%s14617_s7 + $0x460] ss:$16 sps:$4 sm:$0xff]   ;;  %v11461_v60 = vld [vmem:[%s14617_s7 + $0x484] ss:$16 sps:$4 sm:$0xff]  }
 0x610   : > { %v13798_v63 = vsel %vm7342_vm6, %v6746_v17, %v13617_v40  ;;  %v6883_v37 = vmax.f32 %v6882_v61, %v5064_v16  ;;  %v6895_v13 = vmax.f32 %v6894_v6, %v5691_v7  ;;  %v5693_v34 = vpop.f32.mrb[61].mxu1  ;;  %v11416_v40 = vld [vmem:[%s14617_s7 + $0x32c] ss:$16 sps:$4 sm:$0xff]  }
 0x611   : > { %v13802_v54 = vsel %vm7342_vm6, %v6767_v41, %v13623_v36  ;;  %v6916_v28 = vmax.f32 %v6915_v4, %v5693_v34  ;;  %9132 = vmatmul.mubr.bf16.vlgmr.msra.gmra.mrb[104].mxu0 %v13791_v29  ;;  %9278 = vmatpush1.bf16.msra.mxu1 %v11408_v39  ;;  %v5695_v53 = vpop.f32.mrb[62].mxu1  ;;  %v11441_v36 = vld [vmem:[%s14617_s7 + $0x420] ss:$16 sps:$4 sm:$0xff]   ;;  %v11425_v47 = vld [vmem:[%s14617_s7 + $0x38c] ss:$16 sps:$4 sm:$0xff]  }
 0x612   : > { %v6896_v35 = vmax.f32 %v6895_v13, %v5695_v53  ;;  %v5697_v19 = vpop.f32.mrb[63].mxu1  ;;  %9279 = vmatprep.subr.bf16.mxu1 %v11413_v32  ;;  %9141 = vmatpush1.bf16.msra.mxu0 %v11435_v25  ;;  %v11459_v39 = vld [vmem:[%s14617_s7 + $0x480] ss:$16 sps:$4 sm:$0xff]   ;;  %v11467_v32 = vld [vmem:[%s14617_s7 + $0x4a4] ss:$16 sps:$4 sm:$0xff]  }
 0x613   : > { %v6917_v1 = vmax.f32 %v6916_v28, %v5697_v19  ;;  %9142 = vmatprep.subr.bf16.mxu0 %v11443_v51  ;;  %v11428_v53 = vld [vmem:[%s14617_s7 + $0x3ac] ss:$16 sps:$4 sm:$0xff]  }
 0x614   : > { %v5068_v12 = vpop.f32.mrb[32].mxu0 }
 0x615   : > { %v6863_v52 = vmax.f32 %v6862_v9, %v5068_v12  ;;  %9280 = vmatpush1.bf16.msra.mxu1 %v11411_v59  ;;  %v5070_v45 = vpop.f32.mrb[33].mxu0  ;;  %v11465_v59 = vld [vmem:[%s14617_s7 + $0x4a0] ss:$16 sps:$4 sm:$0xff]  }
 0x616   : > { %v6884_v44 = vmax.f32 %v6883_v37, %v5070_v45  ;;  %v5072_v56 = vpop.f32.mrb[34].mxu0  ;;  %9281 = vmatprep.subr.bf16.mxu1 %v11416_v40  ;;  %9143 = vmatpush1.bf16.msra.mxu0 %v11441_v36  ;;  %v11423_v37 = vld [vmem:[%s14617_s7 + $0x388] ss:$16 sps:$4 sm:$0xff]   ;;  %v11473_v40 = vld [vmem:[%s14617_s7 + $0x4c4] ss:$16 sps:$4 sm:$0xff]  }
 0x617   : > { %v6864_v14 = vmax.f32 %v6863_v52, %v5072_v56  ;;  %v5074_v23 = vpop.f32.mrb[35].mxu0  ;;  %v5701_v62 = vpop.f32.mrb[64].mxu1  ;;  %9144 = vmatprep.subr.bf16.mxu0 %v11449_v10  ;;  %v11426_v52 = vld [vmem:[%s14617_s7 + $0x3a8] ss:$16 sps:$4 sm:$0xff]   ;;  %v11471_v56 = vld [vmem:[%s14617_s7 + $0x4c0] ss:$16 sps:$4 sm:$0xff]  }
 0x618   : > { %v6885_v11 = vmax.f32 %v6884_v44, %v5074_v23  ;;  %v6897_v57 = vmax.f32 %v6896_v35, %v5701_v62  ;;  %v5703_v42 = vpop.f32.mrb[65].mxu1  ;;  %v11431_v44 = vld [vmem:[%s14617_s7 + $0x3cc] ss:$16 sps:$4 sm:$0xff]   ;;  %v11479_v62 = vld [vmem:[%s14617_s7 + $0x4e4] ss:$16 sps:$4 sm:$0xff]  }
 0x619   : > { %v6918_v27 = vmax.f32 %v6917_v1, %v5703_v42  ;;  %9282 = vmatpush1.bf16.msra.mxu1 %v11414_v0  ;;  %v5705_v55 = vpop.f32.mrb[66].mxu1 }
 0x61a   : > { %v6898_v6 = vmax.f32 %v6897_v57, %v5705_v55  ;;  %v5707_v15 = vpop.f32.mrb[67].mxu1  ;;  %9283 = vmatprep.subr.bf16.mxu1 %v11419_v58  ;;  %9145 = vmatpush1.bf16.msra.mxu0 %v11447_v24 }
 0x61b   : > { %v6919_v21 = vmax.f32 %v6918_v27, %v5707_v15  ;;  %9146 = vmatprep.subr.bf16.mxu0 %v11455_v38 }
 0x61c   : > { %v5078_v4 = vpop.f32.mrb[36].mxu0 }
 0x61d   : > { %v6865_v3 = vmax.f32 %v6864_v14, %v5078_v4  ;;  %9284 = vmatpush1.bf16.msra.mxu1 %v11417_v50  ;;  %v5080_v48 = vpop.f32.mrb[37].mxu0 }
 0x61e   : > { %v6886_v22 = vmax.f32 %v6885_v11, %v5080_v48  ;;  %v5082_v8 = vpop.f32.mrb[38].mxu0  ;;  %9285 = vmatprep.subr.bf16.mxu1 %v11422_v46  ;;  %9147 = vmatpush1.bf16.msra.mxu0 %v11453_v33  ;;  %v11485_v48 = vld [vmem:[%s14617_s7 + $0x504] ss:$16 sps:$4 sm:$0xff]  }
 0x61f   : > { %v6866_v17 = vmax.f32 %v6865_v3, %v5082_v8  ;;  %v5084_v61 = vpop.f32.mrb[39].mxu0  ;;  %v5711_v43 = vpop.f32.mrb[68].mxu1  ;;  %9148 = vmatprep.subr.bf16.mxu0 %v11461_v60  ;;  %v11477_v60 = vld [vmem:[%s14617_s7 + $0x4e0] ss:$16 sps:$4 sm:$0xff]  }
 0x620   : > { %v6887_v25 = vmax.f32 %v6886_v22, %v5084_v61  ;;  %v6899_v41 = vmax.f32 %v6898_v6, %v5711_v43  ;;  %v5713_v9 = vpop.f32.mrb[69].mxu1  ;;  %v11429_v6 = vld [vmem:[%s14617_s7 + $0x3c8] ss:$16 sps:$4 sm:$0xff]  }
 0x621   : > { %v6867_v16 = vrot.slane %v6866_v17, 4  ;;  %v6920_v7 = vmax.f32 %v6919_v21, %v5713_v9  ;;  %9286 = vmatpush1.bf16.msra.mxu1 %v11420_v30  ;;  %v5715_v51 = vpop.f32.mrb[70].mxu1  ;;  %v11434_v21 = vld [vmem:[%s14617_s7 + $0x3ec] ss:$16 sps:$4 sm:$0xff]  }
 0x622   : > { %v6888_v13 = vrot.slane %v6887_v25, 4  ;;  %v6900_v34 = vmax.f32 %v6899_v41, %v5715_v51  ;;  %v5717_v28 = vpop.f32.mrb[71].mxu1  ;;  %9287 = vmatprep.subr.bf16.mxu1 %v11425_v47  ;;  %9149 = vmatpush1.bf16.msra.mxu0 %v11459_v39 }
 0x623   : > { %v6868_v35 = vmax.f32 %v6866_v17, %v6867_v16  ;;  %v6921_v19 = vmax.f32 %v6920_v7, %v5717_v28  ;;  %9150 = vmatprep.subr.bf16.mxu0 %v11467_v32  ;;  %v11432_v17 = vld [vmem:[%s14617_s7 + $0x3e8] ss:$16 sps:$4 sm:$0xff]   ;;  %v11440_v32 = vld [vmem:[%s14617_s7 + $0x40c] ss:$16 sps:$4 sm:$0xff]   ;;  %v11491_v7 = vld [vmem:[%s14617_s7 + $0x524] ss:$16 sps:$4 sm:$0xff]  }
 0x624   : > { %v6889_v36 = vmax.f32 %v6887_v25, %v6888_v13  ;;  %v5088_v1 = vpop.f32.mrb[40].mxu0 }
 0x625   : > { %v6869_v10 = vrot.slane %v6868_v35, 2  ;;  %9288 = vmatpush1.bf16.msra.mxu1 %v11423_v37  ;;  %v5090_v12 = vpop.f32.mrb[41].mxu0 }
 0x626   : > { %v6890_v45 = vrot.slane %v6889_v36, 2  ;;  %v5092_v0 = vpop.f32.mrb[42].mxu0  ;;  %9289 = vmatprep.subr.bf16.mxu1 %v11428_v53  ;;  %9151 = vmatpush1.bf16.msra.mxu0 %v11465_v59  ;;  %v11438_v53 = vld [vmem:[%s14617_s7 + $0x408] ss:$16 sps:$4 sm:$0xff]  }
 0x627   : > { %v6870_v58 = vmax.f32 %v6868_v35, %v6869_v10  ;;  %v7020_v24 = vmax.f32 %v5088_v1, %v5092_v0  ;;  %v5094_v14 = vpop.f32.mrb[43].mxu0  ;;  %v5721_v23 = vpop.f32.mrb[72].mxu1  ;;  %9152 = vmatprep.subr.bf16.mxu0 %v11473_v40  ;;  %v11446_v35 = vld [vmem:[%s14617_s7 + $0x42c] ss:$16 sps:$4 sm:$0xff]  }
 0x628   : > { %v6891_v38 = vmax.f32 %v6889_v36, %v6890_v45  ;;  %v7041_v11 = vmax.f32 %v5090_v12, %v5094_v14  ;;  %v6901_v57 = vmax.f32 %v6900_v34, %v5721_v23  ;;  %v5723_v42 = vpop.f32.mrb[73].mxu1  ;;  %v11497_v36 = vld [vmem:[%s14617_s7 + $0x544] ss:$16 sps:$4 sm:$0xff]  }
 0x629   : > { %v6871_v27 = vrot.slane %v6870_v58, 1  ;;  %v6922_v55 = vmax.f32 %v6921_v19, %v5723_v42  ;;  %9290 = vmatpush1.bf16.msra.mxu1 %v11426_v52  ;;  %v5725_v50 = vpop.f32.mrb[74].mxu1  ;;  %v11489_v19 = vld [vmem:[%s14617_s7 + $0x520] ss:$16 sps:$4 sm:$0xff]   ;;  %v11444_v52 = vld [vmem:[%s14617_s7 + $0x428] ss:$16 sps:$4 sm:$0xff]  }
 0x62a   : > { %v6892_v15 = vrot.slane %v6891_v38, 1  ;;  %v6902_v46 = vmax.f32 %v6901_v57, %v5725_v50  ;;  %v5727_v33 = vpop.f32.mrb[75].mxu1  ;;  %9291 = vmatprep.subr.bf16.mxu1 %v11431_v44  ;;  %9153 = vmatpush1.bf16.msra.mxu0 %v11471_v56  ;;  %v11452_v44 = vld [vmem:[%s14617_s7 + $0x44c] ss:$16 sps:$4 sm:$0xff]   ;;  %v11503_v14 = vld [vmem:[%s14617_s7 + $0x564] ss:$16 sps:$4 sm:$0xff]  }
 0x62b   : > { %v6872_v4 = vmax.f32 %v6870_v58, %v6871_v27  ;;  %v6923_v3 = vmax.f32 %v6922_v55, %v5727_v33  ;;  %9154 = vmatprep.subr.bf16.mxu0 %v11479_v62  ;;  %v11450_v42 = vld [vmem:[%s14617_s7 + $0x448] ss:$16 sps:$4 sm:$0xff]   ;;  %v11458_v50 = vld [vmem:[%s14617_s7 + $0x46c] ss:$16 sps:$4 sm:$0xff]  }
 0x62c   : > { %v6893_v30 = vmax.f32 %v6891_v38, %v6892_v15  ;;  %v5098_v22 = vpop.f32.mrb[44].mxu0 }
 0x62d   : > { %v13891_v8 = vsel %vm7344_vm7, %v6872_v4, %v13678_v31  ;;  %v7021_v47 = vmax.f32 %v7020_v24, %v5098_v22  ;;  %9292 = vmatpush1.bf16.msra.mxu1 %v11429_v6  ;;  %v5100_v39 = vpop.f32.mrb[45].mxu0  ;;  %v11483_v31 = vld [vmem:[%s14617_s7 + $0x500] ss:$16 sps:$4 sm:$0xff]   ;;  %v11456_v4 = vld [vmem:[%s14617_s7 + $0x468] ss:$16 sps:$4 sm:$0xff]  }
 0x62e   : > { %v7042_v61 = vmax.f32 %v7041_v11, %v5100_v39  ;;  %v5102_v43 = vpop.f32.mrb[46].mxu0  ;;  %9293 = vmatprep.subr.bf16.mxu1 %v11434_v21  ;;  %9155 = vmatpush1.bf16.msra.mxu0 %v11477_v60  ;;  %v13904_v25 = vsel %vm7344_vm7, %v6893_v30, %v13683_v18  ;;  %v11501_v6 = vld [vmem:[%s14617_s7 + $0x560] ss:$16 sps:$4 sm:$0xff]   ;;  %v11464_v30 = vld [vmem:[%s14617_s7 + $0x48c] ss:$16 sps:$4 sm:$0xff]  }
 0x62f   : > { %v7022_v41 = vmax.f32 %v7021_v47, %v5102_v43  ;;  %v5104_v9 = vpop.f32.mrb[47].mxu0  ;;  %v5731_v16 = vpop.f32.mrb[76].mxu1  ;;  %9156 = vmatprep.subr.bf16.mxu0 %v11485_v48  ;;  %v11507_v22 = vld [vmem:[%s14617_s7 + $0x580] ss:$16 sps:$4 sm:$0xff]  }
 0x630   : > { %v7043_v51 = vmax.f32 %v7042_v61, %v5104_v9  ;;  %v6903_v37 = vmax.f32 %v6902_v46, %v5731_v16  ;;  %v5733_v13 = vpop.f32.mrb[77].mxu1  ;;  %v11509_v46 = vld [vmem:[%s14617_s7 + $0x584] ss:$16 sps:$4 sm:$0xff]   ;;  %v11462_v16 = vld [vmem:[%s14617_s7 + $0x488] ss:$16 sps:$4 sm:$0xff]  }
 0x631   : > { %v6924_v34 = vmax.f32 %v6923_v3, %v5733_v13  ;;  %9294 = vmatpush1.bf16.msra.mxu1 %v11432_v17  ;;  %v5735_v28 = vpop.f32.mrb[78].mxu1  ;;  %v11515_v61 = vld [vmem:[%s14617_s7 + $0x5a4] ss:$16 sps:$4 sm:$0xff]   ;;  %v11513_v13 = vld [vmem:[%s14617_s7 + $0x5a0] ss:$16 sps:$4 sm:$0xff]  }
 0x632   : > { %v6904_v18 = vmax.f32 %v6903_v37, %v5735_v28  ;;  %v5737_v59 = vpop.f32.mrb[79].mxu1  ;;  %9304 = vmatprep.subr.bf16.mxu1 %v11440_v32  ;;  %9157 = vmatpush1.bf16.msra.mxu0 %v11483_v31  ;;  %v11470_v37 = vld [vmem:[%s14617_s7 + $0x4ac] ss:$16 sps:$4 sm:$0xff]   ;;  %v11521_v28 = vld [vmem:[%s14617_s7 + $0x5c4] ss:$16 sps:$4 sm:$0xff]  }
 0x633   : > { %v6925_v40 = vmax.f32 %v6924_v34, %v5737_v59  ;;  %9158 = vmatprep.subr.bf16.mxu0 %v11491_v7 }
 0x634   : > { %9296 = vmatmul.mubr.bf16.vlgmr.msra.gmra.mrb[152].mxu1 %v13791_v29  ;;  %v5108_v1 = vpop.f32.mrb[48].mxu0  ;;  %v11495_v29 = vld [vmem:[%s14617_s7 + $0x540] ss:$16 sps:$4 sm:$0xff]  }
 0x635   : > { %v7023_v10 = vmax.f32 %v7022_v41, %v5108_v1  ;;  %v5110_v12 = vpop.f32.mrb[49].mxu0  ;;  %9305 = vmatpush1.bf16.msra.mxu1 %v11438_v53 }
 0x636   : > { %v7044_v45 = vmax.f32 %v7043_v51, %v5110_v12  ;;  %v5112_v0 = vpop.f32.mrb[50].mxu0  ;;  %9306 = vmatprep.subr.bf16.mxu1 %v11446_v35  ;;  %9159 = vmatpush1.bf16.msra.mxu0 %v11489_v19  ;;  %v11476_v12 = vld [vmem:[%s14617_s7 + $0x4cc] ss:$16 sps:$4 sm:$0xff]  }
 0x637   : > { %v7024_v56 = vmax.f32 %v7023_v10, %v5112_v0  ;;  %v5114_v58 = vpop.f32.mrb[51].mxu0  ;;  %v5741_v24 = vpop.f32.mrb[80].mxu1  ;;  %9160 = vmatprep.subr.bf16.mxu0 %v11497_v36 }
 0x638   : > { %v7045_v23 = vmax.f32 %v7044_v45, %v5114_v58  ;;  %v6905_v62 = vmax.f32 %v6904_v18, %v5741_v24  ;;  %v5743_v38 = vpop.f32.mrb[81].mxu1 }
 0x639   : > { %v6926_v11 = vmax.f32 %v6925_v40, %v5743_v38  ;;  %v5745_v57 = vpop.f32.mrb[82].mxu1  ;;  %9307 = vmatpush1.bf16.msra.mxu1 %v11444_v52  ;;  %v11468_v40 = vld [vmem:[%s14617_s7 + $0x4a8] ss:$16 sps:$4 sm:$0xff]   ;;  %v11519_v52 = vld [vmem:[%s14617_s7 + $0x5c0] ss:$16 sps:$4 sm:$0xff]  }
 0x63a   : > { %v6906_v27 = vmax.f32 %v6905_v62, %v5745_v57  ;;  %v5747_v55 = vpop.f32.mrb[83].mxu1  ;;  %9308 = vmatprep.subr.bf16.mxu1 %v11452_v44  ;;  %9161 = vmatpush1.bf16.msra.mxu0 %v11495_v29  ;;  %v11474_v38 = vld [vmem:[%s14617_s7 + $0x4c8] ss:$16 sps:$4 sm:$0xff]  }
 0x63b   : > { %v6927_v15 = vmax.f32 %v6926_v11, %v5747_v55  ;;  %9162 = vmatprep.subr.bf16.mxu0 %v11503_v14  ;;  %v11525_v55 = vld [vmem:[%s14617_s7 + $0x5e0] ss:$16 sps:$4 sm:$0xff]  }
 0x63c   : > { %v5118_v33 = vpop.f32.mrb[52].mxu0 }
 0x63d   : > { %v7025_v21 = vmax.f32 %v7024_v56, %v5118_v33  ;;  %v5120_v60 = vpop.f32.mrb[53].mxu0  ;;  %9309 = vmatpush1.bf16.msra.mxu1 %v11450_v42  ;;  %v11527_v56 = vld [vmem:[%s14617_s7 + $0x5e4] ss:$16 sps:$4 sm:$0xff]  }
 0x63e   : > { %v7046_v3 = vmax.f32 %v7045_v23, %v5120_v60  ;;  %v5122_v48 = vpop.f32.mrb[54].mxu0  ;;  %9310 = vmatprep.subr.bf16.mxu1 %v11458_v50  ;;  %9163 = vmatpush1.bf16.msra.mxu0 %v11501_v6 }
 0x63f   : > { %v7026_v47 = vmax.f32 %v7025_v21, %v5122_v48  ;;  %v5124_v39 = vpop.f32.mrb[55].mxu0  ;;  %v5751_v17 = vpop.f32.mrb[84].mxu1  ;;  %9164 = vmatprep.subr.bf16.mxu0 %v11509_v46 }
 0x640   : > { %v7047_v43 = vmax.f32 %v7046_v3, %v5124_v39  ;;  %v6907_v32 = vmax.f32 %v6906_v27, %v5751_v17  ;;  %v5753_v31 = vpop.f32.mrb[85].mxu1  ;;  %v11482_v27 = vld [vmem:[%s14617_s7 + $0x4ec] ss:$16 sps:$4 sm:$0xff]   ;;  %v11480_v3 = vld [vmem:[%s14617_s7 + $0x4e8] ss:$16 sps:$4 sm:$0xff]  }
 0x641   : > { %v6928_v41 = vmax.f32 %v6927_v15, %v5753_v31  ;;  %v5755_v9 = vpop.f32.mrb[86].mxu1  ;;  %9311 = vmatpush1.bf16.msra.mxu1 %v11456_v4  ;;  %v11533_v15 = vld [vmem:[%s14617_s7 + $0x604] ss:$16 sps:$4 sm:$0xff]  }
 0x642   : > { %v6908_v7 = vmax.f32 %v6907_v32, %v5755_v9  ;;  %v5757_v51 = vpop.f32.mrb[87].mxu1  ;;  %9312 = vmatprep.subr.bf16.mxu1 %v11464_v30  ;;  %9165 = vmatpush1.bf16.msra.mxu0 %v11507_v22 }
 0x643   : > { %v6929_v34 = vmax.f32 %v6928_v41, %v5757_v51  ;;  %9166 = vmatprep.subr.bf16.mxu0 %v11515_v61  ;;  %v11486_v51 = vld [vmem:[%s14617_s7 + $0x508] ss:$16 sps:$4 sm:$0xff]  }
 0x644   : > { %v6909_v53 = vrot.slane %v6908_v7, 4  ;;  %v5128_v18 = vpop.f32.mrb[56].mxu0 }
 0x645   : > { %v6930_v59 = vrot.slane %v6929_v34, 4  ;;  %v7027_v35 = vmax.f32 %v7026_v47, %v5128_v18  ;;  %v5130_v19 = vpop.f32.mrb[57].mxu0  ;;  %9313 = vmatpush1.bf16.msra.mxu1 %v11462_v16  ;;  %v11488_v47 = vld [vmem:[%s14617_s7 + $0x50c] ss:$16 sps:$4 sm:$0xff]  }
 0x646   : > { %v6910_v36 = vmax.f32 %v6908_v7, %v6909_v53  ;;  %v7048_v1 = vmax.f32 %v7047_v43, %v5130_v19  ;;  %v5132_v10 = vpop.f32.mrb[58].mxu0  ;;  %9314 = vmatprep.subr.bf16.mxu1 %v11470_v37  ;;  %9167 = vmatpush1.bf16.msra.mxu0 %v11513_v13 }
 0x647   : > { %v6931_v45 = vmax.f32 %v6929_v34, %v6930_v59  ;;  %v7028_v0 = vmax.f32 %v7027_v35, %v5132_v10  ;;  %v5134_v44 = vpop.f32.mrb[59].mxu0  ;;  %v5761_v29 = vpop.f32.mrb[88].mxu1  ;;  %9168 = vmatprep.subr.bf16.mxu0 %v11521_v28  ;;  %v11492_v35 = vld [vmem:[%s14617_s7 + $0x528] ss:$16 sps:$4 sm:$0xff]  }
 0x648   : > { %v6911_v58 = vrot.slane %v6910_v36, 2  ;;  %v7049_v24 = vmax.f32 %v7048_v1, %v5134_v44  ;;  %v5763_v14 = vpop.f32.mrb[89].mxu1 }
 0x649   : > { %v6932_v23 = vrot.slane %v6931_v45, 2  ;;  %v5765_v62 = vpop.f32.mrb[90].mxu1  ;;  %9315 = vmatpush1.bf16.msra.mxu1 %v11468_v40 }
 0x64a   : > { %v6912_v11 = vmax.f32 %v6910_v36, %v6911_v58  ;;  %v7062_v57 = vmax.f32 %v5761_v29, %v5765_v62  ;;  %v5767_v42 = vpop.f32.mrb[91].mxu1  ;;  %9316 = vmatprep.subr.bf16.mxu1 %v11476_v12  ;;  %9169 = vmatpush1.bf16.msra.mxu0 %v11519_v52  ;;  %v11498_v29 = vld [vmem:[%s14617_s7 + $0x548] ss:$16 sps:$4 sm:$0xff]  }
 0x64b   : > { %v6933_v50 = vmax.f32 %v6931_v45, %v6932_v23  ;;  %v7083_v6 = vmax.f32 %v5763_v14, %v5767_v42  ;;  %9170 = vmatprep.subr.bf16.mxu0 %v11527_v56 }
 0x64c   : > { %v6913_v46 = vrot.slane %v6912_v11, 1  ;;  %v5138_v33 = vpop.f32.mrb[60].mxu0 }
 0x64d   : > { %v6934_v21 = vrot.slane %v6933_v50, 1  ;;  %v7029_v60 = vmax.f32 %v7028_v0, %v5138_v33  ;;  %v5140_v4 = vpop.f32.mrb[61].mxu0  ;;  %9317 = vmatpush1.bf16.msra.mxu1 %v11474_v38 }
 0x64e   : > { %v6914_v48 = vmax.f32 %v6912_v11, %v6913_v46  ;;  %v7050_v30 = vmax.f32 %v7049_v24, %v5140_v4  ;;  %v5142_v22 = vpop.f32.mrb[62].mxu0  ;;  %9318 = vmatprep.subr.bf16.mxu1 %v11482_v27  ;;  %9171 = vmatpush1.bf16.msra.mxu0 %v11525_v55  ;;  %v11506_v24 = vld [vmem:[%s14617_s7 + $0x56c] ss:$16 sps:$4 sm:$0xff]   ;;  %v11504_v11 = vld [vmem:[%s14617_s7 + $0x568] ss:$16 sps:$4 sm:$0xff]  }
 0x64f   : > { %v6935_v39 = vmax.f32 %v6933_v50, %v6934_v21  ;;  %v7030_v17 = vmax.f32 %v7029_v60, %v5142_v22  ;;  %v5144_v61 = vpop.f32.mrb[63].mxu0  ;;  %v5771_v43 = vpop.f32.mrb[92].mxu1  ;;  %9181 = vmatprep.subr.bf16.mxu0 %v11533_v15  ;;  %v11512_v27 = vld [vmem:[%s14617_s7 + $0x58c] ss:$16 sps:$4 sm:$0xff]  }
 0x650   : > { %v14002_v32 = vsel %vm7344_vm7, %v6914_v48, %v13798_v63  ;;  %v7051_v31 = vmax.f32 %v7050_v30, %v5144_v61  ;;  %v7063_v41 = vmax.f32 %v7062_v57, %v5771_v43  ;;  %v5773_v9 = vpop.f32.mrb[93].mxu1  ;;  %v11494_v63 = vld [vmem:[%s14617_s7 + $0x52c] ss:$16 sps:$4 sm:$0xff]  }
 0x651   : > { %v7084_v16 = vmax.f32 %v7083_v6, %v5773_v9  ;;  %v5775_v7 = vpop.f32.mrb[94].mxu1  ;;  %9319 = vmatpush1.bf16.msra.mxu1 %v11480_v3  ;;  %v14009_v37 = vsel %vm7344_vm7, %v6935_v39, %v13802_v54  ;;  %v11500_v54 = vld [vmem:[%s14617_s7 + $0x54c] ss:$16 sps:$4 sm:$0xff]   ;;  %v11510_v3 = vld [vmem:[%s14617_s7 + $0x588] ss:$16 sps:$4 sm:$0xff]  }
 0x652   : > { %v7064_v13 = vmax.f32 %v7063_v41, %v5775_v7  ;;  %v5777_v34 = vpop.f32.mrb[95].mxu1  ;;  %9320 = vmatprep.subr.bf16.mxu1 %v11488_v47  ;;  %v11518_v47 = vld [vmem:[%s14617_s7 + $0x5ac] ss:$16 sps:$4 sm:$0xff]   ;;  %v11516_v9 = vld [vmem:[%s14617_s7 + $0x5a8] ss:$16 sps:$4 sm:$0xff]  }
 0x653   : > { %v7085_v28 = vmax.f32 %v7084_v16, %v5777_v34 }
 0x654   : > { %v5148_v53 = vpop.f32.mrb[64].mxu0 }
 0x655   : > { %v7031_v18 = vmax.f32 %v7030_v17, %v5148_v53  ;;  %v5150_v59 = vpop.f32.mrb[65].mxu0  ;;  %9321 = vmatpush1.bf16.msra.mxu1 %v11486_v51  ;;  %v11524_v51 = vld [vmem:[%s14617_s7 + $0x5cc] ss:$16 sps:$4 sm:$0xff]  }
 0x656   : > { %v7052_v19 = vmax.f32 %v7051_v31, %v5150_v59  ;;  %v5152_v40 = vpop.f32.mrb[66].mxu0  ;;  %9322 = vmatprep.subr.bf16.mxu1 %v11494_v63 }
 0x657   : > { %v7032_v36 = vmax.f32 %v7031_v18, %v5152_v40  ;;  %v5154_v1 = vpop.f32.mrb[67].mxu0  ;;  %v5781_v10 = vpop.f32.mrb[96].mxu1 }
 0x658   : > { %v7053_v12 = vmax.f32 %v7052_v19, %v5154_v1  ;;  %v7065_v52 = vmax.f32 %v7064_v13, %v5781_v10  ;;  %v5783_v45 = vpop.f32.mrb[97].mxu1 }
 0x659   : > { %v7086_v0 = vmax.f32 %v7085_v28, %v5783_v45  ;;  %v5785_v44 = vpop.f32.mrb[98].mxu1  ;;  %9323 = vmatpush1.bf16.msra.mxu1 %v11492_v35 }
 0x65a   : > { %v7066_v56 = vmax.f32 %v7065_v52, %v5785_v44  ;;  %v5787_v58 = vpop.f32.mrb[99].mxu1  ;;  %9324 = vmatprep.subr.bf16.mxu1 %v11500_v54  ;;  %v11530_v52 = vld [vmem:[%s14617_s7 + $0x5ec] ss:$16 sps:$4 sm:$0xff]  }
 0x65b   : > { %v7087_v14 = vmax.f32 %v7086_v0, %v5787_v58 }
 0x65c   : > { %v5158_v23 = vpop.f32.mrb[68].mxu0 }
 0x65d   : > { %v7033_v62 = vmax.f32 %v7032_v36, %v5158_v23  ;;  %v5160_v38 = vpop.f32.mrb[69].mxu0  ;;  %9325 = vmatpush1.bf16.msra.mxu1 %v11498_v29  ;;  %v11522_v36 = vld [vmem:[%s14617_s7 + $0x5c8] ss:$16 sps:$4 sm:$0xff]  }
 0x65e   : > { %v7054_v57 = vmax.f32 %v7053_v12, %v5160_v38  ;;  %v5162_v42 = vpop.f32.mrb[70].mxu0  ;;  %9326 = vmatprep.subr.bf16.mxu1 %v11506_v24 }
 0x65f   : > { %v7034_v55 = vmax.f32 %v7033_v62, %v5162_v42  ;;  %v5164_v50 = vpop.f32.mrb[71].mxu0  ;;  %v5791_v6 = vpop.f32.mrb[100].mxu1 }
 0x660   : > { %v7055_v15 = vmax.f32 %v7054_v57, %v5164_v50  ;;  %v7067_v46 = vmax.f32 %v7066_v56, %v5791_v6  ;;  %v5793_v33 = vpop.f32.mrb[101].mxu1 }
 0x661   : > { %v7035_v21 = vrot.slane %v7034_v55, 4  ;;  %v7088_v60 = vmax.f32 %v7087_v14, %v5793_v33  ;;  %v5795_v4 = vpop.f32.mrb[102].mxu1  ;;  %9327 = vmatpush1.bf16.msra.mxu1 %v11504_v11  ;;  %v11528_v14 = vld [vmem:[%s14617_s7 + $0x5e8] ss:$16 sps:$4 sm:$0xff]   ;;  %v11536_v11 = vld [vmem:[%s14617_s7 + $0x60c] ss:$16 sps:$4 sm:$0xff]  }
 0x662   : > { %v7056_v48 = vrot.slane %v7055_v15, 4  ;;  %v7068_v30 = vmax.f32 %v7067_v46, %v5795_v4  ;;  %v5797_v22 = vpop.f32.mrb[103].mxu1  ;;  %9328 = vmatprep.subr.bf16.mxu1 %v11512_v27 }
 0x663   : > { %v7036_v39 = vmax.f32 %v7034_v55, %v7035_v21  ;;  %v7089_v17 = vmax.f32 %v7088_v60, %v5797_v22 }
 0x664   : > { %v7057_v61 = vmax.f32 %v7055_v15, %v7056_v48  ;;  %v5168_v43 = vpop.f32.mrb[72].mxu0 }
 0x665   : > { %v7037_v31 = vrot.slane %v7036_v39, 2  ;;  %v5170_v41 = vpop.f32.mrb[73].mxu0  ;;  %9329 = vmatpush1.bf16.msra.mxu1 %v11510_v3 }
 0x666   : > { %v7058_v16 = vrot.slane %v7057_v61, 2  ;;  %v5172_v7 = vpop.f32.mrb[74].mxu0  ;;  %9330 = vmatprep.subr.bf16.mxu1 %v11518_v47 }
 0x667   : > { %v7038_v13 = vmax.f32 %v7036_v39, %v7037_v31  ;;  %v7188_v34 = vmax.f32 %v5168_v43, %v5172_v7  ;;  %v5174_v63 = vpop.f32.mrb[75].mxu0  ;;  %v5801_v28 = vpop.f32.mrb[104].mxu1 }
 0x668   : > { %v7059_v53 = vmax.f32 %v7057_v61, %v7058_v16  ;;  %v7209_v18 = vmax.f32 %v5170_v41, %v5174_v63  ;;  %v7069_v59 = vmax.f32 %v7068_v30, %v5801_v28  ;;  %v5803_v35 = vpop.f32.mrb[105].mxu1 }
 0x669   : > { %v7039_v19 = vrot.slane %v7038_v13, 1  ;;  %v7090_v40 = vmax.f32 %v7089_v17, %v5803_v35  ;;  %v5805_v54 = vpop.f32.mrb[106].mxu1  ;;  %9331 = vmatpush1.bf16.msra.mxu1 %v11516_v9 }
 0x66a   : > { %v7060_v1 = vrot.slane %v7059_v53, 1  ;;  %v7070_v10 = vmax.f32 %v7069_v59, %v5805_v54  ;;  %v5807_v12 = vpop.f32.mrb[107].mxu1  ;;  %9332 = vmatprep.subr.bf16.mxu1 %v11524_v51 }
 0x66b   : > { %v7040_v45 = vmax.f32 %v7038_v13, %v7039_v19  ;;  %v7091_v0 = vmax.f32 %v7090_v40, %v5807_v12 }
 0x66c   : > { %v7061_v44 = vmax.f32 %v7059_v53, %v7060_v1  ;;  %v5178_v29 = vpop.f32.mrb[76].mxu0 }
 0x66d   : > { %v14052_v56 = vsel %vm7346_vm8, %v7040_v45, %v13891_v8  ;;  %v7189_v58 = vmax.f32 %v7188_v34, %v5178_v29  ;;  %v5180_v24 = vpop.f32.mrb[77].mxu0  ;;  %9333 = vmatpush1.bf16.msra.mxu1 %v11522_v36 }
 0x66e   : > { %v7210_v23 = vmax.f32 %v7209_v18, %v5180_v24  ;;  %v5182_v62 = vpop.f32.mrb[78].mxu0  ;;  %9334 = vmatprep.subr.bf16.mxu1 %v11530_v52  ;;  %v14059_v38 = vsel %vm7346_vm8, %v7061_v44, %v13904_v25 }
 0x66f   : > { %v7190_v8 = vmax.f32 %v7189_v58, %v5182_v62  ;;  %v5184_v57 = vpop.f32.mrb[79].mxu0  ;;  %v5811_v42 = vpop.f32.mrb[108].mxu1 }
 0x670   : > { %v7211_v27 = vmax.f32 %v7210_v23, %v5184_v57  ;;  %v7071_v55 = vmax.f32 %v7070_v10, %v5811_v42  ;;  %v5813_v50 = vpop.f32.mrb[109].mxu1 }
 0x671   : > { %v7092_v6 = vmax.f32 %v7091_v0, %v5813_v50  ;;  %v5815_v15 = vpop.f32.mrb[110].mxu1  ;;  %9335 = vmatpush1.bf16.msra.mxu1 %v11528_v14 }
 0x672   : > { %v7072_v46 = vmax.f32 %v7071_v55, %v5815_v15  ;;  %v5817_v33 = vpop.f32.mrb[111].mxu1  ;;  %9345 = vmatprep.subr.bf16.mxu1 %v11536_v11 }
 0x673   : > { %v7093_v21 = vmax.f32 %v7092_v6, %v5817_v33 }
 0x674   : > { %v5188_v60 = vpop.f32.mrb[80].mxu0 }
 0x675   : > { %v7191_v25 = vmax.f32 %v7190_v8, %v5188_v60  ;;  %v5190_v4 = vpop.f32.mrb[81].mxu0 }
 0x676   : > { %v7212_v3 = vmax.f32 %v7211_v27, %v5190_v4  ;;  %v5192_v48 = vpop.f32.mrb[82].mxu0 }
 0x677   : > { %v7192_v30 = vmax.f32 %v7191_v25, %v5192_v48  ;;  %v5194_v22 = vpop.f32.mrb[83].mxu0  ;;  %v5821_v47 = vpop.f32.mrb[112].mxu1 }
 0x678   : > { %v7213_v39 = vmax.f32 %v7212_v3, %v5194_v22  ;;  %v7073_v17 = vmax.f32 %v7072_v46, %v5821_v47  ;;  %v5823_v61 = vpop.f32.mrb[113].mxu1 }
 0x679   : > { %v7094_v43 = vmax.f32 %v7093_v21, %v5823_v61  ;;  %v5825_v31 = vpop.f32.mrb[114].mxu1 }
 0x67a   : > { %v7074_v41 = vmax.f32 %v7073_v17, %v5825_v31  ;;  %v5827_v9 = vpop.f32.mrb[115].mxu1 }
 0x67b   : > { %v7095_v16 = vmax.f32 %v7094_v43, %v5827_v9 }
 0x67c   : > { %v5198_v7 = vpop.f32.mrb[84].mxu0 }
 0x67d   : > { %v7193_v51 = vmax.f32 %v7192_v30, %v5198_v7  ;;  %v5200_v13 = vpop.f32.mrb[85].mxu0 }
 0x67e   : > { %v7214_v34 = vmax.f32 %v7213_v39, %v5200_v13  ;;  %v5202_v63 = vpop.f32.mrb[86].mxu0 }
 0x67f   : > { %v7194_v28 = vmax.f32 %v7193_v51, %v5202_v63  ;;  %v5204_v53 = vpop.f32.mrb[87].mxu0  ;;  %v5831_v18 = vpop.f32.mrb[116].mxu1 }
 0x680   : > { %v7215_v59 = vmax.f32 %v7214_v34, %v5204_v53  ;;  %v7075_v35 = vmax.f32 %v7074_v41, %v5831_v18  ;;  %v5833_v19 = vpop.f32.mrb[117].mxu1 }
 0x681   : > { %v7096_v40 = vmax.f32 %v7095_v16, %v5833_v19  ;;  %v5835_v54 = vpop.f32.mrb[118].mxu1 }
 0x682   : > { %v7076_v36 = vmax.f32 %v7075_v35, %v5835_v54  ;;  %v5837_v1 = vpop.f32.mrb[119].mxu1 }
 0x683   : > { %v7097_v10 = vmax.f32 %v7096_v40, %v5837_v1 }
 0x684   : > { %v7077_v12 = vrot.slane %v7076_v36, 4  ;;  %v5208_v52 = vpop.f32.mrb[88].mxu0 }
 0x685   : > { %v7098_v45 = vrot.slane %v7097_v10, 4  ;;  %v7195_v0 = vmax.f32 %v7194_v28, %v5208_v52  ;;  %v5210_v44 = vpop.f32.mrb[89].mxu0 }
 0x686   : > { %v7078_v29 = vmax.f32 %v7076_v36, %v7077_v12  ;;  %v7216_v58 = vmax.f32 %v7215_v59, %v5210_v44  ;;  %v5212_v24 = vpop.f32.mrb[90].mxu0 }
 0x687   : > { %v7099_v14 = vmax.f32 %v7097_v10, %v7098_v45  ;;  %v7196_v23 = vmax.f32 %v7195_v0, %v5212_v24  ;;  %v5214_v62 = vpop.f32.mrb[91].mxu0  ;;  %v5841_v11 = vpop.f32.mrb[120].mxu1 }
 0x688   : > { %v7079_v8 = vrot.slane %v7078_v29, 2  ;;  %v7217_v57 = vmax.f32 %v7216_v58, %v5214_v62  ;;  %v5843_v42 = vpop.f32.mrb[121].mxu1 }
 0x689   : > { %v7100_v27 = vrot.slane %v7099_v14, 2  ;;  %v5845_v55 = vpop.f32.mrb[122].mxu1 }
 0x68a   : > { %v7080_v50 = vmax.f32 %v7078_v29, %v7079_v8  ;;  %v7230_v6 = vmax.f32 %v5841_v11, %v5845_v55  ;;  %v5847_v15 = vpop.f32.mrb[123].mxu1 }
 0x68b   : > { %v7101_v46 = vmax.f32 %v7099_v14, %v7100_v27  ;;  %v7251_v33 = vmax.f32 %v5843_v42, %v5847_v15 }
 0x68c   : > { %v7081_v21 = vrot.slane %v7080_v50, 1  ;;  %v5218_v60 = vpop.f32.mrb[92].mxu0 }
 0x68d   : > { %v7102_v25 = vrot.slane %v7101_v46, 1  ;;  %v7197_v4 = vmax.f32 %v7196_v23, %v5218_v60  ;;  %v5220_v3 = vpop.f32.mrb[93].mxu0 }
 0x68e   : > { %v7082_v48 = vmax.f32 %v7080_v50, %v7081_v21  ;;  %v7218_v30 = vmax.f32 %v7217_v57, %v5220_v3  ;;  %v5222_v22 = vpop.f32.mrb[94].mxu0 }
 0x68f   : > { %v7103_v47 = vmax.f32 %v7101_v46, %v7102_v25  ;;  %v7198_v39 = vmax.f32 %v7197_v4, %v5222_v22  ;;  %v5224_v17 = vpop.f32.mrb[95].mxu0  ;;  %v5851_v61 = vpop.f32.mrb[124].mxu1  ;;  %v7454_v25 = vsub.s32 4, %v13567_v2 }
 0x690   : > { %v14066_v43 = vsel %vm7346_vm8, %v7082_v48, %v14002_v32  ;;  %v7219_v31 = vmax.f32 %v7218_v30, %v5224_v17  ;;  %v7231_v41 = vmax.f32 %v7230_v6, %v5851_v61  ;;  %v5853_v9 = vpop.f32.mrb[125].mxu1  ;;  %v7458_v30 = vsub.s32 5, %v13567_v2 }
 0x691   : > { %v7252_v16 = vmax.f32 %v7251_v33, %v5853_v9  ;;  %v5855_v7 = vpop.f32.mrb[126].mxu1  ;;  %v14070_v51 = vsel %vm7346_vm8, %v7103_v47, %v14009_v37 }
 0x692   : > { %v7232_v13 = vmax.f32 %v7231_v41, %v5855_v7  ;;  %v5857_v34 = vpop.f32.mrb[127].mxu1  ;;  %v14077_v41 = vld [vmem:[%s14616_s6] sm:$0xff] }
 0x693   : > { %v7253_v63 = vmax.f32 %v7252_v16, %v5857_v34  ;;  %v7455_v9 = vrot.slane %v14077_v41, %v7454_v25  ;;  %v11549_v25 = vld [vmem:[%s14617_s7 + $0x660] ss:$16 sps:$4 sm:$0xff]  }
 0x694   : > { %v5228_v28 = vpop.f32.mrb[96].mxu0 }
 0x695   : > { %v7199_v53 = vmax.f32 %v7198_v39, %v5228_v28  ;;  %v5230_v18 = vpop.f32.mrb[97].mxu0  ;;  %v7459_v28 = vrot.slane %v14077_v41, %v7458_v30  ;;  %v11557_v30 = vld [vmem:[%s14617_s7 + $0x684] ss:$16 sps:$4 sm:$0xff]  }
 0x696   : > { %v7220_v59 = vmax.f32 %v7219_v31, %v5230_v18  ;;  %v5232_v35 = vpop.f32.mrb[98].mxu0 }
 0x697   : > { %v7200_v19 = vmax.f32 %v7199_v53, %v5232_v35  ;;  %v5234_v32 = vpop.f32.mrb[99].mxu0  ;;  %v5861_v40 = vpop.f32.mrb[128].mxu1 }
 0x698   : > { %v7221_v54 = vmax.f32 %v7220_v59, %v5234_v32  ;;  %v7233_v36 = vmax.f32 %v7232_v13, %v5861_v40  ;;  %v5863_v1 = vpop.f32.mrb[129].mxu1 }
 0x699   : > { %v7254_v10 = vmax.f32 %v7253_v63, %v5863_v1  ;;  %v5865_v12 = vpop.f32.mrb[130].mxu1 }
 0x69a   : > { %v7234_v52 = vmax.f32 %v7233_v36, %v5865_v12  ;;  %v5867_v45 = vpop.f32.mrb[131].mxu1 }
 0x69b   : > { %v7255_v37 = vmax.f32 %v7254_v10, %v5867_v45 }
 0x69c   : > { %v5238_v0 = vpop.f32.mrb[100].mxu0 }
 0x69d   : > { %v7201_v44 = vmax.f32 %v7200_v19, %v5238_v0  ;;  %v5240_v29 = vpop.f32.mrb[101].mxu0 }
 0x69e   : > { %v7222_v58 = vmax.f32 %v7221_v54, %v5240_v29  ;;  %v5242_v24 = vpop.f32.mrb[102].mxu0  ;;  %v11539_v29 = vld [vmem:[%s14617_s7 + $0x624] ss:$16 sps:$4 sm:$0xff]  }
 0x69f   : > { %v7202_v14 = vmax.f32 %v7201_v44, %v5242_v24  ;;  %v5244_v23 = vpop.f32.mrb[103].mxu0  ;;  %v5871_v62 = vpop.f32.mrb[132].mxu1 }
 0x6a0   : > { %v7223_v11 = vmax.f32 %v7222_v58, %v5244_v23  ;;  %v7235_v8 = vmax.f32 %v7234_v52, %v5871_v62  ;;  %v5873_v57 = vpop.f32.mrb[133].mxu1  ;;  %v11542_v58 = vld [vmem:[%s14617_s7 + $0x62c] ss:$16 sps:$4 sm:$0xff]   ;;  %v11540_v23 = vld [vmem:[%s14617_s7 + $0x628] ss:$16 sps:$4 sm:$0xff]  }
 0x6a1   : > { %v7203_v42 = vrot.slane %v7202_v14, 4  ;;  %v7256_v27 = vmax.f32 %v7255_v37, %v5873_v57  ;;  %v5875_v55 = vpop.f32.mrb[134].mxu1  ;;  %v11548_v57 = vld [vmem:[%s14617_s7 + $0x64c] ss:$16 sps:$4 sm:$0xff]  }
 0x6a2   : > { %v7224_v50 = vrot.slane %v7223_v11, 4  ;;  %v7236_v6 = vmax.f32 %v7235_v8, %v5875_v55  ;;  %v5877_v15 = vpop.f32.mrb[135].mxu1  ;;  %v11545_v8 = vld [vmem:[%s14617_s7 + $0x644] ss:$16 sps:$4 sm:$0xff]  }
 0x6a3   : > { %v7204_v46 = vmax.f32 %v7202_v14, %v7203_v42  ;;  %v7257_v33 = vmax.f32 %v7256_v27, %v5877_v15  ;;  %v11537_v14 = vld [vmem:[%s14617_s7 + $0x620] ss:$16 sps:$4 sm:$0xff]  }
 0x6a4   : > { %v7225_v21 = vmax.f32 %v7223_v11, %v7224_v50  ;;  %v11543_v15 = vld [vmem:[%s14617_s7 + $0x640] ss:$16 sps:$4 sm:$0xff]  }
 0x6a5   : > { %v7205_v60 = vrot.slane %v7204_v46, 2 }
 0x6a6   : > { %v7226_v4 = vrot.slane %v7225_v21, 2 }
 0x6a7   : > { %v7206_v3 = vmax.f32 %v7204_v46, %v7205_v60  ;;  %v5881_v48 = vpop.f32.mrb[136].mxu1  ;;  %v11546_v46 = vld [vmem:[%s14617_s7 + $0x648] ss:$16 sps:$4 sm:$0xff]  }
 0x6a8   : > { %v7227_v22 = vmax.f32 %v7225_v21, %v7226_v4  ;;  %v7237_v47 = vmax.f32 %v7236_v6, %v5881_v48  ;;  %v5883_v39 = vpop.f32.mrb[137].mxu1  ;;  %v11554_v21 = vld [vmem:[%s14617_s7 + $0x66c] ss:$16 sps:$4 sm:$0xff]   ;;  %v11552_v4 = vld [vmem:[%s14617_s7 + $0x668] ss:$16 sps:$4 sm:$0xff]  }
 0x6a9   : > { %v7207_v17 = vrot.slane %v7206_v3, 1  ;;  %v7258_v61 = vmax.f32 %v7257_v33, %v5883_v39  ;;  %v5885_v31 = vpop.f32.mrb[138].mxu1  ;;  %v11551_v33 = vld [vmem:[%s14617_s7 + $0x664] ss:$16 sps:$4 sm:$0xff]  }
 0x6aa   : > { %v7228_v16 = vrot.slane %v7227_v22, 1  ;;  %v7238_v7 = vmax.f32 %v7237_v47, %v5885_v31  ;;  %v5887_v13 = vpop.f32.mrb[139].mxu1 }
 0x6ab   : > { %v7208_v34 = vmax.f32 %v7206_v3, %v7207_v17  ;;  %v7259_v63 = vmax.f32 %v7258_v61, %v5887_v13  ;;  %v11563_v13 = vld [vmem:[%s14617_s7 + $0x6a4] ss:$16 sps:$4 sm:$0xff]  }
 0x6ac   : > { %v7229_v53 = vmax.f32 %v7227_v22, %v7228_v16  ;;  %v11560_v22 = vld [vmem:[%s14617_s7 + $0x68c] ss:$16 sps:$4 sm:$0xff]   ;;  %v11558_v16 = vld [vmem:[%s14617_s7 + $0x688] ss:$16 sps:$4 sm:$0xff]  }
 0x6ad   : > { %v7377_v18 = vsel %vm7348_vm9, %v7208_v34, %v14052_v56  ;;  %v11531_v56 = vld [vmem:[%s14617_s7 + $0x600] ss:$16 sps:$4 sm:$0xff]   ;;  %v11566_v34 = vld [vmem:[%s14617_s7 + $0x6ac] ss:$16 sps:$4 sm:$0xff]  }
 0x6ae   : > { %v7480_v59 = vadd.f32 %v7455_v9, %v7377_v18  ;;  %v7384_v35 = vsel %vm7348_vm9, %v7229_v53, %v14059_v38  ;;  %v11534_v38 = vld [vmem:[%s14617_s7 + $0x608] ss:$16 sps:$4 sm:$0xff]   ;;  %v11555_v9 = vld [vmem:[%s14617_s7 + $0x680] ss:$16 sps:$4 sm:$0xff]  }
 0x6af   : > { %v5891_v19 = vpop.f32.mrb[140].mxu1  ;;  %v7481_v32 = vadd.f32 %v7459_v28, %v7384_v35  ;;  %v11561_v18 = vld [vmem:[%s14617_s7 + $0x6a0] ss:$16 sps:$4 sm:$0xff]  }
 0x6b0   : > { %v7488_v40 = vmax.f32 %v7480_v59, 0.0  ;;  %v7239_v54 = vmax.f32 %v7238_v7, %v5891_v19  ;;  %v5893_v36 = vpop.f32.mrb[141].mxu1  ;;  %v11564_v59 = vld [vmem:[%s14617_s7 + $0x6a8] ss:$16 sps:$4 sm:$0xff]   ;;  %v11569_v19 = vld [vmem:[%s14617_s7 + $0x6c4] ss:$16 sps:$4 sm:$0xff]  }
 0x6b1   : > { %v7260_v1 = vmax.f32 %v7259_v63, %v5893_v36  ;;  %v5895_v10 = vpop.f32.mrb[142].mxu1  ;;  %v7489_v12 = vmax.f32 %v7481_v32, 0.0  ;;  %v11572_v32 = vld [vmem:[%s14617_s7 + $0x6cc] ss:$16 sps:$4 sm:$0xff]   ;;  %v7466_v36 = vsub.s32 7, %v13567_v2 }
 0x6b2   : > { %v7240_v52 = vmax.f32 %v7239_v54, %v5895_v10  ;;  %v5897_v45 = vpop.f32.mrb[143].mxu1  ;;  %v7496_v44 = vpack.c.bf16 %v7488_v40, %v7488_v40  ;;  %v11567_v10 = vld [vmem:[%s14617_s7 + $0x6c0] ss:$16 sps:$4 sm:$0xff]  }
 0x6b3   : > { %v7261_v37 = vmax.f32 %v7260_v1, %v5897_v45  ;;  %v7497_v0 = vpack.c.bf16 %v7489_v12, %v7489_v12  ;;  %v11570_v12 = vld [vmem:[%s14617_s7 + $0x6c8] ss:$16 sps:$4 sm:$0xff]   ;;  %v11575_v45 = vld [vmem:[%s14617_s7 + $0x6e4] ss:$16 sps:$4 sm:$0xff]  }
 0x6b5   : > { %9172 = vmatprep.mubr.bf16.mxu0 %v7497_v0  ;;  %9336 = vmatprep.mubr.bf16.mxu1 %v7497_v0 }
 0x6b6   : > { %9173 = vmatmul.mubr.bf16.vlgmr.msra.gmra.mrb[104].mxu0 %v7496_v44  ;;  %9337 = vmatmul.mubr.bf16.vlgmr.msra.gmra.mrb[152].mxu1 %v7496_v44 }
 0x6b7   : > { %9182 = vmatpush1.bf16.msra.mxu0 %v11531_v56  ;;  %9346 = vmatpush1.bf16.msra.mxu1 %v11534_v38  ;;  %v5901_v24 = vpop.f32.mrb[144].mxu1  ;;  %v7467_v38 = vrot.slane %v14077_v41, %v7466_v36  ;;  %v11635_v36 = vld [vmem:[%s14619_s9 + $0x24] ss:$8 sps:$4 sm:$0xff]  }
 0x6b8   : > { %v7241_v62 = vmax.f32 %v7240_v52, %v5901_v24  ;;  %v5903_v11 = vpop.f32.mrb[145].mxu1  ;;  %9183 = vmatprep.subr.bf16.mxu0 %v11539_v29  ;;  %9347 = vmatprep.subr.bf16.mxu1 %v11542_v58  ;;  %v11573_v29 = vld [vmem:[%s14617_s7 + $0x6e0] ss:$16 sps:$4 sm:$0xff]   ;;  %v11576_v58 = vld [vmem:[%s14617_s7 + $0x6e8] ss:$16 sps:$4 sm:$0xff]  }
 0x6b9   : > { %v7262_v42 = vmax.f32 %v7261_v37, %v5903_v11  ;;  %v5905_v27 = vpop.f32.mrb[146].mxu1  ;;  %v11578_v37 = vld [vmem:[%s14617_s7 + $0x6ec] ss:$16 sps:$4 sm:$0xff]  }
 0x6ba   : > { %v7242_v55 = vmax.f32 %v7241_v62, %v5905_v27  ;;  %v5907_v50 = vpop.f32.mrb[147].mxu1 }
 0x6bb   : > { %v7263_v6 = vmax.f32 %v7262_v42, %v5907_v50  ;;  %9184 = vmatpush1.bf16.msra.mxu0 %v11537_v14  ;;  %9348 = vmatpush1.bf16.msra.mxu1 %v11540_v23  ;;  %v11581_v14 = vld [vmem:[%s14617_s7 + $0x704] ss:$16 sps:$4 sm:$0xff]   ;;  %v11584_v23 = vld [vmem:[%s14617_s7 + $0x70c] ss:$16 sps:$4 sm:$0xff]   ;;  %v11588_v50 = vld [vmem:[%s14617_s7 + $0x728] ss:$16 sps:$4 sm:$0xff]  }
 0x6bc   : > { %9185 = vmatprep.subr.bf16.mxu0 %v11545_v8  ;;  %9349 = vmatprep.subr.bf16.mxu1 %v11548_v57  ;;  %v11582_v8 = vld [vmem:[%s14617_s7 + $0x708] ss:$16 sps:$4 sm:$0xff]   ;;  %v11587_v42 = vld [vmem:[%s14617_s7 + $0x724] ss:$16 sps:$4 sm:$0xff]  }
 0x6bf   : > { %9186 = vmatpush1.bf16.msra.mxu0 %v11543_v15  ;;  %9350 = vmatpush1.bf16.msra.mxu1 %v11546_v46  ;;  %v5911_v60 = vpop.f32.mrb[148].mxu1  ;;  %v11596_v15 = vld [vmem:[%s14617_s7 + $0x74c] ss:$16 sps:$4 sm:$0xff]   ;;  %v11591_v46 = vld [vmem:[%s14617_s7 + $0x740] ss:$16 sps:$4 sm:$0xff]  }
 0x6c0   : > { %v7243_v3 = vmax.f32 %v7242_v55, %v5911_v60  ;;  %v5913_v48 = vpop.f32.mrb[149].mxu1  ;;  %9187 = vmatprep.subr.bf16.mxu0 %v11551_v33  ;;  %9351 = vmatprep.subr.bf16.mxu1 %v11554_v21  ;;  %v11585_v55 = vld [vmem:[%s14617_s7 + $0x720] ss:$16 sps:$4 sm:$0xff]   ;;  %v11594_v33 = vld [vmem:[%s14617_s7 + $0x748] ss:$16 sps:$4 sm:$0xff]  }
 0x6c1   : > { %v7264_v47 = vmax.f32 %v7263_v6, %v5913_v48  ;;  %v5915_v39 = vpop.f32.mrb[150].mxu1  ;;  %v11593_v6 = vld [vmem:[%s14617_s7 + $0x744] ss:$16 sps:$4 sm:$0xff]   ;;  %v11602_v60 = vld [vmem:[%s14617_s7 + $0x76c] ss:$16 sps:$4 sm:$0xff]  }
 0x6c2   : > { %v7244_v17 = vmax.f32 %v7243_v3, %v5915_v39  ;;  %v5917_v61 = vpop.f32.mrb[151].mxu1  ;;  %v11599_v21 = vld [vmem:[%s14617_s7 + $0x764] ss:$16 sps:$4 sm:$0xff]   ;;  %v11608_v48 = vld [vmem:[%s14617_s7 + $0x78c] ss:$16 sps:$4 sm:$0xff]  }
 0x6c3   : > { %v7265_v31 = vmax.f32 %v7264_v47, %v5917_v61  ;;  %9188 = vmatpush1.bf16.msra.mxu0 %v11549_v25  ;;  %9352 = vmatpush1.bf16.msra.mxu1 %v11552_v4  ;;  %v11597_v25 = vld [vmem:[%s14617_s7 + $0x760] ss:$16 sps:$4 sm:$0xff]   ;;  %v11600_v4 = vld [vmem:[%s14617_s7 + $0x768] ss:$16 sps:$4 sm:$0xff]   ;;  %v11605_v3 = vld [vmem:[%s14617_s7 + $0x784] ss:$16 sps:$4 sm:$0xff]  }
 0x6c4   : > { %v7245_v7 = vrot.slane %v7244_v17, 4  ;;  %9189 = vmatprep.subr.bf16.mxu0 %v11557_v30  ;;  %9353 = vmatprep.subr.bf16.mxu1 %v11560_v22  ;;  %v11603_v30 = vld [vmem:[%s14617_s7 + $0x780] ss:$16 sps:$4 sm:$0xff]   ;;  %v11606_v22 = vld [vmem:[%s14617_s7 + $0x788] ss:$16 sps:$4 sm:$0xff]   ;;  %v7462_v47 = vsub.s32 6, %v13567_v2 }
 0x6c5   : > { %v7266_v63 = vrot.slane %v7265_v31, 4  ;;  %v11611_v39 = vld [vmem:[%s14617_s7 + $0x7a4] ss:$16 sps:$4 sm:$0xff]   ;;  %v11609_v61 = vld [vmem:[%s14617_s7 + $0x7a0] ss:$16 sps:$4 sm:$0xff]  }
 0x6c6   : > { %v7246_v28 = vmax.f32 %v7244_v17, %v7245_v7  ;;  %v11614_v17 = vld [vmem:[%s14617_s7 + $0x7ac] ss:$16 sps:$4 sm:$0xff]   ;;  %v11720_v2 = vld [vmem:[%s14619_s9 + $0x1f0] ss:$8 sps:$4 sm:$0xff]  }
 0x6c7   : > { %v7267_v53 = vmax.f32 %v7265_v31, %v7266_v63  ;;  %9190 = vmatpush1.bf16.msra.mxu0 %v11555_v9  ;;  %9354 = vmatpush1.bf16.msra.mxu1 %v11558_v16  ;;  %v11612_v31 = vld [vmem:[%s14617_s7 + $0x7a8] ss:$16 sps:$4 sm:$0xff]   ;;  %v7463_v9 = vrot.slane %v14077_v41, %v7462_v47  ;;  %v11617_v16 = vld [vmem:[%s14617_s7 + $0x7c4] ss:$16 sps:$4 sm:$0xff]   ;;  %v11620_v7 = vld [vmem:[%s14617_s7 + $0x7cc] ss:$16 sps:$4 sm:$0xff]  }
 0x6c8   : > { %v7247_v35 = vrot.slane %v7246_v28, 2  ;;  %9191 = vmatprep.subr.bf16.mxu0 %v11563_v13  ;;  %9355 = vmatprep.subr.bf16.mxu1 %v11566_v34  ;;  %v11615_v13 = vld [vmem:[%s14617_s7 + $0x7c0] ss:$16 sps:$4 sm:$0xff]   ;;  %v11618_v41 = vld [vmem:[%s14617_s7 + $0x7c8] ss:$16 sps:$4 sm:$0xff]  }
 0x6c9   : > { %v7268_v40 = vrot.slane %v7267_v53, 2  ;;  %v11623_v63 = vld [vmem:[%s14617_s7 + $0x7e4] ss:$16 sps:$4 sm:$0xff]  }
 0x6ca   : > { %v7248_v54 = vmax.f32 %v7246_v28, %v7247_v35  ;;  %v11626_v28 = vld [vmem:[%s14617_s7 + $0x7ec] ss:$16 sps:$4 sm:$0xff]   ;;  %v9876_v47 = vld [vmem:[%s14621_s11 + $0x10] sm:$0xff] }
 0x6cb   : > { %v7269_v1 = vmax.f32 %v7267_v53, %v7268_v40  ;;  %9192 = vmatpush1.bf16.msra.mxu0 %v11561_v18  ;;  %9356 = vmatpush1.bf16.msra.mxu1 %v11564_v59  ;;  %v11621_v53 = vld [vmem:[%s14617_s7 + $0x7e0] ss:$16 sps:$4 sm:$0xff]   ;;  %v11624_v18 = vld [vmem:[%s14617_s7 + $0x7e8] ss:$16 sps:$4 sm:$0xff]   ;;  %v11629_v35 = vld [vmem:[%s14619_s9 + $0x4] ss:$8 sps:$4 sm:$0xff]  }
 0x6cc   : > { %v7249_v52 = vrot.slane %v7248_v54, 1  ;;  %9193 = vmatprep.subr.bf16.mxu0 %v11569_v19  ;;  %9357 = vmatprep.subr.bf16.mxu1 %v11572_v32  ;;  %v11627_v19 = vld [vmem:[%s14619_s9] ss:$8 sps:$4 sm:$0xff]   ;;  %v11632_v40 = vld [vmem:[%s14619_s9 + $0x14] ss:$8 sps:$4 sm:$0xff]  }
 0x6cd   : > { %v7270_v0 = vrot.slane %v7269_v1, 1 }
 0x6ce   : > { %v7250_v56 = vmax.f32 %v7248_v54, %v7249_v52  ;;  %v11630_v54 = vld [vmem:[%s14619_s9 + $0x10] ss:$8 sps:$4 sm:$0xff]   ;;  %v11641_v52 = vld [vmem:[%s14619_s9 + $0x44] ss:$8 sps:$4 sm:$0xff]  }
 0x6cf   : > { %v7271_v44 = vmax.f32 %v7269_v1, %v7270_v0  ;;  %9194 = vmatpush1.bf16.msra.mxu0 %v11567_v10  ;;  %9358 = vmatpush1.bf16.msra.mxu1 %v11570_v12  ;;  %v11633_v1 = vld [vmem:[%s14619_s9 + $0x20] ss:$8 sps:$4 sm:$0xff]   ;;  %v11638_v10 = vld [vmem:[%s14619_s9 + $0x34] ss:$8 sps:$4 sm:$0xff]   ;;  %v11636_v12 = vld [vmem:[%s14619_s9 + $0x30] ss:$8 sps:$4 sm:$0xff]  }
 0x6d0   : > { %v14179_v24 = vsel %vm7348_vm9, %v7250_v56, %v14066_v43  ;;  %9195 = vmatprep.subr.bf16.mxu0 %v11575_v45  ;;  %9359 = vmatprep.subr.bf16.mxu1 %v11578_v37  ;;  %v11579_v43 = vld [vmem:[%s14617_s7 + $0x700] ss:$16 sps:$4 sm:$0xff]   ;;  %v11644_v37 = vld [vmem:[%s14619_s9 + $0x54] ss:$8 sps:$4 sm:$0xff]   ;;  %v11647_v56 = vld [vmem:[%s14619_s9 + $0x64] ss:$8 sps:$4 sm:$0xff]  }
 0x6d1   : > { %v7398_v62 = vsel %vm7348_vm9, %v7271_v44, %v14070_v51  ;;  %v11590_v51 = vld [vmem:[%s14617_s7 + $0x72c] ss:$16 sps:$4 sm:$0xff]   ;;  %v7482_v34 = vadd.f32 %v7463_v9, %v14179_v24  ;;  %v11639_v45 = vld [vmem:[%s14619_s9 + $0x40] ss:$8 sps:$4 sm:$0xff]   ;;  %v11642_v0 = vld [vmem:[%s14619_s9 + $0x50] ss:$8 sps:$4 sm:$0xff]  }
 0x6d2   : > { %v7483_v11 = vadd.f32 %v7467_v38, %v7398_v62  ;;  %v11645_v38 = vld [vmem:[%s14619_s9 + $0x60] ss:$8 sps:$4 sm:$0xff]   ;;  %v11650_v44 = vld [vmem:[%s14619_s9 + $0x74] ss:$8 sps:$4 sm:$0xff]   ;;  %v11659_v62 = vld [vmem:[%s14619_s9 + $0xa4] ss:$8 sps:$4 sm:$0xff]  }
 0x6d3   : > { %9196 = vmatpush1.bf16.msra.mxu0 %v11573_v29  ;;  %9360 = vmatpush1.bf16.msra.mxu1 %v11576_v58  ;;  %v7490_v59 = vmax.f32 %v7482_v34, 0.0  ;;  %v11648_v29 = vld [vmem:[%s14619_s9 + $0x70] ss:$8 sps:$4 sm:$0xff]   ;;  %v11653_v58 = vld [vmem:[%s14619_s9 + $0x84] ss:$8 sps:$4 sm:$0xff]  }
 0x6d4   : > { %9197 = vmatprep.subr.bf16.mxu0 %v11581_v14  ;;  %9361 = vmatprep.subr.bf16.mxu1 %v11584_v23  ;;  %v7491_v57 = vmax.f32 %v7483_v11, 0.0  ;;  %v11651_v24 = vld [vmem:[%s14619_s9 + $0x80] ss:$8 sps:$4 sm:$0xff]   ;;  %v11656_v14 = vld [vmem:[%s14619_s9 + $0x94] ss:$8 sps:$4 sm:$0xff]  }
 0x6d5   : > { %v7498_v32 = vpack.c.bf16 %v7490_v59, %v7490_v59  ;;  %v11654_v23 = vld [vmem:[%s14619_s9 + $0x90] ss:$8 sps:$4 sm:$0xff]   ;;  %v11657_v11 = vld [vmem:[%s14619_s9 + $0xa0] ss:$8 sps:$4 sm:$0xff]  }
 0x6d6   : > { %v7499_v27 = vpack.c.bf16 %v7491_v57, %v7491_v57  ;;  %v11665_v57 = vld [vmem:[%s14619_s9 + $0xc4] ss:$8 sps:$4 sm:$0xff]  }
 0x6d7   : > { %9198 = vmatpush1.bf16.msra.mxu0 %v11579_v43  ;;  %9362 = vmatpush1.bf16.msra.mxu1 %v11582_v8  ;;  %v11662_v43 = vld [vmem:[%s14619_s9 + $0xb4] ss:$8 sps:$4 sm:$0xff]   ;;  %v11660_v8 = vld [vmem:[%s14619_s9 + $0xb0] ss:$8 sps:$4 sm:$0xff]   ;;  %v9899_v59 = vld [vmem:[%s14621_s11 + $0xc8] sm:$0xff] }
 0x6d8   : > { %9213 = vmatprep.mubr.bf16.mxu0 %v7499_v27  ;;  %9377 = vmatprep.mubr.bf16.mxu1 %v7499_v27  ;;  %v11666_v27 = vld [vmem:[%s14619_s9 + $0xd0] ss:$8 sps:$4 sm:$0xff]  }
 0x6d9   : > { %9199 = vmatprep.subr.bf16.mxu0 %v11587_v42  ;;  %9363 = vmatprep.subr.bf16.mxu1 %v11590_v51  ;;  %v11663_v42 = vld [vmem:[%s14619_s9 + $0xc0] ss:$8 sps:$4 sm:$0xff]   ;;  %v11668_v51 = vld [vmem:[%s14619_s9 + $0xd4] ss:$8 sps:$4 sm:$0xff]  }
 0x6db   : > { %9200 = vmatpush1.bf16.msra.mxu0 %v11585_v55  ;;  %9364 = vmatpush1.bf16.msra.mxu1 %v11588_v50  ;;  %v11671_v55 = vld [vmem:[%s14619_s9 + $0xe4] ss:$8 sps:$4 sm:$0xff]   ;;  %v11669_v50 = vld [vmem:[%s14619_s9 + $0xe0] ss:$8 sps:$4 sm:$0xff]  }
 0x6dc   : > { %9201 = vmatprep.subr.bf16.mxu0 %v11593_v6  ;;  %9365 = vmatprep.subr.bf16.mxu1 %v11596_v15  ;;  %v11674_v6 = vld [vmem:[%s14619_s9 + $0xf4] ss:$8 sps:$4 sm:$0xff]   ;;  %v11672_v15 = vld [vmem:[%s14619_s9 + $0xf0] ss:$8 sps:$4 sm:$0xff]  }
 0x6df   : > { %9202 = vmatpush1.bf16.msra.mxu0 %v11591_v46  ;;  %9366 = vmatpush1.bf16.msra.mxu1 %v11594_v33  ;;  %v11677_v46 = vld [vmem:[%s14619_s9 + $0x104] ss:$8 sps:$4 sm:$0xff]  }
 0x6e0   : > { %9203 = vmatprep.subr.bf16.mxu0 %v11599_v21  ;;  %9367 = vmatprep.subr.bf16.mxu1 %v11602_v60  ;;  %v9890_v33 = vld [vmem:[%s14621_s11 + $0x80] sm:$0xff]  ;;  %v9891_v21 = vld [vmem:[%s14621_s11 + $0x88] sm:$0xff] }
 0x6e1   : > { %v9874_v60 = vld [vmem:[%s14621_s11] sm:$0xff] }
 0x6e3   : > { %9204 = vmatpush1.bf16.msra.mxu0 %v11597_v25  ;;  %9368 = vmatpush1.bf16.msra.mxu1 %v11600_v4  ;;  %v11080_v25 = vpack.c.bf16 %v9891_v21, %v9890_v33  ;;  %v9875_v4 = vld [vmem:[%s14621_s11 + $0x8] sm:$0xff]  ;;  %v11680_v33 = vld [vmem:[%s14619_s9 + $0x114] ss:$8 sps:$4 sm:$0xff]  }
 0x6e4   : > { %9205 = vmatprep.subr.bf16.mxu0 %v11605_v3  ;;  %9369 = vmatprep.subr.bf16.mxu1 %v11608_v48  ;;  %v9892_v3 = vld [vmem:[%s14621_s11 + $0x90] sm:$0xff]  ;;  %v9893_v48 = vld [vmem:[%s14621_s11 + $0x98] sm:$0xff] }
 0x6e7   : > { %9206 = vmatpush1.bf16.msra.mxu0 %v11603_v30  ;;  %9370 = vmatpush1.bf16.msra.mxu1 %v11606_v22  ;;  %v11082_v30 = vpack.c.bf16 %v9875_v4, %v9874_v60  ;;  %v11084_v22 = vpack.c.bf16 %v9893_v48, %v9892_v3  ;;  %v11678_v60 = vld [vmem:[%s14619_s9 + $0x110] ss:$8 sps:$4 sm:$0xff]   ;;  %v11681_v4 = vld [vmem:[%s14619_s9 + $0x120] ss:$8 sps:$4 sm:$0xff]   ;;  %v11686_v3 = vld [vmem:[%s14619_s9 + $0x134] ss:$8 sps:$4 sm:$0xff]  }
 0x6e8   : > { %9207 = vmatprep.subr.bf16.mxu0 %v11611_v39  ;;  %9371 = vmatprep.subr.bf16.mxu1 %v11614_v17  ;;  %v9877_v39 = vld [vmem:[%s14621_s11 + $0x18] sm:$0xff]  ;;  %v9894_v17 = vld [vmem:[%s14621_s11 + $0xa0] sm:$0xff] }
 0x6e9   : > { %v11684_v48 = vld [vmem:[%s14619_s9 + $0x130] ss:$8 sps:$4 sm:$0xff]  }
 0x6eb   : > { %9208 = vmatpush1.bf16.msra.mxu0 %v11609_v61  ;;  %9372 = vmatpush1.bf16.msra.mxu1 %v11612_v31  ;;  %v9895_v61 = vld [vmem:[%s14621_s11 + $0xa8] sm:$0xff]  ;;  %v11086_v31 = vpack.c.bf16 %v9877_v39, %v9876_v47  ;;  %v11692_v47 = vld [vmem:[%s14619_s9 + $0x154] ss:$8 sps:$4 sm:$0xff]   ;;  %v11690_v39 = vld [vmem:[%s14619_s9 + $0x150] ss:$8 sps:$4 sm:$0xff]  }
 0x6ec   : > { %9209 = vmatprep.subr.bf16.mxu0 %v11617_v16  ;;  %9373 = vmatprep.subr.bf16.mxu1 %v11620_v7  ;;  %v11088_v9 = vpack.c.bf16 %v9895_v61, %v9894_v17  ;;  %v9878_v16 = vld [vmem:[%s14621_s11 + $0x20] sm:$0xff]  ;;  %v9879_v7 = vld [vmem:[%s14621_s11 + $0x28] sm:$0xff] }
 0x6ed   : > { %v11090_v34 = vpack.c.bf16 %v9879_v7, %v9878_v16  ;;  %v11695_v17 = vld [vmem:[%s14619_s9 + $0x164] ss:$8 sps:$4 sm:$0xff]   ;;  %v11693_v61 = vld [vmem:[%s14619_s9 + $0x160] ss:$8 sps:$4 sm:$0xff]  }
 0x6ee   : > { %v11701_v16 = vld [vmem:[%s14619_s9 + $0x184] ss:$8 sps:$4 sm:$0xff]   ;;  %v11699_v7 = vld [vmem:[%s14619_s9 + $0x180] ss:$8 sps:$4 sm:$0xff]  }
 0x6ef   : > { %9210 = vmatpush1.bf16.msra.mxu0 %v11615_v13  ;;  %9374 = vmatpush1.bf16.msra.mxu1 %v11618_v41  ;;  %v9896_v13 = vld [vmem:[%s14621_s11 + $0xb0] sm:$0xff]  ;;  %v9897_v41 = vld [vmem:[%s14621_s11 + $0xb8] sm:$0xff] }
 0x6f0   : > { %9211 = vmatprep.subr.bf16.mxu0 %v11623_v63  ;;  %9375 = vmatprep.subr.bf16.mxu1 %v11626_v28  ;;  %v11092_v63 = vpack.c.bf16 %v9897_v41, %v9896_v13  ;;  %v9880_v28 = vld [vmem:[%s14621_s11 + $0x30] sm:$0xff] }
 0x6f1   : > { %v11704_v13 = vld [vmem:[%s14619_s9 + $0x194] ss:$8 sps:$4 sm:$0xff]   ;;  %v11702_v41 = vld [vmem:[%s14619_s9 + $0x190] ss:$8 sps:$4 sm:$0xff]  }
 0x6f3   : > { %9212 = vmatpush1.bf16.msra.mxu0 %v11621_v53  ;;  %9376 = vmatpush1.bf16.msra.mxu1 %v11624_v18  ;;  %v9881_v53 = vld [vmem:[%s14621_s11 + $0x38] sm:$0xff]  ;;  %v9898_v18 = vld [vmem:[%s14621_s11 + $0xc0] sm:$0xff] }
 0x6f4   : > { %9790 = vmatprep.subr.bf16.mxu0 %v11629_v35  ;;  %11081 = vmatprep.subr.bf16.mxu1 %v11080_v25  ;;  %v11094_v35 = vpack.c.bf16 %v9881_v53, %v9880_v28  ;;  %v11683_v25 = vld [vmem:[%s14619_s9 + $0x124] ss:$8 sps:$4 sm:$0xff]   ;;  %v11710_v28 = vld [vmem:[%s14619_s9 + $0x1b4] ss:$8 sps:$4 sm:$0xff]   ;;  %v11708_v53 = vld [vmem:[%s14619_s9 + $0x1b0] ss:$8 sps:$4 sm:$0xff]  }
 0x6f6   : > { %9214 = vmatmul.mubr.bf16.vlgmr.msra.gmra.mrb[104].mxu0 %v7498_v32  ;;  %9378 = vmatmul.mubr.bf16.vlgmr.msra.gmra.mrb[152].mxu1 %v7498_v32  ;;  %v9882_v32 = vld [vmem:[%s14621_s11 + $0x40] sm:$0xff] }
 0x6f7   : > { %9791 = vmatpush1.bf16.msra.mxu0 %v11627_v19  ;;  %11083 = vmatpush3.bf16.msra.mxu1 %v11082_v30  ;;  %v11096_v19 = vpack.c.bf16 %v9899_v59, %v9898_v18  ;;  %v11689_v30 = vld [vmem:[%s14619_s9 + $0x144] ss:$8 sps:$4 sm:$0xff]   ;;  %v11711_v59 = vld [vmem:[%s14619_s9 + $0x1c0] ss:$8 sps:$4 sm:$0xff]  }
 0x6f8   : > { %9792 = vmatprep.subr.bf16.mxu0 %v11632_v40  ;;  %11085 = vmatprep.subr.bf16.mxu1 %v11084_v22  ;;  %v9883_v40 = vld [vmem:[%s14621_s11 + $0x48] sm:$0xff] }
 0x6f9   : > { %v11687_v22 = vld [vmem:[%s14619_s9 + $0x140] ss:$8 sps:$4 sm:$0xff]   ;;  %v11713_v18 = vld [vmem:[%s14619_s9 + $0x1c4] ss:$8 sps:$4 sm:$0xff]  }
 0x6fb   : > { %9793 = vmatpush1.bf16.msra.mxu0 %v11630_v54  ;;  %11087 = vmatpush3.bf16.msra.mxu1 %v11086_v31  ;;  %v9900_v54 = vld [vmem:[%s14621_s11 + $0xd0] sm:$0xff] }
 0x6fc   : > { %9794 = vmatprep.subr.bf16.mxu0 %v11635_v36  ;;  %11089 = vmatprep.subr.bf16.mxu1 %v11088_v9  ;;  %v9901_v36 = vld [vmem:[%s14621_s11 + $0xd8] sm:$0xff] }
 0x6fd   : > { %v11698_v31 = vld [vmem:[%s14619_s9 + $0x174] ss:$8 sps:$4 sm:$0xff]   ;;  %v11696_v9 = vld [vmem:[%s14619_s9 + $0x170] ss:$8 sps:$4 sm:$0xff]  }
 0x6ff   : > { %9795 = vmatpush1.bf16.msra.mxu0 %v11633_v1  ;;  %11091 = vmatpush3.bf16.msra.mxu1 %v11090_v34  ;;  %v11098_v1 = vpack.c.bf16 %v9883_v40, %v9882_v32  ;;  %v11707_v34 = vld [vmem:[%s14619_s9 + $0x1a4] ss:$8 sps:$4 sm:$0xff]  }
 0x700   : > { %9796 = vmatprep.subr.bf16.mxu0 %v11638_v10  ;;  %11093 = vmatprep.subr.bf16.mxu1 %v11092_v63  ;;  %v11100_v10 = vpack.c.bf16 %v9901_v36, %v9900_v54  ;;  %v11705_v63 = vld [vmem:[%s14619_s9 + $0x1a0] ss:$8 sps:$4 sm:$0xff]   ;;  %v11719_v40 = vld [vmem:[%s14619_s9 + $0x1e4] ss:$8 sps:$4 sm:$0xff]  }
 0x701   : > { %v11717_v54 = vld [vmem:[%s14619_s9 + $0x1e0] ss:$8 sps:$4 sm:$0xff]  }
 0x703   : > { %9797 = vmatpush1.bf16.msra.mxu0 %v11636_v12  ;;  %11095 = vmatpush3.bf16.msra.mxu1 %v11094_v35  ;;  %v9884_v12 = vld [vmem:[%s14621_s11 + $0x50] sm:$0xff] }
 0x704   : > { %9798 = vmatprep.subr.bf16.mxu0 %v11641_v52  ;;  %11097 = vmatprep.subr.bf16.mxu1 %v11096_v19  ;;  %v9885_v52 = vld [vmem:[%s14621_s11 + $0x58] sm:$0xff] }
 0x705   : > { %v11716_v35 = vld [vmem:[%s14619_s9 + $0x1d4] ss:$8 sps:$4 sm:$0xff]   ;;  %v11714_v19 = vld [vmem:[%s14619_s9 + $0x1d0] ss:$8 sps:$4 sm:$0xff]  }
 0x707   : > { %9799 = vmatpush1.bf16.msra.mxu0 %v11639_v45  ;;  %v9902_v45 = vld [vmem:[%s14621_s11 + $0xe0] sm:$0xff]  ;;  %11099 = vmatpush3.bf16.msra.mxu1 %v11098_v1  ;;  %v11722_v1 = vld [vmem:[%s14619_s9 + $0x1f4] ss:$8 sps:$4 sm:$0xff]  }
 0x708   : > { %9800 = vmatprep.subr.bf16.mxu0 %v11644_v37  ;;  %v9903_v37 = vld [vmem:[%s14621_s11 + $0xe8] sm:$0xff]  ;;  %11101 = vmatprep.subr.bf16.mxu1 %v11100_v10 }
 0x70b   : > { %9801 = vmatpush1.bf16.msra.mxu0 %v11642_v0  ;;  %v11102_v0 = vpack.c.bf16 %v9885_v52, %v9884_v12  ;;  %v9886_v12 = vld [vmem:[%s14621_s11 + $0x60] sm:$0xff]  ;;  %v9887_v52 = vld [vmem:[%s14621_s11 + $0x68] sm:$0xff] }
 0x70c   : > { %9802 = vmatprep.subr.bf16.mxu0 %v11647_v56  ;;  %v11104_v56 = vpack.c.bf16 %v9903_v37, %v9902_v45  ;;  %v11106_v45 = vpack.c.bf16 %v9887_v52, %v9886_v12  ;;  %v9904_v37 = vld [vmem:[%s14621_s11 + $0xf0] sm:$0xff] }
 0x70d   : > { %11103 = vmatpush3.bf16.msra.mxu1 %v11102_v0  ;;  %v9905_v0 = vld [vmem:[%s14621_s11 + $0xf8] sm:$0xff] }
 0x70e   : > { %11105 = vmatprep.subr.bf16.mxu1 %v11104_v56  ;;  %v11108_v56 = vpack.c.bf16 %v9905_v0, %v9904_v37 }
 0x70f   : > { %9803 = vmatpush1.bf16.msra.mxu0 %v11645_v38  ;;  %v14462_v38 = vld [vmem:[%s14618_s8] sm:$0xf] }
 0x710   : > { %9804 = vmatprep.subr.bf16.mxu0 %v11650_v44  ;;  %v7761_v44 = vrot.slane %v14462_v38, %v13586_v5  ;;  %v7769_v32 = vrot.slane %v14462_v38, %v7446_v20 }
 0x711   : > { %11107 = vmatpush3.bf16.msra.mxu1 %v11106_v45 }
 0x712   : > { %11109 = vmatprep.subr.bf16.mxu1 %v11108_v56 }
 0x713   : > { %9805 = vmatpush1.bf16.msra.mxu0 %v11648_v29  ;;  %v7765_v29 = vrot.slane %v14462_v38, %v13572_v26 }
 0x714   : > { %9806 = vmatprep.subr.bf16.mxu0 %v11653_v58  ;;  %v7773_v58 = vrot.slane %v14462_v38, %v7450_v49  ;;  %v11675_v49 = vld [vmem:[%s14619_s9 + $0x100] ss:$8 sps:$4 sm:$0xff]   ;;  %v9888_v38 = vld [vmem:[%s14621_s11 + $0x70] sm:$0xff] }
 0x717   : > { %9807 = vmatpush1.bf16.msra.mxu0 %v11651_v24 }
 0x718   : > { %9808 = vmatprep.subr.bf16.mxu0 %v11656_v14 }
 0x71b   : > { %9809 = vmatpush1.bf16.msra.mxu0 %v11654_v23 }
 0x71c   : > { %9810 = vmatprep.subr.bf16.mxu0 %v11659_v62 }
 0x71f   : > { %9811 = vmatpush1.bf16.msra.mxu0 %v11657_v11 }
 0x720   : > { %9812 = vmatprep.subr.bf16.mxu0 %v11662_v43 }
 0x723   : > { %9813 = vmatpush1.bf16.msra.mxu0 %v11660_v8 }
 0x724   : > { %9814 = vmatprep.subr.bf16.mxu0 %v11665_v57 }
 0x727   : > { %9815 = vmatpush1.bf16.msra.mxu0 %v11663_v42 }
 0x728   : > { %9816 = vmatprep.subr.bf16.mxu0 %v11668_v51 }
 0x72b   : > { %9817 = vmatpush1.bf16.msra.mxu0 %v11666_v27 }
 0x72c   : > { %9818 = vmatprep.subr.bf16.mxu0 %v11671_v55 }
 0x72f   : > { %9819 = vmatpush1.bf16.msra.mxu0 %v11669_v50 }
 0x730   : > { %9820 = vmatprep.subr.bf16.mxu0 %v11674_v6 }
 0x733   : > { %9821 = vmatpush1.bf16.msra.mxu0 %v11672_v15 }
 0x734   : > { %9831 = vmatprep.subr.bf16.mxu0 %v11677_v46 }
 0x7c9   : > { %v9215_v24 = vpop.f32.mrb[104].mxu0  ;;  %v14471_v14 = vpop.f32.mrb[152].mxu1 }
 0x7ca   : > { %v11114_v23 = vadd.f32 %v9215_v24, %v7761_v44  ;;  %v9217_v62 = vpop.f32.mrb[105].mxu0  ;;  %v9381_v11 = vpop.f32.mrb[153].mxu1  ;;  %v11116_v36 = vadd.f32 %v14471_v14, %v7769_v32  ;;  %v9889_v44 = vld [vmem:[%s14621_s11 + $0x78] sm:$0xff] }
 0x7cb   : > { %v11115_v43 = vadd.f32 %v9217_v62, %v7765_v29  ;;  %v11117_v8 = vadd.f32 %v9381_v11, %v7773_v58  ;;  %v9219_v57 = vpop.f32.mrb[106].mxu0  ;;  %v9383_v42 = vpop.f32.mrb[154].mxu1  ;;  %v11110_v29 = vpack.c.bf16 %v9889_v44, %v9888_v38  ;;  %v9458_v58 = vld [vmem:[%s14620_s10] sm:$0x3] }
 0x7cc   : > { %v9386_v51 = vmax.f32 %v11114_v23, 0.0  ;;  %v9220_v27 = vpop.f32.mrb[107].mxu0  ;;  %v9384_v55 = vpop.f32.mrb[155].mxu1  ;;  %v9388_v20 = vmax.f32 %v11116_v36, 0.0  ;;  %v9463_v24 = vrot.slane %v9458_v58, %v13586_v5  ;;  %v9467_v14 = vrot.slane %v9458_v58, %v13572_v26  ;;  %v10642_v5 = vld [vmem:[%s14622_s12] ss:$0 sm:$0xff] }
 0x7cd   : > { %v9387_v50 = vmax.f32 %v11115_v43, 0.0  ;;  %v9389_v6 = vmax.f32 %v11117_v8, 0.0  ;;  %11111 = vmatpush3.bf16.msra.mxu1 %v11110_v29 }
 0x7ce   : > { %v9390_v46 = vpack.c.bf16 %v9386_v51, %v9386_v51  ;;  %v9392_v10 = vpack.c.bf16 %v9388_v20, %v9388_v20 }
 0x7cf   : > { %v9391_v15 = vpack.c.bf16 %v9387_v50, %v9387_v50  ;;  %v9393_v21 = vpack.c.bf16 %v9389_v6, %v9389_v6 }
 0x7d1   : > { %9822 = vmatprep.mubr.bf16.mxu0 %v9391_v15 }
 0x7d2   : > { %9823 = vmatmul.mubr.bf16.vlgmr.msra.gmra.mrb[108].mxu0 %v9390_v46 }
 0x7d3   : > { %9832 = vmatpush1.bf16.msra.mxu0 %v11675_v49  ;;  %9863 = vmatprep.mubr.bf16.mxu0 %v9393_v21 }
 0x7d4   : > { %9833 = vmatprep.subr.bf16.mxu0 %v11680_v33 }
 0x7d7   : > { %9834 = vmatpush1.bf16.msra.mxu0 %v11678_v60 }
 0x7d8   : > { %9835 = vmatprep.subr.bf16.mxu0 %v11683_v25 }
 0x7db   : > { %9836 = vmatpush1.bf16.msra.mxu0 %v11681_v4 }
 0x7dc   : > { %9837 = vmatprep.subr.bf16.mxu0 %v11686_v3 }
 0x7df   : > { %9838 = vmatpush1.bf16.msra.mxu0 %v11684_v48 }
 0x7e0   : > { %9839 = vmatprep.subr.bf16.mxu0 %v11689_v30 }
 0x7e3   : > { %9840 = vmatpush1.bf16.msra.mxu0 %v11687_v22 }
 0x7e4   : > { %9841 = vmatprep.subr.bf16.mxu0 %v11692_v47 }
 0x7e7   : > { %9842 = vmatpush1.bf16.msra.mxu0 %v11690_v39 }
 0x7e8   : > { %9843 = vmatprep.subr.bf16.mxu0 %v11695_v17 }
 0x7eb   : > { %9844 = vmatpush1.bf16.msra.mxu0 %v11693_v61 }
 0x7ec   : > { %9845 = vmatprep.subr.bf16.mxu0 %v11698_v31 }
 0x7ef   : > { %9846 = vmatpush1.bf16.msra.mxu0 %v11696_v9 }
 0x7f0   : > { %9847 = vmatprep.subr.bf16.mxu0 %v11701_v16 }
 0x7f3   : > { %9848 = vmatpush1.bf16.msra.mxu0 %v11699_v7 }
 0x7f4   : > { %9849 = vmatprep.subr.bf16.mxu0 %v11704_v13 }
 0x7f7   : > { %9850 = vmatpush1.bf16.msra.mxu0 %v11702_v41 }
 0x7f8   : > { %9851 = vmatprep.subr.bf16.mxu0 %v11707_v34 }
 0x7fb   : > { %9852 = vmatpush1.bf16.msra.mxu0 %v11705_v63 }
 0x7fc   : > { %9853 = vmatprep.subr.bf16.mxu0 %v11710_v28 }
 0x7ff   : > { %9854 = vmatpush1.bf16.msra.mxu0 %v11708_v53 }
 0x800   : > { %9855 = vmatprep.subr.bf16.mxu0 %v11713_v18 }
 0x803   : > { %9856 = vmatpush1.bf16.msra.mxu0 %v11711_v59 }
 0x804   : > { %9857 = vmatprep.subr.bf16.mxu0 %v11716_v35 }
 0x807   : > { %9858 = vmatpush1.bf16.msra.mxu0 %v11714_v19 }
 0x808   : > { %9859 = vmatprep.subr.bf16.mxu0 %v11719_v40 }
 0x80b   : > { %9860 = vmatpush1.bf16.msra.mxu0 %v11717_v54 }
 0x80c   : > { %9861 = vmatprep.subr.bf16.mxu0 %v11722_v1 }
 0x80f   : > { %9862 = vmatpush1.bf16.msra.mxu0 %v11720_v2 }
 0x812   : > { %9864 = vmatmul.mubr.bf16.vlgmr.msra.gmra.mrb[108].mxu0 %v9392_v10 }
 0x8e5   : > { %v9865_v23 = vpop.f32.mrb[108].mxu0 }
 0x8e6   : > { %v11118_v62 = vadd.f32 %v9865_v23, %v9463_v24  ;;  %v9867_v11 = vpop.f32.mrb[109].mxu0 }
 0x8e7   : > { %v11119_v43 = vadd.f32 %v9867_v11, %v9467_v14  ;;  %v9869_v8 = vpop.f32.mrb[110].mxu0 }
 0x8e8   : > { %v9870_v57 = vpop.f32.mrb[111].mxu0  ;;  %v9872_v51 = vmax.f32 %v11118_v62, 0.0 }
 0x8e9   : > { %v9873_v42 = vmax.f32 %v11119_v43, 0.0 }
 0x8eb   : > { %9977 = vmatprep.mubr.f32.mxu1 %v9873_v42 }
 0x8ec   : > { %9978 = vmatmul.mubr.f32.vlgmr.msra.gmra.mrb[156].mxu1 %v9872_v51 }
 0x9bf   : > { %v10811_v27 = vpop.f32.mrb[156].mxu1 }
 0x9c0   : > { %v10812_v55 = vpop.f32.mrb[157].mxu1 }
 0x9c1   : > { %v10813_v26 = vadd.f32 %v10812_v55, %v10811_v27 }
 0x9c3   : > { %v9980_v50 = vadd.f32 %v10813_v26, %v10642_v5 }
 0x9c5   : > { %9983 = vst [vmem:[%s471_s24] sm:$0xff] %v9980_v50 }
 0x9c6 PF: > { %s23_s27 = sadd.s32 1, %s11748_s27   ;;  %s14755_s25 = smov %s11744_s26 }
 0x9c7   : > { %p20_p6 = scmp.ge.s32.totalorder %s23_s27, 4   ;;  %s14756_s26 = smov %s14758_s28 }
 0x9c9   :  { %22 = sbr.rel (!%p20_p6) target bundleno = 2 (0x2), region = 110 }

</bundles_post_ra>
